<compile_context>
chip_gen: v6e
topology: v6e:2x2x1
jax: 0.10.0
libtpu: 0.0.40
codegen_flags: <defaults>
</compile_context>

<pallas_src>
import jax
import jax.numpy as jnp
from jax.experimental import pallas as pl
from jax.experimental.pallas import tpu as pltpu


def _round_up(x, m):
    return ((x + m - 1) // m) * m


def _gru_cell(gi, gh, h, H):
    """PyTorch GRU cell (gate order r, z, n).  gi/gh: [B,3H], h: [B,H].
    H is a multiple of 128 so every slice below is a lane-aligned full block."""
    r = jax.nn.sigmoid(gi[:, :H] + gh[:, :H])
    z = jax.nn.sigmoid(gi[:, H:2 * H] + gh[:, H:2 * H])
    n = jnp.tanh(gi[:, 2 * H:] + r * gh[:, 2 * H:])
    return (1.0 - z) * n + z * h


# ----------------------------------------------------------------------------
# Fused encoder kernel: bidirectional GRU + tanh(Linear) hidden bridge
# ----------------------------------------------------------------------------
def _encoder_kernel(emb_ref, xlen_ref, wih_ref, whh_ref, bih_ref, bhh_ref,
                    fcw_ref, fcb_ref, enc_out_ref, hid_ref):
    B, Tx, E = emb_ref.shape
    Hp = enc_out_ref.shape[2] // 2          # padded hidden (multiple of 128)

    # Hoisted input projection for BOTH directions: one bf16 [B*Tx,E]x[E,6Hp]
    # matmul (f32 accumulate) replaces 2*Tx tiny per-step matmuls.
    emb2 = emb_ref[...].reshape(B * Tx, E).astype(jnp.bfloat16)
    gi_all = (jnp.dot(emb2, wih_ref[...], preferred_element_type=jnp.float32)
              + bih_ref[...]).reshape(B, Tx, 6 * Hp)

    whh = whh_ref[...]                      # bf16 block-diagonal [2Hp, 6Hp]
    bhh = bhh_ref[...]
    xlen = xlen_ref[...]                    # [B, 1] int32
    hf = jnp.zeros((B, Hp), jnp.float32)
    hb = jnp.zeros((B, Hp), jnp.float32)

    # Statically unrolled serial recurrence: forward step t and backward step
    # Tx-1-t share one [B,2Hp]x[2Hp,6Hp] recurrent matmul.
    # TODO(synk): hold whh MXU-resident across steps (matmul_push_rhs/acc/pop).
    for t in range(Tx):
        tb = Tx - 1 - t
        h_cat = jnp.concatenate([hf, hb], axis=1).astype(jnp.bfloat16)
        gh = jnp.dot(h_cat, whh, preferred_element_type=jnp.float32) + bhh
        hf_new = _gru_cell(gi_all[:, t, :3 * Hp], gh[:, :3 * Hp], hf, Hp)
        hb_new = _gru_cell(gi_all[:, tb, 3 * Hp:], gh[:, 3 * Hp:], hb, Hp)
        mf = (xlen > t).astype(jnp.float32)                 # [B, 1]
        mb = (xlen > tb).astype(jnp.float32)
        # pack_padded: padded steps do not advance the hidden state,
        # pad_packed: padded output positions are zero.
        hf = mf * hf_new + (1.0 - mf) * hf
        hb = mb * hb_new + (1.0 - mb) * hb
        # Per-step lane-aligned stores (live state O(1), no end-of-loop stack).
        enc_out_ref[:, t:t + 1, :Hp] = (mf * hf_new)[:, None, :]
        enc_out_ref[:, tb:tb + 1, Hp:] = (mb * hb_new)[:, None, :]

    # hid = tanh(fc(cat(h_fwd, h_bwd)))
    h_cat = jnp.concatenate([hf, hb], axis=1).astype(jnp.bfloat16)
    hid_ref[...] = jnp.tanh(
        jnp.dot(h_cat, fcw_ref[...], preferred_element_type=jnp.float32)
        + fcb_ref[...])


def run_encoder(emb, xlen, wih, whh, bih, bhh, fc_w, fc_b, Hp, Dp):
    B, Tx, _ = emb.shape
    return pl.pallas_call(
        _encoder_kernel,
        out_shape=(jax.ShapeDtypeStruct((B, Tx, 2 * Hp), jnp.float32),
                   jax.ShapeDtypeStruct((B, Dp), jnp.float32)),
    )(emb, xlen, wih, whh, bih, bhh, fc_w, fc_b)


# ----------------------------------------------------------------------------
# Fused decoder kernel: GRU + Luong attention + projection + log_softmax
# ----------------------------------------------------------------------------
def _decoder_kernel(emb_ref, enc_ref, h0_ref, xlen_ref, ylen_ref,
                    wih_ref, whh_ref, bih_ref, bhh_ref,
                    win_ref, wo_ref, bo_ref, outw_ref, outb_ref,
                    logp_ref, hidN_ref, attn_ref, dec_scr):
    B, Ty, E = emb_ref.shape
    Tx, He2 = enc_ref.shape[1], enc_ref.shape[2]
    Dp = h0_ref.shape[1]
    Vp = outw_ref.shape[1]
    Txp = attn_ref.shape[2]

    # ---- decoder GRU with hoisted input projection --------------------------
    gi_all = (jnp.dot(emb_ref[...].reshape(B * Ty, E).astype(jnp.bfloat16),
                      wih_ref[...], preferred_element_type=jnp.float32)
              + bih_ref[...]).reshape(B, Ty, 3 * Dp)
    whh = whh_ref[...]
    bhh = bhh_ref[...]
    ylen = ylen_ref[...]                                    # [B, 1] int32
    h = h0_ref[...]
    # TODO(synk): exact PyTorch parity for the tutorial's y-length handling /
    # attention-mask variant depends on the unshown Decoder code.
    for t in range(Ty):
        gh = jnp.dot(h.astype(jnp.bfloat16), whh,
                     preferred_element_type=jnp.float32) + bhh
        h_new = _gru_cell(gi_all[:, t, :], gh, h, Dp)
        m = (ylen > t).astype(jnp.float32)
        h = m * h_new + (1.0 - m) * h
        dec_scr[:, t:t + 1, :] = (m * h_new)[:, None, :]    # per-step store
    hidN_ref[...] = h
    dec = dec_scr[...]                                      # [B, Ty, Dp]

    # ---- Luong attention, fully batched & VMEM resident ----------------------
    valid_x = jax.lax.broadcasted_iota(jnp.int32, (B, Tx), 1) < xlen_ref[...]
    ctx = enc_ref[...]                                      # [B, Tx, 2Hp]
    ctx_in = jnp.dot(ctx.reshape(B * Tx, He2).astype(jnp.bfloat16), win_ref[...],
                     preferred_element_type=jnp.float32).reshape(B, Tx, Dp)
    scores = jnp.einsum('byh,bxh->byx', dec.astype(jnp.bfloat16),
                        ctx_in.astype(jnp.bfloat16),
                        preferred_element_type=jnp.float32)  # [B, Ty, Tx]
    scores = jnp.where(valid_x[:, None, :], scores, -1e6)    # masked_fill
    scores = scores - jnp.max(scores, axis=-1, keepdims=True)
    e = jnp.exp(scores)
    attn = e * pl.reciprocal(jnp.sum(e, axis=-1, keepdims=True), approx=True)
    # Lane-dense attention store: pad the Tx axis to a 128 multiple with zeros
    # (sliced off in the wrapper).
    if Txp > Tx:
        attn_ref[...] = jnp.concatenate(
            [attn, jnp.zeros((B, Ty, Txp - Tx), jnp.float32)], axis=-1)
    else:
        attn_ref[...] = attn
    wctx = jnp.einsum('byx,bxe->bye', attn.astype(jnp.bfloat16),
                      ctx.astype(jnp.bfloat16),
                      preferred_element_type=jnp.float32)    # [B, Ty, 2Hp]

    # ---- tanh(Linear(cat(wctx, dec))) + vocab projection + log_softmax ------
    # Single folded projection matmul: feat [B*Ty, 2Hp+Dp] x wo [2Hp+Dp, Dp].
    feat = jnp.concatenate([wctx.reshape(B * Ty, He2),
                            dec.reshape(B * Ty, Dp)],
                           axis=-1).astype(jnp.bfloat16)
    o = jnp.tanh(jnp.dot(feat, wo_ref[...], preferred_element_type=jnp.float32)
                 + bo_ref[...])                              # [B*Ty, Dp]
    # TODO(synk): tile the vocab projection over a grid (two-pass log_softmax)
    # for real vocab sizes; fused is fine at Vp=128.
    logits = (jnp.dot(o.astype(jnp.bfloat16), outw_ref[...],
                      preferred_element_type=jnp.float32) + outb_ref[...])
    m_l = jnp.max(logits, axis=-1, keepdims=True)
    s = logits - m_l
    lse = jnp.log(jnp.sum(jnp.exp(s), axis=-1, keepdims=True))
    logp_ref[...] = (s - lse).reshape(B, Ty, Vp)


def run_decoder(emb_y, enc_out, h0, xlen, ylen, wih, whh, bih, bhh,
                w_in, wo_cat, b_out, out_w_pad, out_b_pad, Dp, Vp, Txp):
    B, Ty, _ = emb_y.shape
    return pl.pallas_call(
        _decoder_kernel,
        out_shape=(jax.ShapeDtypeStruct((B, Ty, Vp), jnp.float32),
                   jax.ShapeDtypeStruct((B, Dp), jnp.float32),
                   jax.ShapeDtypeStruct((B, Ty, Txp), jnp.float32)),
        scratch_shapes=[pltpu.VMEM((B, Ty, Dp), jnp.float32)],
    )(emb_y, enc_out, h0, xlen, ylen, wih, whh, bih, bhh,
      w_in, wo_cat, b_out, out_w_pad, out_b_pad)


# ----------------------------------------------------------------------------
# Glue (plain JAX): embedding gathers, weight packing/padding, wiring
# ----------------------------------------------------------------------------
def _pad_gates(w, h, hp):
    """Pad each of the 3 GRU gate blocks along the last axis from h to hp."""
    if h == hp:
        return w
    parts = []
    for g in range(3):
        blk = w[..., g * h:(g + 1) * h]
        pad = [(0, 0)] * (w.ndim - 1) + [(0, hp - h)]
        parts.append(jnp.pad(blk, pad))
    return jnp.concatenate(parts, axis=-1)


def _pad_rows(w, r, rp):
    if r == rp:
        return w
    return jnp.pad(w, [(0, rp - r)] + [(0, 0)] * (w.ndim - 1))


def _pad_cols(w, c, cp):
    if c == cp:
        return w
    return jnp.pad(w, [(0, 0)] * (w.ndim - 1) + [(0, cp - c)])


def _pad_bidir_rows(w, he, hp):
    """[2*he, N] -> [2*hp, N]: fwd rows at 0..he-1, bwd rows at hp..hp+he-1."""
    if he == hp:
        return w
    out = jnp.zeros((2 * hp,) + w.shape[1:], w.dtype)
    return out.at[:he].set(w[:he]).at[hp:hp + he].set(w[he:])


def encoder_forward(p, x, x_lengths):
    emb = p["embed_x"][x].astype(jnp.float32)               # [B, Tx, E]
    He = p["enc_whh_f"].shape[0]
    Hd = p["enc_fc_w"].shape[1]
    Hp = _round_up(He, 128)
    Dp = _round_up(Hd, 128)
    bf16 = jnp.bfloat16

    # Pack fwd/bwd gate weights: input projections side-by-side, recurrent
    # projections block-diagonal -> one MXU call covers both directions.
    wih_cat = jnp.concatenate([_pad_gates(p["enc_wih_f"], He, Hp),
                               _pad_gates(p["enc_wih_b"], He, Hp)],
                              axis=1).astype(bf16)           # [E, 6Hp] bf16
    bih_cat = jnp.concatenate([_pad_gates(p["enc_bih_f"], He, Hp),
                               _pad_gates(p["enc_bih_b"], He, Hp)], axis=1)
    bhh_cat = jnp.concatenate([_pad_gates(p["enc_bhh_f"], He, Hp),
                               _pad_gates(p["enc_bhh_b"], He, Hp)], axis=1)
    whh_f = _pad_rows(_pad_gates(p["enc_whh_f"], He, Hp), He, Hp)   # [Hp, 3Hp]
    whh_b = _pad_rows(_pad_gates(p["enc_whh_b"], He, Hp), He, Hp)
    whh_blk = (jnp.zeros((2 * Hp, 6 * Hp), jnp.float32)
               .at[:Hp, :3 * Hp].set(whh_f)
               .at[Hp:, 3 * Hp:].set(whh_b)).astype(bf16)
    fc_w = _pad_cols(_pad_bidir_rows(p["enc_fc_w"], He, Hp), Hd, Dp).astype(bf16)
    fc_b = _pad_cols(p["enc_fc_b"], Hd, Dp)
    xlen = x_lengths.astype(jnp.int32)[:, None]              # [B, 1]

    enc_out, hid = run_encoder(emb, xlen, wih_cat, whh_blk, bih_cat, bhh_cat,
                               fc_w, fc_b, Hp, Dp)
    return enc_out, hid[None]                                # hid: [1, B, Dp]


def decoder_forward(p, encoder_out, x, y, x_lengths, y_lengths, hid):
    emb = p["embed_y"][y].astype(jnp.float32)                # [B, Ty, E]
    He = p["enc_whh_f"].shape[0]
    Hd = p["dec_whh"].shape[0]
    Vy = p["out_w"].shape[1]
    Hp = _round_up(He, 128)
    Dp = _round_up(Hd, 128)
    Vp = _round_up(Vy, 128)                                  # lane-dense vocab
    Tx = x.shape[1]
    Txp = _round_up(Tx, 128)                                 # lane-dense attn
    bf16 = jnp.bfloat16

    dec_wih = _pad_gates(p["dec_wih"], Hd, Dp).astype(bf16)               # [E, 3Dp]
    dec_whh = _pad_rows(_pad_gates(p["dec_whh"], Hd, Dp), Hd, Dp).astype(bf16)
    dec_bih = _pad_gates(p["dec_bih"], Hd, Dp)
    dec_bhh = _pad_gates(p["dec_bhh"], Hd, Dp)
    att_w_in = _pad_cols(_pad_bidir_rows(p["att_w_in"], He, Hp), Hd, Dp).astype(bf16)
    # Fold the two output-projection matmuls into one: rows [2Hp (ctx); Dp (dec)].
    wo_ctx = _pad_cols(_pad_bidir_rows(p["att_w_out_ctx"], He, Hp), Hd, Dp)
    wo_dec = _pad_cols(_pad_rows(p["att_w_out_dec"], Hd, Dp), Hd, Dp)
    wo_cat = jnp.concatenate([wo_ctx, wo_dec], axis=0).astype(bf16)       # [2Hp+Dp, Dp]
    b_out = _pad_cols(p["att_b_out"], Hd, Dp)
    out_w_pad = _pad_cols(_pad_rows(p["out_w"], Hd, Dp), Vy, Vp).astype(bf16)
    # Padded logits are forced to ~-1e30 through the (f32) bias so exp()==0 and
    # the log_softmax normalization over the real vocab is unchanged.
    out_b_pad = jnp.full((1, Vp), -1e30, jnp.float32).at[:, :Vy].set(p["out_b"])
    xlen = x_lengths.astype(jnp.int32)[:, None]
    ylen = y_lengths.astype(jnp.int32)[:, None]

    logp_pad, h_new, attn_pad = run_decoder(
        emb, encoder_out, hid[0], xlen, ylen,
        dec_wih, dec_whh, dec_bih, dec_bhh,
        att_w_in, wo_cat, b_out, out_w_pad, out_b_pad, Dp, Vp, Txp)
    return logp_pad[:, :, :Vy], h_new[:, :Hd][None], attn_pad[:, :, :Tx]


def seq2seq_forward(p, x, x_lengths, y, y_lengths):
    encoder_out, hid = encoder_forward(p, x, x_lengths)
    output, hid, attn = decoder_forward(p, encoder_out, x, y, x_lengths,
                                        y_lengths, hid)
    return output, attn


def init_params(key, Vx, Vy, E, He, Hd):
    ks = jax.random.split(key, 20)
    f = lambda k, s: (0.1 * jax.random.normal(k, s)).astype(jnp.float32)
    return {
        "embed_x": f(ks[0], (Vx, E)),
        "embed_y": f(ks[1], (Vy, E)),
        "enc_wih_f": f(ks[2], (E, 3 * He)), "enc_whh_f": f(ks[3], (He, 3 * He)),
        "enc_bih_f": f(ks[4], (1, 3 * He)), "enc_bhh_f": f(ks[5], (1, 3 * He)),
        "enc_wih_b": f(ks[6], (E, 3 * He)), "enc_whh_b": f(ks[7], (He, 3 * He)),
        "enc_bih_b": f(ks[8], (1, 3 * He)), "enc_bhh_b": f(ks[9], (1, 3 * He)),
        "enc_fc_w": f(ks[10], (2 * He, Hd)), "enc_fc_b": f(ks[11], (1, Hd)),
        "dec_wih": f(ks[12], (E, 3 * Hd)), "dec_whh": f(ks[13], (Hd, 3 * Hd)),
        "dec_bih": f(ks[14], (1, 3 * Hd)), "dec_bhh": f(ks[15], (1, 3 * Hd)),
        "att_w_in": f(ks[16], (2 * He, Hd)),
        "att_w_out_ctx": f(ks[17], (2 * He, Hd)),
        "att_w_out_dec": f(ks[18], (Hd, Hd)),
        "att_b_out": f(ks[19], (1, Hd)),
        "out_w": f(jax.random.fold_in(key, 100), (Hd, Vy)),
        "out_b": f(jax.random.fold_in(key, 101), (1, Vy)),
    }


if __name__ == "__main__":
    B, Tx, Ty = 2, 8, 8
    Vx, Vy = 20, 24
    E, He, Hd = 32, 32, 32

    key = jax.random.PRNGKey(0)
    kx, ky, kp = jax.random.split(key, 3)
    x = jax.random.randint(kx, (B, Tx), 0, Vx, dtype=jnp.int32)
    y = jax.random.randint(ky, (B, Ty), 0, Vy, dtype=jnp.int32)
    x_lengths = jnp.array([Tx, Tx - 3], dtype=jnp.int32)   # descending (pack_padded)
    y_lengths = jnp.array([Ty, Ty - 2], dtype=jnp.int32)

    params = init_params(kp, Vx, Vy, E, He, Hd)

    fwd = jax.jit(seq2seq_forward)
    output, attn = fwd(params, x, x_lengths, y, y_lengths)
    jax.block_until_ready((output, attn))

    assert output.shape == (B, Ty, Vy), output.shape
    assert attn.shape == (B, Ty, Tx), attn.shape
    assert bool(jnp.all(jnp.isfinite(output))) and bool(jnp.all(jnp.isfinite(attn)))
    # log_softmax rows must sum to ~1 in prob space
    assert bool(jnp.allclose(jnp.exp(output).sum(-1), 1.0, atol=1e-4))
    print("KERNEL_OK")
</pallas_src>

<mosaic_0001>
module attributes {stable_mosaic.version = 11 : i64} {
  func.func @_encoder_kernel(%arg0: memref<2x8x32xf32, #tpu.memory_space<vmem>>, %arg1: memref<2x1xi32, #tpu.memory_space<vmem>>, %arg2: memref<32x768xbf16, #tpu.memory_space<vmem>>, %arg3: memref<256x768xbf16, #tpu.memory_space<vmem>>, %arg4: memref<1x768xf32, #tpu.memory_space<vmem>>, %arg5: memref<1x768xf32, #tpu.memory_space<vmem>>, %arg6: memref<256x128xbf16, #tpu.memory_space<vmem>>, %arg7: memref<1x128xf32, #tpu.memory_space<vmem>>, %arg8: memref<2x8x256xf32, #tpu.memory_space<vmem>>, %arg9: memref<2x128xf32, #tpu.memory_space<vmem>>) attributes {dimension_semantics = [], scalar_prefetch = 0 : i64, scratch_operands = 0 : i64, tpu.core_type = #tpu.core_type<tc>} {
    %c0 = arith.constant 0 : index
    %c0_0 = arith.constant 0 : index
    %c0_1 = arith.constant 0 : index
    %0 = vector.load %arg0[%c0, %c0_0, %c0_1] : memref<2x8x32xf32, #tpu.memory_space<vmem>>, vector<2x8x32xf32>
    %1 = vector.shape_cast %0 : vector<2x8x32xf32> to vector<16x32xf32>
    %2 = arith.truncf %1 : vector<16x32xf32> to vector<16x32xbf16>
    %c0_2 = arith.constant 0 : index
    %c0_3 = arith.constant 0 : index
    %3 = vector.load %arg2[%c0_2, %c0_3] : memref<32x768xbf16, #tpu.memory_space<vmem>>, vector<32x768xbf16>
    %cst = arith.constant dense<0.000000e+00> : vector<16x768xf32>
    %4 = tpu.matmul %2, %3, %cst {dimension_numbers = #tpu.dot_dimension_numbers<[1], [0], [0], [1], [0, 0, 1, 1], [], []>} : vector<16x32xbf16>, vector<32x768xbf16>, vector<16x768xf32> -> vector<16x768xf32>
    %c0_4 = arith.constant 0 : index
    %c0_5 = arith.constant 0 : index
    %5 = vector.load %arg4[%c0_4, %c0_5] : memref<1x768xf32, #tpu.memory_space<vmem>>, vector<1x768xf32>
    %6 = vector.broadcast %5 : vector<1x768xf32> to vector<16x768xf32>
    %7 = arith.addf %4, %6 : vector<16x768xf32>
    %8 = vector.shape_cast %7 : vector<16x768xf32> to vector<2x8x768xf32>
    %c0_6 = arith.constant 0 : index
    %c0_7 = arith.constant 0 : index
    %9 = vector.load %arg3[%c0_6, %c0_7] : memref<256x768xbf16, #tpu.memory_space<vmem>>, vector<256x768xbf16>
    %c0_8 = arith.constant 0 : index
    %c0_9 = arith.constant 0 : index
    %10 = vector.load %arg5[%c0_8, %c0_9] : memref<1x768xf32, #tpu.memory_space<vmem>>, vector<1x768xf32>
    %c0_10 = arith.constant 0 : index
    %c0_11 = arith.constant 0 : index
    %11 = vector.load %arg1[%c0_10, %c0_11] : memref<2x1xi32, #tpu.memory_space<vmem>>, vector<2x1xi32>
    %cst_12 = arith.constant 0.000000e+00 : f32
    %12 = vector.broadcast %cst_12 : f32 to vector<2x128xf32>
    %cst_13 = arith.constant 0.000000e+00 : f32
    %13 = vector.broadcast %cst_13 : f32 to vector<2x128xf32>
    %14 = tpu.concatenate %12, %13 in 1 : vector<2x128xf32>, vector<2x128xf32> -> vector<2x256xf32>
    %15 = arith.truncf %14 : vector<2x256xf32> to vector<2x256xbf16>
    %cst_14 = arith.constant dense<0.000000e+00> : vector<2x768xf32>
    %16 = tpu.matmul %15, %9, %cst_14 {dimension_numbers = #tpu.dot_dimension_numbers<[1], [0], [0], [1], [0, 0, 1, 1], [], []>} : vector<2x256xbf16>, vector<256x768xbf16>, vector<2x768xf32> -> vector<2x768xf32>
    %17 = vector.broadcast %10 : vector<1x768xf32> to vector<2x768xf32>
    %18 = arith.addf %16, %17 : vector<2x768xf32>
    %19 = vector.extract_strided_slice %8 {offsets = [0, 0, 0], sizes = [2, 1, 384], strides = [1, 1, 1]} : vector<2x8x768xf32> to vector<2x1x384xf32>
    %20 = vector.shape_cast %19 : vector<2x1x384xf32> to vector<2x384xf32>
    %21 = vector.extract_strided_slice %18 {offsets = [0, 0], sizes = [2, 384], strides = [1, 1]} : vector<2x768xf32> to vector<2x384xf32>
    %22 = vector.extract_strided_slice %20 {offsets = [0, 0], sizes = [2, 128], strides = [1, 1]} : vector<2x384xf32> to vector<2x128xf32>
    %23 = vector.extract_strided_slice %21 {offsets = [0, 0], sizes = [2, 128], strides = [1, 1]} : vector<2x384xf32> to vector<2x128xf32>
    %24 = arith.addf %22, %23 : vector<2x128xf32>
    %25 = arith.negf %24 : vector<2x128xf32>
    %26 = math.exp %25 : vector<2x128xf32>
    %cst_15 = arith.constant 1.000000e+00 : f32
    %27 = vector.broadcast %cst_15 : f32 to vector<2x128xf32>
    %28 = arith.addf %27, %26 : vector<2x128xf32>
    %29 = arith.divf %27, %28 : vector<2x128xf32>
    %30 = vector.extract_strided_slice %20 {offsets = [0, 128], sizes = [2, 128], strides = [1, 1]} : vector<2x384xf32> to vector<2x128xf32>
    %31 = vector.extract_strided_slice %21 {offsets = [0, 128], sizes = [2, 128], strides = [1, 1]} : vector<2x384xf32> to vector<2x128xf32>
    %32 = arith.addf %30, %31 : vector<2x128xf32>
    %33 = arith.negf %32 : vector<2x128xf32>
    %34 = math.exp %33 : vector<2x128xf32>
    %cst_16 = arith.constant 1.000000e+00 : f32
    %35 = vector.broadcast %cst_16 : f32 to vector<2x128xf32>
    %36 = arith.addf %35, %34 : vector<2x128xf32>
    %37 = arith.divf %35, %36 : vector<2x128xf32>
    %38 = vector.extract_strided_slice %20 {offsets = [0, 256], sizes = [2, 128], strides = [1, 1]} : vector<2x384xf32> to vector<2x128xf32>
    %39 = vector.extract_strided_slice %21 {offsets = [0, 256], sizes = [2, 128], strides = [1, 1]} : vector<2x384xf32> to vector<2x128xf32>
    %40 = arith.mulf %29, %39 : vector<2x128xf32>
    %41 = arith.addf %38, %40 : vector<2x128xf32>
    %42 = math.tanh %41 : vector<2x128xf32>
    %cst_17 = arith.constant 1.000000e+00 : f32
    %43 = vector.broadcast %cst_17 : f32 to vector<2x128xf32>
    %44 = arith.subf %43, %37 : vector<2x128xf32>
    %45 = arith.mulf %44, %42 : vector<2x128xf32>
    %46 = arith.mulf %37, %12 : vector<2x128xf32>
    %47 = arith.addf %45, %46 : vector<2x128xf32>
    %48 = vector.extract_strided_slice %8 {offsets = [0, 7, 384], sizes = [2, 1, 384], strides = [1, 1, 1]} : vector<2x8x768xf32> to vector<2x1x384xf32>
    %49 = vector.shape_cast %48 : vector<2x1x384xf32> to vector<2x384xf32>
    %50 = vector.extract_strided_slice %18 {offsets = [0, 384], sizes = [2, 384], strides = [1, 1]} : vector<2x768xf32> to vector<2x384xf32>
    %51 = vector.extract_strided_slice %49 {offsets = [0, 0], sizes = [2, 128], strides = [1, 1]} : vector<2x384xf32> to vector<2x128xf32>
    %52 = vector.extract_strided_slice %50 {offsets = [0, 0], sizes = [2, 128], strides = [1, 1]} : vector<2x384xf32> to vector<2x128xf32>
    %53 = arith.addf %51, %52 : vector<2x128xf32>
    %54 = arith.negf %53 : vector<2x128xf32>
    %55 = math.exp %54 : vector<2x128xf32>
    %cst_18 = arith.constant 1.000000e+00 : f32
    %56 = vector.broadcast %cst_18 : f32 to vector<2x128xf32>
    %57 = arith.addf %56, %55 : vector<2x128xf32>
    %58 = arith.divf %56, %57 : vector<2x128xf32>
    %59 = vector.extract_strided_slice %49 {offsets = [0, 128], sizes = [2, 128], strides = [1, 1]} : vector<2x384xf32> to vector<2x128xf32>
    %60 = vector.extract_strided_slice %50 {offsets = [0, 128], sizes = [2, 128], strides = [1, 1]} : vector<2x384xf32> to vector<2x128xf32>
    %61 = arith.addf %59, %60 : vector<2x128xf32>
    %62 = arith.negf %61 : vector<2x128xf32>
    %63 = math.exp %62 : vector<2x128xf32>
    %cst_19 = arith.constant 1.000000e+00 : f32
    %64 = vector.broadcast %cst_19 : f32 to vector<2x128xf32>
    %65 = arith.addf %64, %63 : vector<2x128xf32>
    %66 = arith.divf %64, %65 : vector<2x128xf32>
    %67 = vector.extract_strided_slice %49 {offsets = [0, 256], sizes = [2, 128], strides = [1, 1]} : vector<2x384xf32> to vector<2x128xf32>
    %68 = vector.extract_strided_slice %50 {offsets = [0, 256], sizes = [2, 128], strides = [1, 1]} : vector<2x384xf32> to vector<2x128xf32>
    %69 = arith.mulf %58, %68 : vector<2x128xf32>
    %70 = arith.addf %67, %69 : vector<2x128xf32>
    %71 = math.tanh %70 : vector<2x128xf32>
    %cst_20 = arith.constant 1.000000e+00 : f32
    %72 = vector.broadcast %cst_20 : f32 to vector<2x128xf32>
    %73 = arith.subf %72, %66 : vector<2x128xf32>
    %74 = arith.mulf %73, %71 : vector<2x128xf32>
    %75 = arith.mulf %66, %13 : vector<2x128xf32>
    %76 = arith.addf %74, %75 : vector<2x128xf32>
    %c0_i32 = arith.constant 0 : i32
    %77 = vector.broadcast %c0_i32 : i32 to vector<2x1xi32>
    %78 = arith.cmpi sgt, %11, %77 : vector<2x1xi32>
    %79 = arith.extui %78 : vector<2x1xi1> to vector<2x1xi32>
    %80 = arith.sitofp %79 : vector<2x1xi32> to vector<2x1xf32>
    %c7_i32 = arith.constant 7 : i32
    %81 = vector.broadcast %c7_i32 : i32 to vector<2x1xi32>
    %82 = arith.cmpi sgt, %11, %81 : vector<2x1xi32>
    %83 = arith.extui %82 : vector<2x1xi1> to vector<2x1xi32>
    %84 = arith.sitofp %83 : vector<2x1xi32> to vector<2x1xf32>
    %85 = vector.broadcast %80 : vector<2x1xf32> to vector<2x128xf32>
    %86 = arith.mulf %85, %47 : vector<2x128xf32>
    %cst_21 = arith.constant 1.000000e+00 : f32
    %87 = vector.broadcast %cst_21 : f32 to vector<2x1xf32>
    %88 = arith.subf %87, %80 : vector<2x1xf32>
    %89 = vector.broadcast %88 : vector<2x1xf32> to vector<2x128xf32>
    %90 = arith.mulf %89, %12 : vector<2x128xf32>
    %91 = arith.addf %86, %90 : vector<2x128xf32>
    %92 = vector.broadcast %84 : vector<2x1xf32> to vector<2x128xf32>
    %93 = arith.mulf %92, %76 : vector<2x128xf32>
    %cst_22 = arith.constant 1.000000e+00 : f32
    %94 = vector.broadcast %cst_22 : f32 to vector<2x1xf32>
    %95 = arith.subf %94, %84 : vector<2x1xf32>
    %96 = vector.broadcast %95 : vector<2x1xf32> to vector<2x128xf32>
    %97 = arith.mulf %96, %13 : vector<2x128xf32>
    %98 = arith.addf %93, %97 : vector<2x128xf32>
    %99 = vector.broadcast %80 : vector<2x1xf32> to vector<2x128xf32>
    %100 = arith.mulf %99, %47 : vector<2x128xf32>
    %101 = vector.shape_cast %100 : vector<2x128xf32> to vector<2x1x128xf32>
    %c0_23 = arith.constant 0 : index
    %c0_24 = arith.constant 0 : index
    %c0_25 = arith.constant 0 : index
    %102 = vector.load %arg8[%c0_23, %c0_24, %c0_25] : memref<2x8x256xf32, #tpu.memory_space<vmem>>, vector<2x1x128xf32>
    tpu.vector_store %arg8[%c0_23, %c0_24, %c0_25], %101 {strides = array<i32>} : memref<2x8x256xf32, #tpu.memory_space<vmem>>, vector<2x1x128xf32>,
    %103 = vector.broadcast %84 : vector<2x1xf32> to vector<2x128xf32>
    %104 = arith.mulf %103, %76 : vector<2x128xf32>
    %105 = vector.shape_cast %104 : vector<2x128xf32> to vector<2x1x128xf32>
    %c0_26 = arith.constant 0 : index
    %c7 = arith.constant 7 : index
    %c128 = arith.constant 128 : index
    %106 = vector.load %arg8[%c0_26, %c7, %c128] : memref<2x8x256xf32, #tpu.memory_space<vmem>>, vector<2x1x128xf32>
    tpu.vector_store %arg8[%c0_26, %c7, %c128], %105 {strides = array<i32>} : memref<2x8x256xf32, #tpu.memory_space<vmem>>, vector<2x1x128xf32>,
    %107 = tpu.concatenate %91, %98 in 1 : vector<2x128xf32>, vector<2x128xf32> -> vector<2x256xf32>
    %108 = arith.truncf %107 : vector<2x256xf32> to vector<2x256xbf16>
    %cst_27 = arith.constant dense<0.000000e+00> : vector<2x768xf32>
    %109 = tpu.matmul %108, %9, %cst_27 {dimension_numbers = #tpu.dot_dimension_numbers<[1], [0], [0], [1], [0, 0, 1, 1], [], []>} : vector<2x256xbf16>, vector<256x768xbf16>, vector<2x768xf32> -> vector<2x768xf32>
    %110 = vector.broadcast %10 : vector<1x768xf32> to vector<2x768xf32>
    %111 = arith.addf %109, %110 : vector<2x768xf32>
    %112 = vector.extract_strided_slice %8 {offsets = [0, 1, 0], sizes = [2, 1, 384], strides = [1, 1, 1]} : vector<2x8x768xf32> to vector<2x1x384xf32>
    %113 = vector.shape_cast %112 : vector<2x1x384xf32> to vector<2x384xf32>
    %114 = vector.extract_strided_slice %111 {offsets = [0, 0], sizes = [2, 384], strides = [1, 1]} : vector<2x768xf32> to vector<2x384xf32>
    %115 = vector.extract_strided_slice %113 {offsets = [0, 0], sizes = [2, 128], strides = [1, 1]} : vector<2x384xf32> to vector<2x128xf32>
    %116 = vector.extract_strided_slice %114 {offsets = [0, 0], sizes = [2, 128], strides = [1, 1]} : vector<2x384xf32> to vector<2x128xf32>
    %117 = arith.addf %115, %116 : vector<2x128xf32>
    %118 = arith.negf %117 : vector<2x128xf32>
    %119 = math.exp %118 : vector<2x128xf32>
    %cst_28 = arith.constant 1.000000e+00 : f32
    %120 = vector.broadcast %cst_28 : f32 to vector<2x128xf32>
    %121 = arith.addf %120, %119 : vector<2x128xf32>
    %122 = arith.divf %120, %121 : vector<2x128xf32>
    %123 = vector.extract_strided_slice %113 {offsets = [0, 128], sizes = [2, 128], strides = [1, 1]} : vector<2x384xf32> to vector<2x128xf32>
    %124 = vector.extract_strided_slice %114 {offsets = [0, 128], sizes = [2, 128], strides = [1, 1]} : vector<2x384xf32> to vector<2x128xf32>
    %125 = arith.addf %123, %124 : vector<2x128xf32>
    %126 = arith.negf %125 : vector<2x128xf32>
    %127 = math.exp %126 : vector<2x128xf32>
    %cst_29 = arith.constant 1.000000e+00 : f32
    %128 = vector.broadcast %cst_29 : f32 to vector<2x128xf32>
    %129 = arith.addf %128, %127 : vector<2x128xf32>
    %130 = arith.divf %128, %129 : vector<2x128xf32>
    %131 = vector.extract_strided_slice %113 {offsets = [0, 256], sizes = [2, 128], strides = [1, 1]} : vector<2x384xf32> to vector<2x128xf32>
    %132 = vector.extract_strided_slice %114 {offsets = [0, 256], sizes = [2, 128], strides = [1, 1]} : vector<2x384xf32> to vector<2x128xf32>
    %133 = arith.mulf %122, %132 : vector<2x128xf32>
    %134 = arith.addf %131, %133 : vector<2x128xf32>
    %135 = math.tanh %134 : vector<2x128xf32>
    %cst_30 = arith.constant 1.000000e+00 : f32
    %136 = vector.broadcast %cst_30 : f32 to vector<2x128xf32>
    %137 = arith.subf %136, %130 : vector<2x128xf32>
    %138 = arith.mulf %137, %135 : vector<2x128xf32>
    %139 = arith.mulf %130, %91 : vector<2x128xf32>
    %140 = arith.addf %138, %139 : vector<2x128xf32>
    %141 = vector.extract_strided_slice %8 {offsets = [0, 6, 384], sizes = [2, 1, 384], strides = [1, 1, 1]} : vector<2x8x768xf32> to vector<2x1x384xf32>
    %142 = vector.shape_cast %141 : vector<2x1x384xf32> to vector<2x384xf32>
    %143 = vector.extract_strided_slice %111 {offsets = [0, 384], sizes = [2, 384], strides = [1, 1]} : vector<2x768xf32> to vector<2x384xf32>
    %144 = vector.extract_strided_slice %142 {offsets = [0, 0], sizes = [2, 128], strides = [1, 1]} : vector<2x384xf32> to vector<2x128xf32>
    %145 = vector.extract_strided_slice %143 {offsets = [0, 0], sizes = [2, 128], strides = [1, 1]} : vector<2x384xf32> to vector<2x128xf32>
    %146 = arith.addf %144, %145 : vector<2x128xf32>
    %147 = arith.negf %146 : vector<2x128xf32>
    %148 = math.exp %147 : vector<2x128xf32>
    %cst_31 = arith.constant 1.000000e+00 : f32
    %149 = vector.broadcast %cst_31 : f32 to vector<2x128xf32>
    %150 = arith.addf %149, %148 : vector<2x128xf32>
    %151 = arith.divf %149, %150 : vector<2x128xf32>
    %152 = vector.extract_strided_slice %142 {offsets = [0, 128], sizes = [2, 128], strides = [1, 1]} : vector<2x384xf32> to vector<2x128xf32>
    %153 = vector.extract_strided_slice %143 {offsets = [0, 128], sizes = [2, 128], strides = [1, 1]} : vector<2x384xf32> to vector<2x128xf32>
    %154 = arith.addf %152, %153 : vector<2x128xf32>
    %155 = arith.negf %154 : vector<2x128xf32>
    %156 = math.exp %155 : vector<2x128xf32>
    %cst_32 = arith.constant 1.000000e+00 : f32
    %157 = vector.broadcast %cst_32 : f32 to vector<2x128xf32>
    %158 = arith.addf %157, %156 : vector<2x128xf32>
    %159 = arith.divf %157, %158 : vector<2x128xf32>
    %160 = vector.extract_strided_slice %142 {offsets = [0, 256], sizes = [2, 128], strides = [1, 1]} : vector<2x384xf32> to vector<2x128xf32>
    %161 = vector.extract_strided_slice %143 {offsets = [0, 256], sizes = [2, 128], strides = [1, 1]} : vector<2x384xf32> to vector<2x128xf32>
    %162 = arith.mulf %151, %161 : vector<2x128xf32>
    %163 = arith.addf %160, %162 : vector<2x128xf32>
    %164 = math.tanh %163 : vector<2x128xf32>
    %cst_33 = arith.constant 1.000000e+00 : f32
    %165 = vector.broadcast %cst_33 : f32 to vector<2x128xf32>
    %166 = arith.subf %165, %159 : vector<2x128xf32>
    %167 = arith.mulf %166, %164 : vector<2x128xf32>
    %168 = arith.mulf %159, %98 : vector<2x128xf32>
    %169 = arith.addf %167, %168 : vector<2x128xf32>
    %c1_i32 = arith.constant 1 : i32
    %170 = vector.broadcast %c1_i32 : i32 to vector<2x1xi32>
    %171 = arith.cmpi sgt, %11, %170 : vector<2x1xi32>
    %172 = arith.extui %171 : vector<2x1xi1> to vector<2x1xi32>
    %173 = arith.sitofp %172 : vector<2x1xi32> to vector<2x1xf32>
    %c6_i32 = arith.constant 6 : i32
    %174 = vector.broadcast %c6_i32 : i32 to vector<2x1xi32>
    %175 = arith.cmpi sgt, %11, %174 : vector<2x1xi32>
    %176 = arith.extui %175 : vector<2x1xi1> to vector<2x1xi32>
    %177 = arith.sitofp %176 : vector<2x1xi32> to vector<2x1xf32>
    %178 = vector.broadcast %173 : vector<2x1xf32> to vector<2x128xf32>
    %179 = arith.mulf %178, %140 : vector<2x128xf32>
    %cst_34 = arith.constant 1.000000e+00 : f32
    %180 = vector.broadcast %cst_34 : f32 to vector<2x1xf32>
    %181 = arith.subf %180, %173 : vector<2x1xf32>
    %182 = vector.broadcast %181 : vector<2x1xf32> to vector<2x128xf32>
    %183 = arith.mulf %182, %91 : vector<2x128xf32>
    %184 = arith.addf %179, %183 : vector<2x128xf32>
    %185 = vector.broadcast %177 : vector<2x1xf32> to vector<2x128xf32>
    %186 = arith.mulf %185, %169 : vector<2x128xf32>
    %cst_35 = arith.constant 1.000000e+00 : f32
    %187 = vector.broadcast %cst_35 : f32 to vector<2x1xf32>
    %188 = arith.subf %187, %177 : vector<2x1xf32>
    %189 = vector.broadcast %188 : vector<2x1xf32> to vector<2x128xf32>
    %190 = arith.mulf %189, %98 : vector<2x128xf32>
    %191 = arith.addf %186, %190 : vector<2x128xf32>
    %192 = vector.broadcast %173 : vector<2x1xf32> to vector<2x128xf32>
    %193 = arith.mulf %192, %140 : vector<2x128xf32>
    %194 = vector.shape_cast %193 : vector<2x128xf32> to vector<2x1x128xf32>
    %c0_36 = arith.constant 0 : index
    %c1 = arith.constant 1 : index
    %c0_37 = arith.constant 0 : index
    %195 = vector.load %arg8[%c0_36, %c1, %c0_37] : memref<2x8x256xf32, #tpu.memory_space<vmem>>, vector<2x1x128xf32>
    tpu.vector_store %arg8[%c0_36, %c1, %c0_37], %194 {strides = array<i32>} : memref<2x8x256xf32, #tpu.memory_space<vmem>>, vector<2x1x128xf32>,
    %196 = vector.broadcast %177 : vector<2x1xf32> to vector<2x128xf32>
    %197 = arith.mulf %196, %169 : vector<2x128xf32>
    %198 = vector.shape_cast %197 : vector<2x128xf32> to vector<2x1x128xf32>
    %c0_38 = arith.constant 0 : index
    %c6 = arith.constant 6 : index
    %c128_39 = arith.constant 128 : index
    %199 = vector.load %arg8[%c0_38, %c6, %c128_39] : memref<2x8x256xf32, #tpu.memory_space<vmem>>, vector<2x1x128xf32>
    tpu.vector_store %arg8[%c0_38, %c6, %c128_39], %198 {strides = array<i32>} : memref<2x8x256xf32, #tpu.memory_space<vmem>>, vector<2x1x128xf32>,
    %200 = tpu.concatenate %184, %191 in 1 : vector<2x128xf32>, vector<2x128xf32> -> vector<2x256xf32>
    %201 = arith.truncf %200 : vector<2x256xf32> to vector<2x256xbf16>
    %cst_40 = arith.constant dense<0.000000e+00> : vector<2x768xf32>
    %202 = tpu.matmul %201, %9, %cst_40 {dimension_numbers = #tpu.dot_dimension_numbers<[1], [0], [0], [1], [0, 0, 1, 1], [], []>} : vector<2x256xbf16>, vector<256x768xbf16>, vector<2x768xf32> -> vector<2x768xf32>
    %203 = vector.broadcast %10 : vector<1x768xf32> to vector<2x768xf32>
    %204 = arith.addf %202, %203 : vector<2x768xf32>
    %205 = vector.extract_strided_slice %8 {offsets = [0, 2, 0], sizes = [2, 1, 384], strides = [1, 1, 1]} : vector<2x8x768xf32> to vector<2x1x384xf32>
    %206 = vector.shape_cast %205 : vector<2x1x384xf32> to vector<2x384xf32>
    %207 = vector.extract_strided_slice %204 {offsets = [0, 0], sizes = [2, 384], strides = [1, 1]} : vector<2x768xf32> to vector<2x384xf32>
    %208 = vector.extract_strided_slice %206 {offsets = [0, 0], sizes = [2, 128], strides = [1, 1]} : vector<2x384xf32> to vector<2x128xf32>
    %209 = vector.extract_strided_slice %207 {offsets = [0, 0], sizes = [2, 128], strides = [1, 1]} : vector<2x384xf32> to vector<2x128xf32>
    %210 = arith.addf %208, %209 : vector<2x128xf32>
    %211 = arith.negf %210 : vector<2x128xf32>
    %212 = math.exp %211 : vector<2x128xf32>
    %cst_41 = arith.constant 1.000000e+00 : f32
    %213 = vector.broadcast %cst_41 : f32 to vector<2x128xf32>
    %214 = arith.addf %213, %212 : vector<2x128xf32>
    %215 = arith.divf %213, %214 : vector<2x128xf32>
    %216 = vector.extract_strided_slice %206 {offsets = [0, 128], sizes = [2, 128], strides = [1, 1]} : vector<2x384xf32> to vector<2x128xf32>
    %217 = vector.extract_strided_slice %207 {offsets = [0, 128], sizes = [2, 128], strides = [1, 1]} : vector<2x384xf32> to vector<2x128xf32>
    %218 = arith.addf %216, %217 : vector<2x128xf32>
    %219 = arith.negf %218 : vector<2x128xf32>
    %220 = math.exp %219 : vector<2x128xf32>
    %cst_42 = arith.constant 1.000000e+00 : f32
    %221 = vector.broadcast %cst_42 : f32 to vector<2x128xf32>
    %222 = arith.addf %221, %220 : vector<2x128xf32>
    %223 = arith.divf %221, %222 : vector<2x128xf32>
    %224 = vector.extract_strided_slice %206 {offsets = [0, 256], sizes = [2, 128], strides = [1, 1]} : vector<2x384xf32> to vector<2x128xf32>
    %225 = vector.extract_strided_slice %207 {offsets = [0, 256], sizes = [2, 128], strides = [1, 1]} : vector<2x384xf32> to vector<2x128xf32>
    %226 = arith.mulf %215, %225 : vector<2x128xf32>
    %227 = arith.addf %224, %226 : vector<2x128xf32>
    %228 = math.tanh %227 : vector<2x128xf32>
    %cst_43 = arith.constant 1.000000e+00 : f32
    %229 = vector.broadcast %cst_43 : f32 to vector<2x128xf32>
    %230 = arith.subf %229, %223 : vector<2x128xf32>
    %231 = arith.mulf %230, %228 : vector<2x128xf32>
    %232 = arith.mulf %223, %184 : vector<2x128xf32>
    %233 = arith.addf %231, %232 : vector<2x128xf32>
    %234 = vector.extract_strided_slice %8 {offsets = [0, 5, 384], sizes = [2, 1, 384], strides = [1, 1, 1]} : vector<2x8x768xf32> to vector<2x1x384xf32>
    %235 = vector.shape_cast %234 : vector<2x1x384xf32> to vector<2x384xf32>
    %236 = vector.extract_strided_slice %204 {offsets = [0, 384], sizes = [2, 384], strides = [1, 1]} : vector<2x768xf32> to vector<2x384xf32>
    %237 = vector.extract_strided_slice %235 {offsets = [0, 0], sizes = [2, 128], strides = [1, 1]} : vector<2x384xf32> to vector<2x128xf32>
    %238 = vector.extract_strided_slice %236 {offsets = [0, 0], sizes = [2, 128], strides = [1, 1]} : vector<2x384xf32> to vector<2x128xf32>
    %239 = arith.addf %237, %238 : vector<2x128xf32>
    %240 = arith.negf %239 : vector<2x128xf32>
    %241 = math.exp %240 : vector<2x128xf32>
    %cst_44 = arith.constant 1.000000e+00 : f32
    %242 = vector.broadcast %cst_44 : f32 to vector<2x128xf32>
    %243 = arith.addf %242, %241 : vector<2x128xf32>
    %244 = arith.divf %242, %243 : vector<2x128xf32>
    %245 = vector.extract_strided_slice %235 {offsets = [0, 128], sizes = [2, 128], strides = [1, 1]} : vector<2x384xf32> to vector<2x128xf32>
    %246 = vector.extract_strided_slice %236 {offsets = [0, 128], sizes = [2, 128], strides = [1, 1]} : vector<2x384xf32> to vector<2x128xf32>
    %247 = arith.addf %245, %246 : vector<2x128xf32>
    %248 = arith.negf %247 : vector<2x128xf32>
    %249 = math.exp %248 : vector<2x128xf32>
    %cst_45 = arith.constant 1.000000e+00 : f32
    %250 = vector.broadcast %cst_45 : f32 to vector<2x128xf32>
    %251 = arith.addf %250, %249 : vector<2x128xf32>
    %252 = arith.divf %250, %251 : vector<2x128xf32>
    %253 = vector.extract_strided_slice %235 {offsets = [0, 256], sizes = [2, 128], strides = [1, 1]} : vector<2x384xf32> to vector<2x128xf32>
    %254 = vector.extract_strided_slice %236 {offsets = [0, 256], sizes = [2, 128], strides = [1, 1]} : vector<2x384xf32> to vector<2x128xf32>
    %255 = arith.mulf %244, %254 : vector<2x128xf32>
    %256 = arith.addf %253, %255 : vector<2x128xf32>
    %257 = math.tanh %256 : vector<2x128xf32>
    %cst_46 = arith.constant 1.000000e+00 : f32
    %258 = vector.broadcast %cst_46 : f32 to vector<2x128xf32>
    %259 = arith.subf %258, %252 : vector<2x128xf32>
    %260 = arith.mulf %259, %257 : vector<2x128xf32>
    %261 = arith.mulf %252, %191 : vector<2x128xf32>
    %262 = arith.addf %260, %261 : vector<2x128xf32>
    %c2_i32 = arith.constant 2 : i32
    %263 = vector.broadcast %c2_i32 : i32 to vector<2x1xi32>
    %264 = arith.cmpi sgt, %11, %263 : vector<2x1xi32>
    %265 = arith.extui %264 : vector<2x1xi1> to vector<2x1xi32>
    %266 = arith.sitofp %265 : vector<2x1xi32> to vector<2x1xf32>
    %c5_i32 = arith.constant 5 : i32
    %267 = vector.broadcast %c5_i32 : i32 to vector<2x1xi32>
    %268 = arith.cmpi sgt, %11, %267 : vector<2x1xi32>
    %269 = arith.extui %268 : vector<2x1xi1> to vector<2x1xi32>
    %270 = arith.sitofp %269 : vector<2x1xi32> to vector<2x1xf32>
    %271 = vector.broadcast %266 : vector<2x1xf32> to vector<2x128xf32>
    %272 = arith.mulf %271, %233 : vector<2x128xf32>
    %cst_47 = arith.constant 1.000000e+00 : f32
    %273 = vector.broadcast %cst_47 : f32 to vector<2x1xf32>
    %274 = arith.subf %273, %266 : vector<2x1xf32>
    %275 = vector.broadcast %274 : vector<2x1xf32> to vector<2x128xf32>
    %276 = arith.mulf %275, %184 : vector<2x128xf32>
    %277 = arith.addf %272, %276 : vector<2x128xf32>
    %278 = vector.broadcast %270 : vector<2x1xf32> to vector<2x128xf32>
    %279 = arith.mulf %278, %262 : vector<2x128xf32>
    %cst_48 = arith.constant 1.000000e+00 : f32
    %280 = vector.broadcast %cst_48 : f32 to vector<2x1xf32>
    %281 = arith.subf %280, %270 : vector<2x1xf32>
    %282 = vector.broadcast %281 : vector<2x1xf32> to vector<2x128xf32>
    %283 = arith.mulf %282, %191 : vector<2x128xf32>
    %284 = arith.addf %279, %283 : vector<2x128xf32>
    %285 = vector.broadcast %266 : vector<2x1xf32> to vector<2x128xf32>
    %286 = arith.mulf %285, %233 : vector<2x128xf32>
    %287 = vector.shape_cast %286 : vector<2x128xf32> to vector<2x1x128xf32>
    %c0_49 = arith.constant 0 : index
    %c2 = arith.constant 2 : index
    %c0_50 = arith.constant 0 : index
    %288 = vector.load %arg8[%c0_49, %c2, %c0_50] : memref<2x8x256xf32, #tpu.memory_space<vmem>>, vector<2x1x128xf32>
    tpu.vector_store %arg8[%c0_49, %c2, %c0_50], %287 {strides = array<i32>} : memref<2x8x256xf32, #tpu.memory_space<vmem>>, vector<2x1x128xf32>,
    %289 = vector.broadcast %270 : vector<2x1xf32> to vector<2x128xf32>
    %290 = arith.mulf %289, %262 : vector<2x128xf32>
    %291 = vector.shape_cast %290 : vector<2x128xf32> to vector<2x1x128xf32>
    %c0_51 = arith.constant 0 : index
    %c5 = arith.constant 5 : index
    %c128_52 = arith.constant 128 : index
    %292 = vector.load %arg8[%c0_51, %c5, %c128_52] : memref<2x8x256xf32, #tpu.memory_space<vmem>>, vector<2x1x128xf32>
    tpu.vector_store %arg8[%c0_51, %c5, %c128_52], %291 {strides = array<i32>} : memref<2x8x256xf32, #tpu.memory_space<vmem>>, vector<2x1x128xf32>,
    %293 = tpu.concatenate %277, %284 in 1 : vector<2x128xf32>, vector<2x128xf32> -> vector<2x256xf32>
    %294 = arith.truncf %293 : vector<2x256xf32> to vector<2x256xbf16>
    %cst_53 = arith.constant dense<0.000000e+00> : vector<2x768xf32>
    %295 = tpu.matmul %294, %9, %cst_53 {dimension_numbers = #tpu.dot_dimension_numbers<[1], [0], [0], [1], [0, 0, 1, 1], [], []>} : vector<2x256xbf16>, vector<256x768xbf16>, vector<2x768xf32> -> vector<2x768xf32>
    %296 = vector.broadcast %10 : vector<1x768xf32> to vector<2x768xf32>
    %297 = arith.addf %295, %296 : vector<2x768xf32>
    %298 = vector.extract_strided_slice %8 {offsets = [0, 3, 0], sizes = [2, 1, 384], strides = [1, 1, 1]} : vector<2x8x768xf32> to vector<2x1x384xf32>
    %299 = vector.shape_cast %298 : vector<2x1x384xf32> to vector<2x384xf32>
    %300 = vector.extract_strided_slice %297 {offsets = [0, 0], sizes = [2, 384], strides = [1, 1]} : vector<2x768xf32> to vector<2x384xf32>
    %301 = vector.extract_strided_slice %299 {offsets = [0, 0], sizes = [2, 128], strides = [1, 1]} : vector<2x384xf32> to vector<2x128xf32>
    %302 = vector.extract_strided_slice %300 {offsets = [0, 0], sizes = [2, 128], strides = [1, 1]} : vector<2x384xf32> to vector<2x128xf32>
    %303 = arith.addf %301, %302 : vector<2x128xf32>
    %304 = arith.negf %303 : vector<2x128xf32>
    %305 = math.exp %304 : vector<2x128xf32>
    %cst_54 = arith.constant 1.000000e+00 : f32
    %306 = vector.broadcast %cst_54 : f32 to vector<2x128xf32>
    %307 = arith.addf %306, %305 : vector<2x128xf32>
    %308 = arith.divf %306, %307 : vector<2x128xf32>
    %309 = vector.extract_strided_slice %299 {offsets = [0, 128], sizes = [2, 128], strides = [1, 1]} : vector<2x384xf32> to vector<2x128xf32>
    %310 = vector.extract_strided_slice %300 {offsets = [0, 128], sizes = [2, 128], strides = [1, 1]} : vector<2x384xf32> to vector<2x128xf32>
    %311 = arith.addf %309, %310 : vector<2x128xf32>
    %312 = arith.negf %311 : vector<2x128xf32>
    %313 = math.exp %312 : vector<2x128xf32>
    %cst_55 = arith.constant 1.000000e+00 : f32
    %314 = vector.broadcast %cst_55 : f32 to vector<2x128xf32>
    %315 = arith.addf %314, %313 : vector<2x128xf32>
    %316 = arith.divf %314, %315 : vector<2x128xf32>
    %317 = vector.extract_strided_slice %299 {offsets = [0, 256], sizes = [2, 128], strides = [1, 1]} : vector<2x384xf32> to vector<2x128xf32>
    %318 = vector.extract_strided_slice %300 {offsets = [0, 256], sizes = [2, 128], strides = [1, 1]} : vector<2x384xf32> to vector<2x128xf32>
    %319 = arith.mulf %308, %318 : vector<2x128xf32>
    %320 = arith.addf %317, %319 : vector<2x128xf32>
    %321 = math.tanh %320 : vector<2x128xf32>
    %cst_56 = arith.constant 1.000000e+00 : f32
    %322 = vector.broadcast %cst_56 : f32 to vector<2x128xf32>
    %323 = arith.subf %322, %316 : vector<2x128xf32>
    %324 = arith.mulf %323, %321 : vector<2x128xf32>
    %325 = arith.mulf %316, %277 : vector<2x128xf32>
    %326 = arith.addf %324, %325 : vector<2x128xf32>
    %327 = vector.extract_strided_slice %8 {offsets = [0, 4, 384], sizes = [2, 1, 384], strides = [1, 1, 1]} : vector<2x8x768xf32> to vector<2x1x384xf32>
    %328 = vector.shape_cast %327 : vector<2x1x384xf32> to vector<2x384xf32>
    %329 = vector.extract_strided_slice %297 {offsets = [0, 384], sizes = [2, 384], strides = [1, 1]} : vector<2x768xf32> to vector<2x384xf32>
    %330 = vector.extract_strided_slice %328 {offsets = [0, 0], sizes = [2, 128], strides = [1, 1]} : vector<2x384xf32> to vector<2x128xf32>
    %331 = vector.extract_strided_slice %329 {offsets = [0, 0], sizes = [2, 128], strides = [1, 1]} : vector<2x384xf32> to vector<2x128xf32>
    %332 = arith.addf %330, %331 : vector<2x128xf32>
    %333 = arith.negf %332 : vector<2x128xf32>
    %334 = math.exp %333 : vector<2x128xf32>
    %cst_57 = arith.constant 1.000000e+00 : f32
    %335 = vector.broadcast %cst_57 : f32 to vector<2x128xf32>
    %336 = arith.addf %335, %334 : vector<2x128xf32>
    %337 = arith.divf %335, %336 : vector<2x128xf32>
    %338 = vector.extract_strided_slice %328 {offsets = [0, 128], sizes = [2, 128], strides = [1, 1]} : vector<2x384xf32> to vector<2x128xf32>
    %339 = vector.extract_strided_slice %329 {offsets = [0, 128], sizes = [2, 128], strides = [1, 1]} : vector<2x384xf32> to vector<2x128xf32>
    %340 = arith.addf %338, %339 : vector<2x128xf32>
    %341 = arith.negf %340 : vector<2x128xf32>
    %342 = math.exp %341 : vector<2x128xf32>
    %cst_58 = arith.constant 1.000000e+00 : f32
    %343 = vector.broadcast %cst_58 : f32 to vector<2x128xf32>
    %344 = arith.addf %343, %342 : vector<2x128xf32>
    %345 = arith.divf %343, %344 : vector<2x128xf32>
    %346 = vector.extract_strided_slice %328 {offsets = [0, 256], sizes = [2, 128], strides = [1, 1]} : vector<2x384xf32> to vector<2x128xf32>
    %347 = vector.extract_strided_slice %329 {offsets = [0, 256], sizes = [2, 128], strides = [1, 1]} : vector<2x384xf32> to vector<2x128xf32>
    %348 = arith.mulf %337, %347 : vector<2x128xf32>
    %349 = arith.addf %346, %348 : vector<2x128xf32>
    %350 = math.tanh %349 : vector<2x128xf32>
    %cst_59 = arith.constant 1.000000e+00 : f32
    %351 = vector.broadcast %cst_59 : f32 to vector<2x128xf32>
    %352 = arith.subf %351, %345 : vector<2x128xf32>
    %353 = arith.mulf %352, %350 : vector<2x128xf32>
    %354 = arith.mulf %345, %284 : vector<2x128xf32>
    %355 = arith.addf %353, %354 : vector<2x128xf32>
    %c3_i32 = arith.constant 3 : i32
    %356 = vector.broadcast %c3_i32 : i32 to vector<2x1xi32>
    %357 = arith.cmpi sgt, %11, %356 : vector<2x1xi32>
    %358 = arith.extui %357 : vector<2x1xi1> to vector<2x1xi32>
    %359 = arith.sitofp %358 : vector<2x1xi32> to vector<2x1xf32>
    %c4_i32 = arith.constant 4 : i32
    %360 = vector.broadcast %c4_i32 : i32 to vector<2x1xi32>
    %361 = arith.cmpi sgt, %11, %360 : vector<2x1xi32>
    %362 = arith.extui %361 : vector<2x1xi1> to vector<2x1xi32>
    %363 = arith.sitofp %362 : vector<2x1xi32> to vector<2x1xf32>
    %364 = vector.broadcast %359 : vector<2x1xf32> to vector<2x128xf32>
    %365 = arith.mulf %364, %326 : vector<2x128xf32>
    %cst_60 = arith.constant 1.000000e+00 : f32
    %366 = vector.broadcast %cst_60 : f32 to vector<2x1xf32>
    %367 = arith.subf %366, %359 : vector<2x1xf32>
    %368 = vector.broadcast %367 : vector<2x1xf32> to vector<2x128xf32>
    %369 = arith.mulf %368, %277 : vector<2x128xf32>
    %370 = arith.addf %365, %369 : vector<2x128xf32>
    %371 = vector.broadcast %363 : vector<2x1xf32> to vector<2x128xf32>
    %372 = arith.mulf %371, %355 : vector<2x128xf32>
    %cst_61 = arith.constant 1.000000e+00 : f32
    %373 = vector.broadcast %cst_61 : f32 to vector<2x1xf32>
    %374 = arith.subf %373, %363 : vector<2x1xf32>
    %375 = vector.broadcast %374 : vector<2x1xf32> to vector<2x128xf32>
    %376 = arith.mulf %375, %284 : vector<2x128xf32>
    %377 = arith.addf %372, %376 : vector<2x128xf32>
    %378 = vector.broadcast %359 : vector<2x1xf32> to vector<2x128xf32>
    %379 = arith.mulf %378, %326 : vector<2x128xf32>
    %380 = vector.shape_cast %379 : vector<2x128xf32> to vector<2x1x128xf32>
    %c0_62 = arith.constant 0 : index
    %c3 = arith.constant 3 : index
    %c0_63 = arith.constant 0 : index
    %381 = vector.load %arg8[%c0_62, %c3, %c0_63] : memref<2x8x256xf32, #tpu.memory_space<vmem>>, vector<2x1x128xf32>
    tpu.vector_store %arg8[%c0_62, %c3, %c0_63], %380 {strides = array<i32>} : memref<2x8x256xf32, #tpu.memory_space<vmem>>, vector<2x1x128xf32>,
    %382 = vector.broadcast %363 : vector<2x1xf32> to vector<2x128xf32>
    %383 = arith.mulf %382, %355 : vector<2x128xf32>
    %384 = vector.shape_cast %383 : vector<2x128xf32> to vector<2x1x128xf32>
    %c0_64 = arith.constant 0 : index
    %c4 = arith.constant 4 : index
    %c128_65 = arith.constant 128 : index
    %385 = vector.load %arg8[%c0_64, %c4, %c128_65] : memref<2x8x256xf32, #tpu.memory_space<vmem>>, vector<2x1x128xf32>
    tpu.vector_store %arg8[%c0_64, %c4, %c128_65], %384 {strides = array<i32>} : memref<2x8x256xf32, #tpu.memory_space<vmem>>, vector<2x1x128xf32>,
    %386 = tpu.concatenate %370, %377 in 1 : vector<2x128xf32>, vector<2x128xf32> -> vector<2x256xf32>
    %387 = arith.truncf %386 : vector<2x256xf32> to vector<2x256xbf16>
    %cst_66 = arith.constant dense<0.000000e+00> : vector<2x768xf32>
    %388 = tpu.matmul %387, %9, %cst_66 {dimension_numbers = #tpu.dot_dimension_numbers<[1], [0], [0], [1], [0, 0, 1, 1], [], []>} : vector<2x256xbf16>, vector<256x768xbf16>, vector<2x768xf32> -> vector<2x768xf32>
    %389 = vector.broadcast %10 : vector<1x768xf32> to vector<2x768xf32>
    %390 = arith.addf %388, %389 : vector<2x768xf32>
    %391 = vector.extract_strided_slice %8 {offsets = [0, 4, 0], sizes = [2, 1, 384], strides = [1, 1, 1]} : vector<2x8x768xf32> to vector<2x1x384xf32>
    %392 = vector.shape_cast %391 : vector<2x1x384xf32> to vector<2x384xf32>
    %393 = vector.extract_strided_slice %390 {offsets = [0, 0], sizes = [2, 384], strides = [1, 1]} : vector<2x768xf32> to vector<2x384xf32>
    %394 = vector.extract_strided_slice %392 {offsets = [0, 0], sizes = [2, 128], strides = [1, 1]} : vector<2x384xf32> to vector<2x128xf32>
    %395 = vector.extract_strided_slice %393 {offsets = [0, 0], sizes = [2, 128], strides = [1, 1]} : vector<2x384xf32> to vector<2x128xf32>
    %396 = arith.addf %394, %395 : vector<2x128xf32>
    %397 = arith.negf %396 : vector<2x128xf32>
    %398 = math.exp %397 : vector<2x128xf32>
    %cst_67 = arith.constant 1.000000e+00 : f32
    %399 = vector.broadcast %cst_67 : f32 to vector<2x128xf32>
    %400 = arith.addf %399, %398 : vector<2x128xf32>
    %401 = arith.divf %399, %400 : vector<2x128xf32>
    %402 = vector.extract_strided_slice %392 {offsets = [0, 128], sizes = [2, 128], strides = [1, 1]} : vector<2x384xf32> to vector<2x128xf32>
    %403 = vector.extract_strided_slice %393 {offsets = [0, 128], sizes = [2, 128], strides = [1, 1]} : vector<2x384xf32> to vector<2x128xf32>
    %404 = arith.addf %402, %403 : vector<2x128xf32>
    %405 = arith.negf %404 : vector<2x128xf32>
    %406 = math.exp %405 : vector<2x128xf32>
    %cst_68 = arith.constant 1.000000e+00 : f32
    %407 = vector.broadcast %cst_68 : f32 to vector<2x128xf32>
    %408 = arith.addf %407, %406 : vector<2x128xf32>
    %409 = arith.divf %407, %408 : vector<2x128xf32>
    %410 = vector.extract_strided_slice %392 {offsets = [0, 256], sizes = [2, 128], strides = [1, 1]} : vector<2x384xf32> to vector<2x128xf32>
    %411 = vector.extract_strided_slice %393 {offsets = [0, 256], sizes = [2, 128], strides = [1, 1]} : vector<2x384xf32> to vector<2x128xf32>
    %412 = arith.mulf %401, %411 : vector<2x128xf32>
    %413 = arith.addf %410, %412 : vector<2x128xf32>
    %414 = math.tanh %413 : vector<2x128xf32>
    %cst_69 = arith.constant 1.000000e+00 : f32
    %415 = vector.broadcast %cst_69 : f32 to vector<2x128xf32>
    %416 = arith.subf %415, %409 : vector<2x128xf32>
    %417 = arith.mulf %416, %414 : vector<2x128xf32>
    %418 = arith.mulf %409, %370 : vector<2x128xf32>
    %419 = arith.addf %417, %418 : vector<2x128xf32>
    %420 = vector.extract_strided_slice %8 {offsets = [0, 3, 384], sizes = [2, 1, 384], strides = [1, 1, 1]} : vector<2x8x768xf32> to vector<2x1x384xf32>
    %421 = vector.shape_cast %420 : vector<2x1x384xf32> to vector<2x384xf32>
    %422 = vector.extract_strided_slice %390 {offsets = [0, 384], sizes = [2, 384], strides = [1, 1]} : vector<2x768xf32> to vector<2x384xf32>
    %423 = vector.extract_strided_slice %421 {offsets = [0, 0], sizes = [2, 128], strides = [1, 1]} : vector<2x384xf32> to vector<2x128xf32>
    %424 = vector.extract_strided_slice %422 {offsets = [0, 0], sizes = [2, 128], strides = [1, 1]} : vector<2x384xf32> to vector<2x128xf32>
    %425 = arith.addf %423, %424 : vector<2x128xf32>
    %426 = arith.negf %425 : vector<2x128xf32>
    %427 = math.exp %426 : vector<2x128xf32>
    %cst_70 = arith.constant 1.000000e+00 : f32
    %428 = vector.broadcast %cst_70 : f32 to vector<2x128xf32>
    %429 = arith.addf %428, %427 : vector<2x128xf32>
    %430 = arith.divf %428, %429 : vector<2x128xf32>
    %431 = vector.extract_strided_slice %421 {offsets = [0, 128], sizes = [2, 128], strides = [1, 1]} : vector<2x384xf32> to vector<2x128xf32>
    %432 = vector.extract_strided_slice %422 {offsets = [0, 128], sizes = [2, 128], strides = [1, 1]} : vector<2x384xf32> to vector<2x128xf32>
    %433 = arith.addf %431, %432 : vector<2x128xf32>
    %434 = arith.negf %433 : vector<2x128xf32>
    %435 = math.exp %434 : vector<2x128xf32>
    %cst_71 = arith.constant 1.000000e+00 : f32
    %436 = vector.broadcast %cst_71 : f32 to vector<2x128xf32>
    %437 = arith.addf %436, %435 : vector<2x128xf32>
    %438 = arith.divf %436, %437 : vector<2x128xf32>
    %439 = vector.extract_strided_slice %421 {offsets = [0, 256], sizes = [2, 128], strides = [1, 1]} : vector<2x384xf32> to vector<2x128xf32>
    %440 = vector.extract_strided_slice %422 {offsets = [0, 256], sizes = [2, 128], strides = [1, 1]} : vector<2x384xf32> to vector<2x128xf32>
    %441 = arith.mulf %430, %440 : vector<2x128xf32>
    %442 = arith.addf %439, %441 : vector<2x128xf32>
    %443 = math.tanh %442 : vector<2x128xf32>
    %cst_72 = arith.constant 1.000000e+00 : f32
    %444 = vector.broadcast %cst_72 : f32 to vector<2x128xf32>
    %445 = arith.subf %444, %438 : vector<2x128xf32>
    %446 = arith.mulf %445, %443 : vector<2x128xf32>
    %447 = arith.mulf %438, %377 : vector<2x128xf32>
    %448 = arith.addf %446, %447 : vector<2x128xf32>
    %c4_i32_73 = arith.constant 4 : i32
    %449 = vector.broadcast %c4_i32_73 : i32 to vector<2x1xi32>
    %450 = arith.cmpi sgt, %11, %449 : vector<2x1xi32>
    %451 = arith.extui %450 : vector<2x1xi1> to vector<2x1xi32>
    %452 = arith.sitofp %451 : vector<2x1xi32> to vector<2x1xf32>
    %c3_i32_74 = arith.constant 3 : i32
    %453 = vector.broadcast %c3_i32_74 : i32 to vector<2x1xi32>
    %454 = arith.cmpi sgt, %11, %453 : vector<2x1xi32>
    %455 = arith.extui %454 : vector<2x1xi1> to vector<2x1xi32>
    %456 = arith.sitofp %455 : vector<2x1xi32> to vector<2x1xf32>
    %457 = vector.broadcast %452 : vector<2x1xf32> to vector<2x128xf32>
    %458 = arith.mulf %457, %419 : vector<2x128xf32>
    %cst_75 = arith.constant 1.000000e+00 : f32
    %459 = vector.broadcast %cst_75 : f32 to vector<2x1xf32>
    %460 = arith.subf %459, %452 : vector<2x1xf32>
    %461 = vector.broadcast %460 : vector<2x1xf32> to vector<2x128xf32>
    %462 = arith.mulf %461, %370 : vector<2x128xf32>
    %463 = arith.addf %458, %462 : vector<2x128xf32>
    %464 = vector.broadcast %456 : vector<2x1xf32> to vector<2x128xf32>
    %465 = arith.mulf %464, %448 : vector<2x128xf32>
    %cst_76 = arith.constant 1.000000e+00 : f32
    %466 = vector.broadcast %cst_76 : f32 to vector<2x1xf32>
    %467 = arith.subf %466, %456 : vector<2x1xf32>
    %468 = vector.broadcast %467 : vector<2x1xf32> to vector<2x128xf32>
    %469 = arith.mulf %468, %377 : vector<2x128xf32>
    %470 = arith.addf %465, %469 : vector<2x128xf32>
    %471 = vector.broadcast %452 : vector<2x1xf32> to vector<2x128xf32>
    %472 = arith.mulf %471, %419 : vector<2x128xf32>
    %473 = vector.shape_cast %472 : vector<2x128xf32> to vector<2x1x128xf32>
    %c0_77 = arith.constant 0 : index
    %c4_78 = arith.constant 4 : index
    %c0_79 = arith.constant 0 : index
    %474 = vector.load %arg8[%c0_77, %c4_78, %c0_79] : memref<2x8x256xf32, #tpu.memory_space<vmem>>, vector<2x1x128xf32>
    tpu.vector_store %arg8[%c0_77, %c4_78, %c0_79], %473 {strides = array<i32>} : memref<2x8x256xf32, #tpu.memory_space<vmem>>, vector<2x1x128xf32>,
    %475 = vector.broadcast %456 : vector<2x1xf32> to vector<2x128xf32>
    %476 = arith.mulf %475, %448 : vector<2x128xf32>
    %477 = vector.shape_cast %476 : vector<2x128xf32> to vector<2x1x128xf32>
    %c0_80 = arith.constant 0 : index
    %c3_81 = arith.constant 3 : index
    %c128_82 = arith.constant 128 : index
    %478 = vector.load %arg8[%c0_80, %c3_81, %c128_82] : memref<2x8x256xf32, #tpu.memory_space<vmem>>, vector<2x1x128xf32>
    tpu.vector_store %arg8[%c0_80, %c3_81, %c128_82], %477 {strides = array<i32>} : memref<2x8x256xf32, #tpu.memory_space<vmem>>, vector<2x1x128xf32>,
    %479 = tpu.concatenate %463, %470 in 1 : vector<2x128xf32>, vector<2x128xf32> -> vector<2x256xf32>
    %480 = arith.truncf %479 : vector<2x256xf32> to vector<2x256xbf16>
    %cst_83 = arith.constant dense<0.000000e+00> : vector<2x768xf32>
    %481 = tpu.matmul %480, %9, %cst_83 {dimension_numbers = #tpu.dot_dimension_numbers<[1], [0], [0], [1], [0, 0, 1, 1], [], []>} : vector<2x256xbf16>, vector<256x768xbf16>, vector<2x768xf32> -> vector<2x768xf32>
    %482 = vector.broadcast %10 : vector<1x768xf32> to vector<2x768xf32>
    %483 = arith.addf %481, %482 : vector<2x768xf32>
    %484 = vector.extract_strided_slice %8 {offsets = [0, 5, 0], sizes = [2, 1, 384], strides = [1, 1, 1]} : vector<2x8x768xf32> to vector<2x1x384xf32>
    %485 = vector.shape_cast %484 : vector<2x1x384xf32> to vector<2x384xf32>
    %486 = vector.extract_strided_slice %483 {offsets = [0, 0], sizes = [2, 384], strides = [1, 1]} : vector<2x768xf32> to vector<2x384xf32>
    %487 = vector.extract_strided_slice %485 {offsets = [0, 0], sizes = [2, 128], strides = [1, 1]} : vector<2x384xf32> to vector<2x128xf32>
    %488 = vector.extract_strided_slice %486 {offsets = [0, 0], sizes = [2, 128], strides = [1, 1]} : vector<2x384xf32> to vector<2x128xf32>
    %489 = arith.addf %487, %488 : vector<2x128xf32>
    %490 = arith.negf %489 : vector<2x128xf32>
    %491 = math.exp %490 : vector<2x128xf32>
    %cst_84 = arith.constant 1.000000e+00 : f32
    %492 = vector.broadcast %cst_84 : f32 to vector<2x128xf32>
    %493 = arith.addf %492, %491 : vector<2x128xf32>
    %494 = arith.divf %492, %493 : vector<2x128xf32>
    %495 = vector.extract_strided_slice %485 {offsets = [0, 128], sizes = [2, 128], strides = [1, 1]} : vector<2x384xf32> to vector<2x128xf32>
    %496 = vector.extract_strided_slice %486 {offsets = [0, 128], sizes = [2, 128], strides = [1, 1]} : vector<2x384xf32> to vector<2x128xf32>
    %497 = arith.addf %495, %496 : vector<2x128xf32>
    %498 = arith.negf %497 : vector<2x128xf32>
    %499 = math.exp %498 : vector<2x128xf32>
    %cst_85 = arith.constant 1.000000e+00 : f32
    %500 = vector.broadcast %cst_85 : f32 to vector<2x128xf32>
    %501 = arith.addf %500, %499 : vector<2x128xf32>
    %502 = arith.divf %500, %501 : vector<2x128xf32>
    %503 = vector.extract_strided_slice %485 {offsets = [0, 256], sizes = [2, 128], strides = [1, 1]} : vector<2x384xf32> to vector<2x128xf32>
    %504 = vector.extract_strided_slice %486 {offsets = [0, 256], sizes = [2, 128], strides = [1, 1]} : vector<2x384xf32> to vector<2x128xf32>
    %505 = arith.mulf %494, %504 : vector<2x128xf32>
    %506 = arith.addf %503, %505 : vector<2x128xf32>
    %507 = math.tanh %506 : vector<2x128xf32>
    %cst_86 = arith.constant 1.000000e+00 : f32
    %508 = vector.broadcast %cst_86 : f32 to vector<2x128xf32>
    %509 = arith.subf %508, %502 : vector<2x128xf32>
    %510 = arith.mulf %509, %507 : vector<2x128xf32>
    %511 = arith.mulf %502, %463 : vector<2x128xf32>
    %512 = arith.addf %510, %511 : vector<2x128xf32>
    %513 = vector.extract_strided_slice %8 {offsets = [0, 2, 384], sizes = [2, 1, 384], strides = [1, 1, 1]} : vector<2x8x768xf32> to vector<2x1x384xf32>
    %514 = vector.shape_cast %513 : vector<2x1x384xf32> to vector<2x384xf32>
    %515 = vector.extract_strided_slice %483 {offsets = [0, 384], sizes = [2, 384], strides = [1, 1]} : vector<2x768xf32> to vector<2x384xf32>
    %516 = vector.extract_strided_slice %514 {offsets = [0, 0], sizes = [2, 128], strides = [1, 1]} : vector<2x384xf32> to vector<2x128xf32>
    %517 = vector.extract_strided_slice %515 {offsets = [0, 0], sizes = [2, 128], strides = [1, 1]} : vector<2x384xf32> to vector<2x128xf32>
    %518 = arith.addf %516, %517 : vector<2x128xf32>
    %519 = arith.negf %518 : vector<2x128xf32>
    %520 = math.exp %519 : vector<2x128xf32>
    %cst_87 = arith.constant 1.000000e+00 : f32
    %521 = vector.broadcast %cst_87 : f32 to vector<2x128xf32>
    %522 = arith.addf %521, %520 : vector<2x128xf32>
    %523 = arith.divf %521, %522 : vector<2x128xf32>
    %524 = vector.extract_strided_slice %514 {offsets = [0, 128], sizes = [2, 128], strides = [1, 1]} : vector<2x384xf32> to vector<2x128xf32>
    %525 = vector.extract_strided_slice %515 {offsets = [0, 128], sizes = [2, 128], strides = [1, 1]} : vector<2x384xf32> to vector<2x128xf32>
    %526 = arith.addf %524, %525 : vector<2x128xf32>
    %527 = arith.negf %526 : vector<2x128xf32>
    %528 = math.exp %527 : vector<2x128xf32>
    %cst_88 = arith.constant 1.000000e+00 : f32
    %529 = vector.broadcast %cst_88 : f32 to vector<2x128xf32>
    %530 = arith.addf %529, %528 : vector<2x128xf32>
    %531 = arith.divf %529, %530 : vector<2x128xf32>
    %532 = vector.extract_strided_slice %514 {offsets = [0, 256], sizes = [2, 128], strides = [1, 1]} : vector<2x384xf32> to vector<2x128xf32>
    %533 = vector.extract_strided_slice %515 {offsets = [0, 256], sizes = [2, 128], strides = [1, 1]} : vector<2x384xf32> to vector<2x128xf32>
    %534 = arith.mulf %523, %533 : vector<2x128xf32>
    %535 = arith.addf %532, %534 : vector<2x128xf32>
    %536 = math.tanh %535 : vector<2x128xf32>
    %cst_89 = arith.constant 1.000000e+00 : f32
    %537 = vector.broadcast %cst_89 : f32 to vector<2x128xf32>
    %538 = arith.subf %537, %531 : vector<2x128xf32>
    %539 = arith.mulf %538, %536 : vector<2x128xf32>
    %540 = arith.mulf %531, %470 : vector<2x128xf32>
    %541 = arith.addf %539, %540 : vector<2x128xf32>
    %c5_i32_90 = arith.constant 5 : i32
    %542 = vector.broadcast %c5_i32_90 : i32 to vector<2x1xi32>
    %543 = arith.cmpi sgt, %11, %542 : vector<2x1xi32>
    %544 = arith.extui %543 : vector<2x1xi1> to vector<2x1xi32>
    %545 = arith.sitofp %544 : vector<2x1xi32> to vector<2x1xf32>
    %c2_i32_91 = arith.constant 2 : i32
    %546 = vector.broadcast %c2_i32_91 : i32 to vector<2x1xi32>
    %547 = arith.cmpi sgt, %11, %546 : vector<2x1xi32>
    %548 = arith.extui %547 : vector<2x1xi1> to vector<2x1xi32>
    %549 = arith.sitofp %548 : vector<2x1xi32> to vector<2x1xf32>
    %550 = vector.broadcast %545 : vector<2x1xf32> to vector<2x128xf32>
    %551 = arith.mulf %550, %512 : vector<2x128xf32>
    %cst_92 = arith.constant 1.000000e+00 : f32
    %552 = vector.broadcast %cst_92 : f32 to vector<2x1xf32>
    %553 = arith.subf %552, %545 : vector<2x1xf32>
    %554 = vector.broadcast %553 : vector<2x1xf32> to vector<2x128xf32>
    %555 = arith.mulf %554, %463 : vector<2x128xf32>
    %556 = arith.addf %551, %555 : vector<2x128xf32>
    %557 = vector.broadcast %549 : vector<2x1xf32> to vector<2x128xf32>
    %558 = arith.mulf %557, %541 : vector<2x128xf32>
    %cst_93 = arith.constant 1.000000e+00 : f32
    %559 = vector.broadcast %cst_93 : f32 to vector<2x1xf32>
    %560 = arith.subf %559, %549 : vector<2x1xf32>
    %561 = vector.broadcast %560 : vector<2x1xf32> to vector<2x128xf32>
    %562 = arith.mulf %561, %470 : vector<2x128xf32>
    %563 = arith.addf %558, %562 : vector<2x128xf32>
    %564 = vector.broadcast %545 : vector<2x1xf32> to vector<2x128xf32>
    %565 = arith.mulf %564, %512 : vector<2x128xf32>
    %566 = vector.shape_cast %565 : vector<2x128xf32> to vector<2x1x128xf32>
    %c0_94 = arith.constant 0 : index
    %c5_95 = arith.constant 5 : index
    %c0_96 = arith.constant 0 : index
    %567 = vector.load %arg8[%c0_94, %c5_95, %c0_96] : memref<2x8x256xf32, #tpu.memory_space<vmem>>, vector<2x1x128xf32>
    tpu.vector_store %arg8[%c0_94, %c5_95, %c0_96], %566 {strides = array<i32>} : memref<2x8x256xf32, #tpu.memory_space<vmem>>, vector<2x1x128xf32>,
    %568 = vector.broadcast %549 : vector<2x1xf32> to vector<2x128xf32>
    %569 = arith.mulf %568, %541 : vector<2x128xf32>
    %570 = vector.shape_cast %569 : vector<2x128xf32> to vector<2x1x128xf32>
    %c0_97 = arith.constant 0 : index
    %c2_98 = arith.constant 2 : index
    %c128_99 = arith.constant 128 : index
    %571 = vector.load %arg8[%c0_97, %c2_98, %c128_99] : memref<2x8x256xf32, #tpu.memory_space<vmem>>, vector<2x1x128xf32>
    tpu.vector_store %arg8[%c0_97, %c2_98, %c128_99], %570 {strides = array<i32>} : memref<2x8x256xf32, #tpu.memory_space<vmem>>, vector<2x1x128xf32>,
    %572 = tpu.concatenate %556, %563 in 1 : vector<2x128xf32>, vector<2x128xf32> -> vector<2x256xf32>
    %573 = arith.truncf %572 : vector<2x256xf32> to vector<2x256xbf16>
    %cst_100 = arith.constant dense<0.000000e+00> : vector<2x768xf32>
    %574 = tpu.matmul %573, %9, %cst_100 {dimension_numbers = #tpu.dot_dimension_numbers<[1], [0], [0], [1], [0, 0, 1, 1], [], []>} : vector<2x256xbf16>, vector<256x768xbf16>, vector<2x768xf32> -> vector<2x768xf32>
    %575 = vector.broadcast %10 : vector<1x768xf32> to vector<2x768xf32>
    %576 = arith.addf %574, %575 : vector<2x768xf32>
    %577 = vector.extract_strided_slice %8 {offsets = [0, 6, 0], sizes = [2, 1, 384], strides = [1, 1, 1]} : vector<2x8x768xf32> to vector<2x1x384xf32>
    %578 = vector.shape_cast %577 : vector<2x1x384xf32> to vector<2x384xf32>
    %579 = vector.extract_strided_slice %576 {offsets = [0, 0], sizes = [2, 384], strides = [1, 1]} : vector<2x768xf32> to vector<2x384xf32>
    %580 = vector.extract_strided_slice %578 {offsets = [0, 0], sizes = [2, 128], strides = [1, 1]} : vector<2x384xf32> to vector<2x128xf32>
    %581 = vector.extract_strided_slice %579 {offsets = [0, 0], sizes = [2, 128], strides = [1, 1]} : vector<2x384xf32> to vector<2x128xf32>
    %582 = arith.addf %580, %581 : vector<2x128xf32>
    %583 = arith.negf %582 : vector<2x128xf32>
    %584 = math.exp %583 : vector<2x128xf32>
    %cst_101 = arith.constant 1.000000e+00 : f32
    %585 = vector.broadcast %cst_101 : f32 to vector<2x128xf32>
    %586 = arith.addf %585, %584 : vector<2x128xf32>
    %587 = arith.divf %585, %586 : vector<2x128xf32>
    %588 = vector.extract_strided_slice %578 {offsets = [0, 128], sizes = [2, 128], strides = [1, 1]} : vector<2x384xf32> to vector<2x128xf32>
    %589 = vector.extract_strided_slice %579 {offsets = [0, 128], sizes = [2, 128], strides = [1, 1]} : vector<2x384xf32> to vector<2x128xf32>
    %590 = arith.addf %588, %589 : vector<2x128xf32>
    %591 = arith.negf %590 : vector<2x128xf32>
    %592 = math.exp %591 : vector<2x128xf32>
    %cst_102 = arith.constant 1.000000e+00 : f32
    %593 = vector.broadcast %cst_102 : f32 to vector<2x128xf32>
    %594 = arith.addf %593, %592 : vector<2x128xf32>
    %595 = arith.divf %593, %594 : vector<2x128xf32>
    %596 = vector.extract_strided_slice %578 {offsets = [0, 256], sizes = [2, 128], strides = [1, 1]} : vector<2x384xf32> to vector<2x128xf32>
    %597 = vector.extract_strided_slice %579 {offsets = [0, 256], sizes = [2, 128], strides = [1, 1]} : vector<2x384xf32> to vector<2x128xf32>
    %598 = arith.mulf %587, %597 : vector<2x128xf32>
    %599 = arith.addf %596, %598 : vector<2x128xf32>
    %600 = math.tanh %599 : vector<2x128xf32>
    %cst_103 = arith.constant 1.000000e+00 : f32
    %601 = vector.broadcast %cst_103 : f32 to vector<2x128xf32>
    %602 = arith.subf %601, %595 : vector<2x128xf32>
    %603 = arith.mulf %602, %600 : vector<2x128xf32>
    %604 = arith.mulf %595, %556 : vector<2x128xf32>
    %605 = arith.addf %603, %604 : vector<2x128xf32>
    %606 = vector.extract_strided_slice %8 {offsets = [0, 1, 384], sizes = [2, 1, 384], strides = [1, 1, 1]} : vector<2x8x768xf32> to vector<2x1x384xf32>
    %607 = vector.shape_cast %606 : vector<2x1x384xf32> to vector<2x384xf32>
    %608 = vector.extract_strided_slice %576 {offsets = [0, 384], sizes = [2, 384], strides = [1, 1]} : vector<2x768xf32> to vector<2x384xf32>
    %609 = vector.extract_strided_slice %607 {offsets = [0, 0], sizes = [2, 128], strides = [1, 1]} : vector<2x384xf32> to vector<2x128xf32>
    %610 = vector.extract_strided_slice %608 {offsets = [0, 0], sizes = [2, 128], strides = [1, 1]} : vector<2x384xf32> to vector<2x128xf32>
    %611 = arith.addf %609, %610 : vector<2x128xf32>
    %612 = arith.negf %611 : vector<2x128xf32>
    %613 = math.exp %612 : vector<2x128xf32>
    %cst_104 = arith.constant 1.000000e+00 : f32
    %614 = vector.broadcast %cst_104 : f32 to vector<2x128xf32>
    %615 = arith.addf %614, %613 : vector<2x128xf32>
    %616 = arith.divf %614, %615 : vector<2x128xf32>
    %617 = vector.extract_strided_slice %607 {offsets = [0, 128], sizes = [2, 128], strides = [1, 1]} : vector<2x384xf32> to vector<2x128xf32>
    %618 = vector.extract_strided_slice %608 {offsets = [0, 128], sizes = [2, 128], strides = [1, 1]} : vector<2x384xf32> to vector<2x128xf32>
    %619 = arith.addf %617, %618 : vector<2x128xf32>
    %620 = arith.negf %619 : vector<2x128xf32>
    %621 = math.exp %620 : vector<2x128xf32>
    %cst_105 = arith.constant 1.000000e+00 : f32
    %622 = vector.broadcast %cst_105 : f32 to vector<2x128xf32>
    %623 = arith.addf %622, %621 : vector<2x128xf32>
    %624 = arith.divf %622, %623 : vector<2x128xf32>
    %625 = vector.extract_strided_slice %607 {offsets = [0, 256], sizes = [2, 128], strides = [1, 1]} : vector<2x384xf32> to vector<2x128xf32>
    %626 = vector.extract_strided_slice %608 {offsets = [0, 256], sizes = [2, 128], strides = [1, 1]} : vector<2x384xf32> to vector<2x128xf32>
    %627 = arith.mulf %616, %626 : vector<2x128xf32>
    %628 = arith.addf %625, %627 : vector<2x128xf32>
    %629 = math.tanh %628 : vector<2x128xf32>
    %cst_106 = arith.constant 1.000000e+00 : f32
    %630 = vector.broadcast %cst_106 : f32 to vector<2x128xf32>
    %631 = arith.subf %630, %624 : vector<2x128xf32>
    %632 = arith.mulf %631, %629 : vector<2x128xf32>
    %633 = arith.mulf %624, %563 : vector<2x128xf32>
    %634 = arith.addf %632, %633 : vector<2x128xf32>
    %c6_i32_107 = arith.constant 6 : i32
    %635 = vector.broadcast %c6_i32_107 : i32 to vector<2x1xi32>
    %636 = arith.cmpi sgt, %11, %635 : vector<2x1xi32>
    %637 = arith.extui %636 : vector<2x1xi1> to vector<2x1xi32>
    %638 = arith.sitofp %637 : vector<2x1xi32> to vector<2x1xf32>
    %c1_i32_108 = arith.constant 1 : i32
    %639 = vector.broadcast %c1_i32_108 : i32 to vector<2x1xi32>
    %640 = arith.cmpi sgt, %11, %639 : vector<2x1xi32>
    %641 = arith.extui %640 : vector<2x1xi1> to vector<2x1xi32>
    %642 = arith.sitofp %641 : vector<2x1xi32> to vector<2x1xf32>
    %643 = vector.broadcast %638 : vector<2x1xf32> to vector<2x128xf32>
    %644 = arith.mulf %643, %605 : vector<2x128xf32>
    %cst_109 = arith.constant 1.000000e+00 : f32
    %645 = vector.broadcast %cst_109 : f32 to vector<2x1xf32>
    %646 = arith.subf %645, %638 : vector<2x1xf32>
    %647 = vector.broadcast %646 : vector<2x1xf32> to vector<2x128xf32>
    %648 = arith.mulf %647, %556 : vector<2x128xf32>
    %649 = arith.addf %644, %648 : vector<2x128xf32>
    %650 = vector.broadcast %642 : vector<2x1xf32> to vector<2x128xf32>
    %651 = arith.mulf %650, %634 : vector<2x128xf32>
    %cst_110 = arith.constant 1.000000e+00 : f32
    %652 = vector.broadcast %cst_110 : f32 to vector<2x1xf32>
    %653 = arith.subf %652, %642 : vector<2x1xf32>
    %654 = vector.broadcast %653 : vector<2x1xf32> to vector<2x128xf32>
    %655 = arith.mulf %654, %563 : vector<2x128xf32>
    %656 = arith.addf %651, %655 : vector<2x128xf32>
    %657 = vector.broadcast %638 : vector<2x1xf32> to vector<2x128xf32>
    %658 = arith.mulf %657, %605 : vector<2x128xf32>
    %659 = vector.shape_cast %658 : vector<2x128xf32> to vector<2x1x128xf32>
    %c0_111 = arith.constant 0 : index
    %c6_112 = arith.constant 6 : index
    %c0_113 = arith.constant 0 : index
    %660 = vector.load %arg8[%c0_111, %c6_112, %c0_113] : memref<2x8x256xf32, #tpu.memory_space<vmem>>, vector<2x1x128xf32>
    tpu.vector_store %arg8[%c0_111, %c6_112, %c0_113], %659 {strides = array<i32>} : memref<2x8x256xf32, #tpu.memory_space<vmem>>, vector<2x1x128xf32>,
    %661 = vector.broadcast %642 : vector<2x1xf32> to vector<2x128xf32>
    %662 = arith.mulf %661, %634 : vector<2x128xf32>
    %663 = vector.shape_cast %662 : vector<2x128xf32> to vector<2x1x128xf32>
    %c0_114 = arith.constant 0 : index
    %c1_115 = arith.constant 1 : index
    %c128_116 = arith.constant 128 : index
    %664 = vector.load %arg8[%c0_114, %c1_115, %c128_116] : memref<2x8x256xf32, #tpu.memory_space<vmem>>, vector<2x1x128xf32>
    tpu.vector_store %arg8[%c0_114, %c1_115, %c128_116], %663 {strides = array<i32>} : memref<2x8x256xf32, #tpu.memory_space<vmem>>, vector<2x1x128xf32>,
    %665 = tpu.concatenate %649, %656 in 1 : vector<2x128xf32>, vector<2x128xf32> -> vector<2x256xf32>
    %666 = arith.truncf %665 : vector<2x256xf32> to vector<2x256xbf16>
    %cst_117 = arith.constant dense<0.000000e+00> : vector<2x768xf32>
    %667 = tpu.matmul %666, %9, %cst_117 {dimension_numbers = #tpu.dot_dimension_numbers<[1], [0], [0], [1], [0, 0, 1, 1], [], []>} : vector<2x256xbf16>, vector<256x768xbf16>, vector<2x768xf32> -> vector<2x768xf32>
    %668 = vector.broadcast %10 : vector<1x768xf32> to vector<2x768xf32>
    %669 = arith.addf %667, %668 : vector<2x768xf32>
    %670 = vector.extract_strided_slice %8 {offsets = [0, 7, 0], sizes = [2, 1, 384], strides = [1, 1, 1]} : vector<2x8x768xf32> to vector<2x1x384xf32>
    %671 = vector.shape_cast %670 : vector<2x1x384xf32> to vector<2x384xf32>
    %672 = vector.extract_strided_slice %669 {offsets = [0, 0], sizes = [2, 384], strides = [1, 1]} : vector<2x768xf32> to vector<2x384xf32>
    %673 = vector.extract_strided_slice %671 {offsets = [0, 0], sizes = [2, 128], strides = [1, 1]} : vector<2x384xf32> to vector<2x128xf32>
    %674 = vector.extract_strided_slice %672 {offsets = [0, 0], sizes = [2, 128], strides = [1, 1]} : vector<2x384xf32> to vector<2x128xf32>
    %675 = arith.addf %673, %674 : vector<2x128xf32>
    %676 = arith.negf %675 : vector<2x128xf32>
    %677 = math.exp %676 : vector<2x128xf32>
    %cst_118 = arith.constant 1.000000e+00 : f32
    %678 = vector.broadcast %cst_118 : f32 to vector<2x128xf32>
    %679 = arith.addf %678, %677 : vector<2x128xf32>
    %680 = arith.divf %678, %679 : vector<2x128xf32>
    %681 = vector.extract_strided_slice %671 {offsets = [0, 128], sizes = [2, 128], strides = [1, 1]} : vector<2x384xf32> to vector<2x128xf32>
    %682 = vector.extract_strided_slice %672 {offsets = [0, 128], sizes = [2, 128], strides = [1, 1]} : vector<2x384xf32> to vector<2x128xf32>
    %683 = arith.addf %681, %682 : vector<2x128xf32>
    %684 = arith.negf %683 : vector<2x128xf32>
    %685 = math.exp %684 : vector<2x128xf32>
    %cst_119 = arith.constant 1.000000e+00 : f32
    %686 = vector.broadcast %cst_119 : f32 to vector<2x128xf32>
    %687 = arith.addf %686, %685 : vector<2x128xf32>
    %688 = arith.divf %686, %687 : vector<2x128xf32>
    %689 = vector.extract_strided_slice %671 {offsets = [0, 256], sizes = [2, 128], strides = [1, 1]} : vector<2x384xf32> to vector<2x128xf32>
    %690 = vector.extract_strided_slice %672 {offsets = [0, 256], sizes = [2, 128], strides = [1, 1]} : vector<2x384xf32> to vector<2x128xf32>
    %691 = arith.mulf %680, %690 : vector<2x128xf32>
    %692 = arith.addf %689, %691 : vector<2x128xf32>
    %693 = math.tanh %692 : vector<2x128xf32>
    %cst_120 = arith.constant 1.000000e+00 : f32
    %694 = vector.broadcast %cst_120 : f32 to vector<2x128xf32>
    %695 = arith.subf %694, %688 : vector<2x128xf32>
    %696 = arith.mulf %695, %693 : vector<2x128xf32>
    %697 = arith.mulf %688, %649 : vector<2x128xf32>
    %698 = arith.addf %696, %697 : vector<2x128xf32>
    %699 = vector.extract_strided_slice %8 {offsets = [0, 0, 384], sizes = [2, 1, 384], strides = [1, 1, 1]} : vector<2x8x768xf32> to vector<2x1x384xf32>
    %700 = vector.shape_cast %699 : vector<2x1x384xf32> to vector<2x384xf32>
    %701 = vector.extract_strided_slice %669 {offsets = [0, 384], sizes = [2, 384], strides = [1, 1]} : vector<2x768xf32> to vector<2x384xf32>
    %702 = vector.extract_strided_slice %700 {offsets = [0, 0], sizes = [2, 128], strides = [1, 1]} : vector<2x384xf32> to vector<2x128xf32>
    %703 = vector.extract_strided_slice %701 {offsets = [0, 0], sizes = [2, 128], strides = [1, 1]} : vector<2x384xf32> to vector<2x128xf32>
    %704 = arith.addf %702, %703 : vector<2x128xf32>
    %705 = arith.negf %704 : vector<2x128xf32>
    %706 = math.exp %705 : vector<2x128xf32>
    %cst_121 = arith.constant 1.000000e+00 : f32
    %707 = vector.broadcast %cst_121 : f32 to vector<2x128xf32>
    %708 = arith.addf %707, %706 : vector<2x128xf32>
    %709 = arith.divf %707, %708 : vector<2x128xf32>
    %710 = vector.extract_strided_slice %700 {offsets = [0, 128], sizes = [2, 128], strides = [1, 1]} : vector<2x384xf32> to vector<2x128xf32>
    %711 = vector.extract_strided_slice %701 {offsets = [0, 128], sizes = [2, 128], strides = [1, 1]} : vector<2x384xf32> to vector<2x128xf32>
    %712 = arith.addf %710, %711 : vector<2x128xf32>
    %713 = arith.negf %712 : vector<2x128xf32>
    %714 = math.exp %713 : vector<2x128xf32>
    %cst_122 = arith.constant 1.000000e+00 : f32
    %715 = vector.broadcast %cst_122 : f32 to vector<2x128xf32>
    %716 = arith.addf %715, %714 : vector<2x128xf32>
    %717 = arith.divf %715, %716 : vector<2x128xf32>
    %718 = vector.extract_strided_slice %700 {offsets = [0, 256], sizes = [2, 128], strides = [1, 1]} : vector<2x384xf32> to vector<2x128xf32>
    %719 = vector.extract_strided_slice %701 {offsets = [0, 256], sizes = [2, 128], strides = [1, 1]} : vector<2x384xf32> to vector<2x128xf32>
    %720 = arith.mulf %709, %719 : vector<2x128xf32>
    %721 = arith.addf %718, %720 : vector<2x128xf32>
    %722 = math.tanh %721 : vector<2x128xf32>
    %cst_123 = arith.constant 1.000000e+00 : f32
    %723 = vector.broadcast %cst_123 : f32 to vector<2x128xf32>
    %724 = arith.subf %723, %717 : vector<2x128xf32>
    %725 = arith.mulf %724, %722 : vector<2x128xf32>
    %726 = arith.mulf %717, %656 : vector<2x128xf32>
    %727 = arith.addf %725, %726 : vector<2x128xf32>
    %c7_i32_124 = arith.constant 7 : i32
    %728 = vector.broadcast %c7_i32_124 : i32 to vector<2x1xi32>
    %729 = arith.cmpi sgt, %11, %728 : vector<2x1xi32>
    %730 = arith.extui %729 : vector<2x1xi1> to vector<2x1xi32>
    %731 = arith.sitofp %730 : vector<2x1xi32> to vector<2x1xf32>
    %c0_i32_125 = arith.constant 0 : i32
    %732 = vector.broadcast %c0_i32_125 : i32 to vector<2x1xi32>
    %733 = arith.cmpi sgt, %11, %732 : vector<2x1xi32>
    %734 = arith.extui %733 : vector<2x1xi1> to vector<2x1xi32>
    %735 = arith.sitofp %734 : vector<2x1xi32> to vector<2x1xf32>
    %736 = vector.broadcast %731 : vector<2x1xf32> to vector<2x128xf32>
    %737 = arith.mulf %736, %698 : vector<2x128xf32>
    %cst_126 = arith.constant 1.000000e+00 : f32
    %738 = vector.broadcast %cst_126 : f32 to vector<2x1xf32>
    %739 = arith.subf %738, %731 : vector<2x1xf32>
    %740 = vector.broadcast %739 : vector<2x1xf32> to vector<2x128xf32>
    %741 = arith.mulf %740, %649 : vector<2x128xf32>
    %742 = arith.addf %737, %741 : vector<2x128xf32>
    %743 = vector.broadcast %735 : vector<2x1xf32> to vector<2x128xf32>
    %744 = arith.mulf %743, %727 : vector<2x128xf32>
    %cst_127 = arith.constant 1.000000e+00 : f32
    %745 = vector.broadcast %cst_127 : f32 to vector<2x1xf32>
    %746 = arith.subf %745, %735 : vector<2x1xf32>
    %747 = vector.broadcast %746 : vector<2x1xf32> to vector<2x128xf32>
    %748 = arith.mulf %747, %656 : vector<2x128xf32>
    %749 = arith.addf %744, %748 : vector<2x128xf32>
    %750 = vector.broadcast %731 : vector<2x1xf32> to vector<2x128xf32>
    %751 = arith.mulf %750, %698 : vector<2x128xf32>
    %752 = vector.shape_cast %751 : vector<2x128xf32> to vector<2x1x128xf32>
    %c0_128 = arith.constant 0 : index
    %c7_129 = arith.constant 7 : index
    %c0_130 = arith.constant 0 : index
    %753 = vector.load %arg8[%c0_128, %c7_129, %c0_130] : memref<2x8x256xf32, #tpu.memory_space<vmem>>, vector<2x1x128xf32>
    tpu.vector_store %arg8[%c0_128, %c7_129, %c0_130], %752 {strides = array<i32>} : memref<2x8x256xf32, #tpu.memory_space<vmem>>, vector<2x1x128xf32>,
    %754 = vector.broadcast %735 : vector<2x1xf32> to vector<2x128xf32>
    %755 = arith.mulf %754, %727 : vector<2x128xf32>
    %756 = vector.shape_cast %755 : vector<2x128xf32> to vector<2x1x128xf32>
    %c0_131 = arith.constant 0 : index
    %c0_132 = arith.constant 0 : index
    %c128_133 = arith.constant 128 : index
    %757 = vector.load %arg8[%c0_131, %c0_132, %c128_133] : memref<2x8x256xf32, #tpu.memory_space<vmem>>, vector<2x1x128xf32>
    tpu.vector_store %arg8[%c0_131, %c0_132, %c128_133], %756 {strides = array<i32>} : memref<2x8x256xf32, #tpu.memory_space<vmem>>, vector<2x1x128xf32>,
    %758 = tpu.concatenate %742, %749 in 1 : vector<2x128xf32>, vector<2x128xf32> -> vector<2x256xf32>
    %759 = arith.truncf %758 : vector<2x256xf32> to vector<2x256xbf16>
    %c0_134 = arith.constant 0 : index
    %c0_135 = arith.constant 0 : index
    %760 = vector.load %arg6[%c0_134, %c0_135] : memref<256x128xbf16, #tpu.memory_space<vmem>>, vector<256x128xbf16>
    %cst_136 = arith.constant dense<0.000000e+00> : vector<2x128xf32>
    %761 = tpu.matmul %759, %760, %cst_136 {dimension_numbers = #tpu.dot_dimension_numbers<[1], [0], [0], [1], [0, 0, 1, 1], [], []>} : vector<2x256xbf16>, vector<256x128xbf16>, vector<2x128xf32> -> vector<2x128xf32>
    %c0_137 = arith.constant 0 : index
    %c0_138 = arith.constant 0 : index
    %762 = vector.load %arg7[%c0_137, %c0_138] : memref<1x128xf32, #tpu.memory_space<vmem>>, vector<1x128xf32>
    %763 = vector.broadcast %762 : vector<1x128xf32> to vector<2x128xf32>
    %764 = arith.addf %761, %763 : vector<2x128xf32>
    %765 = math.tanh %764 : vector<2x128xf32>
    %c0_139 = arith.constant 0 : index
    %c0_140 = arith.constant 0 : index
    %766 = vector.load %arg9[%c0_139, %c0_140] : memref<2x128xf32, #tpu.memory_space<vmem>>, vector<2x128xf32>
    tpu.vector_store %arg9[%c0_139, %c0_140], %765 {strides = array<i32>} : memref<2x128xf32, #tpu.memory_space<vmem>>, vector<2x128xf32>,
    return
  }
}

module attributes {stable_mosaic.version = 11 : i64} {
  func.func @_decoder_kernel(%arg0: memref<2x8x32xf32, #tpu.memory_space<vmem>>, %arg1: memref<2x8x256xf32, #tpu.memory_space<vmem>>, %arg2: memref<2x128xf32, #tpu.memory_space<vmem>>, %arg3: memref<2x1xi32, #tpu.memory_space<vmem>>, %arg4: memref<2x1xi32, #tpu.memory_space<vmem>>, %arg5: memref<32x384xbf16, #tpu.memory_space<vmem>>, %arg6: memref<128x384xbf16, #tpu.memory_space<vmem>>, %arg7: memref<1x384xf32, #tpu.memory_space<vmem>>, %arg8: memref<1x384xf32, #tpu.memory_space<vmem>>, %arg9: memref<256x128xbf16, #tpu.memory_space<vmem>>, %arg10: memref<384x128xbf16, #tpu.memory_space<vmem>>, %arg11: memref<1x128xf32, #tpu.memory_space<vmem>>, %arg12: memref<128x128xbf16, #tpu.memory_space<vmem>>, %arg13: memref<1x128xf32, #tpu.memory_space<vmem>>, %arg14: memref<2x8x128xf32, #tpu.memory_space<vmem>>, %arg15: memref<2x128xf32, #tpu.memory_space<vmem>>, %arg16: memref<2x8x128xf32, #tpu.memory_space<vmem>>, %arg17: memref<2x8x128xf32, #tpu.memory_space<vmem>>) attributes {dimension_semantics = [], scalar_prefetch = 0 : i64, scratch_operands = 1 : i64, tpu.core_type = #tpu.core_type<tc>} {
    %c0 = arith.constant 0 : index
    %c0_0 = arith.constant 0 : index
    %c0_1 = arith.constant 0 : index
    %0 = vector.load %arg0[%c0, %c0_0, %c0_1] : memref<2x8x32xf32, #tpu.memory_space<vmem>>, vector<2x8x32xf32>
    %1 = vector.shape_cast %0 : vector<2x8x32xf32> to vector<16x32xf32>
    %2 = arith.truncf %1 : vector<16x32xf32> to vector<16x32xbf16>
    %c0_2 = arith.constant 0 : index
    %c0_3 = arith.constant 0 : index
    %3 = vector.load %arg5[%c0_2, %c0_3] : memref<32x384xbf16, #tpu.memory_space<vmem>>, vector<32x384xbf16>
    %cst = arith.constant dense<0.000000e+00> : vector<16x384xf32>
    %4 = tpu.matmul %2, %3, %cst {dimension_numbers = #tpu.dot_dimension_numbers<[1], [0], [0], [1], [0, 0, 1, 1], [], []>} : vector<16x32xbf16>, vector<32x384xbf16>, vector<16x384xf32> -> vector<16x384xf32>
    %c0_4 = arith.constant 0 : index
    %c0_5 = arith.constant 0 : index
    %5 = vector.load %arg7[%c0_4, %c0_5] : memref<1x384xf32, #tpu.memory_space<vmem>>, vector<1x384xf32>
    %6 = vector.broadcast %5 : vector<1x384xf32> to vector<16x384xf32>
    %7 = arith.addf %4, %6 : vector<16x384xf32>
    %8 = vector.shape_cast %7 : vector<16x384xf32> to vector<2x8x384xf32>
    %c0_6 = arith.constant 0 : index
    %c0_7 = arith.constant 0 : index
    %9 = vector.load %arg6[%c0_6, %c0_7] : memref<128x384xbf16, #tpu.memory_space<vmem>>, vector<128x384xbf16>
    %c0_8 = arith.constant 0 : index
    %c0_9 = arith.constant 0 : index
    %10 = vector.load %arg8[%c0_8, %c0_9] : memref<1x384xf32, #tpu.memory_space<vmem>>, vector<1x384xf32>
    %c0_10 = arith.constant 0 : index
    %c0_11 = arith.constant 0 : index
    %11 = vector.load %arg4[%c0_10, %c0_11] : memref<2x1xi32, #tpu.memory_space<vmem>>, vector<2x1xi32>
    %c0_12 = arith.constant 0 : index
    %c0_13 = arith.constant 0 : index
    %12 = vector.load %arg2[%c0_12, %c0_13] : memref<2x128xf32, #tpu.memory_space<vmem>>, vector<2x128xf32>
    %13 = arith.truncf %12 : vector<2x128xf32> to vector<2x128xbf16>
    %cst_14 = arith.constant dense<0.000000e+00> : vector<2x384xf32>
    %14 = tpu.matmul %13, %9, %cst_14 {dimension_numbers = #tpu.dot_dimension_numbers<[1], [0], [0], [1], [0, 0, 1, 1], [], []>} : vector<2x128xbf16>, vector<128x384xbf16>, vector<2x384xf32> -> vector<2x384xf32>
    %15 = vector.broadcast %10 : vector<1x384xf32> to vector<2x384xf32>
    %16 = arith.addf %14, %15 : vector<2x384xf32>
    %17 = vector.extract_strided_slice %8 {offsets = [0, 0, 0], sizes = [2, 1, 384], strides = [1, 1, 1]} : vector<2x8x384xf32> to vector<2x1x384xf32>
    %18 = vector.shape_cast %17 : vector<2x1x384xf32> to vector<2x384xf32>
    %19 = vector.extract_strided_slice %18 {offsets = [0, 0], sizes = [2, 128], strides = [1, 1]} : vector<2x384xf32> to vector<2x128xf32>
    %20 = vector.extract_strided_slice %16 {offsets = [0, 0], sizes = [2, 128], strides = [1, 1]} : vector<2x384xf32> to vector<2x128xf32>
    %21 = arith.addf %19, %20 : vector<2x128xf32>
    %22 = arith.negf %21 : vector<2x128xf32>
    %23 = math.exp %22 : vector<2x128xf32>
    %cst_15 = arith.constant 1.000000e+00 : f32
    %24 = vector.broadcast %cst_15 : f32 to vector<2x128xf32>
    %25 = arith.addf %24, %23 : vector<2x128xf32>
    %26 = arith.divf %24, %25 : vector<2x128xf32>
    %27 = vector.extract_strided_slice %18 {offsets = [0, 128], sizes = [2, 128], strides = [1, 1]} : vector<2x384xf32> to vector<2x128xf32>
    %28 = vector.extract_strided_slice %16 {offsets = [0, 128], sizes = [2, 128], strides = [1, 1]} : vector<2x384xf32> to vector<2x128xf32>
    %29 = arith.addf %27, %28 : vector<2x128xf32>
    %30 = arith.negf %29 : vector<2x128xf32>
    %31 = math.exp %30 : vector<2x128xf32>
    %cst_16 = arith.constant 1.000000e+00 : f32
    %32 = vector.broadcast %cst_16 : f32 to vector<2x128xf32>
    %33 = arith.addf %32, %31 : vector<2x128xf32>
    %34 = arith.divf %32, %33 : vector<2x128xf32>
    %35 = vector.extract_strided_slice %18 {offsets = [0, 256], sizes = [2, 128], strides = [1, 1]} : vector<2x384xf32> to vector<2x128xf32>
    %36 = vector.extract_strided_slice %16 {offsets = [0, 256], sizes = [2, 128], strides = [1, 1]} : vector<2x384xf32> to vector<2x128xf32>
    %37 = arith.mulf %26, %36 : vector<2x128xf32>
    %38 = arith.addf %35, %37 : vector<2x128xf32>
    %39 = math.tanh %38 : vector<2x128xf32>
    %cst_17 = arith.constant 1.000000e+00 : f32
    %40 = vector.broadcast %cst_17 : f32 to vector<2x128xf32>
    %41 = arith.subf %40, %34 : vector<2x128xf32>
    %42 = arith.mulf %41, %39 : vector<2x128xf32>
    %43 = arith.mulf %34, %12 : vector<2x128xf32>
    %44 = arith.addf %42, %43 : vector<2x128xf32>
    %c0_i32 = arith.constant 0 : i32
    %45 = vector.broadcast %c0_i32 : i32 to vector<2x1xi32>
    %46 = arith.cmpi sgt, %11, %45 : vector<2x1xi32>
    %47 = arith.extui %46 : vector<2x1xi1> to vector<2x1xi32>
    %48 = arith.sitofp %47 : vector<2x1xi32> to vector<2x1xf32>
    %49 = vector.broadcast %48 : vector<2x1xf32> to vector<2x128xf32>
    %50 = arith.mulf %49, %44 : vector<2x128xf32>
    %cst_18 = arith.constant 1.000000e+00 : f32
    %51 = vector.broadcast %cst_18 : f32 to vector<2x1xf32>
    %52 = arith.subf %51, %48 : vector<2x1xf32>
    %53 = vector.broadcast %52 : vector<2x1xf32> to vector<2x128xf32>
    %54 = arith.mulf %53, %12 : vector<2x128xf32>
    %55 = arith.addf %50, %54 : vector<2x128xf32>
    %56 = vector.broadcast %48 : vector<2x1xf32> to vector<2x128xf32>
    %57 = arith.mulf %56, %44 : vector<2x128xf32>
    %58 = vector.shape_cast %57 : vector<2x128xf32> to vector<2x1x128xf32>
    %c0_19 = arith.constant 0 : index
    %c0_20 = arith.constant 0 : index
    %c0_21 = arith.constant 0 : index
    %59 = vector.load %arg17[%c0_19, %c0_20, %c0_21] : memref<2x8x128xf32, #tpu.memory_space<vmem>>, vector<2x1x128xf32>
    tpu.vector_store %arg17[%c0_19, %c0_20, %c0_21], %58 {strides = array<i32>} : memref<2x8x128xf32, #tpu.memory_space<vmem>>, vector<2x1x128xf32>,
    %60 = arith.truncf %55 : vector<2x128xf32> to vector<2x128xbf16>
    %cst_22 = arith.constant dense<0.000000e+00> : vector<2x384xf32>
    %61 = tpu.matmul %60, %9, %cst_22 {dimension_numbers = #tpu.dot_dimension_numbers<[1], [0], [0], [1], [0, 0, 1, 1], [], []>} : vector<2x128xbf16>, vector<128x384xbf16>, vector<2x384xf32> -> vector<2x384xf32>
    %62 = vector.broadcast %10 : vector<1x384xf32> to vector<2x384xf32>
    %63 = arith.addf %61, %62 : vector<2x384xf32>
    %64 = vector.extract_strided_slice %8 {offsets = [0, 1, 0], sizes = [2, 1, 384], strides = [1, 1, 1]} : vector<2x8x384xf32> to vector<2x1x384xf32>
    %65 = vector.shape_cast %64 : vector<2x1x384xf32> to vector<2x384xf32>
    %66 = vector.extract_strided_slice %65 {offsets = [0, 0], sizes = [2, 128], strides = [1, 1]} : vector<2x384xf32> to vector<2x128xf32>
    %67 = vector.extract_strided_slice %63 {offsets = [0, 0], sizes = [2, 128], strides = [1, 1]} : vector<2x384xf32> to vector<2x128xf32>
    %68 = arith.addf %66, %67 : vector<2x128xf32>
    %69 = arith.negf %68 : vector<2x128xf32>
    %70 = math.exp %69 : vector<2x128xf32>
    %cst_23 = arith.constant 1.000000e+00 : f32
    %71 = vector.broadcast %cst_23 : f32 to vector<2x128xf32>
    %72 = arith.addf %71, %70 : vector<2x128xf32>
    %73 = arith.divf %71, %72 : vector<2x128xf32>
    %74 = vector.extract_strided_slice %65 {offsets = [0, 128], sizes = [2, 128], strides = [1, 1]} : vector<2x384xf32> to vector<2x128xf32>
    %75 = vector.extract_strided_slice %63 {offsets = [0, 128], sizes = [2, 128], strides = [1, 1]} : vector<2x384xf32> to vector<2x128xf32>
    %76 = arith.addf %74, %75 : vector<2x128xf32>
    %77 = arith.negf %76 : vector<2x128xf32>
    %78 = math.exp %77 : vector<2x128xf32>
    %cst_24 = arith.constant 1.000000e+00 : f32
    %79 = vector.broadcast %cst_24 : f32 to vector<2x128xf32>
    %80 = arith.addf %79, %78 : vector<2x128xf32>
    %81 = arith.divf %79, %80 : vector<2x128xf32>
    %82 = vector.extract_strided_slice %65 {offsets = [0, 256], sizes = [2, 128], strides = [1, 1]} : vector<2x384xf32> to vector<2x128xf32>
    %83 = vector.extract_strided_slice %63 {offsets = [0, 256], sizes = [2, 128], strides = [1, 1]} : vector<2x384xf32> to vector<2x128xf32>
    %84 = arith.mulf %73, %83 : vector<2x128xf32>
    %85 = arith.addf %82, %84 : vector<2x128xf32>
    %86 = math.tanh %85 : vector<2x128xf32>
    %cst_25 = arith.constant 1.000000e+00 : f32
    %87 = vector.broadcast %cst_25 : f32 to vector<2x128xf32>
    %88 = arith.subf %87, %81 : vector<2x128xf32>
    %89 = arith.mulf %88, %86 : vector<2x128xf32>
    %90 = arith.mulf %81, %55 : vector<2x128xf32>
    %91 = arith.addf %89, %90 : vector<2x128xf32>
    %c1_i32 = arith.constant 1 : i32
    %92 = vector.broadcast %c1_i32 : i32 to vector<2x1xi32>
    %93 = arith.cmpi sgt, %11, %92 : vector<2x1xi32>
    %94 = arith.extui %93 : vector<2x1xi1> to vector<2x1xi32>
    %95 = arith.sitofp %94 : vector<2x1xi32> to vector<2x1xf32>
    %96 = vector.broadcast %95 : vector<2x1xf32> to vector<2x128xf32>
    %97 = arith.mulf %96, %91 : vector<2x128xf32>
    %cst_26 = arith.constant 1.000000e+00 : f32
    %98 = vector.broadcast %cst_26 : f32 to vector<2x1xf32>
    %99 = arith.subf %98, %95 : vector<2x1xf32>
    %100 = vector.broadcast %99 : vector<2x1xf32> to vector<2x128xf32>
    %101 = arith.mulf %100, %55 : vector<2x128xf32>
    %102 = arith.addf %97, %101 : vector<2x128xf32>
    %103 = vector.broadcast %95 : vector<2x1xf32> to vector<2x128xf32>
    %104 = arith.mulf %103, %91 : vector<2x128xf32>
    %105 = vector.shape_cast %104 : vector<2x128xf32> to vector<2x1x128xf32>
    %c0_27 = arith.constant 0 : index
    %c1 = arith.constant 1 : index
    %c0_28 = arith.constant 0 : index
    %106 = vector.load %arg17[%c0_27, %c1, %c0_28] : memref<2x8x128xf32, #tpu.memory_space<vmem>>, vector<2x1x128xf32>
    tpu.vector_store %arg17[%c0_27, %c1, %c0_28], %105 {strides = array<i32>} : memref<2x8x128xf32, #tpu.memory_space<vmem>>, vector<2x1x128xf32>,
    %107 = arith.truncf %102 : vector<2x128xf32> to vector<2x128xbf16>
    %cst_29 = arith.constant dense<0.000000e+00> : vector<2x384xf32>
    %108 = tpu.matmul %107, %9, %cst_29 {dimension_numbers = #tpu.dot_dimension_numbers<[1], [0], [0], [1], [0, 0, 1, 1], [], []>} : vector<2x128xbf16>, vector<128x384xbf16>, vector<2x384xf32> -> vector<2x384xf32>
    %109 = vector.broadcast %10 : vector<1x384xf32> to vector<2x384xf32>
    %110 = arith.addf %108, %109 : vector<2x384xf32>
    %111 = vector.extract_strided_slice %8 {offsets = [0, 2, 0], sizes = [2, 1, 384], strides = [1, 1, 1]} : vector<2x8x384xf32> to vector<2x1x384xf32>
    %112 = vector.shape_cast %111 : vector<2x1x384xf32> to vector<2x384xf32>
    %113 = vector.extract_strided_slice %112 {offsets = [0, 0], sizes = [2, 128], strides = [1, 1]} : vector<2x384xf32> to vector<2x128xf32>
    %114 = vector.extract_strided_slice %110 {offsets = [0, 0], sizes = [2, 128], strides = [1, 1]} : vector<2x384xf32> to vector<2x128xf32>
    %115 = arith.addf %113, %114 : vector<2x128xf32>
    %116 = arith.negf %115 : vector<2x128xf32>
    %117 = math.exp %116 : vector<2x128xf32>
    %cst_30 = arith.constant 1.000000e+00 : f32
    %118 = vector.broadcast %cst_30 : f32 to vector<2x128xf32>
    %119 = arith.addf %118, %117 : vector<2x128xf32>
    %120 = arith.divf %118, %119 : vector<2x128xf32>
    %121 = vector.extract_strided_slice %112 {offsets = [0, 128], sizes = [2, 128], strides = [1, 1]} : vector<2x384xf32> to vector<2x128xf32>
    %122 = vector.extract_strided_slice %110 {offsets = [0, 128], sizes = [2, 128], strides = [1, 1]} : vector<2x384xf32> to vector<2x128xf32>
    %123 = arith.addf %121, %122 : vector<2x128xf32>
    %124 = arith.negf %123 : vector<2x128xf32>
    %125 = math.exp %124 : vector<2x128xf32>
    %cst_31 = arith.constant 1.000000e+00 : f32
    %126 = vector.broadcast %cst_31 : f32 to vector<2x128xf32>
    %127 = arith.addf %126, %125 : vector<2x128xf32>
    %128 = arith.divf %126, %127 : vector<2x128xf32>
    %129 = vector.extract_strided_slice %112 {offsets = [0, 256], sizes = [2, 128], strides = [1, 1]} : vector<2x384xf32> to vector<2x128xf32>
    %130 = vector.extract_strided_slice %110 {offsets = [0, 256], sizes = [2, 128], strides = [1, 1]} : vector<2x384xf32> to vector<2x128xf32>
    %131 = arith.mulf %120, %130 : vector<2x128xf32>
    %132 = arith.addf %129, %131 : vector<2x128xf32>
    %133 = math.tanh %132 : vector<2x128xf32>
    %cst_32 = arith.constant 1.000000e+00 : f32
    %134 = vector.broadcast %cst_32 : f32 to vector<2x128xf32>
    %135 = arith.subf %134, %128 : vector<2x128xf32>
    %136 = arith.mulf %135, %133 : vector<2x128xf32>
    %137 = arith.mulf %128, %102 : vector<2x128xf32>
    %138 = arith.addf %136, %137 : vector<2x128xf32>
    %c2_i32 = arith.constant 2 : i32
    %139 = vector.broadcast %c2_i32 : i32 to vector<2x1xi32>
    %140 = arith.cmpi sgt, %11, %139 : vector<2x1xi32>
    %141 = arith.extui %140 : vector<2x1xi1> to vector<2x1xi32>
    %142 = arith.sitofp %141 : vector<2x1xi32> to vector<2x1xf32>
    %143 = vector.broadcast %142 : vector<2x1xf32> to vector<2x128xf32>
    %144 = arith.mulf %143, %138 : vector<2x128xf32>
    %cst_33 = arith.constant 1.000000e+00 : f32
    %145 = vector.broadcast %cst_33 : f32 to vector<2x1xf32>
    %146 = arith.subf %145, %142 : vector<2x1xf32>
    %147 = vector.broadcast %146 : vector<2x1xf32> to vector<2x128xf32>
    %148 = arith.mulf %147, %102 : vector<2x128xf32>
    %149 = arith.addf %144, %148 : vector<2x128xf32>
    %150 = vector.broadcast %142 : vector<2x1xf32> to vector<2x128xf32>
    %151 = arith.mulf %150, %138 : vector<2x128xf32>
    %152 = vector.shape_cast %151 : vector<2x128xf32> to vector<2x1x128xf32>
    %c0_34 = arith.constant 0 : index
    %c2 = arith.constant 2 : index
    %c0_35 = arith.constant 0 : index
    %153 = vector.load %arg17[%c0_34, %c2, %c0_35] : memref<2x8x128xf32, #tpu.memory_space<vmem>>, vector<2x1x128xf32>
    tpu.vector_store %arg17[%c0_34, %c2, %c0_35], %152 {strides = array<i32>} : memref<2x8x128xf32, #tpu.memory_space<vmem>>, vector<2x1x128xf32>,
    %154 = arith.truncf %149 : vector<2x128xf32> to vector<2x128xbf16>
    %cst_36 = arith.constant dense<0.000000e+00> : vector<2x384xf32>
    %155 = tpu.matmul %154, %9, %cst_36 {dimension_numbers = #tpu.dot_dimension_numbers<[1], [0], [0], [1], [0, 0, 1, 1], [], []>} : vector<2x128xbf16>, vector<128x384xbf16>, vector<2x384xf32> -> vector<2x384xf32>
    %156 = vector.broadcast %10 : vector<1x384xf32> to vector<2x384xf32>
    %157 = arith.addf %155, %156 : vector<2x384xf32>
    %158 = vector.extract_strided_slice %8 {offsets = [0, 3, 0], sizes = [2, 1, 384], strides = [1, 1, 1]} : vector<2x8x384xf32> to vector<2x1x384xf32>
    %159 = vector.shape_cast %158 : vector<2x1x384xf32> to vector<2x384xf32>
    %160 = vector.extract_strided_slice %159 {offsets = [0, 0], sizes = [2, 128], strides = [1, 1]} : vector<2x384xf32> to vector<2x128xf32>
    %161 = vector.extract_strided_slice %157 {offsets = [0, 0], sizes = [2, 128], strides = [1, 1]} : vector<2x384xf32> to vector<2x128xf32>
    %162 = arith.addf %160, %161 : vector<2x128xf32>
    %163 = arith.negf %162 : vector<2x128xf32>
    %164 = math.exp %163 : vector<2x128xf32>
    %cst_37 = arith.constant 1.000000e+00 : f32
    %165 = vector.broadcast %cst_37 : f32 to vector<2x128xf32>
    %166 = arith.addf %165, %164 : vector<2x128xf32>
    %167 = arith.divf %165, %166 : vector<2x128xf32>
    %168 = vector.extract_strided_slice %159 {offsets = [0, 128], sizes = [2, 128], strides = [1, 1]} : vector<2x384xf32> to vector<2x128xf32>
    %169 = vector.extract_strided_slice %157 {offsets = [0, 128], sizes = [2, 128], strides = [1, 1]} : vector<2x384xf32> to vector<2x128xf32>
    %170 = arith.addf %168, %169 : vector<2x128xf32>
    %171 = arith.negf %170 : vector<2x128xf32>
    %172 = math.exp %171 : vector<2x128xf32>
    %cst_38 = arith.constant 1.000000e+00 : f32
    %173 = vector.broadcast %cst_38 : f32 to vector<2x128xf32>
    %174 = arith.addf %173, %172 : vector<2x128xf32>
    %175 = arith.divf %173, %174 : vector<2x128xf32>
    %176 = vector.extract_strided_slice %159 {offsets = [0, 256], sizes = [2, 128], strides = [1, 1]} : vector<2x384xf32> to vector<2x128xf32>
    %177 = vector.extract_strided_slice %157 {offsets = [0, 256], sizes = [2, 128], strides = [1, 1]} : vector<2x384xf32> to vector<2x128xf32>
    %178 = arith.mulf %167, %177 : vector<2x128xf32>
    %179 = arith.addf %176, %178 : vector<2x128xf32>
    %180 = math.tanh %179 : vector<2x128xf32>
    %cst_39 = arith.constant 1.000000e+00 : f32
    %181 = vector.broadcast %cst_39 : f32 to vector<2x128xf32>
    %182 = arith.subf %181, %175 : vector<2x128xf32>
    %183 = arith.mulf %182, %180 : vector<2x128xf32>
    %184 = arith.mulf %175, %149 : vector<2x128xf32>
    %185 = arith.addf %183, %184 : vector<2x128xf32>
    %c3_i32 = arith.constant 3 : i32
    %186 = vector.broadcast %c3_i32 : i32 to vector<2x1xi32>
    %187 = arith.cmpi sgt, %11, %186 : vector<2x1xi32>
    %188 = arith.extui %187 : vector<2x1xi1> to vector<2x1xi32>
    %189 = arith.sitofp %188 : vector<2x1xi32> to vector<2x1xf32>
    %190 = vector.broadcast %189 : vector<2x1xf32> to vector<2x128xf32>
    %191 = arith.mulf %190, %185 : vector<2x128xf32>
    %cst_40 = arith.constant 1.000000e+00 : f32
    %192 = vector.broadcast %cst_40 : f32 to vector<2x1xf32>
    %193 = arith.subf %192, %189 : vector<2x1xf32>
    %194 = vector.broadcast %193 : vector<2x1xf32> to vector<2x128xf32>
    %195 = arith.mulf %194, %149 : vector<2x128xf32>
    %196 = arith.addf %191, %195 : vector<2x128xf32>
    %197 = vector.broadcast %189 : vector<2x1xf32> to vector<2x128xf32>
    %198 = arith.mulf %197, %185 : vector<2x128xf32>
    %199 = vector.shape_cast %198 : vector<2x128xf32> to vector<2x1x128xf32>
    %c0_41 = arith.constant 0 : index
    %c3 = arith.constant 3 : index
    %c0_42 = arith.constant 0 : index
    %200 = vector.load %arg17[%c0_41, %c3, %c0_42] : memref<2x8x128xf32, #tpu.memory_space<vmem>>, vector<2x1x128xf32>
    tpu.vector_store %arg17[%c0_41, %c3, %c0_42], %199 {strides = array<i32>} : memref<2x8x128xf32, #tpu.memory_space<vmem>>, vector<2x1x128xf32>,
    %201 = arith.truncf %196 : vector<2x128xf32> to vector<2x128xbf16>
    %cst_43 = arith.constant dense<0.000000e+00> : vector<2x384xf32>
    %202 = tpu.matmul %201, %9, %cst_43 {dimension_numbers = #tpu.dot_dimension_numbers<[1], [0], [0], [1], [0, 0, 1, 1], [], []>} : vector<2x128xbf16>, vector<128x384xbf16>, vector<2x384xf32> -> vector<2x384xf32>
    %203 = vector.broadcast %10 : vector<1x384xf32> to vector<2x384xf32>
    %204 = arith.addf %202, %203 : vector<2x384xf32>
    %205 = vector.extract_strided_slice %8 {offsets = [0, 4, 0], sizes = [2, 1, 384], strides = [1, 1, 1]} : vector<2x8x384xf32> to vector<2x1x384xf32>
    %206 = vector.shape_cast %205 : vector<2x1x384xf32> to vector<2x384xf32>
    %207 = vector.extract_strided_slice %206 {offsets = [0, 0], sizes = [2, 128], strides = [1, 1]} : vector<2x384xf32> to vector<2x128xf32>
    %208 = vector.extract_strided_slice %204 {offsets = [0, 0], sizes = [2, 128], strides = [1, 1]} : vector<2x384xf32> to vector<2x128xf32>
    %209 = arith.addf %207, %208 : vector<2x128xf32>
    %210 = arith.negf %209 : vector<2x128xf32>
    %211 = math.exp %210 : vector<2x128xf32>
    %cst_44 = arith.constant 1.000000e+00 : f32
    %212 = vector.broadcast %cst_44 : f32 to vector<2x128xf32>
    %213 = arith.addf %212, %211 : vector<2x128xf32>
    %214 = arith.divf %212, %213 : vector<2x128xf32>
    %215 = vector.extract_strided_slice %206 {offsets = [0, 128], sizes = [2, 128], strides = [1, 1]} : vector<2x384xf32> to vector<2x128xf32>
    %216 = vector.extract_strided_slice %204 {offsets = [0, 128], sizes = [2, 128], strides = [1, 1]} : vector<2x384xf32> to vector<2x128xf32>
    %217 = arith.addf %215, %216 : vector<2x128xf32>
    %218 = arith.negf %217 : vector<2x128xf32>
    %219 = math.exp %218 : vector<2x128xf32>
    %cst_45 = arith.constant 1.000000e+00 : f32
    %220 = vector.broadcast %cst_45 : f32 to vector<2x128xf32>
    %221 = arith.addf %220, %219 : vector<2x128xf32>
    %222 = arith.divf %220, %221 : vector<2x128xf32>
    %223 = vector.extract_strided_slice %206 {offsets = [0, 256], sizes = [2, 128], strides = [1, 1]} : vector<2x384xf32> to vector<2x128xf32>
    %224 = vector.extract_strided_slice %204 {offsets = [0, 256], sizes = [2, 128], strides = [1, 1]} : vector<2x384xf32> to vector<2x128xf32>
    %225 = arith.mulf %214, %224 : vector<2x128xf32>
    %226 = arith.addf %223, %225 : vector<2x128xf32>
    %227 = math.tanh %226 : vector<2x128xf32>
    %cst_46 = arith.constant 1.000000e+00 : f32
    %228 = vector.broadcast %cst_46 : f32 to vector<2x128xf32>
    %229 = arith.subf %228, %222 : vector<2x128xf32>
    %230 = arith.mulf %229, %227 : vector<2x128xf32>
    %231 = arith.mulf %222, %196 : vector<2x128xf32>
    %232 = arith.addf %230, %231 : vector<2x128xf32>
    %c4_i32 = arith.constant 4 : i32
    %233 = vector.broadcast %c4_i32 : i32 to vector<2x1xi32>
    %234 = arith.cmpi sgt, %11, %233 : vector<2x1xi32>
    %235 = arith.extui %234 : vector<2x1xi1> to vector<2x1xi32>
    %236 = arith.sitofp %235 : vector<2x1xi32> to vector<2x1xf32>
    %237 = vector.broadcast %236 : vector<2x1xf32> to vector<2x128xf32>
    %238 = arith.mulf %237, %232 : vector<2x128xf32>
    %cst_47 = arith.constant 1.000000e+00 : f32
    %239 = vector.broadcast %cst_47 : f32 to vector<2x1xf32>
    %240 = arith.subf %239, %236 : vector<2x1xf32>
    %241 = vector.broadcast %240 : vector<2x1xf32> to vector<2x128xf32>
    %242 = arith.mulf %241, %196 : vector<2x128xf32>
    %243 = arith.addf %238, %242 : vector<2x128xf32>
    %244 = vector.broadcast %236 : vector<2x1xf32> to vector<2x128xf32>
    %245 = arith.mulf %244, %232 : vector<2x128xf32>
    %246 = vector.shape_cast %245 : vector<2x128xf32> to vector<2x1x128xf32>
    %c0_48 = arith.constant 0 : index
    %c4 = arith.constant 4 : index
    %c0_49 = arith.constant 0 : index
    %247 = vector.load %arg17[%c0_48, %c4, %c0_49] : memref<2x8x128xf32, #tpu.memory_space<vmem>>, vector<2x1x128xf32>
    tpu.vector_store %arg17[%c0_48, %c4, %c0_49], %246 {strides = array<i32>} : memref<2x8x128xf32, #tpu.memory_space<vmem>>, vector<2x1x128xf32>,
    %248 = arith.truncf %243 : vector<2x128xf32> to vector<2x128xbf16>
    %cst_50 = arith.constant dense<0.000000e+00> : vector<2x384xf32>
    %249 = tpu.matmul %248, %9, %cst_50 {dimension_numbers = #tpu.dot_dimension_numbers<[1], [0], [0], [1], [0, 0, 1, 1], [], []>} : vector<2x128xbf16>, vector<128x384xbf16>, vector<2x384xf32> -> vector<2x384xf32>
    %250 = vector.broadcast %10 : vector<1x384xf32> to vector<2x384xf32>
    %251 = arith.addf %249, %250 : vector<2x384xf32>
    %252 = vector.extract_strided_slice %8 {offsets = [0, 5, 0], sizes = [2, 1, 384], strides = [1, 1, 1]} : vector<2x8x384xf32> to vector<2x1x384xf32>
    %253 = vector.shape_cast %252 : vector<2x1x384xf32> to vector<2x384xf32>
    %254 = vector.extract_strided_slice %253 {offsets = [0, 0], sizes = [2, 128], strides = [1, 1]} : vector<2x384xf32> to vector<2x128xf32>
    %255 = vector.extract_strided_slice %251 {offsets = [0, 0], sizes = [2, 128], strides = [1, 1]} : vector<2x384xf32> to vector<2x128xf32>
    %256 = arith.addf %254, %255 : vector<2x128xf32>
    %257 = arith.negf %256 : vector<2x128xf32>
    %258 = math.exp %257 : vector<2x128xf32>
    %cst_51 = arith.constant 1.000000e+00 : f32
    %259 = vector.broadcast %cst_51 : f32 to vector<2x128xf32>
    %260 = arith.addf %259, %258 : vector<2x128xf32>
    %261 = arith.divf %259, %260 : vector<2x128xf32>
    %262 = vector.extract_strided_slice %253 {offsets = [0, 128], sizes = [2, 128], strides = [1, 1]} : vector<2x384xf32> to vector<2x128xf32>
    %263 = vector.extract_strided_slice %251 {offsets = [0, 128], sizes = [2, 128], strides = [1, 1]} : vector<2x384xf32> to vector<2x128xf32>
    %264 = arith.addf %262, %263 : vector<2x128xf32>
    %265 = arith.negf %264 : vector<2x128xf32>
    %266 = math.exp %265 : vector<2x128xf32>
    %cst_52 = arith.constant 1.000000e+00 : f32
    %267 = vector.broadcast %cst_52 : f32 to vector<2x128xf32>
    %268 = arith.addf %267, %266 : vector<2x128xf32>
    %269 = arith.divf %267, %268 : vector<2x128xf32>
    %270 = vector.extract_strided_slice %253 {offsets = [0, 256], sizes = [2, 128], strides = [1, 1]} : vector<2x384xf32> to vector<2x128xf32>
    %271 = vector.extract_strided_slice %251 {offsets = [0, 256], sizes = [2, 128], strides = [1, 1]} : vector<2x384xf32> to vector<2x128xf32>
    %272 = arith.mulf %261, %271 : vector<2x128xf32>
    %273 = arith.addf %270, %272 : vector<2x128xf32>
    %274 = math.tanh %273 : vector<2x128xf32>
    %cst_53 = arith.constant 1.000000e+00 : f32
    %275 = vector.broadcast %cst_53 : f32 to vector<2x128xf32>
    %276 = arith.subf %275, %269 : vector<2x128xf32>
    %277 = arith.mulf %276, %274 : vector<2x128xf32>
    %278 = arith.mulf %269, %243 : vector<2x128xf32>
    %279 = arith.addf %277, %278 : vector<2x128xf32>
    %c5_i32 = arith.constant 5 : i32
    %280 = vector.broadcast %c5_i32 : i32 to vector<2x1xi32>
    %281 = arith.cmpi sgt, %11, %280 : vector<2x1xi32>
    %282 = arith.extui %281 : vector<2x1xi1> to vector<2x1xi32>
    %283 = arith.sitofp %282 : vector<2x1xi32> to vector<2x1xf32>
    %284 = vector.broadcast %283 : vector<2x1xf32> to vector<2x128xf32>
    %285 = arith.mulf %284, %279 : vector<2x128xf32>
    %cst_54 = arith.constant 1.000000e+00 : f32
    %286 = vector.broadcast %cst_54 : f32 to vector<2x1xf32>
    %287 = arith.subf %286, %283 : vector<2x1xf32>
    %288 = vector.broadcast %287 : vector<2x1xf32> to vector<2x128xf32>
    %289 = arith.mulf %288, %243 : vector<2x128xf32>
    %290 = arith.addf %285, %289 : vector<2x128xf32>
    %291 = vector.broadcast %283 : vector<2x1xf32> to vector<2x128xf32>
    %292 = arith.mulf %291, %279 : vector<2x128xf32>
    %293 = vector.shape_cast %292 : vector<2x128xf32> to vector<2x1x128xf32>
    %c0_55 = arith.constant 0 : index
    %c5 = arith.constant 5 : index
    %c0_56 = arith.constant 0 : index
    %294 = vector.load %arg17[%c0_55, %c5, %c0_56] : memref<2x8x128xf32, #tpu.memory_space<vmem>>, vector<2x1x128xf32>
    tpu.vector_store %arg17[%c0_55, %c5, %c0_56], %293 {strides = array<i32>} : memref<2x8x128xf32, #tpu.memory_space<vmem>>, vector<2x1x128xf32>,
    %295 = arith.truncf %290 : vector<2x128xf32> to vector<2x128xbf16>
    %cst_57 = arith.constant dense<0.000000e+00> : vector<2x384xf32>
    %296 = tpu.matmul %295, %9, %cst_57 {dimension_numbers = #tpu.dot_dimension_numbers<[1], [0], [0], [1], [0, 0, 1, 1], [], []>} : vector<2x128xbf16>, vector<128x384xbf16>, vector<2x384xf32> -> vector<2x384xf32>
    %297 = vector.broadcast %10 : vector<1x384xf32> to vector<2x384xf32>
    %298 = arith.addf %296, %297 : vector<2x384xf32>
    %299 = vector.extract_strided_slice %8 {offsets = [0, 6, 0], sizes = [2, 1, 384], strides = [1, 1, 1]} : vector<2x8x384xf32> to vector<2x1x384xf32>
    %300 = vector.shape_cast %299 : vector<2x1x384xf32> to vector<2x384xf32>
    %301 = vector.extract_strided_slice %300 {offsets = [0, 0], sizes = [2, 128], strides = [1, 1]} : vector<2x384xf32> to vector<2x128xf32>
    %302 = vector.extract_strided_slice %298 {offsets = [0, 0], sizes = [2, 128], strides = [1, 1]} : vector<2x384xf32> to vector<2x128xf32>
    %303 = arith.addf %301, %302 : vector<2x128xf32>
    %304 = arith.negf %303 : vector<2x128xf32>
    %305 = math.exp %304 : vector<2x128xf32>
    %cst_58 = arith.constant 1.000000e+00 : f32
    %306 = vector.broadcast %cst_58 : f32 to vector<2x128xf32>
    %307 = arith.addf %306, %305 : vector<2x128xf32>
    %308 = arith.divf %306, %307 : vector<2x128xf32>
    %309 = vector.extract_strided_slice %300 {offsets = [0, 128], sizes = [2, 128], strides = [1, 1]} : vector<2x384xf32> to vector<2x128xf32>
    %310 = vector.extract_strided_slice %298 {offsets = [0, 128], sizes = [2, 128], strides = [1, 1]} : vector<2x384xf32> to vector<2x128xf32>
    %311 = arith.addf %309, %310 : vector<2x128xf32>
    %312 = arith.negf %311 : vector<2x128xf32>
    %313 = math.exp %312 : vector<2x128xf32>
    %cst_59 = arith.constant 1.000000e+00 : f32
    %314 = vector.broadcast %cst_59 : f32 to vector<2x128xf32>
    %315 = arith.addf %314, %313 : vector<2x128xf32>
    %316 = arith.divf %314, %315 : vector<2x128xf32>
    %317 = vector.extract_strided_slice %300 {offsets = [0, 256], sizes = [2, 128], strides = [1, 1]} : vector<2x384xf32> to vector<2x128xf32>
    %318 = vector.extract_strided_slice %298 {offsets = [0, 256], sizes = [2, 128], strides = [1, 1]} : vector<2x384xf32> to vector<2x128xf32>
    %319 = arith.mulf %308, %318 : vector<2x128xf32>
    %320 = arith.addf %317, %319 : vector<2x128xf32>
    %321 = math.tanh %320 : vector<2x128xf32>
    %cst_60 = arith.constant 1.000000e+00 : f32
    %322 = vector.broadcast %cst_60 : f32 to vector<2x128xf32>
    %323 = arith.subf %322, %316 : vector<2x128xf32>
    %324 = arith.mulf %323, %321 : vector<2x128xf32>
    %325 = arith.mulf %316, %290 : vector<2x128xf32>
    %326 = arith.addf %324, %325 : vector<2x128xf32>
    %c6_i32 = arith.constant 6 : i32
    %327 = vector.broadcast %c6_i32 : i32 to vector<2x1xi32>
    %328 = arith.cmpi sgt, %11, %327 : vector<2x1xi32>
    %329 = arith.extui %328 : vector<2x1xi1> to vector<2x1xi32>
    %330 = arith.sitofp %329 : vector<2x1xi32> to vector<2x1xf32>
    %331 = vector.broadcast %330 : vector<2x1xf32> to vector<2x128xf32>
    %332 = arith.mulf %331, %326 : vector<2x128xf32>
    %cst_61 = arith.constant 1.000000e+00 : f32
    %333 = vector.broadcast %cst_61 : f32 to vector<2x1xf32>
    %334 = arith.subf %333, %330 : vector<2x1xf32>
    %335 = vector.broadcast %334 : vector<2x1xf32> to vector<2x128xf32>
    %336 = arith.mulf %335, %290 : vector<2x128xf32>
    %337 = arith.addf %332, %336 : vector<2x128xf32>
    %338 = vector.broadcast %330 : vector<2x1xf32> to vector<2x128xf32>
    %339 = arith.mulf %338, %326 : vector<2x128xf32>
    %340 = vector.shape_cast %339 : vector<2x128xf32> to vector<2x1x128xf32>
    %c0_62 = arith.constant 0 : index
    %c6 = arith.constant 6 : index
    %c0_63 = arith.constant 0 : index
    %341 = vector.load %arg17[%c0_62, %c6, %c0_63] : memref<2x8x128xf32, #tpu.memory_space<vmem>>, vector<2x1x128xf32>
    tpu.vector_store %arg17[%c0_62, %c6, %c0_63], %340 {strides = array<i32>} : memref<2x8x128xf32, #tpu.memory_space<vmem>>, vector<2x1x128xf32>,
    %342 = arith.truncf %337 : vector<2x128xf32> to vector<2x128xbf16>
    %cst_64 = arith.constant dense<0.000000e+00> : vector<2x384xf32>
    %343 = tpu.matmul %342, %9, %cst_64 {dimension_numbers = #tpu.dot_dimension_numbers<[1], [0], [0], [1], [0, 0, 1, 1], [], []>} : vector<2x128xbf16>, vector<128x384xbf16>, vector<2x384xf32> -> vector<2x384xf32>
    %344 = vector.broadcast %10 : vector<1x384xf32> to vector<2x384xf32>
    %345 = arith.addf %343, %344 : vector<2x384xf32>
    %346 = vector.extract_strided_slice %8 {offsets = [0, 7, 0], sizes = [2, 1, 384], strides = [1, 1, 1]} : vector<2x8x384xf32> to vector<2x1x384xf32>
    %347 = vector.shape_cast %346 : vector<2x1x384xf32> to vector<2x384xf32>
    %348 = vector.extract_strided_slice %347 {offsets = [0, 0], sizes = [2, 128], strides = [1, 1]} : vector<2x384xf32> to vector<2x128xf32>
    %349 = vector.extract_strided_slice %345 {offsets = [0, 0], sizes = [2, 128], strides = [1, 1]} : vector<2x384xf32> to vector<2x128xf32>
    %350 = arith.addf %348, %349 : vector<2x128xf32>
    %351 = arith.negf %350 : vector<2x128xf32>
    %352 = math.exp %351 : vector<2x128xf32>
    %cst_65 = arith.constant 1.000000e+00 : f32
    %353 = vector.broadcast %cst_65 : f32 to vector<2x128xf32>
    %354 = arith.addf %353, %352 : vector<2x128xf32>
    %355 = arith.divf %353, %354 : vector<2x128xf32>
    %356 = vector.extract_strided_slice %347 {offsets = [0, 128], sizes = [2, 128], strides = [1, 1]} : vector<2x384xf32> to vector<2x128xf32>
    %357 = vector.extract_strided_slice %345 {offsets = [0, 128], sizes = [2, 128], strides = [1, 1]} : vector<2x384xf32> to vector<2x128xf32>
    %358 = arith.addf %356, %357 : vector<2x128xf32>
    %359 = arith.negf %358 : vector<2x128xf32>
    %360 = math.exp %359 : vector<2x128xf32>
    %cst_66 = arith.constant 1.000000e+00 : f32
    %361 = vector.broadcast %cst_66 : f32 to vector<2x128xf32>
    %362 = arith.addf %361, %360 : vector<2x128xf32>
    %363 = arith.divf %361, %362 : vector<2x128xf32>
    %364 = vector.extract_strided_slice %347 {offsets = [0, 256], sizes = [2, 128], strides = [1, 1]} : vector<2x384xf32> to vector<2x128xf32>
    %365 = vector.extract_strided_slice %345 {offsets = [0, 256], sizes = [2, 128], strides = [1, 1]} : vector<2x384xf32> to vector<2x128xf32>
    %366 = arith.mulf %355, %365 : vector<2x128xf32>
    %367 = arith.addf %364, %366 : vector<2x128xf32>
    %368 = math.tanh %367 : vector<2x128xf32>
    %cst_67 = arith.constant 1.000000e+00 : f32
    %369 = vector.broadcast %cst_67 : f32 to vector<2x128xf32>
    %370 = arith.subf %369, %363 : vector<2x128xf32>
    %371 = arith.mulf %370, %368 : vector<2x128xf32>
    %372 = arith.mulf %363, %337 : vector<2x128xf32>
    %373 = arith.addf %371, %372 : vector<2x128xf32>
    %c7_i32 = arith.constant 7 : i32
    %374 = vector.broadcast %c7_i32 : i32 to vector<2x1xi32>
    %375 = arith.cmpi sgt, %11, %374 : vector<2x1xi32>
    %376 = arith.extui %375 : vector<2x1xi1> to vector<2x1xi32>
    %377 = arith.sitofp %376 : vector<2x1xi32> to vector<2x1xf32>
    %378 = vector.broadcast %377 : vector<2x1xf32> to vector<2x128xf32>
    %379 = arith.mulf %378, %373 : vector<2x128xf32>
    %cst_68 = arith.constant 1.000000e+00 : f32
    %380 = vector.broadcast %cst_68 : f32 to vector<2x1xf32>
    %381 = arith.subf %380, %377 : vector<2x1xf32>
    %382 = vector.broadcast %381 : vector<2x1xf32> to vector<2x128xf32>
    %383 = arith.mulf %382, %337 : vector<2x128xf32>
    %384 = arith.addf %379, %383 : vector<2x128xf32>
    %385 = vector.broadcast %377 : vector<2x1xf32> to vector<2x128xf32>
    %386 = arith.mulf %385, %373 : vector<2x128xf32>
    %387 = vector.shape_cast %386 : vector<2x128xf32> to vector<2x1x128xf32>
    %c0_69 = arith.constant 0 : index
    %c7 = arith.constant 7 : index
    %c0_70 = arith.constant 0 : index
    %388 = vector.load %arg17[%c0_69, %c7, %c0_70] : memref<2x8x128xf32, #tpu.memory_space<vmem>>, vector<2x1x128xf32>
    tpu.vector_store %arg17[%c0_69, %c7, %c0_70], %387 {strides = array<i32>} : memref<2x8x128xf32, #tpu.memory_space<vmem>>, vector<2x1x128xf32>,
    %c0_71 = arith.constant 0 : index
    %c0_72 = arith.constant 0 : index
    %389 = vector.load %arg15[%c0_71, %c0_72] : memref<2x128xf32, #tpu.memory_space<vmem>>, vector<2x128xf32>
    tpu.vector_store %arg15[%c0_71, %c0_72], %384 {strides = array<i32>} : memref<2x128xf32, #tpu.memory_space<vmem>>, vector<2x128xf32>,
    %c0_73 = arith.constant 0 : index
    %c0_74 = arith.constant 0 : index
    %c0_75 = arith.constant 0 : index
    %390 = vector.load %arg17[%c0_73, %c0_74, %c0_75] : memref<2x8x128xf32, #tpu.memory_space<vmem>>, vector<2x8x128xf32>
    %391 = tpu.iota {dimensions = array<i32: 1>} : vector<2x8xi32>
    %c0_76 = arith.constant 0 : index
    %c0_77 = arith.constant 0 : index
    %392 = vector.load %arg3[%c0_76, %c0_77] : memref<2x1xi32, #tpu.memory_space<vmem>>, vector<2x1xi32>
    %393 = vector.broadcast %392 : vector<2x1xi32> to vector<2x8xi32>
    %394 = arith.cmpi slt, %391, %393 : vector<2x8xi32>
    %c0_78 = arith.constant 0 : index
    %c0_79 = arith.constant 0 : index
    %c0_80 = arith.constant 0 : index
    %395 = vector.load %arg1[%c0_78, %c0_79, %c0_80] : memref<2x8x256xf32, #tpu.memory_space<vmem>>, vector<2x8x256xf32>
    %396 = vector.shape_cast %395 : vector<2x8x256xf32> to vector<16x256xf32>
    %397 = arith.truncf %396 : vector<16x256xf32> to vector<16x256xbf16>
    %c0_81 = arith.constant 0 : index
    %c0_82 = arith.constant 0 : index
    %398 = vector.load %arg9[%c0_81, %c0_82] : memref<256x128xbf16, #tpu.memory_space<vmem>>, vector<256x128xbf16>
    %cst_83 = arith.constant dense<0.000000e+00> : vector<16x128xf32>
    %399 = tpu.matmul %397, %398, %cst_83 {dimension_numbers = #tpu.dot_dimension_numbers<[1], [0], [0], [1], [0, 0, 1, 1], [], []>} : vector<16x256xbf16>, vector<256x128xbf16>, vector<16x128xf32> -> vector<16x128xf32>
    %400 = vector.shape_cast %399 : vector<16x128xf32> to vector<2x8x128xf32>
    %401 = arith.truncf %390 : vector<2x8x128xf32> to vector<2x8x128xbf16>
    %402 = arith.truncf %400 : vector<2x8x128xf32> to vector<2x8x128xbf16>
    "tpu.trace_start"() <{level = 10 : i32, message = "byh,bxh->byx"}> : () -> ()
    %cst_84 = arith.constant dense<0.000000e+00> : vector<2x8x8xf32>
    %403 = tpu.matmul %401, %402, %cst_84 {dimension_numbers = #tpu.dot_dimension_numbers<[2], [2], [1], [1], [0, 0, 0, 1, 1, 1], [0], [0]>} : vector<2x8x128xbf16>, vector<2x8x128xbf16>, vector<2x8x8xf32> -> vector<2x8x8xf32>
    "tpu.trace_stop"() : () -> ()
    %404 = vector.shape_cast %394 : vector<2x8xi1> to vector<2x1x8xi1>
    %cst_85 = arith.constant -1.000000e+06 : f32
    %405 = vector.shape_cast %404 : vector<2x1x8xi1> to vector<2x1x8xi1>
    %406 = vector.broadcast %405 : vector<2x1x8xi1> to vector<2x8x8xi1>
    %407 = vector.broadcast %cst_85 : f32 to vector<2x8x8xf32>
    %408 = arith.select %406, %403, %407 : vector<2x8x8xi1>, vector<2x8x8xf32>
    %cst_86 = arith.constant dense<0xFF800000> : vector<2x8xf32>
    %409 = vector.multi_reduction <maximumf>, %408, %cst_86 [2] : vector<2x8x8xf32> to vector<2x8xf32>
    %410 = vector.shape_cast %409 : vector<2x8xf32> to vector<2x8x1xf32>
    %411 = vector.broadcast %410 : vector<2x8x1xf32> to vector<2x8x8xf32>
    %412 = arith.subf %408, %411 : vector<2x8x8xf32>
    %413 = math.exp %412 : vector<2x8x8xf32>
    %cst_87 = arith.constant dense<0.000000e+00> : vector<2x8xf32>
    %414 = vector.multi_reduction <add>, %413, %cst_87 [2] : vector<2x8x8xf32> to vector<2x8xf32>
    %415 = vector.shape_cast %414 : vector<2x8xf32> to vector<2x8x1xf32>
    %416 = tpu.reciprocal %415 {approx = true} : vector<2x8x1xf32> -> vector<2x8x1xf32>
    %417 = vector.broadcast %416 : vector<2x8x1xf32> to vector<2x8x8xf32>
    %418 = arith.mulf %413, %417 : vector<2x8x8xf32>
    %cst_88 = arith.constant 0.000000e+00 : f32
    %419 = vector.broadcast %cst_88 : f32 to vector<2x8x120xf32>
    %420 = tpu.concatenate %418, %419 in 2 : vector<2x8x8xf32>, vector<2x8x120xf32> -> vector<2x8x128xf32>
    %c0_89 = arith.constant 0 : index
    %c0_90 = arith.constant 0 : index
    %c0_91 = arith.constant 0 : index
    %421 = vector.load %arg16[%c0_89, %c0_90, %c0_91] : memref<2x8x128xf32, #tpu.memory_space<vmem>>, vector<2x8x128xf32>
    tpu.vector_store %arg16[%c0_89, %c0_90, %c0_91], %420 {strides = array<i32>} : memref<2x8x128xf32, #tpu.memory_space<vmem>>, vector<2x8x128xf32>,
    %422 = arith.truncf %418 : vector<2x8x8xf32> to vector<2x8x8xbf16>
    %423 = arith.truncf %395 : vector<2x8x256xf32> to vector<2x8x256xbf16>
    "tpu.trace_start"() <{level = 10 : i32, message = "byx,bxe->bye"}> : () -> ()
    %cst_92 = arith.constant dense<0.000000e+00> : vector<2x8x256xf32>
    %424 = tpu.matmul %422, %423, %cst_92 {dimension_numbers = #tpu.dot_dimension_numbers<[2], [1], [1], [2], [0, 0, 0, 1, 1, 2], [0], [0]>} : vector<2x8x8xbf16>, vector<2x8x256xbf16>, vector<2x8x256xf32> -> vector<2x8x256xf32>
    "tpu.trace_stop"() : () -> ()
    %425 = vector.shape_cast %424 : vector<2x8x256xf32> to vector<16x256xf32>
    %426 = vector.shape_cast %390 : vector<2x8x128xf32> to vector<16x128xf32>
    %427 = tpu.concatenate %425, %426 in 1 : vector<16x256xf32>, vector<16x128xf32> -> vector<16x384xf32>
    %428 = arith.truncf %427 : vector<16x384xf32> to vector<16x384xbf16>
    %c0_93 = arith.constant 0 : index
    %c0_94 = arith.constant 0 : index
    %429 = vector.load %arg10[%c0_93, %c0_94] : memref<384x128xbf16, #tpu.memory_space<vmem>>, vector<384x128xbf16>
    %cst_95 = arith.constant dense<0.000000e+00> : vector<16x128xf32>
    %430 = tpu.matmul %428, %429, %cst_95 {dimension_numbers = #tpu.dot_dimension_numbers<[1], [0], [0], [1], [0, 0, 1, 1], [], []>} : vector<16x384xbf16>, vector<384x128xbf16>, vector<16x128xf32> -> vector<16x128xf32>
    %c0_96 = arith.constant 0 : index
    %c0_97 = arith.constant 0 : index
    %431 = vector.load %arg11[%c0_96, %c0_97] : memref<1x128xf32, #tpu.memory_space<vmem>>, vector<1x128xf32>
    %432 = vector.broadcast %431 : vector<1x128xf32> to vector<16x128xf32>
    %433 = arith.addf %430, %432 : vector<16x128xf32>
    %434 = math.tanh %433 : vector<16x128xf32>
    %435 = arith.truncf %434 : vector<16x128xf32> to vector<16x128xbf16>
    %c0_98 = arith.constant 0 : index
    %c0_99 = arith.constant 0 : index
    %436 = vector.load %arg12[%c0_98, %c0_99] : memref<128x128xbf16, #tpu.memory_space<vmem>>, vector<128x128xbf16>
    %cst_100 = arith.constant dense<0.000000e+00> : vector<16x128xf32>
    %437 = tpu.matmul %435, %436, %cst_100 {dimension_numbers = #tpu.dot_dimension_numbers<[1], [0], [0], [1], [0, 0, 1, 1], [], []>} : vector<16x128xbf16>, vector<128x128xbf16>, vector<16x128xf32> -> vector<16x128xf32>
    %c0_101 = arith.constant 0 : index
    %c0_102 = arith.constant 0 : index
    %438 = vector.load %arg13[%c0_101, %c0_102] : memref<1x128xf32, #tpu.memory_space<vmem>>, vector<1x128xf32>
    %439 = vector.broadcast %438 : vector<1x128xf32> to vector<16x128xf32>
    %440 = arith.addf %437, %439 : vector<16x128xf32>
    %cst_103 = arith.constant dense<0xFF800000> : vector<16xf32>
    %441 = vector.multi_reduction <maximumf>, %440, %cst_103 [1] : vector<16x128xf32> to vector<16xf32>
    %442 = vector.shape_cast %441 : vector<16xf32> to vector<16x1xf32>
    %443 = vector.broadcast %442 : vector<16x1xf32> to vector<16x128xf32>
    %444 = arith.subf %440, %443 : vector<16x128xf32>
    %445 = math.exp %444 : vector<16x128xf32>
    %cst_104 = arith.constant dense<0.000000e+00> : vector<16xf32>
    %446 = vector.multi_reduction <add>, %445, %cst_104 [1] : vector<16x128xf32> to vector<16xf32>
    %447 = vector.shape_cast %446 : vector<16xf32> to vector<16x1xf32>
    %448 = math.log %447 : vector<16x1xf32>
    %449 = vector.broadcast %448 : vector<16x1xf32> to vector<16x128xf32>
    %450 = arith.subf %444, %449 : vector<16x128xf32>
    %451 = vector.shape_cast %450 : vector<16x128xf32> to vector<2x8x128xf32>
    %c0_105 = arith.constant 0 : index
    %c0_106 = arith.constant 0 : index
    %c0_107 = arith.constant 0 : index
    %452 = vector.load %arg14[%c0_105, %c0_106, %c0_107] : memref<2x8x128xf32, #tpu.memory_space<vmem>>, vector<2x8x128xf32>
    tpu.vector_store %arg14[%c0_105, %c0_106, %c0_107], %451 {strides = array<i32>} : memref<2x8x128xf32, #tpu.memory_space<vmem>>, vector<2x8x128xf32>,
    return
  }
}

</mosaic_0001>

<bundles_post_ra>
// kernel: seq2seq_forward.3
= control target key start
LH: loop header
LB: loop body
LE: loop exit
PB: predicated region body
PF: predicated region fallthrough
CT: control target
= control target key end

     0   :  { %s4811_s0 = inlined_call_operand.vmem [shape: f32[2,8,32], index: 0, kind: input, shape index: {}]   ;;  %s4812_s1 = inlined_call_operand.vmem [shape: f32[2,8,256], index: 1, kind: input, shape index: {}]   ;;  %s4813_s2 = inlined_call_operand.vmem [shape: f32[2,128], index: 2, kind: input, shape index: {}]   ;;  %s4814_s3 = inlined_call_operand.vmem [shape: s32[2,1], index: 3, kind: input, shape index: {}]   ;;  %s4815_s4 = inlined_call_operand.vmem [shape: s32[2,1], index: 4, kind: input, shape index: {}]   ;;  %s4816_s5 = inlined_call_operand.vmem [shape: bf16[32,384], index: 5, kind: input, shape index: {}]   ;;  %s4817_s6 = inlined_call_operand.vmem [shape: bf16[128,384], index: 6, kind: input, shape index: {}]   ;;  %s4818_s7 = inlined_call_operand.vmem [shape: f32[1,384], index: 7, kind: input, shape index: {}]   ;;  %s4819_s8 = inlined_call_operand.vmem [shape: f32[1,384], index: 8, kind: input, shape index: {}]   ;;  %s4820_s9 = inlined_call_operand.vmem [shape: bf16[256,128], index: 9, kind: input, shape index: {}]   ;;  %s4821_s10 = inlined_call_operand.vmem [shape: bf16[384,128], index: 10, kind: input, shape index: {}]   ;;  %s4822_s11 = inlined_call_operand.vmem [shape: f32[1,128], index: 11, kind: input, shape index: {}]   ;;  %s4823_s12 = inlined_call_operand.vmem [shape: bf16[128,128], index: 12, kind: input, shape index: {}]   ;;  %s4824_s13 = inlined_call_operand.vmem [shape: f32[1,128], index: 13, kind: input, shape index: {}]   ;;  %s4825_s14 = inlined_call_operand.hbm [shape: f32[2,8,128], index: 14, kind: output, shape index: {0}]   ;;  %s4826_s15 = inlined_call_operand.hbm [shape: f32[2,128], index: 15, kind: output, shape index: {1}]   ;;  %s4827_s16 = inlined_call_operand.hbm [shape: f32[2,8,128], index: 16, kind: output, shape index: {2}]  }
   0x1   :  { %4829 = sst [smem:[#allocation10_spill]] %s4811_s0 }
   0x2   :  { %22 = vsyncpa [#allocation4], 0  ;;  %v3798_v0 = vld [vmem:[%s4817_s6 + $0xac] ss:$12 sps:$4 sm:$0xff]   ;;  %v3803_v1 = vld [vmem:[%s4817_s6 + $0xa8] ss:$12 sps:$4 sm:$0xff]  }
   0x3   :  { %v3701_v2 = vmov 0   ;;  %381 = vmatprep.subr.bf16.mxu0 %v3798_v0  ;;  %v3811_v3 = vld [vmem:[%s4817_s6 + $0x94] ss:$12 sps:$4 sm:$0xff]   ;;  %v3818_v4 = vld [vmem:[%s4817_s6 + $0x90] ss:$12 sps:$4 sm:$0xff]   ;;  %s4830_s17 = sld [smem:[#allocation10_spill]] }
   0x4   :  { %149 = vmatprep.mubr.bf16.mxu1 %v3701_v2  ;;  %413 = vmatprep.mubr.bf16.mxu0 %v3701_v2  ;;  %v3823_v5 = vld [vmem:[%s4817_s6 + $0x7c] ss:$12 sps:$4 sm:$0xff]   ;;  %v3833_v7 = vld [vmem:[%s4817_s6 + $0x78] ss:$12 sps:$4 sm:$0xff]   ;;  %v3364_v11 = vld [vmem:[%s4816_s5] ss:$12 sps:$4 sm:$0xff]  }
   0x5   :  { %3343 = vset.pattern.permute.xlu0 %v3701_v2  ;;  %382 = vmatpush1.bf16.msra.mxu0 %v3803_v1  ;;  %v3354_v6 = vld [vmem:[%s4816_s5 + $0x1c] ss:$12 sps:$4 sm:$0xff]   ;;  %v3358_v8 = vld [vmem:[%s4816_s5 + $0x18] ss:$12 sps:$4 sm:$0xff]   ;;  %v3854_v12 = vld [vmem:[%s4817_s6 + $0x60] ss:$12 sps:$4 sm:$0xff]  }
   0x6   :  { %3344 = vset.pattern.permute.xlu1 %v3701_v2  ;;  %383 = vmatprep.subr.bf16.mxu0 %v3811_v3  ;;  %v3360_v9 = vld [vmem:[%s4816_s5 + $0x4] ss:$12 sps:$4 sm:$0xff]   ;;  %v3866_v15 = vld [vmem:[%s4817_s6 + $0x4c] ss:$12 sps:$4 sm:$0xff]   ;;  %vm113_vm0 = vcmask 261120   ;;  %v3702_v18 = vmov 0.0  }
   0x7   :  { %129 = vmatprep.subr.bf16.mxu1 %v3354_v6  ;;  %v3846_v10 = vld [vmem:[%s4817_s6 + $0x64] ss:$12 sps:$4 sm:$0xff]   ;;  %v3368_v17 = vld [vmem:[%s4816_s5 + $0x20] ss:$12 sps:$4 sm:$0xff]   ;;  %v3877_v19 = vld [vmem:[%s4817_s6 + $0x48] ss:$12 sps:$4 sm:$0xff]  }
   0x8   :  { %130 = vmatpush1.bf16.msra.mxu1 %v3358_v8  ;;  %v3882_v20 = vld [vmem:[%s4817_s6 + $0x34] ss:$12 sps:$4 sm:$0xff]   ;;  %vm3703_vm1 = vmmov 0   ;;  %v3895_v22 = vld [vmem:[%s4817_s6 + $0x30] ss:$12 sps:$4 sm:$0xff]  }
   0x9   :  { %384 = vmatpush1.bf16.msra.mxu0 %v3818_v4  ;;  %131 = vmatprep.subr.bf16.mxu1 %v3360_v9  ;;  %v53_v13 = vld [vmem:[%s4830_s17] sm:$0xff]  ;;  %v54_v14 = vld [vmem:[%s4830_s17 + $0x8] sm:$0xff]  ;;  %v3907_v24 = vld [vmem:[%s4817_s6 + $0xb0] ss:$12 sps:$4 sm:$0xff]  }
   0xa   :  { %385 = vmatprep.subr.bf16.mxu0 %v3823_v5  ;;  %v55_v16 = vpack.c.bf16 %v54_v14, %v53_v13  ;;  %v3372_v21 = vld [vmem:[%s4816_s5 + $0x8] ss:$12 sps:$4 sm:$0xff]   ;;  %v3913_v25 = vld [vmem:[%s4817_s6 + $0x18] ss:$12 sps:$4 sm:$0xff]   ;;  %v3920_v26 = vld [vmem:[%s4813_s2] sm:$0x3] }
   0xb   :  { %v3901_v23 = vld [vmem:[%s4817_s6 + $0x1c] ss:$12 sps:$4 sm:$0xff]   ;;  %v3926_v27 = vld [vmem:[%s4817_s6 + $0x4] ss:$12 sps:$4 sm:$0xff]   ;;  %v234_v29 = vld [vmem:[%s4815_s4] sm:$0x3]  ;;  %v3947_v31 = vpack.c.bf16 %v3920_v26, %v3920_v26 }
   0xc   :  { %132 = vmatpush1.bf16.msra.mxu1 %v3364_v11  ;;  %v3932_v28 = vld [vmem:[%s4817_s6 + $0x98] ss:$12 sps:$4 sm:$0xff]   ;;  %v3940_v30 = vld [vmem:[%s4817_s6] ss:$12 sps:$4 sm:$0xff]   ;;  %vm520_vm2 = vcmp.gt.s32.totalorder %v234_v29, 0  ;;  %vm903_vm3 = vcmp.gt.s32.totalorder %v234_v29, 2 }
   0xd   :  { %386 = vmatpush1.bf16.msra.mxu0 %v3833_v7  ;;  %3114 = vmatprep.subr.bf16.mxu1 %v3702_v18  ;;  %vm1097_vm4 = vcmp.gt.s32.totalorder %v234_v29, 3  ;;  %vm1291_vm5 = vcmp.gt.s32.totalorder %v234_v29, 4  ;;  %v3952_v32 = vld [vmem:[%s4817_s6 + $0x80] ss:$12 sps:$4 sm:$0xff]   ;;  %v2867_v33 = vsel %vm520_vm2, 1.0, %v3702_v18  ;;  %v2881_v34 = vsel %vm903_vm3, 1.0, %v3702_v18 }
   0xe   :  { %387 = vmatprep.subr.bf16.mxu0 %v3846_v10  ;;  %v2888_v35 = vsel %vm1097_vm4, 1.0, %v3702_v18  ;;  %v535_v36 = vsub.f32 1.0, %v2867_v33  ;;  %525 = vperm.xlu0 %3343, %v2867_v33   ;;  %v918_v37 = vsub.f32 1.0, %v2881_v34  ;;  %v2895_v39 = vsel %vm1291_vm5, 1.0, %v3702_v18  ;;  %v3968_v44 = vld [vmem:[%s4817_s6 + $0x68] ss:$12 sps:$4 sm:$0xff]  }
   0xf   :  { %2837 = vmatmul.mubr.msk.bf16.vlgmr.msra.gmra.mxu1 %vm113_vm0, %v55_v16  ;;  %v1112_v38 = vsub.f32 1.0, %v2888_v35  ;;  %vm1485_vm6 = vcmp.gt.s32.totalorder %v234_v29, 5  ;;  %vm1679_vm7 = vcmp.gt.s32.totalorder %v234_v29, 6  ;;  %vm1873_vm8 = vcmp.gt.s32.totalorder %v234_v29, 7  ;;  %v3981_v49 = vld [vmem:[%s4817_s6 + $0x50] ss:$12 sps:$4 sm:$0xff]  }
  0x10   :  { %3115 = vmatpush3.bf16.msra.mxu1 %v3368_v17  ;;  %3118 = vmatprep.mubr.msk.bf16.mxu1 %vm3703_vm1, %v3702_v18  ;;  %vm710_vm9 = vcmp.gt.s32.totalorder %v234_v29, 1  ;;  %v1306_v40 = vsub.f32 1.0, %v2895_v39  ;;  %v2902_v41 = vsel %vm1485_vm6, 1.0, %v3702_v18  ;;  %v2909_v42 = vsel %vm1679_vm7, 1.0, %v3702_v18  ;;  %v3991_v50 = vld [vmem:[%s4817_s6 + $0x38] ss:$12 sps:$4 sm:$0xff]  }
  0x11   :  { %388 = vmatpush1.bf16.msra.mxu0 %v3854_v12  ;;  %3116 = vmatprep.subr.bf16.mxu1 %v3702_v18  ;;  %v2874_v43 = vsel %vm710_vm9, 1.0, %v3702_v18  ;;  %v1500_v45 = vsub.f32 1.0, %v2902_v41  ;;  %v1694_v46 = vsub.f32 1.0, %v2909_v42  ;;  %v3971_v47 = vsel %vm1873_vm8, 1.0, %v3702_v18  ;;  %v4000_v51 = vld [vmem:[%s4817_s6 + $0x20] ss:$12 sps:$4 sm:$0xff]  }
  0x12   :  { %389 = vmatprep.subr.bf16.mxu0 %v3866_v15  ;;  %v724_v48 = vsub.f32 1.0, %v2874_v43  ;;  %715 = vperm.xlu1 %3344, %v2874_v43   ;;  %v4009_v52 = vld [vmem:[%s4817_s6 + $0x8] ss:$12 sps:$4 sm:$0xff]  }
  0x13   :  { %538 = vperm.xlu0 %3343, %v535_v36  }
  0x14   :  { %3117 = vmatpush3.bf16.msra.mxu1 %v3372_v21 }
  0x15   :  { %390 = vmatpush1.bf16.msra.mxu0 %v3877_v19  ;;  %3122 = vmatprep.subr.bf16.mxu1 %v3702_v18 }
  0x16   :  { %391 = vmatprep.subr.bf16.mxu0 %v3882_v20  ;;  %727 = vperm.xlu1 %3344, %v724_v48  }
  0x17   :  { %3119 = vmatmul.mubr.msk.bf16.vlgmr.msra.gmra.mxu1 %vm113_vm0, %v55_v16  ;;  %908 = vperm.xlu0 %3343, %v2881_v34  }
  0x18   :  { %3123 = vmatpush3.bf16.msra.mxu1 %v3907_v24  ;;  %3138 = vmatprep.mubr.msk.bf16.mxu1 %vm3703_vm1, %v3702_v18 }
  0x19   :  { %392 = vmatpush1.bf16.msra.mxu0 %v3895_v22  ;;  %3124 = vmatprep.subr.bf16.mxu1 %v3702_v18 }
  0x1a   :  { %393 = vmatprep.subr.bf16.mxu0 %v3901_v23  ;;  %921 = vperm.xlu1 %3344, %v918_v37  }
  0x1b   :  { %1102 = vperm.xlu0 %3343, %v2888_v35  }
  0x1c   :  { %3125 = vmatpush3.bf16.msra.mxu1 %v3932_v28 }
  0x1d   :  { %394 = vmatpush1.bf16.msra.mxu0 %v3913_v25  ;;  %3126 = vmatprep.subr.bf16.mxu1 %v3702_v18 }
  0x1e   :  { %395 = vmatprep.subr.bf16.mxu0 %v3926_v27  ;;  %1115 = vperm.xlu1 %3344, %v1112_v38  }
  0x1f   :  { %1296 = vperm.xlu0 %3343, %v2895_v39  }
  0x20   :  { %3127 = vmatpush3.bf16.msra.mxu1 %v3952_v32 }
  0x21   :  { %396 = vmatpush1.bf16.msra.mxu0 %v3940_v30  ;;  %3128 = vmatprep.subr.bf16.mxu1 %v3702_v18 }
  0x22   :  { %571 = vmatprep.subr.bf16.mxu0 %v3798_v0  ;;  %1309 = vperm.xlu1 %3344, %v1306_v40  }
  0x23   :  { %1490 = vperm.xlu0 %3343, %v2902_v41  }
  0x24   :  { %414 = vmatmul.mubr.bf16.vlgmr.msra.gmra.mxu0 %v3947_v31  ;;  %3129 = vmatpush3.bf16.msra.mxu1 %v3968_v44 }
  0x25   :  { %572 = vmatpush1.bf16.msra.mxu0 %v3803_v1  ;;  %3130 = vmatprep.subr.bf16.mxu1 %v3702_v18 }
  0x26   :  { %573 = vmatprep.subr.bf16.mxu0 %v3811_v3  ;;  %603 = vmatprep.mubr.bf16.mxu0 %v3701_v2 }
  0x27   :  { %1503 = vperm.xlu1 %3344, %v1500_v45   ;;  %1684 = vperm.xlu0 %3343, %v2909_v42  }
  0x28   :  { %3131 = vmatpush3.bf16.msra.mxu1 %v3981_v49 }
  0x29   :  { %574 = vmatpush1.bf16.msra.mxu0 %v3818_v4  ;;  %3132 = vmatprep.subr.bf16.mxu1 %v3702_v18 }
  0x2a   :  { %575 = vmatprep.subr.bf16.mxu0 %v3823_v5 }
  0x2b   :  { %1697 = vperm.xlu1 %3344, %v1694_v46   ;;  %1878 = vperm.xlu0 %3343, %v3971_v47  }
  0x2c   :  { %3133 = vmatpush3.bf16.msra.mxu1 %v3991_v50 }
  0x2d   :  { %576 = vmatpush1.bf16.msra.mxu0 %v3833_v7  ;;  %3134 = vmatprep.subr.bf16.mxu1 %v3702_v18 }
  0x2e   :  { %577 = vmatprep.subr.bf16.mxu0 %v3846_v10 }
  0x30   :  { %3135 = vmatpush3.bf16.msra.mxu1 %v4000_v51 }
  0x31   :  { %578 = vmatpush1.bf16.msra.mxu0 %v3854_v12  ;;  %3136 = vmatprep.subr.bf16.mxu1 %v3702_v18 }
  0x32   :  { %579 = vmatprep.subr.bf16.mxu0 %v3866_v15 }
  0x34   :  { %3137 = vmatpush3.bf16.msra.mxu1 %v4009_v52 }
  0x35   :  { %580 = vmatpush1.bf16.msra.mxu0 %v3877_v19  ;;  %3142 = vmatprep.subr.bf16.mxu1 %v3702_v18 }
  0x36   :  { %581 = vmatprep.subr.bf16.mxu0 %v3882_v20 }
  0x37   :  { %3139 = vmatmul.mubr.bf16.vlgmr.msra.gmra.mxu1 %v3947_v31 }
  0x38   :  { %3143 = vmatpush3.bf16.msra.mxu1 %v3907_v24  ;;  %3158 = vmatprep.mubr.msk.bf16.mxu1 %vm3703_vm1, %v3702_v18 }
  0x39   :  { %582 = vmatpush1.bf16.msra.mxu0 %v3895_v22  ;;  %3144 = vmatprep.subr.bf16.mxu1 %v3702_v18 }
  0x3a   :  { %583 = vmatprep.subr.bf16.mxu0 %v3901_v23 }
  0x3c   :  { %3145 = vmatpush3.bf16.msra.mxu1 %v3932_v28 }
  0x3d   :  { %584 = vmatpush1.bf16.msra.mxu0 %v3913_v25  ;;  %3146 = vmatprep.subr.bf16.mxu1 %v3702_v18 }
  0x3e   :  { %585 = vmatprep.subr.bf16.mxu0 %v3926_v27 }
  0x3f   :  { %23 = vsyncpa [#allocation6], 0  ;;  %v1928_v53 = vld [vmem:[%s4814_s3] sm:$0x3]  ;;  %v66_v56 = vlaneseq  ;;  %vm531_vm10 = vcmask 1041409   ;;  %vm2231_vm14 = vcmask 64512  }
  0x40   :  { %3147 = vmatpush3.bf16.msra.mxu1 %v3952_v32  ;;  %1930 = vperm.xlu1 %3344, %v1928_v53   ;;  %v64_v6 = vld [vmem:[%s4818_s7] sm:$0x7]  ;;  %vm2267_vm2 = vcmask 1043456   ;;  %s3706_s28 = smov [#allocation7]  }
  0x41   :  { %586 = vmatpush1.bf16.msra.mxu0 %v3940_v30  ;;  %3148 = vmatprep.subr.bf16.mxu1 %v3702_v18  ;;  %v4049_v59 = vshrl.u32 %v66_v56, 7  ;;  %v233_v8 = vld [vmem:[%s4819_s8] sm:$0x7]  ;;  %s2813_s29 = sshll.u32 %s3706_s28, 4  ;;  %s2814_s29 = int_to_ptr.vmem [resolvable:$true] %s2813_s29 }
  0x42   :  { %760 = vmatprep.subr.bf16.mxu0 %v3798_v0 }
  0x43   :  { %v4052_v62 = vsub.s32 0, %v4049_v59  ;;  %v72_v13 = vsub.s32 1, %v4049_v59 }
  0x44   :  { %3149 = vmatpush3.bf16.msra.mxu1 %v3968_v44 }
  0x45   :  { %3150 = vmatprep.subr.bf16.mxu1 %v3702_v18  ;;  %v69_v11 = vrot.slane %v64_v6, %v4052_v62  ;;  %v4063_v14 = vrot.slane %v233_v8, %v4052_v62  ;;  %v4065_v16 = vrot.slane %v233_v8, %v72_v13  ;;  %v73_v37 = vrot.slane %v64_v6, %v72_v13 }
  0x48   :  { %3151 = vmatpush3.bf16.msra.mxu1 %v3981_v49 }
  0x49   :  { %3152 = vmatprep.subr.bf16.mxu1 %v3702_v18 }
  0x4c   :  { %3153 = vmatpush3.bf16.msra.mxu1 %v3991_v50 }
  0x4d   :  { %3154 = vmatprep.subr.bf16.mxu1 %v3702_v18 }
  0x50   :  { %3155 = vmatpush3.bf16.msra.mxu1 %v4000_v51 }
  0x51   :  { %3156 = vmatprep.subr.bf16.mxu1 %v3702_v18 }
  0x54   :  { %3157 = vmatpush3.bf16.msra.mxu1 %v4009_v52 }
  0x55   :  { %3162 = vmatprep.subr.bf16.mxu1 %v3702_v18 }
  0xcf   :  { %v151_v54 = vpop.f32.mrf.mxu1 }
  0xd0   :  { %v4067_v21 = vadd.f32 %v151_v54, %v69_v11 }
  0xd1   :  { %v153_v55 = vpop.f32.mrf.mxu1 }
  0xd2   :  { %v4075_v45 = vadd.f32 %v153_v55, %v73_v37  ;;  %v76_v55 = vsub.s32 2, %v4049_v59 }
  0xd3   :  { %v155_v57 = vpop.f32.mrf.mxu1 }
  0xd4   :  { %v4070_v33 = vadd.f32 %v155_v57, %v69_v11 }
  0xd5   :  { %v157_v58 = vpop.f32.mrf.mxu1 }
  0xd6   :  { %v4077_v46 = vadd.f32 %v157_v58, %v73_v37 }
  0xd7   :  { %v194_v60 = vpop.f32.mrf.mxu1 }
  0xd9   :  { %v3120_v61 = vpop.f32.mrf.mxu1 }
  0xdb   :  { %v197_v63 = vpop.f32.mrf.mxu1 }
  0xdd   :  { %v3121_v9 = vpop.f32.mrf.mxu1 }
  0xe4   :  { %v415_v17 = vpop.f32.mrf.mxu0 }
  0xe5   :  { %v416_v29 = vadd.f32 %v415_v17, %v4063_v14 }
  0xe6   :  { %v417_v31 = vpop.f32.mrf.mxu0 }
  0xe7   :  { %v463_v34 = vrot.slane %v416_v29, 1  ;;  %v466_v35 = vadd.f32 %v416_v29, %v4067_v21  ;;  %v418_v36 = vadd.f32 %v417_v31, %v4065_v16  ;;  %v4082_v31 = vrot.slane %v233_v8, %v76_v55 }
  0xe8   :  { %v419_v38 = vpop.f32.mrf.mxu0 }
  0xe9   :  { %v467_v39 = vadd.f32 %v463_v34, %v4070_v33  ;;  %v2863_v40 = vmul.f32 -1.442695, %v466_v35  ;;  %v481_v43 = vrot.slane %v418_v36, 1  ;;  %v484_v48 = vadd.f32 %v418_v36, %v4075_v45 }
  0xea   :  { %v420_v41 = vpop.f32.mrf.mxu0  ;;  %v77_v38 = vrot.slane %v64_v6, %v76_v55 }
  0xeb   :  { %3433 = vpow2.f32 %v2863_v40  ;;  %v2864_v42 = vmul.f32 -1.442695, %v467_v39  ;;  %v485_v53 = vadd.f32 %v481_v43, %v4077_v46  ;;  %v2865_v54 = vmul.f32 -1.442695, %v484_v48 }
  0xec   :  { %v4085_v43 = vadd.f32 %v194_v60, %v77_v38  ;;  %v3704_v60 = vmov 1966171168  }
  0xed   :  { %3435 = vpow2.f32 %v2864_v42  ;;  %v2866_v57 = vmul.f32 -1.442695, %v485_v53 }
  0xee   :  { %3437 = vpow2.f32 %v2865_v54  ;;  %v4087_v54 = vadd.f32 %v197_v63, %v77_v38  ;;  %v526_v63 = vpop.permute.xlu0 %525 }
  0xef   :  { %3439 = vpow2.f32 %v2866_v57 }
  0xf7   :  { %v456_v11 = vpop.f32.mrf.mxu1 }
  0xf8   :  { %v3434_v61 = vpop.eup %3433  ;;  %v457_v36 = vadd.f32 %v456_v11, %v4082_v31  ;;  %v513_v11 = vrot.slane %v3920_v26, 1 }
  0xf9   :  { %v474_v9 = vadd.f32 1.0, %v3434_v61  ;;  %v3140_v29 = vpop.f32.mrf.mxu1 }
  0xfa   :  { %v3436_v13 = vpop.eup %3435  ;;  %v499_v41 = vrot.slane %v457_v36, 1 }
  0xfb   :  { %v475_v17 = vadd.f32 1.0, %v3436_v13  ;;  %3441 = vrcp.f32 %v474_v9  ;;  %v459_v58 = vpop.f32.mrf.mxu1  ;;  %v3438_v35 = vpop.eup %3437 }
  0xfc   :  { %v3440_v37 = vpop.eup %3439  ;;  %v492_v39 = vadd.f32 1.0, %v3438_v35 }
  0xfd   :  { %3443 = vrcp.f32 %v475_v17  ;;  %v3141_v34 = vpop.f32.mrf.mxu1  ;;  %v493_v40 = vadd.f32 1.0, %v3440_v37  ;;  %v545_v17 = vunpack.c.l.s4 %v3704_v60 }
  0xfe   :  { %3445 = vrcp.f32 %v492_v39 }
  0xff   :  { %3447 = vrcp.f32 %v493_v40  ;;  %v546_v37 = vunpack.c.0.s8 %v545_v17 }
 0x108   :  { %v3442_v42 = vpop.eup %3441 }
 0x109   :  { %v502_v48 = vmul.f32 %v3442_v42, %v457_v36  ;;  %v4094_v42 = vsub.s32 %v546_v37, %v4049_v59 }
 0x10a   :  { %v3444_v53 = vpop.eup %3443 }
 0x10b   :  { %v503_v8 = vmul.f32 %v3444_v53, %v499_v41  ;;  %v504_v57 = vadd.f32 %v502_v48, %v4085_v43  ;;  %v3446_v6 = vpop.eup %3445  ;;  %v539_v53 = vpop.permute.xlu0 %538 }
 0x10c   :  { %v3448_v9 = vpop.eup %3447  ;;  %v508_v29 = vsub.f32 1.0, %v3446_v6  ;;  %v516_v38 = vmul.f32 %v3446_v6, %v3920_v26 }
 0x10d   :  { %v505_v61 = vadd.f32 %v503_v8, %v4087_v54  ;;  %3449 = vtanh.f32 %v504_v57  ;;  %v509_v55 = vsub.f32 1.0, %v3448_v9  ;;  %v517_v36 = vmul.f32 %v3448_v9, %v513_v11 }
 0x10e   :  { %v541_v57 = vmul.f32 %v539_v53, %v3920_v26 }
 0x10f   :  { %3451 = vtanh.f32 %v505_v61 }
 0x11a   :  { %v3450_v13 = vpop.eup %3449 }
 0x11b   :  { %v510_v34 = vmul.f32 %v3450_v13, %v508_v29 }
 0x11c   :  { %v3452_v58 = vpop.eup %3451 }
 0x11d   :  { %v511_v35 = vmul.f32 %v3452_v58, %v509_v55  ;;  %v518_v40 = vadd.f32 %v516_v38, %v510_v34 }
 0x11f   :  { %v519_v39 = vadd.f32 %v517_v36, %v511_v35 }
 0x121   :  { %v530_v41 = vrot.slane %v519_v39, 7 }
 0x123   :  { %v532_v48 = vsel %vm531_vm10, %v530_v41, %v518_v40 }
 0x124   :  { %v534_v8 = vmul.f32 %v532_v48, %v526_v63 }
 0x126   :  { %v550_v61 = vrot.slane %v534_v8, %v4094_v42  ;;  %v4099_v13 = vadd.f32 %v541_v57, %v534_v8 }
 0x128   :  { %v551_v9 = vcombine.high %v550_v61, %v550_v61  ;;  %2868 = vst.sshfl [vmem:[#allocation2] sm:$0x1 pattern:$0x73625140] %v550_v61  ;;  %v570_v6 = vpack.c.bf16 %v4099_v13, %v4099_v13 }
 0x12a   :  { %2869 = vst.sshfl [vmem:[#allocation2 + $0x8] sm:$0x1 pattern:$0x73625140] %v551_v9  ;;  %604 = vmatmul.mubr.bf16.vlgmr.msra.gmra.mxu0 %v570_v6  ;;  %3159 = vmatmul.mubr.bf16.vlgmr.msra.gmra.mxu1 %v570_v6 }
 0x12b   :  { %761 = vmatpush1.bf16.msra.mxu0 %v3803_v1  ;;  %3163 = vmatpush3.bf16.msra.mxu1 %v3907_v24 }
 0x12c   :  { %762 = vmatprep.subr.bf16.mxu0 %v3811_v3  ;;  %3164 = vmatprep.subr.bf16.mxu1 %v3702_v18 }
 0x12d   :  { %792 = vmatprep.mubr.bf16.mxu0 %v3701_v2  ;;  %3178 = vmatprep.mubr.msk.bf16.mxu1 %vm3703_vm1, %v3702_v18 }
 0x12f   :  { %763 = vmatpush1.bf16.msra.mxu0 %v3818_v4  ;;  %3165 = vmatpush3.bf16.msra.mxu1 %v3932_v28 }
 0x130   :  { %764 = vmatprep.subr.bf16.mxu0 %v3823_v5  ;;  %3166 = vmatprep.subr.bf16.mxu1 %v3702_v18 }
 0x133   :  { %765 = vmatpush1.bf16.msra.mxu0 %v3833_v7  ;;  %3167 = vmatpush3.bf16.msra.mxu1 %v3952_v32 }
 0x134   :  { %766 = vmatprep.subr.bf16.mxu0 %v3846_v10  ;;  %3168 = vmatprep.subr.bf16.mxu1 %v3702_v18 }
 0x137   :  { %767 = vmatpush1.bf16.msra.mxu0 %v3854_v12  ;;  %3169 = vmatpush3.bf16.msra.mxu1 %v3968_v44 }
 0x138   :  { %768 = vmatprep.subr.bf16.mxu0 %v3866_v15  ;;  %3170 = vmatprep.subr.bf16.mxu1 %v3702_v18 }
 0x13b   :  { %769 = vmatpush1.bf16.msra.mxu0 %v3877_v19  ;;  %3171 = vmatpush3.bf16.msra.mxu1 %v3981_v49 }
 0x13c   :  { %770 = vmatprep.subr.bf16.mxu0 %v3882_v20  ;;  %3172 = vmatprep.subr.bf16.mxu1 %v3702_v18 }
 0x13f   :  { %771 = vmatpush1.bf16.msra.mxu0 %v3895_v22  ;;  %3173 = vmatpush3.bf16.msra.mxu1 %v3991_v50 }
 0x140   :  { %772 = vmatprep.subr.bf16.mxu0 %v3901_v23  ;;  %3174 = vmatprep.subr.bf16.mxu1 %v3702_v18 }
 0x143   :  { %773 = vmatpush1.bf16.msra.mxu0 %v3913_v25  ;;  %3175 = vmatpush3.bf16.msra.mxu1 %v4000_v51 }
 0x144   :  { %774 = vmatprep.subr.bf16.mxu0 %v3926_v27  ;;  %3176 = vmatprep.subr.bf16.mxu1 %v3702_v18 }
 0x147   :  { %775 = vmatpush1.bf16.msra.mxu0 %v3940_v30  ;;  %3177 = vmatpush3.bf16.msra.mxu1 %v4009_v52 }
 0x148   :  { %954 = vmatprep.subr.bf16.mxu0 %v3798_v0  ;;  %3182 = vmatprep.subr.bf16.mxu1 %v3702_v18 }
 0x1ea   :  { %v605_v26 = vpop.f32.mrf.mxu0  ;;  %v646_v59 = vpop.f32.mrf.mxu1 }
 0x1eb   :  { %v606_v11 = vadd.f32 %v605_v26, %v4063_v14 }
 0x1ec   :  { %v607_v60 = vpop.f32.mrf.mxu0  ;;  %v3160_v17 = vpop.f32.mrf.mxu1 }
 0x1ed   :  { %v653_v29 = vrot.slane %v606_v11, 7  ;;  %v657_v55 = vadd.f32 %v606_v11, %v4070_v33  ;;  %v608_v58 = vadd.f32 %v607_v60, %v4065_v16  ;;  %v647_v11 = vadd.f32 %v646_v59, %v4082_v31 }
 0x1ee   :  { %v609_v63 = vpop.f32.mrf.mxu0  ;;  %v649_v34 = vpop.f32.mrf.mxu1  ;;  %v703_v59 = vrot.slane %v4099_v13, 7 }
 0x1ef   :  { %v656_v35 = vadd.f32 %v653_v29, %v4067_v21  ;;  %v2871_v36 = vmul.f32 -1.442695, %v657_v55  ;;  %v671_v39 = vrot.slane %v608_v58, 7  ;;  %v675_v40 = vadd.f32 %v608_v58, %v4077_v46 }
 0x1f0   :  { %v610_v37 = vpop.f32.mrf.mxu0  ;;  %v3161_v0 = vpop.f32.mrf.mxu1  ;;  %v689_v55 = vrot.slane %v647_v11, 7 }
 0x1f1   :  { %v2870_v38 = vmul.f32 -1.442695, %v656_v35  ;;  %3453 = vpow2.f32 %v2871_v36  ;;  %v674_v41 = vadd.f32 %v671_v39, %v4075_v45  ;;  %v2873_v48 = vmul.f32 -1.442695, %v675_v40  ;;  %v716_v39 = vpop.permute.xlu1 %715 }
 0x1f3   :  { %3455 = vpow2.f32 %v2870_v38  ;;  %v2872_v53 = vmul.f32 -1.442695, %v674_v41 }
 0x1f4   :  { %3457 = vpow2.f32 %v2873_v48 }
 0x1f5   :  { %3459 = vpow2.f32 %v2872_v53 }
 0x1fe   :  { %v3454_v8 = vpop.eup %3453 }
 0x1ff   :  { %v665_v57 = vadd.f32 1.0, %v3454_v8 }
 0x200   :  { %v3456_v61 = vpop.eup %3455 }
 0x201   :  { %v664_v9 = vadd.f32 1.0, %v3456_v61  ;;  %3461 = vrcp.f32 %v665_v57  ;;  %v3458_v6 = vpop.eup %3457 }
 0x202   :  { %v3460_v26 = vpop.eup %3459  ;;  %v683_v60 = vadd.f32 1.0, %v3458_v6  ;;  %v728_v6 = vpop.permute.xlu1 %727 }
 0x203   :  { %3463 = vrcp.f32 %v664_v9  ;;  %v682_v17 = vadd.f32 1.0, %v3460_v26 }
 0x204   :  { %3465 = vrcp.f32 %v683_v60 }
 0x205   :  { %3467 = vrcp.f32 %v682_v17  ;;  %v730_v17 = vmul.f32 %v728_v6, %v4099_v13 }
 0x20e   :  { %v3462_v29 = vpop.eup %3461 }
 0x20f   :  { %v693_v58 = vmul.f32 %v3462_v29, %v647_v11 }
 0x210   :  { %v3464_v63 = vpop.eup %3463 }
 0x211   :  { %v692_v34 = vmul.f32 %v3464_v63, %v689_v55  ;;  %v695_v35 = vadd.f32 %v693_v58, %v4087_v54  ;;  %v3466_v37 = vpop.eup %3465 }
 0x212   :  { %v3468_v0 = vpop.eup %3467  ;;  %v699_v41 = vsub.f32 1.0, %v3466_v37  ;;  %v707_v61 = vmul.f32 %v3466_v37, %v4099_v13 }
 0x213   :  { %v694_v36 = vadd.f32 %v692_v34, %v4085_v43  ;;  %3469 = vtanh.f32 %v695_v35  ;;  %v698_v40 = vsub.f32 1.0, %v3468_v0  ;;  %v706_v57 = vmul.f32 %v3468_v0, %v703_v59 }
 0x215   :  { %3471 = vtanh.f32 %v694_v36 }
 0x220   :  { %v3470_v38 = vpop.eup %3469 }
 0x221   :  { %v701_v8 = vmul.f32 %v3470_v38, %v699_v41 }
 0x222   :  { %v3472_v48 = vpop.eup %3471 }
 0x223   :  { %v700_v53 = vmul.f32 %v3472_v48, %v698_v40  ;;  %v709_v26 = vadd.f32 %v707_v61, %v701_v8 }
 0x225   :  { %v708_v9 = vadd.f32 %v706_v57, %v700_v53 }
 0x227   :  { %v720_v11 = vrot.slane %v708_v9, 1 }
 0x229   :  { %v721_v60 = vsel %vm531_vm10, %v709_v26, %v720_v11 }
 0x22a   :  { %v723_v29 = vmul.f32 %v721_v60, %v716_v39 }
 0x22c   :  { %v4151_v55 = vadd.f32 %v730_v17, %v723_v29  ;;  %v739_v58 = vrot.slane %v723_v29, %v4094_v42 }
 0x22e   :  { %v740_v63 = vcombine.high %v739_v58, %v739_v58  ;;  %2875 = vst.sshfl [vmem:[#allocation2 + $0x1] sm:$0x1 pattern:$0x73625140] %v739_v58  ;;  %v759_v34 = vpack.c.bf16 %v4151_v55, %v4151_v55 }
 0x230   :  { %2876 = vst.sshfl [vmem:[#allocation2 + $0x9] sm:$0x1 pattern:$0x73625140] %v740_v63  ;;  %793 = vmatmul.mubr.bf16.vlgmr.msra.gmra.mxu0 %v759_v34  ;;  %3179 = vmatmul.mubr.bf16.vlgmr.msra.gmra.mxu1 %v759_v34  ;;  %v895_v34 = vrot.slane %v4151_v55, 6 }
 0x231   :  { %955 = vmatpush1.bf16.msra.mxu0 %v3803_v1  ;;  %3183 = vmatpush3.bf16.msra.mxu1 %v3907_v24  ;;  %v4192_v1 = vld [vmem:[%s4817_s6 + $0xac] ss:$12 sps:$4 sm:$0xff]  }
 0x232   :  { %956 = vmatprep.subr.bf16.mxu0 %v3811_v3  ;;  %3184 = vmatprep.subr.bf16.mxu1 %v3702_v18 }
 0x233   :  { %986 = vmatprep.mubr.bf16.mxu0 %v3701_v2  ;;  %3198 = vmatprep.mubr.msk.bf16.mxu1 %vm3703_vm1, %v3702_v18 }
 0x235   :  { %957 = vmatpush1.bf16.msra.mxu0 %v3818_v4  ;;  %3185 = vmatpush3.bf16.msra.mxu1 %v3932_v28 }
 0x236   :  { %958 = vmatprep.subr.bf16.mxu0 %v3823_v5  ;;  %3186 = vmatprep.subr.bf16.mxu1 %v3702_v18 }
 0x239   :  { %959 = vmatpush1.bf16.msra.mxu0 %v3833_v7  ;;  %3187 = vmatpush3.bf16.msra.mxu1 %v3952_v32 }
 0x23a   :  { %960 = vmatprep.subr.bf16.mxu0 %v3846_v10  ;;  %3188 = vmatprep.subr.bf16.mxu1 %v3702_v18 }
 0x23d   :  { %961 = vmatpush1.bf16.msra.mxu0 %v3854_v12  ;;  %3189 = vmatpush3.bf16.msra.mxu1 %v3968_v44 }
 0x23e   :  { %962 = vmatprep.subr.bf16.mxu0 %v3866_v15  ;;  %3190 = vmatprep.subr.bf16.mxu1 %v3702_v18 }
 0x241   :  { %963 = vmatpush1.bf16.msra.mxu0 %v3877_v19  ;;  %3191 = vmatpush3.bf16.msra.mxu1 %v3981_v49 }
 0x242   :  { %964 = vmatprep.subr.bf16.mxu0 %v3882_v20  ;;  %3192 = vmatprep.subr.bf16.mxu1 %v3702_v18 }
 0x245   :  { %965 = vmatpush1.bf16.msra.mxu0 %v3895_v22  ;;  %3193 = vmatpush3.bf16.msra.mxu1 %v3991_v50 }
 0x246   :  { %966 = vmatprep.subr.bf16.mxu0 %v3901_v23  ;;  %3194 = vmatprep.subr.bf16.mxu1 %v3702_v18 }
 0x249   :  { %967 = vmatpush1.bf16.msra.mxu0 %v3913_v25  ;;  %3195 = vmatpush3.bf16.msra.mxu1 %v4000_v51 }
 0x24a   :  { %968 = vmatprep.subr.bf16.mxu0 %v3926_v27  ;;  %3196 = vmatprep.subr.bf16.mxu1 %v3702_v18 }
 0x24d   :  { %969 = vmatpush1.bf16.msra.mxu0 %v3940_v30  ;;  %3197 = vmatpush3.bf16.msra.mxu1 %v4009_v52 }
 0x24e   :  { %1148 = vmatprep.subr.bf16.mxu0 %v4192_v1  ;;  %3202 = vmatprep.subr.bf16.mxu1 %v3702_v18 }
 0x2f0   :  { %v794_v3 = vpop.f32.mrf.mxu0  ;;  %v835_v4 = vpop.f32.mrf.mxu1 }
 0x2f1   :  { %v795_v5 = vadd.f32 %v794_v3, %v4063_v14  ;;  %v836_v53 = vadd.f32 %v835_v4, %v4082_v31 }
 0x2f2   :  { %v796_v7 = vpop.f32.mrf.mxu0  ;;  %v3180_v10 = vpop.f32.mrf.mxu1 }
 0x2f3   :  { %v842_v12 = vrot.slane %v795_v5, 6  ;;  %v843_v15 = vrot.slane %v795_v5, 7  ;;  %v797_v19 = vadd.f32 %v796_v7, %v4065_v16  ;;  %v880_v61 = vrot.slane %v836_v53, 6 }
 0x2f4   :  { %v798_v20 = vpop.f32.mrf.mxu0  ;;  %v838_v22 = vpop.f32.mrf.mxu1  ;;  %v881_v6 = vrot.slane %v836_v53, 7  ;;  %v896_v5 = vrot.slane %v4151_v55, 7  ;;  %v4264_v53 = vld [vmem:[%s4817_s6 + $0x80] ss:$12 sps:$4 sm:$0xff]  }
 0x2f5   :  { %v846_v23 = vadd.f32 %v842_v12, %v4067_v21  ;;  %v847_v24 = vadd.f32 %v843_v15, %v4070_v33  ;;  %v861_v32 = vrot.slane %v797_v19, 6  ;;  %v862_v13 = vrot.slane %v797_v19, 7 }
 0x2f6   :  { %v799_v25 = vpop.f32.mrf.mxu0  ;;  %v3181_v27 = vpop.f32.mrf.mxu1 }
 0x2f7   :  { %v2877_v28 = vmul.f32 -1.442695, %v846_v23  ;;  %v2878_v30 = vmul.f32 -1.442695, %v847_v24  ;;  %v865_v35 = vadd.f32 %v861_v32, %v4075_v45  ;;  %v866_v36 = vadd.f32 %v862_v13, %v4077_v46  ;;  %v909_v27 = vpop.permute.xlu0 %908 }
 0x2f9   :  { %3473 = vpow2.f32 %v2877_v28  ;;  %v2879_v37 = vmul.f32 -1.442695, %v865_v35  ;;  %v2880_v0 = vmul.f32 -1.442695, %v866_v36  ;;  %v922_v28 = vpop.permute.xlu1 %921 }
 0x2fa   :  { %3475 = vpow2.f32 %v2878_v30  ;;  %v924_v32 = vmul.f32 %v922_v28, %v4151_v55  ;;  %v4223_v55 = vld [vmem:[%s4817_s6 + $0xb0] ss:$12 sps:$4 sm:$0xff]  }
 0x2fb   :  { %3477 = vpow2.f32 %v2879_v37 }
 0x2fc   :  { %3479 = vpow2.f32 %v2880_v0 }
 0x306   :  { %v3474_v38 = vpop.eup %3473 }
 0x307   :  { %v3476_v59 = vpop.eup %3475  ;;  %v854_v39 = vadd.f32 1.0, %v3474_v38  ;;  %v4217_v38 = vld [vmem:[%s4817_s6 + $0xa8] ss:$12 sps:$4 sm:$0xff]  }
 0x308   :  { %v855_v40 = vadd.f32 1.0, %v3476_v59  ;;  %v3478_v41 = vpop.eup %3477  ;;  %v4229_v59 = vld [vmem:[%s4817_s6 + $0x94] ss:$12 sps:$4 sm:$0xff]  }
 0x309   :  { %3481 = vrcp.f32 %v854_v39  ;;  %v3480_v48 = vpop.eup %3479  ;;  %v873_v8 = vadd.f32 1.0, %v3478_v41  ;;  %v4239_v39 = vld [vmem:[%s4817_s6 + $0x90] ss:$12 sps:$4 sm:$0xff]  }
 0x30a   :  { %3483 = vrcp.f32 %v855_v40  ;;  %v874_v57 = vadd.f32 1.0, %v3480_v48  ;;  %v4245_v40 = vld [vmem:[%s4817_s6 + $0x98] ss:$12 sps:$4 sm:$0xff]   ;;  %v4251_v41 = vld [vmem:[%s4817_s6 + $0x7c] ss:$12 sps:$4 sm:$0xff]  }
 0x30b   :  { %3485 = vrcp.f32 %v873_v8  ;;  %v4258_v48 = vld [vmem:[%s4817_s6 + $0x78] ss:$12 sps:$4 sm:$0xff]  }
 0x30c   :  { %3487 = vrcp.f32 %v874_v57  ;;  %v4270_v8 = vld [vmem:[%s4817_s6 + $0x64] ss:$12 sps:$4 sm:$0xff]   ;;  %v4277_v57 = vld [vmem:[%s4817_s6 + $0x60] ss:$12 sps:$4 sm:$0xff]  }
 0x316   :  { %v3482_v9 = vpop.eup %3481 }
 0x317   :  { %v3484_v26 = vpop.eup %3483  ;;  %v884_v11 = vmul.f32 %v3482_v9, %v880_v61  ;;  %v4284_v61 = vld [vmem:[%s4817_s6 + $0x4c] ss:$12 sps:$4 sm:$0xff]   ;;  %v4291_v9 = vld [vmem:[%s4817_s6 + $0x48] ss:$12 sps:$4 sm:$0xff]  }
 0x318   :  { %v885_v60 = vmul.f32 %v3484_v26, %v881_v6  ;;  %v3486_v58 = vpop.eup %3485  ;;  %v4305_v6 = vld [vmem:[%s4817_s6 + $0x30] ss:$12 sps:$4 sm:$0xff]   ;;  %v4319_v26 = vld [vmem:[%s4817_s6 + $0x18] ss:$12 sps:$4 sm:$0xff]  }
 0x319   :  { %v886_v17 = vadd.f32 %v884_v11, %v4085_v43  ;;  %v3488_v63 = vpop.eup %3487  ;;  %v890_v3 = vsub.f32 1.0, %v3486_v58  ;;  %v899_v12 = vmul.f32 %v3486_v58, %v895_v34  ;;  %v4333_v11 = vld [vmem:[%s4817_s6] ss:$12 sps:$4 sm:$0xff]  }
 0x31a   :  { %v887_v29 = vadd.f32 %v885_v60, %v4087_v54  ;;  %v891_v7 = vsub.f32 1.0, %v3488_v63  ;;  %v900_v19 = vmul.f32 %v3488_v63, %v896_v5 }
 0x31b   :  { %3489 = vtanh.f32 %v886_v17 }
 0x31c   :  { %3491 = vtanh.f32 %v887_v29 }
 0x328   :  { %v3490_v4 = vpop.eup %3489 }
 0x329   :  { %v3492_v10 = vpop.eup %3491  ;;  %v892_v15 = vmul.f32 %v3490_v4, %v890_v3 }
 0x32a   :  { %v893_v20 = vmul.f32 %v3492_v10, %v891_v7 }
 0x32b   :  { %v901_v22 = vadd.f32 %v899_v12, %v892_v15 }
 0x32c   :  { %v902_v23 = vadd.f32 %v900_v19, %v893_v20 }
 0x32d   :  { %v913_v24 = vrot.slane %v901_v22, 2 }
 0x32e   :  { %v914_v25 = vrot.slane %v902_v23, 1 }
 0x330   :  { %v915_v30 = vsel %vm531_vm10, %v914_v25, %v913_v24 }
 0x331   :  { %v917_v13 = vmul.f32 %v915_v30, %v909_v27 }
 0x333   :  { %v4209_v35 = vadd.f32 %v924_v32, %v917_v13  ;;  %v933_v36 = vrot.slane %v917_v13, %v4094_v42 }
 0x335   :  { %v934_v37 = vcombine.high %v933_v36, %v933_v36  ;;  %2882 = vst.sshfl [vmem:[#allocation2 + $0x2] sm:$0x1 pattern:$0x73625140] %v933_v36  ;;  %v953_v0 = vpack.c.bf16 %v4209_v35, %v4209_v35 }
 0x337   :  { %2883 = vst.sshfl [vmem:[#allocation2 + $0xa] sm:$0x1 pattern:$0x73625140] %v934_v37  ;;  %987 = vmatmul.mubr.bf16.vlgmr.msra.gmra.mxu0 %v953_v0  ;;  %3199 = vmatmul.mubr.bf16.vlgmr.msra.gmra.mxu1 %v953_v0 }
 0x338   :  { %1149 = vmatpush1.bf16.msra.mxu0 %v4217_v38  ;;  %3203 = vmatpush3.bf16.msra.mxu1 %v4223_v55 }
 0x339   :  { %1150 = vmatprep.subr.bf16.mxu0 %v4229_v59  ;;  %3204 = vmatprep.subr.bf16.mxu1 %v3702_v18 }
 0x33a   :  { %1180 = vmatprep.mubr.bf16.mxu0 %v3701_v2  ;;  %3218 = vmatprep.mubr.msk.bf16.mxu1 %vm3703_vm1, %v3702_v18 }
 0x33c   :  { %1151 = vmatpush1.bf16.msra.mxu0 %v4239_v39  ;;  %3205 = vmatpush3.bf16.msra.mxu1 %v4245_v40 }
 0x33d   :  { %1152 = vmatprep.subr.bf16.mxu0 %v4251_v41  ;;  %3206 = vmatprep.subr.bf16.mxu1 %v3702_v18 }
 0x340   :  { %1153 = vmatpush1.bf16.msra.mxu0 %v4258_v48  ;;  %3207 = vmatpush3.bf16.msra.mxu1 %v4264_v53 }
 0x341   :  { %1154 = vmatprep.subr.bf16.mxu0 %v4270_v8  ;;  %3208 = vmatprep.subr.bf16.mxu1 %v3702_v18 }
 0x344   :  { %1155 = vmatpush1.bf16.msra.mxu0 %v4277_v57  ;;  %3209 = vmatpush3.bf16.msra.mxu1 %v3968_v44  ;;  %v4298_v44 = vld [vmem:[%s4817_s6 + $0x34] ss:$12 sps:$4 sm:$0xff]  }
 0x345   :  { %1156 = vmatprep.subr.bf16.mxu0 %v4284_v61  ;;  %3210 = vmatprep.subr.bf16.mxu1 %v3702_v18 }
 0x348   :  { %1157 = vmatpush1.bf16.msra.mxu0 %v4291_v9  ;;  %3211 = vmatpush3.bf16.msra.mxu1 %v3981_v49  ;;  %v4312_v49 = vld [vmem:[%s4817_s6 + $0x1c] ss:$12 sps:$4 sm:$0xff]  }
 0x349   :  { %1158 = vmatprep.subr.bf16.mxu0 %v4298_v44  ;;  %3212 = vmatprep.subr.bf16.mxu1 %v3702_v18 }
 0x34c   :  { %1159 = vmatpush1.bf16.msra.mxu0 %v4305_v6  ;;  %3213 = vmatpush3.bf16.msra.mxu1 %v3991_v50  ;;  %v4326_v50 = vld [vmem:[%s4817_s6 + $0x4] ss:$12 sps:$4 sm:$0xff]  }
 0x34d   :  { %1160 = vmatprep.subr.bf16.mxu0 %v4312_v49  ;;  %3214 = vmatprep.subr.bf16.mxu1 %v3702_v18 }
 0x350   :  { %1161 = vmatpush1.bf16.msra.mxu0 %v4319_v26  ;;  %3215 = vmatpush3.bf16.msra.mxu1 %v4000_v51 }
 0x351   :  { %1162 = vmatprep.subr.bf16.mxu0 %v4326_v50  ;;  %3216 = vmatprep.subr.bf16.mxu1 %v3702_v18 }
 0x354   :  { %1163 = vmatpush1.bf16.msra.mxu0 %v4333_v11  ;;  %3217 = vmatpush3.bf16.msra.mxu1 %v4009_v52 }
 0x355   :  { %1342 = vmatprep.subr.bf16.mxu0 %v4192_v1  ;;  %3222 = vmatprep.subr.bf16.mxu1 %v3702_v18 }
 0x3f7   :  { %v988_v51 = vpop.f32.mrf.mxu0  ;;  %v1029_v60 = vpop.f32.mrf.mxu1 }
 0x3f8   :  { %v989_v17 = vadd.f32 %v988_v51, %v4063_v14  ;;  %v1030_v0 = vadd.f32 %v1029_v60, %v4082_v31  ;;  %v1089_v60 = vrot.slane %v4209_v35, 5 }
 0x3f9   :  { %v990_v29 = vpop.f32.mrf.mxu0  ;;  %v3200_v58 = vpop.f32.mrf.mxu1 }
 0x3fa   :  { %v1036_v63 = vrot.slane %v989_v17, 5  ;;  %v1037_v34 = vrot.slane %v989_v17, 6  ;;  %v991_v3 = vadd.f32 %v990_v29, %v4065_v16  ;;  %v1074_v29 = vrot.slane %v1030_v0, 5 }
 0x3fb   :  { %v992_v4 = vpop.f32.mrf.mxu0  ;;  %v1032_v5 = vpop.f32.mrf.mxu1 }
 0x3fc   :  { %v1040_v7 = vadd.f32 %v1036_v63, %v4067_v21  ;;  %v1041_v52 = vadd.f32 %v1037_v34, %v4070_v33  ;;  %v1055_v20 = vrot.slane %v991_v3, 5  ;;  %v1056_v22 = vrot.slane %v991_v3, 6 }
 0x3fd   :  { %v993_v10 = vpop.f32.mrf.mxu0  ;;  %v3201_v12 = vpop.f32.mrf.mxu1  ;;  %v1075_v63 = vrot.slane %v1030_v0, 6 }
 0x3fe   :  { %v2884_v15 = vmul.f32 -1.442695, %v1040_v7  ;;  %v2885_v19 = vmul.f32 -1.442695, %v1041_v52  ;;  %v1059_v23 = vadd.f32 %v1055_v20, %v4075_v45  ;;  %v1060_v24 = vadd.f32 %v1056_v22, %v4077_v46 }
 0x400   :  { %3493 = vpow2.f32 %v2884_v15  ;;  %v2886_v25 = vmul.f32 -1.442695, %v1059_v23  ;;  %v2887_v27 = vmul.f32 -1.442695, %v1060_v24 }
 0x401   :  { %3495 = vpow2.f32 %v2885_v19  ;;  %v1090_v19 = vrot.slane %v4209_v35, 6 }
 0x402   :  { %3497 = vpow2.f32 %v2886_v25 }
 0x403   :  { %3499 = vpow2.f32 %v2887_v27 }
 0x40d   :  { %v3494_v28 = vpop.eup %3493 }
 0x40e   :  { %v3496_v30 = vpop.eup %3495  ;;  %v1048_v32 = vadd.f32 1.0, %v3494_v28 }
 0x40f   :  { %v1049_v13 = vadd.f32 1.0, %v3496_v30  ;;  %v3498_v36 = vpop.eup %3497 }
 0x410   :  { %3501 = vrcp.f32 %v1048_v32  ;;  %v3500_v37 = vpop.eup %3499  ;;  %v1067_v51 = vadd.f32 1.0, %v3498_v36  ;;  %v1103_v36 = vpop.permute.xlu0 %1102 }
 0x411   :  { %3503 = vrcp.f32 %v1049_v13  ;;  %v1068_v17 = vadd.f32 1.0, %v3500_v37  ;;  %v1116_v37 = vpop.permute.xlu1 %1115 }
 0x412   :  { %3505 = vrcp.f32 %v1067_v51 }
 0x413   :  { %3507 = vrcp.f32 %v1068_v17  ;;  %v1118_v17 = vmul.f32 %v1116_v37, %v4209_v35  ;;  %v4376_v35 = vld [vmem:[%s4817_s6 + $0x68] ss:$12 sps:$4 sm:$0xff]  }
 0x41d   :  { %v3502_v58 = vpop.eup %3501 }
 0x41e   :  { %v3504_v34 = vpop.eup %3503  ;;  %v1078_v3 = vmul.f32 %v3502_v58, %v1074_v29 }
 0x41f   :  { %v1079_v4 = vmul.f32 %v3504_v34, %v1075_v63  ;;  %v3506_v52 = vpop.eup %3505 }
 0x420   :  { %v1080_v5 = vadd.f32 %v1078_v3, %v4085_v43  ;;  %v3508_v10 = vpop.eup %3507  ;;  %v1084_v12 = vsub.f32 1.0, %v3506_v52  ;;  %v1093_v23 = vmul.f32 %v3506_v52, %v1089_v60  ;;  %v4385_v3 = vld [vmem:[%s4817_s6 + $0x50] ss:$12 sps:$4 sm:$0xff]  }
 0x421   :  { %v1081_v7 = vadd.f32 %v1079_v4, %v4087_v54  ;;  %v1085_v20 = vsub.f32 1.0, %v3508_v10  ;;  %v1094_v25 = vmul.f32 %v3508_v10, %v1090_v19  ;;  %v4394_v4 = vld [vmem:[%s4817_s6 + $0x38] ss:$12 sps:$4 sm:$0xff]  }
 0x422   :  { %3509 = vtanh.f32 %v1080_v5  ;;  %v4403_v5 = vld [vmem:[%s4817_s6 + $0x20] ss:$12 sps:$4 sm:$0xff]  }
 0x423   :  { %3511 = vtanh.f32 %v1081_v7  ;;  %v4412_v7 = vld [vmem:[%s4817_s6 + $0x8] ss:$12 sps:$4 sm:$0xff]  }
 0x42f   :  { %v3510_v15 = vpop.eup %3509 }
 0x430   :  { %v3512_v22 = vpop.eup %3511  ;;  %v1086_v24 = vmul.f32 %v3510_v15, %v1084_v12 }
 0x431   :  { %v1087_v27 = vmul.f32 %v3512_v22, %v1085_v20 }
 0x432   :  { %v1095_v28 = vadd.f32 %v1093_v23, %v1086_v24 }
 0x433   :  { %v1096_v30 = vadd.f32 %v1094_v25, %v1087_v27 }
 0x434   :  { %v1107_v32 = vrot.slane %v1095_v28, 3 }
 0x435   :  { %v1108_v13 = vrot.slane %v1096_v30, 2 }
 0x437   :  { %v1109_v0 = vsel %vm531_vm10, %v1108_v13, %v1107_v32 }
 0x438   :  { %v1111_v51 = vmul.f32 %v1109_v0, %v1103_v36 }
 0x43a   :  { %v4352_v29 = vadd.f32 %v1118_v17, %v1111_v51  ;;  %v1127_v58 = vrot.slane %v1111_v51, %v4094_v42 }
 0x43c   :  { %v1128_v63 = vcombine.high %v1127_v58, %v1127_v58  ;;  %2889 = vst.sshfl [vmem:[#allocation2 + $0x3] sm:$0x1 pattern:$0x73625140] %v1127_v58  ;;  %v1147_v34 = vpack.c.bf16 %v4352_v29, %v4352_v29 }
 0x43e   :  { %2890 = vst.sshfl [vmem:[#allocation2 + $0xb] sm:$0x1 pattern:$0x73625140] %v1128_v63  ;;  %1181 = vmatmul.mubr.bf16.vlgmr.msra.gmra.mxu0 %v1147_v34  ;;  %3219 = vmatmul.mubr.bf16.vlgmr.msra.gmra.mxu1 %v1147_v34 }
 0x43f   :  { %1343 = vmatpush1.bf16.msra.mxu0 %v4217_v38  ;;  %3223 = vmatpush3.bf16.msra.mxu1 %v4223_v55 }
 0x440   :  { %1344 = vmatprep.subr.bf16.mxu0 %v4229_v59  ;;  %3224 = vmatprep.subr.bf16.mxu1 %v3702_v18 }
 0x441   :  { %1374 = vmatprep.mubr.bf16.mxu0 %v3701_v2  ;;  %3238 = vmatprep.mubr.msk.bf16.mxu1 %vm3703_vm1, %v3702_v18 }
 0x443   :  { %1345 = vmatpush1.bf16.msra.mxu0 %v4239_v39  ;;  %3225 = vmatpush3.bf16.msra.mxu1 %v4245_v40 }
 0x444   :  { %1346 = vmatprep.subr.bf16.mxu0 %v4251_v41  ;;  %3226 = vmatprep.subr.bf16.mxu1 %v3702_v18 }
 0x447   :  { %1347 = vmatpush1.bf16.msra.mxu0 %v4258_v48  ;;  %3227 = vmatpush3.bf16.msra.mxu1 %v4264_v53 }
 0x448   :  { %1348 = vmatprep.subr.bf16.mxu0 %v4270_v8  ;;  %3228 = vmatprep.subr.bf16.mxu1 %v3702_v18 }
 0x44b   :  { %1349 = vmatpush1.bf16.msra.mxu0 %v4277_v57  ;;  %3229 = vmatpush3.bf16.msra.mxu1 %v4376_v35 }
 0x44c   :  { %1350 = vmatprep.subr.bf16.mxu0 %v4284_v61  ;;  %3230 = vmatprep.subr.bf16.mxu1 %v3702_v18 }
 0x44f   :  { %1351 = vmatpush1.bf16.msra.mxu0 %v4291_v9  ;;  %3231 = vmatpush3.bf16.msra.mxu1 %v4385_v3 }
 0x450   :  { %1352 = vmatprep.subr.bf16.mxu0 %v4298_v44  ;;  %3232 = vmatprep.subr.bf16.mxu1 %v3702_v18 }
 0x453   :  { %1353 = vmatpush1.bf16.msra.mxu0 %v4305_v6  ;;  %3233 = vmatpush3.bf16.msra.mxu1 %v4394_v4 }
 0x454   :  { %1354 = vmatprep.subr.bf16.mxu0 %v4312_v49  ;;  %3234 = vmatprep.subr.bf16.mxu1 %v3702_v18 }
 0x457   :  { %1355 = vmatpush1.bf16.msra.mxu0 %v4319_v26  ;;  %3235 = vmatpush3.bf16.msra.mxu1 %v4403_v5 }
 0x458   :  { %1356 = vmatprep.subr.bf16.mxu0 %v4326_v50  ;;  %3236 = vmatprep.subr.bf16.mxu1 %v3702_v18 }
 0x45b   :  { %1357 = vmatpush1.bf16.msra.mxu0 %v4333_v11  ;;  %3237 = vmatpush3.bf16.msra.mxu1 %v4412_v7 }
 0x45c   :  { %1536 = vmatprep.subr.bf16.mxu0 %v4192_v1  ;;  %3242 = vmatprep.subr.bf16.mxu1 %v3702_v18 }
 0x4fe   :  { %v1182_v52 = vpop.f32.mrf.mxu0  ;;  %v1223_v10 = vpop.f32.mrf.mxu1 }
 0x4ff   :  { %v1183_v60 = vadd.f32 %v1182_v52, %v4063_v14 }
 0x500   :  { %v1184_v12 = vpop.f32.mrf.mxu0  ;;  %v3220_v15 = vpop.f32.mrf.mxu1 }
 0x501   :  { %v1230_v19 = vrot.slane %v1183_v60, 4  ;;  %v1231_v20 = vrot.slane %v1183_v60, 5  ;;  %v1185_v22 = vadd.f32 %v1184_v12, %v4065_v16 }
 0x502   :  { %v1186_v23 = vpop.f32.mrf.mxu0  ;;  %v1226_v24 = vpop.f32.mrf.mxu1 }
 0x503   :  { %v1234_v25 = vadd.f32 %v1230_v19, %v4067_v21  ;;  %v1235_v27 = vadd.f32 %v1231_v20, %v4070_v33  ;;  %v1249_v36 = vrot.slane %v1185_v22, 4  ;;  %v1250_v37 = vrot.slane %v1185_v22, 5 }
 0x504   :  { %v1187_v28 = vpop.f32.mrf.mxu0  ;;  %v3221_v30 = vpop.f32.mrf.mxu1  ;;  %v1224_v19 = vadd.f32 %v1223_v10, %v4082_v31  ;;  %v1283_v10 = vrot.slane %v4352_v29, 4 }
 0x505   :  { %v2891_v32 = vmul.f32 -1.442695, %v1234_v25  ;;  %v2892_v13 = vmul.f32 -1.442695, %v1235_v27  ;;  %v1253_v0 = vadd.f32 %v1249_v36, %v4075_v45  ;;  %v1254_v51 = vadd.f32 %v1250_v37, %v4077_v46 }
 0x506   :  { %v1268_v23 = vrot.slane %v1224_v19, 4  ;;  %v1269_v25 = vrot.slane %v1224_v19, 5 }
 0x507   :  { %3513 = vpow2.f32 %v2891_v32  ;;  %v2893_v17 = vmul.f32 -1.442695, %v1253_v0  ;;  %v2894_v58 = vmul.f32 -1.442695, %v1254_v51 }
 0x508   :  { %3515 = vpow2.f32 %v2892_v13 }
 0x509   :  { %3517 = vpow2.f32 %v2893_v17  ;;  %v1284_v17 = vrot.slane %v4352_v29, 5 }
 0x50a   :  { %3519 = vpow2.f32 %v2894_v58 }
 0x514   :  { %v3514_v63 = vpop.eup %3513 }
 0x515   :  { %v3516_v34 = vpop.eup %3515  ;;  %v1242_v52 = vadd.f32 1.0, %v3514_v63 }
 0x516   :  { %v1243_v60 = vadd.f32 1.0, %v3516_v34  ;;  %v3518_v12 = vpop.eup %3517 }
 0x517   :  { %3521 = vrcp.f32 %v1242_v52  ;;  %v3520_v15 = vpop.eup %3519  ;;  %v1261_v20 = vadd.f32 1.0, %v3518_v12 }
 0x518   :  { %3523 = vrcp.f32 %v1243_v60  ;;  %v1262_v22 = vadd.f32 1.0, %v3520_v15 }
 0x519   :  { %3525 = vrcp.f32 %v1261_v20 }
 0x51a   :  { %3527 = vrcp.f32 %v1262_v22 }
 0x524   :  { %v3522_v24 = vpop.eup %3521 }
 0x525   :  { %v3524_v27 = vpop.eup %3523  ;;  %v1272_v28 = vmul.f32 %v3522_v24, %v1268_v23  ;;  %v1297_v23 = vpop.permute.xlu0 %1296 }
 0x526   :  { %v1273_v30 = vmul.f32 %v3524_v27, %v1269_v25  ;;  %v3526_v36 = vpop.eup %3525  ;;  %v1310_v24 = vpop.permute.xlu1 %1309 }
 0x527   :  { %v1274_v32 = vadd.f32 %v1272_v28, %v4085_v43  ;;  %v3528_v37 = vpop.eup %3527  ;;  %v1278_v0 = vsub.f32 1.0, %v3526_v36  ;;  %v1287_v34 = vmul.f32 %v3526_v36, %v1283_v10  ;;  %v1312_v28 = vmul.f32 %v1310_v24, %v4352_v29 }
 0x528   :  { %v1275_v13 = vadd.f32 %v1273_v30, %v4087_v54  ;;  %v1279_v58 = vsub.f32 1.0, %v3528_v37  ;;  %v1288_v60 = vmul.f32 %v3528_v37, %v1284_v17 }
 0x529   :  { %3529 = vtanh.f32 %v1274_v32 }
 0x52a   :  { %3531 = vtanh.f32 %v1275_v13 }
 0x536   :  { %v3530_v51 = vpop.eup %3529 }
 0x537   :  { %v3532_v63 = vpop.eup %3531  ;;  %v1280_v52 = vmul.f32 %v3530_v51, %v1278_v0 }
 0x538   :  { %v1281_v12 = vmul.f32 %v3532_v63, %v1279_v58 }
 0x539   :  { %v1289_v15 = vadd.f32 %v1287_v34, %v1280_v52 }
 0x53a   :  { %v1290_v19 = vadd.f32 %v1288_v60, %v1281_v12 }
 0x53b   :  { %v1301_v20 = vrot.slane %v1289_v15, 4 }
 0x53c   :  { %v1302_v22 = vrot.slane %v1290_v19, 3 }
 0x53e   :  { %v1303_v25 = vsel %vm531_vm10, %v1302_v22, %v1301_v20 }
 0x53f   :  { %v1305_v27 = vmul.f32 %v1303_v25, %v1297_v23 }
 0x541   :  { %v4430_v30 = vadd.f32 %v1312_v28, %v1305_v27  ;;  %v1321_v32 = vrot.slane %v1305_v27, %v4094_v42 }
 0x543   :  { %v1322_v13 = vcombine.high %v1321_v32, %v1321_v32  ;;  %2896 = vst.sshfl [vmem:[#allocation2 + $0x4] sm:$0x1 pattern:$0x73625140] %v1321_v32  ;;  %v1341_v36 = vpack.c.bf16 %v4430_v30, %v4430_v30 }
 0x545   :  { %2897 = vst.sshfl [vmem:[#allocation2 + $0xc] sm:$0x1 pattern:$0x73625140] %v1322_v13  ;;  %1375 = vmatmul.mubr.bf16.vlgmr.msra.gmra.mxu0 %v1341_v36  ;;  %3239 = vmatmul.mubr.bf16.vlgmr.msra.gmra.mxu1 %v1341_v36 }
 0x546   :  { %1537 = vmatpush1.bf16.msra.mxu0 %v4217_v38  ;;  %3243 = vmatpush3.bf16.msra.mxu1 %v4223_v55 }
 0x547   :  { %1538 = vmatprep.subr.bf16.mxu0 %v4229_v59  ;;  %3244 = vmatprep.subr.bf16.mxu1 %v3702_v18 }
 0x548   :  { %1568 = vmatprep.mubr.bf16.mxu0 %v3701_v2  ;;  %3258 = vmatprep.mubr.msk.bf16.mxu1 %vm3703_vm1, %v3702_v18 }
 0x54a   :  { %1539 = vmatpush1.bf16.msra.mxu0 %v4239_v39  ;;  %3245 = vmatpush3.bf16.msra.mxu1 %v4245_v40 }
 0x54b   :  { %1540 = vmatprep.subr.bf16.mxu0 %v4251_v41  ;;  %3246 = vmatprep.subr.bf16.mxu1 %v3702_v18 }
 0x54e   :  { %1541 = vmatpush1.bf16.msra.mxu0 %v4258_v48  ;;  %3247 = vmatpush3.bf16.msra.mxu1 %v4264_v53 }
 0x54f   :  { %1542 = vmatprep.subr.bf16.mxu0 %v4270_v8  ;;  %3248 = vmatprep.subr.bf16.mxu1 %v3702_v18 }
 0x552   :  { %1543 = vmatpush1.bf16.msra.mxu0 %v4277_v57  ;;  %3249 = vmatpush3.bf16.msra.mxu1 %v4376_v35 }
 0x553   :  { %1544 = vmatprep.subr.bf16.mxu0 %v4284_v61  ;;  %3250 = vmatprep.subr.bf16.mxu1 %v3702_v18 }
 0x556   :  { %1545 = vmatpush1.bf16.msra.mxu0 %v4291_v9  ;;  %3251 = vmatpush3.bf16.msra.mxu1 %v4385_v3 }
 0x557   :  { %1546 = vmatprep.subr.bf16.mxu0 %v4298_v44  ;;  %3252 = vmatprep.subr.bf16.mxu1 %v3702_v18 }
 0x55a   :  { %1547 = vmatpush1.bf16.msra.mxu0 %v4305_v6  ;;  %3253 = vmatpush3.bf16.msra.mxu1 %v4394_v4 }
 0x55b   :  { %1548 = vmatprep.subr.bf16.mxu0 %v4312_v49  ;;  %3254 = vmatprep.subr.bf16.mxu1 %v3702_v18 }
 0x55e   :  { %1549 = vmatpush1.bf16.msra.mxu0 %v4319_v26  ;;  %3255 = vmatpush3.bf16.msra.mxu1 %v4403_v5 }
 0x55f   :  { %1550 = vmatprep.subr.bf16.mxu0 %v4326_v50  ;;  %3256 = vmatprep.subr.bf16.mxu1 %v3702_v18 }
 0x562   :  { %1551 = vmatpush1.bf16.msra.mxu0 %v4333_v11  ;;  %3257 = vmatpush3.bf16.msra.mxu1 %v4412_v7 }
 0x563   :  { %1730 = vmatprep.subr.bf16.mxu0 %v4192_v1  ;;  %3262 = vmatprep.subr.bf16.mxu1 %v3702_v18 }
 0x605   :  { %v1376_v29 = vpop.f32.mrf.mxu0  ;;  %v1417_v37 = vpop.f32.mrf.mxu1 }
 0x606   :  { %v1377_v10 = vadd.f32 %v1376_v29, %v4063_v14 }
 0x607   :  { %v1378_v0 = vpop.f32.mrf.mxu0  ;;  %v3240_v51 = vpop.f32.mrf.mxu1 }
 0x608   :  { %v1424_v17 = vrot.slane %v1377_v10, 3  ;;  %v1425_v58 = vrot.slane %v1377_v10, 4  ;;  %v1379_v63 = vadd.f32 %v1378_v0, %v4065_v16  ;;  %v1418_v51 = vadd.f32 %v1417_v37, %v4082_v31 }
 0x609   :  { %v1380_v34 = vpop.f32.mrf.mxu0  ;;  %v1420_v52 = vpop.f32.mrf.mxu1  ;;  %v1477_v37 = vrot.slane %v4430_v30, 3 }
 0x60a   :  { %v1428_v60 = vadd.f32 %v1424_v17, %v4067_v21  ;;  %v1429_v12 = vadd.f32 %v1425_v58, %v4070_v33  ;;  %v1443_v22 = vrot.slane %v1379_v63, 3  ;;  %v1444_v23 = vrot.slane %v1379_v63, 4 }
 0x60b   :  { %v1381_v15 = vpop.f32.mrf.mxu0  ;;  %v3241_v1 = vpop.f32.mrf.mxu1  ;;  %v1462_v63 = vrot.slane %v1418_v51, 3  ;;  %v1463_v52 = vrot.slane %v1418_v51, 4 }
 0x60c   :  { %v2898_v19 = vmul.f32 -1.442695, %v1428_v60  ;;  %v2899_v20 = vmul.f32 -1.442695, %v1429_v12  ;;  %v1447_v24 = vadd.f32 %v1443_v22, %v4075_v45  ;;  %v1448_v25 = vadd.f32 %v1444_v23, %v4077_v46 }
 0x60e   :  { %3533 = vpow2.f32 %v2898_v19  ;;  %v2900_v27 = vmul.f32 -1.442695, %v1447_v24  ;;  %v2901_v28 = vmul.f32 -1.442695, %v1448_v25  ;;  %v1478_v25 = vrot.slane %v4430_v30, 4 }
 0x60f   :  { %3535 = vpow2.f32 %v2899_v20 }
 0x610   :  { %3537 = vpow2.f32 %v2900_v27 }
 0x611   :  { %3539 = vpow2.f32 %v2901_v28 }
 0x61b   :  { %v3534_v32 = vpop.eup %3533 }
 0x61c   :  { %v3536_v13 = vpop.eup %3535  ;;  %v1436_v36 = vadd.f32 1.0, %v3534_v32 }
 0x61d   :  { %v1437_v29 = vadd.f32 1.0, %v3536_v13  ;;  %v3538_v10 = vpop.eup %3537 }
 0x61e   :  { %3541 = vrcp.f32 %v1436_v36  ;;  %v3540_v0 = vpop.eup %3539  ;;  %v1455_v17 = vadd.f32 1.0, %v3538_v10 }
 0x61f   :  { %3543 = vrcp.f32 %v1437_v29  ;;  %v1456_v58 = vadd.f32 1.0, %v3540_v0 }
 0x620   :  { %3545 = vrcp.f32 %v1455_v17 }
 0x621   :  { %3547 = vrcp.f32 %v1456_v58  ;;  %v1491_v58 = vpop.permute.xlu0 %1490 }
 0x62b   :  { %v3542_v34 = vpop.eup %3541 }
 0x62c   :  { %v3544_v60 = vpop.eup %3543  ;;  %v1466_v12 = vmul.f32 %v3542_v34, %v1462_v63  ;;  %v1504_v63 = vpop.permute.xlu1 %1503 }
 0x62d   :  { %v1467_v15 = vmul.f32 %v3544_v60, %v1463_v52  ;;  %v3546_v20 = vpop.eup %3545  ;;  %v1506_v60 = vmul.f32 %v1504_v63, %v4430_v30 }
 0x62e   :  { %v1468_v1 = vadd.f32 %v1466_v12, %v4085_v43  ;;  %v3548_v22 = vpop.eup %3547  ;;  %v1472_v23 = vsub.f32 1.0, %v3546_v20  ;;  %v1481_v32 = vmul.f32 %v3546_v20, %v1477_v37 }
 0x62f   :  { %v1469_v19 = vadd.f32 %v1467_v15, %v4087_v54  ;;  %v1473_v27 = vsub.f32 1.0, %v3548_v22  ;;  %v1482_v36 = vmul.f32 %v3548_v22, %v1478_v25 }
 0x630   :  { %3549 = vtanh.f32 %v1468_v1 }
 0x631   :  { %3551 = vtanh.f32 %v1469_v19 }
 0x63d   :  { %v3550_v24 = vpop.eup %3549 }
 0x63e   :  { %v3552_v28 = vpop.eup %3551  ;;  %v1474_v13 = vmul.f32 %v3550_v24, %v1472_v23 }
 0x63f   :  { %v1475_v29 = vmul.f32 %v3552_v28, %v1473_v27 }
 0x640   :  { %v1483_v10 = vadd.f32 %v1481_v32, %v1474_v13 }
 0x641   :  { %v1484_v0 = vadd.f32 %v1482_v36, %v1475_v29 }
 0x642   :  { %v1495_v51 = vrot.slane %v1483_v10, 5 }
 0x643   :  { %v1496_v17 = vrot.slane %v1484_v0, 4 }
 0x645   :  { %v1497_v34 = vsel %vm531_vm10, %v1496_v17, %v1495_v51 }
 0x646   :  { %v1499_v52 = vmul.f32 %v1497_v34, %v1491_v58 }
 0x648   :  { %v4483_v12 = vadd.f32 %v1506_v60, %v1499_v52  ;;  %v1515_v15 = vrot.slane %v1499_v52, %v4094_v42 }
 0x64a   :  { %v1516_v1 = vcombine.high %v1515_v15, %v1515_v15  ;;  %2903 = vst.sshfl [vmem:[#allocation2 + $0x5] sm:$0x1 pattern:$0x73625140] %v1515_v15  ;;  %v1535_v19 = vpack.c.bf16 %v4483_v12, %v4483_v12  ;;  %v1671_v34 = vrot.slane %v4483_v12, 2  ;;  %v1672_v15 = vrot.slane %v4483_v12, 3 }
 0x64c   :  { %2904 = vst.sshfl [vmem:[#allocation2 + $0xd] sm:$0x1 pattern:$0x73625140] %v1516_v1  ;;  %1569 = vmatmul.mubr.bf16.vlgmr.msra.gmra.mxu0 %v1535_v19  ;;  %3259 = vmatmul.mubr.bf16.vlgmr.msra.gmra.mxu1 %v1535_v19 }
 0x64d   :  { %1731 = vmatpush1.bf16.msra.mxu0 %v4217_v38  ;;  %3263 = vmatpush3.bf16.msra.mxu1 %v4223_v55  ;;  %v3385_v38 = vld [vmem:[%s4820_s9 + $0x78] sm:$0xff]  }
 0x64e   :  { %1732 = vmatprep.subr.bf16.mxu0 %v4229_v59  ;;  %3264 = vmatprep.subr.bf16.mxu1 %v3702_v18 }
 0x64f   :  { %1762 = vmatprep.mubr.bf16.mxu0 %v3701_v2  ;;  %3278 = vmatprep.mubr.msk.bf16.mxu1 %vm3703_vm1, %v3702_v18 }
 0x651   :  { %1733 = vmatpush1.bf16.msra.mxu0 %v4239_v39  ;;  %3265 = vmatpush3.bf16.msra.mxu1 %v4245_v40 }
 0x652   :  { %1734 = vmatprep.subr.bf16.mxu0 %v4251_v41  ;;  %3266 = vmatprep.subr.bf16.mxu1 %v3702_v18 }
 0x655   :  { %1735 = vmatpush1.bf16.msra.mxu0 %v4258_v48  ;;  %3267 = vmatpush3.bf16.msra.mxu1 %v4264_v53 }
 0x656   :  { %1736 = vmatprep.subr.bf16.mxu0 %v4270_v8  ;;  %3268 = vmatprep.subr.bf16.mxu1 %v3702_v18 }
 0x659   :  { %1737 = vmatpush1.bf16.msra.mxu0 %v4277_v57  ;;  %3269 = vmatpush3.bf16.msra.mxu1 %v4376_v35 }
 0x65a   :  { %1738 = vmatprep.subr.bf16.mxu0 %v4284_v61  ;;  %3270 = vmatprep.subr.bf16.mxu1 %v3702_v18 }
 0x65d   :  { %1739 = vmatpush1.bf16.msra.mxu0 %v4291_v9  ;;  %3271 = vmatpush3.bf16.msra.mxu1 %v4385_v3 }
 0x65e   :  { %1740 = vmatprep.subr.bf16.mxu0 %v4298_v44  ;;  %3272 = vmatprep.subr.bf16.mxu1 %v3702_v18 }
 0x661   :  { %1741 = vmatpush1.bf16.msra.mxu0 %v4305_v6  ;;  %3273 = vmatpush3.bf16.msra.mxu1 %v4394_v4 }
 0x662   :  { %1742 = vmatprep.subr.bf16.mxu0 %v4312_v49  ;;  %3274 = vmatprep.subr.bf16.mxu1 %v3702_v18 }
 0x665   :  { %1743 = vmatpush1.bf16.msra.mxu0 %v4319_v26  ;;  %3275 = vmatpush3.bf16.msra.mxu1 %v4403_v5 }
 0x666   :  { %1744 = vmatprep.subr.bf16.mxu0 %v4326_v50  ;;  %3276 = vmatprep.subr.bf16.mxu1 %v3702_v18 }
 0x669   :  { %1745 = vmatpush1.bf16.msra.mxu0 %v4333_v11  ;;  %3277 = vmatpush3.bf16.msra.mxu1 %v4412_v7 }
 0x66a   :  { %3282 = vmatprep.subr.bf16.mxu1 %v3702_v18  ;;  %3048 = vmatprep.subr.bf16.mxu0 %v3385_v38 }
 0x70c   :  { %v1570_v55 = vpop.f32.mrf.mxu0  ;;  %v1611_v59 = vpop.f32.mrf.mxu1 }
 0x70d   :  { %v1571_v39 = vadd.f32 %v1570_v55, %v4063_v14  ;;  %v1612_v25 = vadd.f32 %v1611_v59, %v4082_v31 }
 0x70e   :  { %v1572_v40 = vpop.f32.mrf.mxu0  ;;  %v3260_v41 = vpop.f32.mrf.mxu1 }
 0x70f   :  { %v1618_v48 = vrot.slane %v1571_v39, 2  ;;  %v1619_v53 = vrot.slane %v1571_v39, 3  ;;  %v1573_v8 = vadd.f32 %v1572_v40, %v4065_v16  ;;  %v1656_v32 = vrot.slane %v1612_v25, 2 }
 0x710   :  { %v1574_v57 = vpop.f32.mrf.mxu0  ;;  %v1614_v61 = vpop.f32.mrf.mxu1  ;;  %v1657_v36 = vrot.slane %v1612_v25, 3  ;;  %v3396_v25 = vld [vmem:[%s4820_s9 + $0x10] sm:$0xff]  }
 0x711   :  { %v1622_v9 = vadd.f32 %v1618_v48, %v4067_v21  ;;  %v1623_v44 = vadd.f32 %v1619_v53, %v4070_v33  ;;  %v1637_v11 = vrot.slane %v1573_v8, 2  ;;  %v1638_v35 = vrot.slane %v1573_v8, 3  ;;  %v1685_v8 = vpop.permute.xlu0 %1684  ;;  %v1698_v57 = vpop.permute.xlu1 %1697 }
 0x712   :  { %v1575_v6 = vpop.f32.mrf.mxu0  ;;  %v3261_v49 = vpop.f32.mrf.mxu1 }
 0x713   :  { %v2905_v26 = vmul.f32 -1.442695, %v1622_v9  ;;  %v2906_v50 = vmul.f32 -1.442695, %v1623_v44  ;;  %v1641_v3 = vadd.f32 %v1637_v11, %v4075_v45  ;;  %v1642_v4 = vadd.f32 %v1638_v35, %v4077_v46  ;;  %v4541_v6 = vld [vmem:[%s4812_s1 + $0x8] sm:$0xff]  ;;  %v4546_v49 = vld [vmem:[%s4812_s1 + $0x18] sm:$0xff] }
 0x714   :  { %v1700_v44 = vmul.f32 %v1698_v57, %v4483_v12  ;;  %v3386_v11 = vld [vmem:[%s4820_s9 + $0x38] sm:$0xff]   ;;  %v1938_v12 = vpack.c.bf16 %v4546_v49, %v4541_v6 }
 0x715   :  { %3553 = vpow2.f32 %v2905_v26  ;;  %v2907_v5 = vmul.f32 -1.442695, %v1641_v3  ;;  %v2908_v7 = vmul.f32 -1.442695, %v1642_v4  ;;  %v3387_v4 = vld [vmem:[%s4820_s9 + $0x70] sm:$0xff]  }
 0x716   :  { %3555 = vpow2.f32 %v2906_v50 }
 0x717   :  { %3557 = vpow2.f32 %v2907_v5  ;;  %v3388_v5 = vld [vmem:[%s4820_s9 + $0x30] sm:$0xff]  }
 0x718   :  { %3559 = vpow2.f32 %v2908_v7  ;;  %v3389_v7 = vld [vmem:[%s4820_s9 + $0x68] sm:$0xff]  }
 0x722   :  { %v3554_v30 = vpop.eup %3553 }
 0x723   :  { %v3556_v20 = vpop.eup %3555  ;;  %v1630_v22 = vadd.f32 1.0, %v3554_v30  ;;  %v3390_v30 = vld [vmem:[%s4820_s9 + $0x28] sm:$0xff]  }
 0x724   :  { %v1631_v37 = vadd.f32 1.0, %v3556_v20  ;;  %v3558_v23 = vpop.eup %3557  ;;  %v3391_v20 = vld [vmem:[%s4820_s9 + $0x60] sm:$0xff]  }
 0x725   :  { %3561 = vrcp.f32 %v1630_v22  ;;  %v3560_v24 = vpop.eup %3559  ;;  %v1649_v27 = vadd.f32 1.0, %v3558_v23  ;;  %v3392_v22 = vld [vmem:[%s4820_s9 + $0x20] sm:$0xff]   ;;  %v3394_v23 = vld [vmem:[%s4820_s9 + $0x18] sm:$0xff]  }
 0x726   :  { %3563 = vrcp.f32 %v1631_v37  ;;  %v1650_v28 = vadd.f32 1.0, %v3560_v24  ;;  %v3393_v37 = vld [vmem:[%s4820_s9 + $0x58] sm:$0xff]   ;;  %v3395_v24 = vld [vmem:[%s4820_s9 + $0x50] sm:$0xff]  }
 0x727   :  { %3565 = vrcp.f32 %v1649_v27  ;;  %v3397_v27 = vld [vmem:[%s4820_s9 + $0x48] sm:$0xff]  }
 0x728   :  { %3567 = vrcp.f32 %v1650_v28  ;;  %v3398_v28 = vld [vmem:[%s4820_s9 + $0x8] sm:$0xff]  }
 0x732   :  { %v3562_v13 = vpop.eup %3561 }
 0x733   :  { %v3564_v29 = vpop.eup %3563  ;;  %v1660_v10 = vmul.f32 %v3562_v13, %v1656_v32  ;;  %v3399_v32 = vld [vmem:[%s4820_s9 + $0x40] sm:$0xff]  }
 0x734   :  { %v1661_v0 = vmul.f32 %v3564_v29, %v1657_v36  ;;  %v3566_v58 = vpop.eup %3565  ;;  %v3400_v13 = vld [vmem:[%s4820_s9] sm:$0xff]   ;;  %v4610_v29 = vld [vmem:[%s4812_s1 + $0x10] sm:$0xff] }
 0x735   :  { %v1662_v51 = vadd.f32 %v1660_v10, %v4085_v43  ;;  %v3568_v63 = vpop.eup %3567  ;;  %v1666_v52 = vsub.f32 1.0, %v3566_v58  ;;  %v1675_v38 = vmul.f32 %v3566_v58, %v1671_v34  ;;  %v4605_v36 = vld [vmem:[%s4812_s1] sm:$0xff] }
 0x736   :  { %v1663_v17 = vadd.f32 %v1661_v0, %v4087_v54  ;;  %v1667_v1 = vsub.f32 1.0, %v3568_v63  ;;  %v1676_v59 = vmul.f32 %v3568_v63, %v1672_v15  ;;  %v1937_v10 = vpack.c.bf16 %v4610_v29, %v4605_v36 }
 0x737   :  { %3569 = vtanh.f32 %v1662_v51 }
 0x738   :  { %3571 = vtanh.f32 %v1663_v17 }
 0x744   :  { %v3570_v60 = vpop.eup %3569 }
 0x745   :  { %v3572_v19 = vpop.eup %3571  ;;  %v1668_v55 = vmul.f32 %v3570_v60, %v1666_v52 }
 0x746   :  { %v1669_v39 = vmul.f32 %v3572_v19, %v1667_v1 }
 0x747   :  { %v1677_v40 = vadd.f32 %v1675_v38, %v1668_v55 }
 0x748   :  { %v1678_v41 = vadd.f32 %v1676_v59, %v1669_v39 }
 0x749   :  { %v1689_v48 = vrot.slane %v1677_v40, 6 }
 0x74a   :  { %v1690_v53 = vrot.slane %v1678_v41, 5 }
 0x74c   :  { %v1691_v61 = vsel %vm531_vm10, %v1690_v53, %v1689_v48 }
 0x74d   :  { %v1693_v9 = vmul.f32 %v1691_v61, %v1685_v8 }
 0x74f   :  { %v4548_v26 = vadd.f32 %v1700_v44, %v1693_v9  ;;  %v1709_v50 = vrot.slane %v1693_v9, %v4094_v42 }
 0x751   :  { %v1710_v35 = vcombine.high %v1709_v50, %v1709_v50  ;;  %2910 = vst.sshfl [vmem:[#allocation2 + $0x6] sm:$0x1 pattern:$0x73625140] %v1709_v50  ;;  %v1729_v3 = vpack.c.bf16 %v4548_v26, %v4548_v26 }
 0x753   :  { %2911 = vst.sshfl [vmem:[#allocation2 + $0xe] sm:$0x1 pattern:$0x73625140] %v1710_v35  ;;  %1763 = vmatmul.mubr.bf16.vlgmr.msra.gmra.mxu0 %v1729_v3  ;;  %3279 = vmatmul.mubr.bf16.vlgmr.msra.gmra.mxu1 %v1729_v3 }
 0x754   :  { %3049 = vmatpush3.bf16.msra.mxu0 %v3386_v11  ;;  %2099 = vmatprep.mubr.bf16.mxu0 %v1938_v12 }
 0x755   :  { %3050 = vmatprep.subr.bf16.mxu0 %v3387_v4  ;;  %3284 = vmatprep.mubr.msk.bf16.mxu1 %vm3703_vm1, %v3702_v18 }
 0x758   :  { %3051 = vmatpush3.bf16.msra.mxu0 %v3388_v5 }
 0x759   :  { %3052 = vmatprep.subr.bf16.mxu0 %v3389_v7 }
 0x75c   :  { %3053 = vmatpush3.bf16.msra.mxu0 %v3390_v30 }
 0x75d   :  { %3054 = vmatprep.subr.bf16.mxu0 %v3391_v20 }
 0x760   :  { %3055 = vmatpush3.bf16.msra.mxu0 %v3392_v22 }
 0x761   :  { %3056 = vmatprep.subr.bf16.mxu0 %v3393_v37 }
 0x764   :  { %3057 = vmatpush3.bf16.msra.mxu0 %v3394_v23 }
 0x765   :  { %3058 = vmatprep.subr.bf16.mxu0 %v3395_v24 }
 0x768   :  { %3059 = vmatpush3.bf16.msra.mxu0 %v3396_v25  ;;  %v1865_v25 = vrot.slane %v4548_v26, 1 }
 0x769   :  { %3060 = vmatprep.subr.bf16.mxu0 %v3397_v27 }
 0x76c   :  { %3061 = vmatpush3.bf16.msra.mxu0 %v3398_v28 }
 0x76d   :  { %3062 = vmatprep.subr.bf16.mxu0 %v3399_v32  ;;  %v1866_v32 = vrot.slane %v4548_v26, 2 }
 0x770   :  { %3063 = vmatpush3.bf16.msra.mxu0 %v3400_v13 }
 0x773   :  { %2100 = vmatmul.mubr.bf16.vlgmr.msra.gmra.mxu0 %v1937_v10 }
 0x813   :  { %v1764_v0 = vpop.f32.mrf.mxu0  ;;  %v1805_v51 = vpop.f32.mrf.mxu1 }
 0x814   :  { %v1765_v17 = vadd.f32 %v1764_v0, %v4063_v14  ;;  %v1806_v11 = vadd.f32 %v1805_v51, %v4082_v31 }
 0x815   :  { %v1766_v58 = vpop.f32.mrf.mxu0  ;;  %v3280_v63 = vpop.f32.mrf.mxu1 }
 0x816   :  { %v1812_v34 = vrot.slane %v1765_v17, 1  ;;  %v1813_v52 = vrot.slane %v1765_v17, 2  ;;  %v1767_v60 = vadd.f32 %v1766_v58, %v4065_v16  ;;  %v1851_v7 = vrot.slane %v1806_v11, 2 }
 0x817   :  { %v1768_v15 = vpop.f32.mrf.mxu0  ;;  %v1808_v1 = vpop.f32.mrf.mxu1 }
 0x818   :  { %v1816_v19 = vadd.f32 %v1812_v34, %v4067_v21  ;;  %v1817_v38 = vadd.f32 %v1813_v52, %v4070_v33  ;;  %v1831_v41 = vrot.slane %v1767_v60, 1  ;;  %v1832_v48 = vrot.slane %v1767_v60, 2  ;;  %v1879_v52 = vpop.permute.xlu0 %1878 }
 0x819   :  { %v1769_v55 = vpop.f32.mrf.mxu0  ;;  %v3281_v59 = vpop.f32.mrf.mxu1 }
 0x81a   :  { %v2912_v39 = vmul.f32 -1.442695, %v1816_v19  ;;  %v2913_v40 = vmul.f32 -1.442695, %v1817_v38  ;;  %v1835_v14 = vadd.f32 %v1831_v41, %v4075_v45  ;;  %v1836_v53 = vadd.f32 %v1832_v48, %v4077_v46 }
 0x81b   :  { %v1850_v46 = vrot.slane %v1806_v11, 1 }
 0x81c   :  { %3573 = vpow2.f32 %v2912_v39  ;;  %v2914_v8 = vmul.f32 -1.442695, %v1835_v14  ;;  %v2915_v16 = vmul.f32 -1.442695, %v1836_v53 }
 0x81d   :  { %3575 = vpow2.f32 %v2913_v40 }
 0x81e   :  { %3577 = vpow2.f32 %v2914_v8  ;;  %v1927_v8 = vand.u32 127, %v66_v56 }
 0x81f   :  { %3579 = vpow2.f32 %v2915_v16  ;;  %v1931_v16 = vpop.permute.xlu1 %1930 }
 0x820   :  { %vm1932_vm11 = vcmp.lt.s32.totalorder %v1927_v8, %v1931_v16 }
 0x829   :  { %v3574_v57 = vpop.eup %3573 }
 0x82a   :  { %v3576_v21 = vpop.eup %3575  ;;  %v1824_v61 = vadd.f32 1.0, %v3574_v57  ;;  %v2192_v57 = vsel %vm1932_vm11, 1, %v3701_v2 }
 0x82b   :  { %v1825_v33 = vadd.f32 1.0, %v3576_v21  ;;  %v3578_v9 = vpop.eup %3577  ;;  %v2199_v21 = vrot.slane %v2192_v57, %v4094_v42 }
 0x82c   :  { %3581 = vrcp.f32 %v1824_v61  ;;  %v3580_v50 = vpop.eup %3579  ;;  %v1843_v35 = vadd.f32 1.0, %v3578_v9 }
 0x82d   :  { %3583 = vrcp.f32 %v1825_v33  ;;  %v1844_v3 = vadd.f32 1.0, %v3580_v50  ;;  %v2207_v61 = vrot.slane %v2199_v21, %v4094_v42  ;;  %v2200_v33 = vcombine.high %v2199_v21, %v2199_v21 }
 0x82e   :  { %3585 = vrcp.f32 %v1843_v35 }
 0x82f   :  { %3587 = vrcp.f32 %v1844_v3  ;;  %vm2215_vm12 = vcmp.ne.s32.totalorder %v2207_v61, 0  ;;  %v3402_v61 = vld [vmem:[%s4821_s10 + $0xb0] sm:$0xff]  }
 0x830   :  { %v2217_v9 = vsel %vm2215_vm12, 1, %v3701_v2 }
 0x831   :  { %v2222_v50 = vrot.slane %v2217_v9, %v4052_v62  ;;  %v3405_v9 = vld [vmem:[%s4821_s10 + $0x98] sm:$0xff]  }
 0x833   :  { %v3064_v44 = vpop.f32.mrf.mxu0  ;;  %vm2227_vm15 = vcmp.eq.s32.totalorder %v2222_v50, 1  ;;  %v3407_v50 = vld [vmem:[%s4821_s10 + $0x88] sm:$0xff]  }
 0x835   :  { %v3065_v12 = vpop.f32.mrf.mxu0 }
 0x836   :  { %v3066_v45 = vadd.f32 %v3065_v12, %v3064_v44  ;;  %v2214_v44 = vrot.slane %v2200_v33, %v4094_v42  ;;  %v3404_v33 = vld [vmem:[%s4821_s10 + $0xa0] sm:$0xff]  }
 0x837   :  { %v3067_v19 = vpop.f32.mrf.mxu0 }
 0x838   :  { %v2110_v4 = vpack.c.bf16 %v3066_v45, %v3066_v45  ;;  %vm2216_vm13 = vcmp.ne.s32.totalorder %v2214_v44, 0  ;;  %v3406_v44 = vld [vmem:[%s4821_s10 + $0x90] sm:$0xff]  }
 0x839   :  { %v3582_v5 = vpop.eup %3581  ;;  %v3068_v55 = vpop.f32.mrf.mxu0  ;;  %v2218_v12 = vsel %vm2216_vm13, 1, %v3701_v2 }
 0x83a   :  { %v3584_v30 = vpop.eup %3583  ;;  %v1854_v20 = vmul.f32 %v3582_v5, %v1850_v46  ;;  %3283 = vmatpush3.bf16.xpose.msra.mxu1 %v2110_v4  ;;  %v3069_v59 = vadd.f32 %v3068_v55, %v3067_v19  ;;  %v2226_v46 = vrot.slane %v2218_v12, %v4052_v62  ;;  %v3420_v12 = vld [vmem:[%s4821_s10 + $0x10] sm:$0xff]  }
 0x83b   :  { %v1855_v22 = vmul.f32 %v3584_v30, %v1851_v7  ;;  %3288 = vmatprep.subr.bf16.mxu1 %v3702_v18  ;;  %v3586_v23 = vpop.eup %3585 }
 0x83c   :  { %v1856_v37 = vadd.f32 %v1854_v20, %v4085_v43  ;;  %v3588_v24 = vpop.eup %3587  ;;  %v1860_v27 = vsub.f32 1.0, %v3586_v23  ;;  %v1869_v51 = vmul.f32 %v3586_v23, %v1865_v25  ;;  %v2111_v41 = vpack.c.bf16 %v3069_v59, %v3069_v59 }
 0x83d   :  { %v1857_v31 = vadd.f32 %v1855_v22, %v4087_v54  ;;  %v1861_v13 = vsub.f32 1.0, %v3588_v24  ;;  %v1870_v58 = vmul.f32 %v3588_v24, %v1866_v32  ;;  %vm2228_vm0 = vcmp.eq.s32.totalorder %v2226_v46, 1 }
 0x83e   :  { %3589 = vtanh.f32 %v1856_v37 }
 0x83f   :  { %3591 = vtanh.f32 %v1857_v31 }
 0x84b   :  { %v3590_v28 = vpop.eup %3589 }
 0x84c   :  { %v3592_v10 = vpop.eup %3591  ;;  %v1862_v0 = vmul.f32 %v3590_v28, %v1860_v27 }
 0x84d   :  { %v1863_v17 = vmul.f32 %v3592_v10, %v1861_v13  ;;  %v2261_v10 = vpack.c.bf16 %v4541_v6, %v4541_v6  ;;  %v3410_v6 = vld [vmem:[%s4821_s10 + $0x38] sm:$0xff]  }
 0x84e   :  { %v1871_v63 = vadd.f32 %v1869_v51, %v1862_v0  ;;  %v2263_v0 = vpack.c.bf16 %v4546_v49, %v4546_v49  ;;  %v2260_v51 = vpack.c.bf16 %v4605_v36, %v4605_v36  ;;  %v3411_v49 = vld [vmem:[%s4821_s10 + $0x70] sm:$0xff]  }
 0x84f   :  { %v1872_v43 = vadd.f32 %v1870_v58, %v1863_v17  ;;  %v3409_v58 = vld [vmem:[%s4821_s10 + $0x78] sm:$0xff]   ;;  %v3412_v36 = vld [vmem:[%s4821_s10 + $0x30] sm:$0xff]  }
 0x850   :  { %v1883_v34 = vrot.slane %v1871_v63, 7  ;;  %v2269_v17 = vsel %vm2267_vm2, %v2260_v51, 0  ;;  %3074 = vmatprep.subr.bf16.mxu0 %v3409_v58  ;;  %v3413_v63 = vld [vmem:[%s4821_s10 + $0x68] sm:$0xff]  }
 0x851   :  { %v1884_v54 = vrot.slane %v1872_v43, 6  ;;  %3075 = vmatpush3.bf16.msra.mxu0 %v3410_v6  ;;  %v3414_v43 = vld [vmem:[%s4821_s10 + $0x28] sm:$0xff]  }
 0x852   :  { %3076 = vmatprep.subr.bf16.mxu0 %v3411_v49 }
 0x853   :  { %v1885_v60 = vsel %vm531_vm10, %v1884_v54, %v1883_v34  ;;  %v3415_v34 = vld [vmem:[%s4821_s10 + $0x60] sm:$0xff]  }
 0x854   :  { %v4627_v15 = vmul.f32 %v1885_v60, %v1879_v52  ;;  %v3416_v54 = vld [vmem:[%s4821_s10 + $0x20] sm:$0xff]   ;;  %v3417_v52 = vld [vmem:[%s4821_s10 + $0x58] sm:$0xff]  }
 0x855   :  { %3077 = vmatpush3.bf16.msra.mxu0 %v3412_v36  ;;  %v3418_v60 = vld [vmem:[%s4821_s10 + $0x18] sm:$0xff]  }
 0x856   :  { %v1903_v1 = vrot.slane %v4627_v15, %v4094_v42  ;;  %3078 = vmatprep.subr.bf16.mxu0 %v3413_v63 }
 0x858   :  { %v1904_v38 = vcombine.high %v1903_v1, %v1903_v1  ;;  %2917 = vst.sshfl [vmem:[#allocation2 + $0x7] sm:$0x1 pattern:$0x73625140] %v1903_v1 }
 0x859   :  { %3079 = vmatpush3.bf16.msra.mxu0 %v3414_v43 }
 0x85a   :  { %2918 = vst.sshfl [vmem:[#allocation2 + $0xf] sm:$0x1 pattern:$0x73625140] %v1904_v38  ;;  %3080 = vmatprep.subr.bf16.mxu0 %v3415_v34  ;;  %v2262_v38 = vpack.c.bf16 %v4610_v29, %v4610_v29  ;;  %v3401_v29 = vld [vmem:[%s4821_s10 + $0xb8] sm:$0xff]  }
 0x85d   :  { %3081 = vmatpush3.bf16.msra.mxu0 %v3416_v54 }
 0x85e   :  { %3082 = vmatprep.subr.bf16.mxu0 %v3417_v52 }
 0x85f   :  { %v4631_v39 = vld [vmem:[#allocation2] sm:$0xff] }
 0x860   :  { %v2108_v40 = vpack.c.bf16 %v4631_v39, %v4631_v39 }
 0x861   :  { %v4635_v48 = vld [vmem:[#allocation2 + $0x8] sm:$0xff]  ;;  %3083 = vmatpush3.bf16.msra.mxu0 %v3418_v60 }
 0x862   :  { %3285 = vmatmul.mubr.bf16.vlgmr.msra.gmra.mxu1 %v2108_v40  ;;  %v2367_v14 = vpack.c.bf16 %v4635_v48, %v4631_v39  ;;  %v2109_v53 = vpack.c.bf16 %v4635_v48, %v4635_v48  ;;  %v3423_v39 = vld [vmem:[%s4821_s10 + $0x40] sm:$0xff]  }
 0x863   :  { %3289 = vmatpush3.bf16.xpose.msra.mxu1 %v2111_v41  ;;  %3290 = vmatprep.mubr.msk.bf16.mxu1 %vm3703_vm1, %v3702_v18  ;;  %v2319_v41 = vsel %vm2267_vm2, %v2262_v38, 0  ;;  %v3424_v48 = vld [vmem:[%s4821_s10] sm:$0xff]  }
 0x864   :  { %2935 = vmatprep.subr.msk.bf16.mxu1 %vm2267_vm2, %v2261_v10  ;;  %v3431_v10 = vld [vmem:[%s4823_s12 + $0x8] sm:$0xff]  }
 0x86a   :  { %3291 = vmatmul.mubr.bf16.vlgmr.msra.gmra.mxu1 %v2109_v53 }
 0x86b   :  { %2306 = vmatprep.mubr.bf16.mxu1 %v3701_v2  ;;  %2289 = vmatpush1.bf16.msra.mxu1 %v2269_v17  ;;  %v2939_v17 = vld [vmem:[%s4822_s11] ss:$0 sm:$0xff]  ;;  %s3705_s11 = smov [#allocation5]  }
 0x86c   :  { %2937 = vmatprep.subr.msk.bf16.mxu1 %vm2267_vm2, %v2263_v0  ;;  %v3432_v0 = vld [vmem:[%s4823_s12] sm:$0xff]  }
 0x922   :  { %v2146_v11 = vpop.f32.mrf.mxu1 }
 0x923   :  { %v2229_v56 = vsel %vm2227_vm15, %v2146_v11, -1000000.0  ;;  %v3408_v11 = vld [vmem:[%s4821_s10 + $0x80] sm:$0xff]  }
 0x924   :  { %v3286_v35 = vpop.f32.mrf.mxu1  ;;  %v2232_v45 = vsel %vm2231_vm14, %v2229_v56, -inf }
 0x925   :  { %2233 = vmax.xlane.f32.xlu0 %v2232_v45  ;;  %v3421_v35 = vld [vmem:[%s4821_s10 + $0x48] sm:$0xff]  }
 0x926   :  { %v2149_v3 = vpop.f32.mrf.mxu1  ;;  %v3422_v45 = vld [vmem:[%s4821_s10 + $0x8] sm:$0xff]  }
 0x928   :  { %v3287_v4 = vpop.f32.mrf.mxu1 }
 0x92a   :  { %v2186_v5 = vpop.f32.mrf.mxu1 }
 0x92b   :  { %v2230_v42 = vsel %vm2228_vm0, %v2186_v5, -1000000.0 }
 0x92c   :  { %v3292_v7 = vpop.f32.mrf.mxu1  ;;  %v2235_v30 = vsel %vm2231_vm14, %v2230_v42, -inf }
 0x92d   :  { %2236 = vmax.xlane.f32.xlu1 %v2235_v30  ;;  %v3425_v30 = vld [vmem:[%s4823_s12 + $0x38] sm:$0xff]  }
 0x92e   :  { %v2189_v20 = vpop.f32.mrf.mxu1 }
 0x930   :  { %v3293_v22 = vpop.f32.mrf.mxu1 }
 0x9ae   :  { %v2234_v37 = vpop.xlane.xlu0 %2233 }
 0x9af   :  { %v2238_v31 = vsub.f32 %v2229_v56, %v2234_v37  ;;  %v3419_v56 = vld [vmem:[%s4821_s10 + $0x50] sm:$0xff]  }
 0x9b0   :  { %3084 = vmatprep.subr.bf16.mxu0 %v3419_v56 }
 0x9b1   :  { %v2240_v23 = vmul.f32 1.442695, %v2238_v31  ;;  %3085 = vmatpush3.bf16.msra.mxu0 %v3420_v12 }
 0x9b2   :  { %3086 = vmatprep.subr.bf16.mxu0 %v3421_v35 }
 0x9b3   :  { %3593 = vpow2.f32 %v2240_v23 }
 0x9b5   :  { %3087 = vmatpush3.bf16.msra.mxu0 %v3422_v45 }
 0x9b6   :  { %v2237_v24 = vpop.xlane.xlu1 %2236  ;;  %3088 = vmatprep.subr.bf16.mxu0 %v3423_v39 }
 0x9b7   :  { %v2239_v25 = vsub.f32 %v2230_v42, %v2237_v24 }
 0x9b9   :  { %v2242_v27 = vmul.f32 1.442695, %v2239_v25  ;;  %3089 = vmatpush3.bf16.msra.mxu0 %v3424_v48 }
 0x9ba   :  { %3314 = vmatprep.subr.bf16.mxu0 %v3702_v18 }
 0x9bb   :  { %3595 = vpow2.f32 %v2242_v27  ;;  %v3426_v27 = vld [vmem:[%s4823_s12 + $0x30] sm:$0xff]  }
 0x9c0   :  { %v3594_v28 = vpop.eup %3593 }
 0x9c1   :  { %v2244_v62 = vsel %vm2231_vm14, %v3594_v28, 0.0 }
 0x9c2   :  { %2245 = vadd.xlane.f32.xlu0 %v2244_v62  ;;  %v3428_v62 = vld [vmem:[%s4823_s12 + $0x20] sm:$0xff]  }
 0x9c8   :  { %v3596_v32 = vpop.eup %3595 }
 0x9c9   :  { %v2247_v13 = vsel %vm2231_vm14, %v3596_v32, 0.0 }
 0x9ca   :  { %2248 = vadd.xlane.f32.xlu0 %v2247_v13  ;;  %v3430_v13 = vld [vmem:[%s4823_s12 + $0x10] sm:$0xff]  }
 0xa4b   :  { %v2246_v1 = vpop.xlane.xlu0 %2245 }
 0xa4c   :  { %3597 = vrcp.f32 %v2246_v1 }
 0xa53   :  { %v2249_v19 = vpop.xlane.xlu0 %2248 }
 0xa54   :  { %3599 = vrcp.f32 %v2249_v19  ;;  %v2964_v19 = vld [vmem:[%s4824_s13] ss:$0 sm:$0xff]  ;;  %s2804_s13 = sshll.u32 %s3705_s11, 4  ;;  %s2805_s13 = int_to_ptr.vmem [resolvable:$true] %s2804_s13 }
 0xa55   :  { %s3637_s3 = scalar_lea.vmem %s2805_s13, 32  ;;  %p3642_p1 = scmp.lt.s32.totalorder %s2805_s13, %s2805_s13 }
 0xa56   :  { %p3638_p0 = scmp.ne.s32.totalorder %s2805_s13, %s3637_s3  ;;  %p3643_p2 = scmp.lt.s32.totalorder %s3637_s3, %s3637_s3 }
 0xa58   :  { %p3644_p3 = por %p3643_p2, %p3642_p1 }
 0xa59   :  { %v3598_v55 = vpop.eup %3597 }
 0xa5a   :  { %v2252_v59 = vmul.f32 %v3598_v55, %v3594_v28  ;;  %v3427_v28 = vld [vmem:[%s4823_s12 + $0x28] sm:$0xff]   ;;  %p3645_p4 = pnand %p3644_p3, %p3638_p0 }
 0xa5c   :  { %v2258_v40 = vpack.c.bf16 %v2252_v59, %v2252_v59  ;;  %v2254_v53 = vsel %vm2231_vm14, %v2252_v59, 0.0 }
 0xa5d   :  { %2256 = vst [vmem:[#allocation7] sm:$0xff] %v2254_v53 }
 0xa5e   :  { %2936 = vmatmul.mubr.msk.bf16.vlgmr.msra.gmra.mxu1 %vm2231_vm14, %v2258_v40 }
 0xa5f   :  { %2339 = vmatpush1.bf16.msra.mxu1 %v2319_v41  ;;  %2356 = vmatprep.mubr.bf16.mxu1 %v3701_v2  ;;  %v3403_v2 = vld [vmem:[%s4821_s10 + $0xa8] sm:$0xff]  }
 0xa60   :  { %3294 = vmatprep.subr.bf16.mxu1 %v3702_v18 }
 0xa61   :  { %v3600_v8 = vpop.eup %3599 }
 0xa62   :  { %v2253_v16 = vmul.f32 %v3600_v8, %v3596_v32  ;;  %v3429_v32 = vld [vmem:[%s4823_s12 + $0x18] sm:$0xff]  }
 0xa64   :  { %v2259_v57 = vpack.c.bf16 %v2253_v16, %v2253_v16  ;;  %v2255_v21 = vsel %vm2231_vm14, %v2253_v16, 0.0 }
 0xa65   :  { %2257 = vst [vmem:[#allocation7 + $0x8] sm:$0xff] %v2255_v21 }
 0xa66   :  { %2938 = vmatmul.mubr.msk.bf16.vlgmr.msra.gmra.mxu1 %vm2231_vm14, %v2259_v57 }
 0xa67   :  { %3295 = vmatpush3.bf16.msra.mxu1 %v3401_v29  ;;  %3310 = vmatprep.mubr.msk.bf16.mxu1 %vm3703_vm1, %v3702_v18 }
 0xa68   :  { %3296 = vmatprep.subr.bf16.mxu1 %v3702_v18 }
 0xa6b   :  { %3297 = vmatpush3.bf16.msra.mxu1 %v3402_v61 }
 0xa6c   :  { %3298 = vmatprep.subr.bf16.mxu1 %v3702_v18 }
 0xa6f   :  { %3299 = vmatpush3.bf16.msra.mxu1 %v3403_v2 }
 0xa70   :  { %3300 = vmatprep.subr.bf16.mxu1 %v3702_v18 }
 0xa73   :  { %3301 = vmatpush3.bf16.msra.mxu1 %v3404_v33 }
 0xa74   :  { %3302 = vmatprep.subr.bf16.mxu1 %v3702_v18 }
 0xa77   :  { %3303 = vmatpush3.bf16.msra.mxu1 %v3405_v9  ;;  %v1888_v9 = vsub.f32 1.0, %v3971_v47 }
 0xa78   :  { %3304 = vmatprep.subr.bf16.mxu1 %v3702_v18 }
 0xa7b   :  { %3305 = vmatpush3.bf16.msra.mxu1 %v3406_v44 }
 0xa7c   :  { %3306 = vmatprep.subr.bf16.mxu1 %v3702_v18 }
 0xa7f   :  { %3307 = vmatpush3.bf16.msra.mxu1 %v3407_v50 }
 0xa80   :  { %3308 = vmatprep.subr.bf16.mxu1 %v3702_v18 }
 0xa83   :  { %3309 = vmatpush3.bf16.msra.mxu1 %v3408_v11 }
 0xa86   :  { %3311 = vmatmul.mubr.bf16.vlgmr.msra.gmra.mxu1 %v2367_v14 }
 0xb1e   :  { %v2308_v14 = vpop.f32.mrf.mxu1 }
 0xb20   :  { %v2310_v3 = vpop.f32.mrf.mxu1 }
 0xb22   :  { %v2312_v46 = vpop.f32.mrf.mxu1 }
 0xb24   :  { %v2313_v4 = vpop.f32.mrf.mxu1 }
 0xb26   :  { %v2358_v5 = vpop.f32.mrf.mxu1 }
 0xb27   :  { %v2365_v20 = vpack.c.bf16 %v2358_v5, %v2308_v14 }
 0xb28   :  { %v2360_v42 = vpop.f32.mrf.mxu1 }
 0xb29   :  { %v2366_v7 = vpack.c.bf16 %v2360_v42, %v2310_v3 }
 0xb2a   :  { %v2362_v22 = vpop.f32.mrf.mxu1 }
 0xb2b   :  { %2599 = vmatprep.mubr.bf16.mxu0 %v2366_v7 }
 0xb2c   :  { %v2363_v37 = vpop.f32.mrf.mxu1  ;;  %2600 = vmatmul.mubr.bf16.vlgmr.msra.gmra.mxu0 %v2365_v20 }
 0xb2d   :  { %3315 = vmatpush3.bf16.msra.mxu0 %v3425_v30  ;;  %3330 = vmatprep.mubr.msk.bf16.mxu0 %vm3703_vm1, %v3702_v18 }
 0xb2e   :  { %3316 = vmatprep.subr.bf16.mxu0 %v3702_v18 }
 0xb31   :  { %3317 = vmatpush3.bf16.msra.mxu0 %v3426_v27 }
 0xb32   :  { %3318 = vmatprep.subr.bf16.mxu0 %v3702_v18 }
 0xb35   :  { %3319 = vmatpush3.bf16.msra.mxu0 %v3427_v28 }
 0xb36   :  { %3320 = vmatprep.subr.bf16.mxu0 %v3702_v18 }
 0xb39   :  { %3321 = vmatpush3.bf16.msra.mxu0 %v3428_v62 }
 0xb3a   :  { %3322 = vmatprep.subr.bf16.mxu0 %v3702_v18 }
 0xb3d   :  { %3323 = vmatpush3.bf16.msra.mxu0 %v3429_v32 }
 0xb3e   :  { %3324 = vmatprep.subr.bf16.mxu0 %v3702_v18 }
 0xb41   :  { %3325 = vmatpush3.bf16.msra.mxu0 %v3430_v13 }
 0xb42   :  { %3326 = vmatprep.subr.bf16.mxu0 %v3702_v18 }
 0xb45   :  { %3327 = vmatpush3.bf16.msra.mxu0 %v3431_v10 }
 0xb46   :  { %v2642_v31 = vpop.f32.mrf.mxu1  ;;  %3328 = vmatprep.subr.bf16.mxu0 %v3702_v18 }
 0xb48   :  { %v3312_v23 = vpop.f32.mrf.mxu1 }
 0xb49   :  { %3329 = vmatpush3.bf16.msra.mxu0 %v3432_v0 }
 0xb4a   :  { %v2645_v24 = vpop.f32.mrf.mxu1 }
 0xb4c   :  { %v3313_v25 = vpop.f32.mrf.mxu1 }
 0xbec   :  { %v3090_v51 = vpop.f32.mrf.mxu0 }
 0xbee   :  { %v3091_v58 = vpop.f32.mrf.mxu0 }
 0xbef   :  { %v3092_v6 = vadd.f32 %v3091_v58, %v3090_v51 }
 0xbf0   :  { %v3093_v49 = vpop.f32.mrf.mxu0 }
 0xbf1   :  { %v2602_v36 = vadd.f32 %v3092_v6, %v2939_v17 }
 0xbf2   :  { %v3094_v63 = vpop.f32.mrf.mxu0 }
 0xbf3   :  { %v3095_v43 = vadd.f32 %v3094_v63, %v3093_v49  ;;  %v2643_v34 = vadd.f32 %v2642_v31, %v2602_v36 }
 0xbf5   :  { %v2605_v54 = vadd.f32 %v3095_v43, %v2939_v17  ;;  %3601 = vtanh.f32 %v2643_v34 }
 0xbf7   :  { %v2646_v52 = vadd.f32 %v2645_v24, %v2605_v54 }
 0xbf9   :  { %3603 = vtanh.f32 %v2646_v52 }
 0xc02   :  { %v3602_v60 = vpop.eup %3601 }
 0xc06   :  { %v3604_v1 = vpop.eup %3603 }
 0xc07   :  { %v2651_v18 = vpack.c.bf16 %v3604_v1, %v3602_v60 }
 0xc09   :  { %3331 = vmatmul.mubr.bf16.vlgmr.msra.gmra.mxu0 %v2651_v18 }
 0xcc9   :  { %v2757_v38 = vpop.f32.mrf.mxu0 }
 0xcca   :  { %v2758_v55 = vadd.f32 %v2964_v19, %v2757_v38 }
 0xccb   :  { %v3332_v59 = vpop.f32.mrf.mxu0 }
 0xccc   :  { %2764 = vmax.xlane.f32.xlu1 %v2758_v55 }
 0xccd   :  { %v2760_v40 = vpop.f32.mrf.mxu0 }
 0xcce   :  { %v2761_v41 = vadd.f32 %v2964_v19, %v2760_v40 }
 0xccf   :  { %v3333_v53 = vpop.f32.mrf.mxu0 }
 0xcd0   :  { %2766 = vmax.xlane.f32.xlu0 %v2761_v41 }
 0xd55   :  { %v2765_v8 = vpop.xlane.xlu1 %2764 }
 0xd56   :  { %v2768_v16 = vsub.f32 %v2758_v55, %v2765_v8 }
 0xd58   :  { %v2770_v29 = vmul.f32 1.442695, %v2768_v16 }
 0xd59   :  { %v2767_v57 = vpop.xlane.xlu0 %2766 }
 0xd5a   :  { %3605 = vpow2.f32 %v2770_v29  ;;  %v2769_v21 = vsub.f32 %v2761_v41, %v2767_v57 }
 0xd5c   :  { %v2772_v61 = vmul.f32 1.442695, %v2769_v21 }
 0xd5e   :  { %3607 = vpow2.f32 %v2772_v61 }
 0xd67   :  { %v3606_v2 = vpop.eup %3605 }
 0xd68   :  { %2774 = vadd.xlane.f32.xlu1 %v3606_v2 }
 0xd6b   :  { %v3608_v33 = vpop.eup %3607 }
 0xd6c   :  { %2776 = vadd.xlane.f32.xlu0 %v3608_v33 }
 0xd79   :  { %1891 = vperm.xlu1 %3344, %v1888_v9  }
 0xdf1   :  { %v2775_v44 = vpop.xlane.xlu1 %2774 }
 0xdf2   :  { %3609 = vlog2.f32 %v2775_v44 }
 0xdf5   :  { %v1892_v50 = vpop.permute.xlu1 %1891  ;;  %v2777_v11 = vpop.xlane.xlu0 %2776 }
 0xdf6   :  { %v1894_v56 = vmul.f32 %v1892_v50, %v4548_v26  ;;  %3611 = vlog2.f32 %v2777_v11 }
 0xdf8   :  { %v1895_v12 = vadd.f32 %v1894_v56, %v4627_v15 }
 0xdfa   :  { %1923 = vst [vmem:[#allocation5] sm:$0x3] %v1895_v12 }
 0xdfb   :  { %3648 = shalt.err (!%p3645_p4)
}
 0xdfc   :  { %2807 = dma.vmem_to_hbm [thread:$0]  %s2805_s13, 32, %s4826_s15, [#allocation6]  }
 0xdfd   :  { %s3657_s8 = scalar_lea.vmem %s2814_s29, 256  ;;  %p3662_p6 = scmp.lt.s32.totalorder %s2814_s29, %s2814_s29 }
 0xdfe   :  { %p3658_p5 = scmp.ne.s32.totalorder %s2814_s29, %s3657_s8  ;;  %p3663_p7 = scmp.lt.s32.totalorder %s3657_s8, %s3657_s8 }
 0xe00   :  { %p3664_p8 = por %p3663_p7, %p3662_p6 }
 0xe02   :  { %p3665_p9 = pnand %p3664_p8, %p3658_p5 }
 0xe04   :  { %3668 = shalt.err (!%p3665_p9)
}
 0xe05   :  { %s3707_s1 = smov 128   ;;  %s3708_s9 = smov 8   ;;  %v3610_v47 = vpop.eup %3609 }
 0xe06   :  { %2819 = dma.vmem_to_hbm [thread:$0]  %s2814_s29, 256, %s4827_s16, [#allocation6], %s3707_s1, %s3707_s1, %s3708_s9   ;;  %v2779_v26 = vmul.f32 0.6931472, %v3610_v47  ;;  %v3612_v35 = vpop.eup %3611 }
 0xe07   :  { %s3709_s0 = smov [#allocation3]   ;;  %v2781_v45 = vmul.f32 0.6931472, %v3612_v35 }
 0xe08   :  { %v2782_v15 = vsub.f32 %v2768_v16, %v2779_v26  ;;  %s2791_s4 = sshll.u32 %s3709_s0, 4  ;;  %s2792_s4 = int_to_ptr.vmem [resolvable:$true] %s2791_s4 }
 0xe09   :  { %v2783_v39 = vsub.f32 %v2769_v21, %v2781_v45  ;;  %s3677_s15 = scalar_lea.vmem %s2792_s4, 256  ;;  %p3682_p11 = scmp.lt.s32.totalorder %s2792_s4, %s2792_s4 }
 0xe0a   :  { %2784 = vst [vmem:[#allocation3] sm:$0xff] %v2782_v15  ;;  %p3678_p10 = scmp.ne.s32.totalorder %s2792_s4, %s3677_s15  ;;  %p3683_p12 = scmp.lt.s32.totalorder %s3677_s15, %s3677_s15 }
 0xe0b   :  { %2785 = vst [vmem:[#allocation3 + $0x8] sm:$0xff] %v2783_v39 }
 0xe0c   :  { %p3684_p13 = por %p3683_p12, %p3682_p11 }
 0xe0e   :  { %p3685_p0 = pnand %p3684_p13, %p3678_p10 }
 0xe10   :  { %3688 = shalt.err (!%p3685_p0)
}
 0xe11   :  { %2797 = dma.vmem_to_hbm [thread:$0]  %s2792_s4, 256, %s4825_s14, [#allocation4], %s3707_s1, %s3707_s1, %s3708_s9  }
 0xe12   :  { %3697 = dma.done.wait [#allocation4], 256  }
 0xe13   :  { %3698 = vsyncadd [#allocation4], 4294967040 }
 0xe14   :  { %3699 = dma.done.wait [#allocation6], 288  }
 0xe15   :  { %3700 = vsyncadd [#allocation6], 4294967008 }
 0xe16   :  { %2829 = vsyncpa [#allocation4], 1 }
 0xe17   :  { %2830 = vsyncpa [#allocation6], 1 }

// kernel: seq2seq_forward.2
= control target key start
LH: loop header
LB: loop body
LE: loop exit
PB: predicated region body
PF: predicated region fallthrough
CT: control target
= control target key end

     0   :  { %v4691_v1 = vmov 0   ;;  %v7666_v2 = vmov 0.0|0.0   ;;  %vm139_vm0 = vcmask 261120   ;;  %vm1130_vm9 = vcmask 1041409   ;;  %s7654_s2 = inlined_call_operand.vmem [shape: bf16[32,768], index: 2, kind: input, shape index: {}]   ;;  %s7655_s3 = inlined_call_operand.vmem [shape: bf16[256,768], index: 3, kind: input, shape index: {}]   ;;  %s7656_s0 = inlined_call_operand.vmem [shape: f32[2,8,32], index: 0, kind: input, shape index: {}]   ;;  %s7657_s1 = inlined_call_operand.vmem [shape: s32[2,1], index: 1, kind: input, shape index: {}]   ;;  %s7658_s4 = inlined_call_operand.vmem [shape: f32[1,768], index: 4, kind: input, shape index: {}]   ;;  %s7659_s5 = inlined_call_operand.vmem [shape: f32[1,768], index: 5, kind: input, shape index: {}]   ;;  %s7660_s8 = inlined_call_operand.vmem [shape: f32[2,8,256], index: 8, kind: output, shape index: {0}]   ;;  %s7661_s6 = inlined_call_operand.vmem [shape: bf16[256,128], index: 6, kind: input, shape index: {}]   ;;  %s7662_s7 = inlined_call_operand.vmem [shape: f32[1,128], index: 7, kind: input, shape index: {}]   ;;  %s7663_s9 = inlined_call_operand.vmem [shape: f32[2,128], index: 9, kind: output, shape index: {1}]  }
   0x1   :  { %v3999_v0 = vld [vmem:[%s7654_s2 + $0x34] ss:$24 sps:$4 sm:$0xff]   ;;  %175 = vmatprep.mubr.bf16.mxu0 %v4691_v1  ;;  %914 = vmatprep.mubr.bf16.mxu1 %v7666_v2  ;;  %v4003_v4 = vld [vmem:[%s7654_s2 + $0x30] ss:$24 sps:$4 sm:$0xff]   ;;  %v4005_v6 = vld [vmem:[%s7654_s2 + $0x4] ss:$24 sps:$4 sm:$0xff]  }
   0x2   :  { %v4752_v3 = vld [vmem:[%s7655_s3 + $0x154] ss:$24 sps:$4 sm:$0xff]   ;;  %3983 = vset.pattern.permute.xlu1 %v4691_v1  ;;  %3977 = vset.pattern.permute.xlu0 %v4691_v1  ;;  %v4760_v5 = vld [vmem:[%s7655_s3 + $0x150] ss:$24 sps:$4 sm:$0xff]   ;;  %v4770_v7 = vld [vmem:[%s7655_s3 + $0x124] ss:$24 sps:$4 sm:$0xff]  }
   0x3   :  { %7979 = vst [vmem:[#allocation2_spill] sm:$0xff] %v4752_v3  ;;  %155 = vmatprep.subr.bf16.mxu0 %v3999_v0  ;;  %882 = vmatprep.subr.bf16.mxu1 %v4752_v3  ;;  %v4009_v8 = vld [vmem:[%s7654_s2] ss:$24 sps:$4 sm:$0xff]   ;;  %v4013_v11 = vld [vmem:[%s7654_s2 + $0x3c] ss:$24 sps:$4 sm:$0xff]   ;;  %v33_v14 = vld [vmem:[%s7656_s0 + $0x8] sm:$0xff] }
   0x4   :  { %156 = vmatpush1.bf16.msra.mxu0 %v4003_v4  ;;  %883 = vmatpush1.bf16.msra.mxu1 %v4760_v5  ;;  %v4778_v9 = vld [vmem:[%s7655_s3 + $0x120] ss:$24 sps:$4 sm:$0xff]   ;;  %v4790_v12 = vld [vmem:[%s7655_s3 + $0xf4] ss:$24 sps:$4 sm:$0xff]   ;;  %v4802_v15 = vld [vmem:[%s7655_s3 + $0xf0] ss:$24 sps:$4 sm:$0xff]  }
   0x5   :  { %157 = vmatprep.subr.bf16.mxu0 %v4005_v6  ;;  %884 = vmatprep.subr.bf16.mxu1 %v4770_v7  ;;  %v4011_v10 = vld [vmem:[%s7654_s2 + $0x38] ss:$24 sps:$4 sm:$0xff]   ;;  %v32_v13 = vld [vmem:[%s7656_s0] sm:$0xff]  ;;  %v4830_v22 = vld [vmem:[%s7655_s3 + $0x94] ss:$24 sps:$4 sm:$0xff]  }
   0x6   :  { %v34_v16 = vpack.c.bf16 %v33_v14, %v32_v13  ;;  %v4019_v17 = vld [vmem:[%s7654_s2 + $0xc] ss:$24 sps:$4 sm:$0xff]   ;;  %v4017_v19 = vld [vmem:[%s7654_s2 + $0x8] ss:$24 sps:$4 sm:$0xff]   ;;  %v4869_v30 = vld [vmem:[%s7655_s3 + $0x15c] ss:$24 sps:$4 sm:$0xff]  }
   0x7   :  { %v4811_v18 = vld [vmem:[%s7655_s3 + $0xc4] ss:$24 sps:$4 sm:$0xff]   ;;  %v4821_v20 = vld [vmem:[%s7655_s3 + $0xc0] ss:$24 sps:$4 sm:$0xff]   ;;  %v4839_v24 = vld [vmem:[%s7655_s3 + $0x90] ss:$24 sps:$4 sm:$0xff]  }
   0x8   :  { %158 = vmatpush1.bf16.msra.mxu0 %v4009_v8  ;;  %885 = vmatpush1.bf16.msra.mxu1 %v4778_v9  ;;  %v4025_v21 = vld [vmem:[%s7654_s2 + $0x44] ss:$24 sps:$4 sm:$0xff]   ;;  %v4023_v23 = vld [vmem:[%s7654_s2 + $0x40] ss:$24 sps:$4 sm:$0xff]   ;;  %v4031_v25 = vld [vmem:[%s7654_s2 + $0x14] ss:$24 sps:$4 sm:$0xff]  }
   0x9   :  { %198 = vmatprep.subr.bf16.mxu0 %v4013_v11  ;;  %886 = vmatprep.subr.bf16.mxu1 %v4790_v12  ;;  %v4848_v26 = vld [vmem:[%s7655_s3 + $0x64] ss:$24 sps:$4 sm:$0xff]   ;;  %v4029_v27 = vld [vmem:[%s7654_s2 + $0x10] ss:$24 sps:$4 sm:$0xff]   ;;  %v4858_v28 = vld [vmem:[%s7655_s3 + $0x60] ss:$24 sps:$4 sm:$0xff]  }
   0xa   :  { %v4864_v29 = vld [vmem:[%s7655_s3 + $0x34] ss:$24 sps:$4 sm:$0xff]   ;;  %v4874_v31 = vld [vmem:[%s7655_s3 + $0x30] ss:$24 sps:$4 sm:$0xff]   ;;  %v4885_v33 = vld [vmem:[%s7655_s3 + $0x4] ss:$24 sps:$4 sm:$0xff]  }
   0xb   :  { %3731 = vmatmul.mubr.msk.bf16.vlgmr.msra.gmra.mxu0 %vm139_vm0, %v34_v16  ;;  %v4880_v32 = vld [vmem:[%s7655_s3 + $0x158] ss:$24 sps:$4 sm:$0xff]   ;;  %v4892_v34 = vld [vmem:[%s7655_s3 + $0x12c] ss:$24 sps:$4 sm:$0xff]   ;;  %v4905_v36 = vld [vmem:[%s7655_s3 + $0x128] ss:$24 sps:$4 sm:$0xff]  }
   0xc   :  { %199 = vmatpush1.bf16.msra.mxu0 %v4011_v10  ;;  %887 = vmatpush1.bf16.msra.mxu1 %v4802_v15  ;;  %v4898_v35 = vld [vmem:[%s7655_s3] ss:$24 sps:$4 sm:$0xff]   ;;  %v4912_v37 = vld [vmem:[%s7655_s3 + $0x2d4] ss:$24 sps:$4 sm:$0xff]   ;;  %v4923_v39 = vld [vmem:[%s7655_s3 + $0x2d0] ss:$24 sps:$4 sm:$0xff]  }
   0xd   :  { %200 = vmatprep.subr.bf16.mxu0 %v4019_v17  ;;  %888 = vmatprep.subr.bf16.mxu1 %v4811_v18  ;;  %v4917_v38 = vld [vmem:[%s7655_s3 + $0xfc] ss:$24 sps:$4 sm:$0xff]   ;;  %v4930_v40 = vld [vmem:[%s7655_s3 + $0xf8] ss:$24 sps:$4 sm:$0xff]   ;;  %v4942_v42 = vld [vmem:[%s7655_s3 + $0xcc] ss:$24 sps:$4 sm:$0xff]  }
   0xe   :  { %218 = vmatprep.mubr.bf16.mxu0 %v4691_v1  ;;  %v4935_v41 = vld [vmem:[%s7655_s3 + $0x2a4] ss:$24 sps:$4 sm:$0xff]   ;;  %v4947_v43 = vld [vmem:[%s7655_s3 + $0x2a0] ss:$24 sps:$4 sm:$0xff]   ;;  %v4961_v45 = vld [vmem:[%s7655_s3 + $0x274] ss:$24 sps:$4 sm:$0xff]  }
   0xf   :  { %v4954_v44 = vld [vmem:[%s7655_s3 + $0xc8] ss:$24 sps:$4 sm:$0xff]   ;;  %v4966_v46 = vld [vmem:[%s7655_s3 + $0x9c] ss:$24 sps:$4 sm:$0xff]   ;;  %v4978_v48 = vld [vmem:[%s7655_s3 + $0x98] ss:$24 sps:$4 sm:$0xff]  }
  0x10   :  { %201 = vmatpush1.bf16.msra.mxu0 %v4017_v19  ;;  %889 = vmatpush1.bf16.msra.mxu1 %v4821_v20  ;;  %v4971_v47 = vld [vmem:[%s7655_s3 + $0x270] ss:$24 sps:$4 sm:$0xff]   ;;  %v4983_v49 = vld [vmem:[%s7655_s3 + $0x244] ss:$24 sps:$4 sm:$0xff]   ;;  %v4995_v51 = vld [vmem:[%s7655_s3 + $0x240] ss:$24 sps:$4 sm:$0xff]  }
  0x11   :  { %241 = vmatprep.subr.bf16.mxu0 %v4025_v21  ;;  %890 = vmatprep.subr.bf16.mxu1 %v4830_v22  ;;  %v4990_v50 = vld [vmem:[%s7655_s3 + $0x6c] ss:$24 sps:$4 sm:$0xff]   ;;  %v5002_v52 = vld [vmem:[%s7655_s3 + $0x68] ss:$24 sps:$4 sm:$0xff]   ;;  %v5014_v54 = vld [vmem:[%s7655_s3 + $0x3c] ss:$24 sps:$4 sm:$0xff]  }
  0x12   :  { %v5009_v53 = vld [vmem:[%s7655_s3 + $0x214] ss:$24 sps:$4 sm:$0xff]   ;;  %v5019_v55 = vld [vmem:[%s7655_s3 + $0x210] ss:$24 sps:$4 sm:$0xff]   ;;  %v5031_v57 = vld [vmem:[%s7655_s3 + $0x1e4] ss:$24 sps:$4 sm:$0xff]  }
  0x13   :  { %3732 = vmatmul.mubr.msk.bf16.vlgmr.msra.gmra.mxu0 %vm139_vm0, %v34_v16  ;;  %v5026_v56 = vld [vmem:[%s7655_s3 + $0x38] ss:$24 sps:$4 sm:$0xff]   ;;  %v5038_v58 = vld [vmem:[%s7655_s3 + $0xc] ss:$24 sps:$4 sm:$0xff]   ;;  %v5050_v60 = vld [vmem:[%s7655_s3 + $0x8] ss:$24 sps:$4 sm:$0xff]  }
  0x14   :  { %242 = vmatpush1.bf16.msra.mxu0 %v4023_v23  ;;  %891 = vmatpush1.bf16.msra.mxu1 %v4839_v24  ;;  %v5043_v59 = vld [vmem:[%s7655_s3 + $0x1e0] ss:$24 sps:$4 sm:$0xff]   ;;  %v5057_v61 = vld [vmem:[%s7655_s3 + $0x1b4] ss:$24 sps:$4 sm:$0xff]   ;;  %v5067_v63 = vld [vmem:[%s7655_s3 + $0x1b0] ss:$24 sps:$4 sm:$0xff]  }
  0x15   :  { %243 = vmatprep.subr.bf16.mxu0 %v4031_v25  ;;  %892 = vmatprep.subr.bf16.mxu1 %v4848_v26  ;;  %v5062_v62 = vld [vmem:[%s7655_s3 + $0x2dc] ss:$24 sps:$4 sm:$0xff]   ;;  %v5074_v0 = vld [vmem:[%s7655_s3 + $0x2d8] ss:$24 sps:$4 sm:$0xff]   ;;  %v5086_v4 = vld [vmem:[%s7655_s3 + $0x2ac] ss:$24 sps:$4 sm:$0xff]  }
  0x16   :  { %261 = vmatprep.mubr.bf16.mxu0 %v4691_v1  ;;  %7980 = vst [vmem:[#allocation3_spill] sm:$0xff] %v5074_v0  ;;  %v5079_v1 = vld [vmem:[%s7655_s3 + $0x184] ss:$24 sps:$4 sm:$0xff]   ;;  %7981 = vst [vmem:[#allocation4_spill] sm:$0xff] %v5086_v4  ;;  %v5093_v6 = vld [vmem:[%s7655_s3 + $0x180] ss:$24 sps:$4 sm:$0xff]  }
  0x17   :  { %v5098_v8 = vld [vmem:[%s7655_s3 + $0x2a8] ss:$24 sps:$4 sm:$0xff]   ;;  %v5105_v10 = vld [vmem:[%s7655_s3 + $0x27c] ss:$24 sps:$4 sm:$0xff]   ;;  %v5117_v13 = vld [vmem:[%s7655_s3 + $0x278] ss:$24 sps:$4 sm:$0xff]  }
  0x18   :  { %244 = vmatpush1.bf16.msra.mxu0 %v4029_v27  ;;  %893 = vmatpush1.bf16.msra.mxu1 %v4858_v28  ;;  %7982 = vst [vmem:[#allocation5_spill] sm:$0xff] %v5098_v8  ;;  %7983 = vst [vmem:[#allocation6_spill] sm:$0xff] %v5105_v10  ;;  %v5110_v11 = vld [vmem:[%s7655_s3 + $0x164] ss:$24 sps:$4 sm:$0xff]   ;;  %v5122_v14 = vld [vmem:[%s7655_s3 + $0x160] ss:$24 sps:$4 sm:$0xff]  }
  0x19   :  { %894 = vmatprep.subr.bf16.mxu1 %v4864_v29  ;;  %923 = vmatprep.subr.bf16.mxu0 %v4869_v30  ;;  %7984 = vst [vmem:[#allocation7_spill] sm:$0xff] %v5117_v13  ;;  %7985 = vst [vmem:[#allocation8_spill] sm:$0xff] %v5122_v14  ;;  %v5134_v17 = vld [vmem:[%s7655_s3 + $0x134] ss:$24 sps:$4 sm:$0xff]   ;;  %v5142_v19 = vld [vmem:[%s7655_s3 + $0x248] ss:$24 sps:$4 sm:$0xff]  }
  0x1a   :  { %7987 = vst [vmem:[#allocation10_spill] sm:$0xff] %v5134_v17  ;;  %7988 = vst [vmem:[#allocation11_spill] sm:$0xff] %v5142_v19  ;;  %v5147_v21 = vld [vmem:[%s7655_s3 + $0x130] ss:$24 sps:$4 sm:$0xff]   ;;  %v5154_v23 = vld [vmem:[%s7655_s3 + $0x21c] ss:$24 sps:$4 sm:$0xff]  }
  0x1b   :  { %3733 = vmatmul.mubr.msk.bf16.vlgmr.msra.gmra.mxu0 %vm139_vm0, %v34_v16  ;;  %v5129_v16 = vld [vmem:[%s7655_s3 + $0x24c] ss:$24 sps:$4 sm:$0xff]   ;;  %7989 = vst [vmem:[#allocation12_spill] sm:$0xff] %v5147_v21  ;;  %7990 = vst [vmem:[#allocation13_spill] sm:$0xff] %v5154_v23  ;;  %v5165_v27 = vld [vmem:[%s7655_s3 + $0x218] ss:$24 sps:$4 sm:$0xff]  }
  0x1c   :  { %895 = vmatpush1.bf16.msra.mxu1 %v4874_v31  ;;  %924 = vmatpush1.bf16.msra.mxu0 %v4880_v32  ;;  %7986 = vst [vmem:[#allocation9_spill] sm:$0xff] %v5129_v16  ;;  %v5159_v25 = vld [vmem:[%s7655_s3 + $0x104] ss:$24 sps:$4 sm:$0xff]   ;;  %7992 = vst [vmem:[#allocation15_spill] sm:$0xff] %v5165_v27 }
  0x1d   :  { %896 = vmatprep.subr.bf16.mxu1 %v4885_v33  ;;  %925 = vmatprep.subr.bf16.mxu0 %v4892_v34  ;;  %7991 = vst [vmem:[#allocation14_spill] sm:$0xff] %v5159_v25 }
  0x1e   :  { %955 = vmatprep.mubr.bf16.mxu0 %v7666_v2 }
  0x20   :  { %897 = vmatpush1.bf16.msra.mxu1 %v4898_v35  ;;  %926 = vmatpush1.bf16.msra.mxu0 %v4905_v36 }
  0x21   :  { %898 = vmatprep.subr.bf16.mxu1 %v4912_v37  ;;  %927 = vmatprep.subr.bf16.mxu0 %v4917_v38 }
  0x24   :  { %899 = vmatpush2.bf16.msra.mxu1 %v4923_v39  ;;  %928 = vmatpush1.bf16.msra.mxu0 %v4930_v40 }
  0x25   :  { %900 = vmatprep.subr.bf16.mxu1 %v4935_v41  ;;  %929 = vmatprep.subr.bf16.mxu0 %v4942_v42 }
  0x28   :  { %901 = vmatpush2.bf16.msra.mxu1 %v4947_v43  ;;  %930 = vmatpush1.bf16.msra.mxu0 %v4954_v44 }
  0x29   :  { %902 = vmatprep.subr.bf16.mxu1 %v4961_v45  ;;  %931 = vmatprep.subr.bf16.mxu0 %v4966_v46 }
  0x2c   :  { %903 = vmatpush2.bf16.msra.mxu1 %v4971_v47  ;;  %932 = vmatpush1.bf16.msra.mxu0 %v4978_v48 }
  0x2d   :  { %904 = vmatprep.subr.bf16.mxu1 %v4983_v49  ;;  %933 = vmatprep.subr.bf16.mxu0 %v4990_v50 }
  0x30   :  { %905 = vmatpush2.bf16.msra.mxu1 %v4995_v51  ;;  %934 = vmatpush1.bf16.msra.mxu0 %v5002_v52 }
  0x31   :  { %906 = vmatprep.subr.bf16.mxu1 %v5009_v53  ;;  %935 = vmatprep.subr.bf16.mxu0 %v5014_v54 }
  0x34   :  { %907 = vmatpush2.bf16.msra.mxu1 %v5019_v55  ;;  %936 = vmatpush1.bf16.msra.mxu0 %v5026_v56 }
  0x35   :  { %908 = vmatprep.subr.bf16.mxu1 %v5031_v57  ;;  %937 = vmatprep.subr.bf16.mxu0 %v5038_v58 }
  0x38   :  { %909 = vmatpush2.bf16.msra.mxu1 %v5043_v59  ;;  %938 = vmatpush1.bf16.msra.mxu0 %v5050_v60 }
  0x39   :  { %910 = vmatprep.subr.bf16.mxu1 %v5057_v61  ;;  %939 = vmatprep.subr.bf16.mxu0 %v5062_v62 }
  0x3c   :  { %911 = vmatpush2.bf16.msra.mxu1 %v5067_v63  ;;  %940 = vmatpush2.bf16.msra.mxu0 %v5074_v0  ;;  %v5209_v0 = vld [vmem:[%s7655_s3 + $0xd0] ss:$24 sps:$4 sm:$0xff]  }
  0x3d   :  { %912 = vmatprep.subr.bf16.mxu1 %v5079_v1  ;;  %941 = vmatprep.subr.bf16.mxu0 %v5086_v4  ;;  %v5204_v4 = vld [vmem:[%s7655_s3 + $0x1e8] ss:$24 sps:$4 sm:$0xff]   ;;  %7997 = vst [vmem:[#allocation20_spill] sm:$0xff] %v5209_v0 }
  0x3e   :  { %7996 = vst [vmem:[#allocation19_spill] sm:$0xff] %v5204_v4 }
  0x40   :  { %913 = vmatpush2.bf16.msra.mxu1 %v5093_v6  ;;  %942 = vmatpush2.bf16.msra.mxu0 %v5098_v8 }
  0x41   :  { %943 = vmatprep.subr.bf16.mxu0 %v5105_v10  ;;  %964 = vmatprep.subr.bf16.mxu1 %v5110_v11 }
  0x43   :  { %915 = vmatmul.mubr.bf16.vlgmr.msra.gmra.mxu1 %v7666_v2 }
  0x44   :  { %944 = vmatpush2.bf16.msra.mxu0 %v5117_v13  ;;  %965 = vmatpush1.bf16.msra.mxu1 %v5122_v14  ;;  %v5177_v14 = vld [vmem:[%s7655_s3 + $0x1ec] ss:$24 sps:$4 sm:$0xff]  }
  0x45   :  { %945 = vmatprep.subr.bf16.mxu0 %v5129_v16  ;;  %966 = vmatprep.subr.bf16.mxu1 %v5134_v17  ;;  %v5172_v17 = vld [vmem:[%s7655_s3 + $0x100] ss:$24 sps:$4 sm:$0xff]   ;;  %7994 = vst [vmem:[#allocation17_spill] sm:$0xff] %v5177_v14 }
  0x46   :  { %996 = vmatprep.mubr.bf16.mxu1 %v7666_v2  ;;  %7993 = vst [vmem:[#allocation16_spill] sm:$0xff] %v5172_v17  ;;  %v5182_v2 = vld [vmem:[%s7657_s1] sm:$0x3] }
  0x47   :  { %vm1116_vm1 = vcmp.gt.s32.totalorder %v5182_v2, 0  ;;  %vm1119_vm2 = vcmp.gt.s32.totalorder %v5182_v2, 7  ;;  %vm1461_vm3 = vcmp.gt.s32.totalorder %v5182_v2, 1  ;;  %vm1464_vm4 = vcmp.gt.s32.totalorder %v5182_v2, 6 }
  0x48   :  { %946 = vmatpush2.bf16.msra.mxu0 %v5142_v19  ;;  %967 = vmatpush1.bf16.msra.mxu1 %v5147_v21  ;;  %v5189_v21 = vld [vmem:[%s7655_s3 + $0xd4] ss:$24 sps:$4 sm:$0xff]   ;;  %v7684_v19 = vmov 0.0   ;;  %vm1809_vm5 = vcmp.gt.s32.totalorder %v5182_v2, 2  ;;  %vm1812_vm6 = vcmp.gt.s32.totalorder %v5182_v2, 5  ;;  %vm2161_vm7 = vcmp.gt.s32.totalorder %v5182_v2, 4 }
  0x49   :  { %947 = vmatprep.subr.bf16.mxu0 %v5154_v23  ;;  %968 = vmatprep.subr.bf16.mxu1 %v5159_v25  ;;  %7995 = vst [vmem:[#allocation18_spill] sm:$0xff] %v5189_v21  ;;  %v3838_v16 = vsel %vm1116_vm1, 1.0, %v7684_v19  ;;  %v3839_v23 = vsel %vm1119_vm2, 1.0, %v7684_v19  ;;  %v3852_v10 = vsel %vm1461_vm3, 1.0, %v7684_v19  ;;  %v3853_v8 = vsel %vm1464_vm4, 1.0, %v7684_v19 }
  0x4a   :  { %v1134_v13 = vsub.f32 1.0, %v3838_v16  ;;  %v3978_v25 = vpack.i.bf16 %v3838_v16, %v3839_v23  ;;  %v5216_v16 = vld [vmem:[%s7655_s3 + $0x1bc] ss:$24 sps:$4 sm:$0xff]   ;;  %vm2158_vm8 = vcmp.gt.s32.totalorder %v5182_v2, 3 }
  0x4b   :  { %7998 = vst [vmem:[#allocation21_spill] sm:$0xff] %v5216_v16  ;;  %v5221_v19 = vld [vmem:[%s7655_s3 + $0xa4] ss:$24 sps:$4 sm:$0xff]  }
  0x4c   :  { %948 = vmatpush2.bf16.msra.mxu0 %v5165_v27  ;;  %969 = vmatpush1.bf16.msra.mxu1 %v5172_v17  ;;  %7999 = vst [vmem:[#allocation22_spill] sm:$0xff] %v5221_v19  ;;  %v1154_v17 = vsub.f32 1.0, %v3839_v23  ;;  %v3984_v27 = vpack.i.bf16 %v3852_v10, %v3853_v8  ;;  %v5245_v23 = vld [vmem:[%s7655_s3 + $0x74] ss:$24 sps:$4 sm:$0xff]   ;;  %v5327_v2 = vld [vmem:[%s7655_s3 + $0x284] ss:$24 sps:$4 sm:$0xff]  }
  0x4d   :  { %949 = vmatprep.subr.bf16.mxu0 %v5177_v14  ;;  %970 = vmatprep.subr.bf16.mxu1 %v5189_v21  ;;  %v5228_v21 = vld [vmem:[%s7655_s3 + $0x1b8] ss:$24 sps:$4 sm:$0xff]   ;;  %8003 = vst [vmem:[#allocation26_spill] sm:$0xff] %v5245_v23 }
  0x4e   :  { %1137 = vperm.xlu1 %3983, %v1134_v13   ;;  %3979 = vperm.xlu0 %3977, %v3978_v25   ;;  %8000 = vst [vmem:[#allocation23_spill] sm:$0xff] %v5228_v21  ;;  %v5233_v14 = vld [vmem:[%s7655_s3 + $0xa0] ss:$24 sps:$4 sm:$0xff]   ;;  %v5240_v13 = vld [vmem:[%s7655_s3 + $0x18c] ss:$24 sps:$4 sm:$0xff]   ;;  %v1478_v25 = vsub.f32 1.0, %v3852_v10 }
  0x4f   :  { %8001 = vst [vmem:[#allocation24_spill] sm:$0xff] %v5233_v14  ;;  %8002 = vst [vmem:[#allocation25_spill] sm:$0xff] %v5240_v13  ;;  %v5264_v10 = vld [vmem:[%s7655_s3 + $0x44] ss:$24 sps:$4 sm:$0xff]  }
  0x50   :  { %950 = vmatpush2.bf16.msra.mxu0 %v5204_v4  ;;  %971 = vmatpush1.bf16.msra.mxu1 %v5209_v0  ;;  %v5257_v0 = vld [vmem:[%s7655_s3 + $0x70] ss:$24 sps:$4 sm:$0xff]   ;;  %8006 = vst [vmem:[#allocation29_spill] sm:$0xff] %v5264_v10 }
  0x51   :  { %951 = vmatprep.subr.bf16.mxu0 %v5216_v16  ;;  %972 = vmatprep.subr.bf16.mxu1 %v5221_v19  ;;  %v5252_v19 = vld [vmem:[%s7655_s3 + $0x188] ss:$24 sps:$4 sm:$0xff]   ;;  %8005 = vst [vmem:[#allocation28_spill] sm:$0xff] %v5257_v0 }
  0x52   :  { %3985 = vperm.xlu1 %3983, %v3984_v27   ;;  %1157 = vperm.xlu0 %3977, %v1154_v17   ;;  %8004 = vst [vmem:[#allocation27_spill] sm:$0xff] %v5252_v19  ;;  %v1498_v17 = vsub.f32 1.0, %v3853_v8  ;;  %v5271_v27 = vld [vmem:[%s7655_s3 + $0x40] ss:$24 sps:$4 sm:$0xff]   ;;  %v8008_v8 = vmov 0.0|0.0  }
  0x53   :  { %8007 = vst [vmem:[#allocation30_spill] sm:$0xff] %v5271_v27 }
  0x54   :  { %952 = vmatpush2.bf16.msra.mxu0 %v5228_v21  ;;  %973 = vmatpush1.bf16.msra.mxu1 %v5233_v14 }
  0x55   :  { %953 = vmatprep.subr.bf16.mxu0 %v5240_v13  ;;  %974 = vmatprep.subr.bf16.mxu1 %v5245_v23  ;;  %v5277_v23 = vld [vmem:[%s7655_s3 + $0x14] ss:$24 sps:$4 sm:$0xff]   ;;  %v5303_v13 = vld [vmem:[%s7655_s3 + $0x2e0] ss:$24 sps:$4 sm:$0xff]  }
  0x56   :  { %1481 = vperm.xlu1 %3983, %v1478_v25   ;;  %1501 = vperm.xlu0 %3977, %v1498_v17   ;;  %v8009_v25 = vmov 0.0  }
  0x57   :  { %v3867_v14 = vsel %vm1812_vm6, 1.0, %v8009_v25 }
  0x58   :  { %954 = vmatpush2.bf16.msra.mxu0 %v5252_v19  ;;  %975 = vmatpush1.bf16.msra.mxu1 %v5257_v0  ;;  %v3866_v0 = vsel %vm1809_vm5, 1.0, %v8009_v25 }
  0x59   :  { %976 = vmatprep.subr.bf16.mxu1 %v5264_v10  ;;  %1218 = vmatprep.subr.bf16.mxu0 %v4752_v3  ;;  %v5289_v10 = vld [vmem:[%s7655_s3 + $0x10] ss:$24 sps:$4 sm:$0xff]   ;;  %v3989_v17 = vpack.i.bf16 %v3866_v0, %v3867_v14  ;;  %v5296_v3 = vld [vmem:[%s7655_s3 + $0x2e4] ss:$24 sps:$4 sm:$0xff]   ;;  %v1827_v19 = vsub.f32 1.0, %v3866_v0  ;;  %v3880_v0 = vsel %vm2158_vm8, 1.0, %v8009_v25 }
  0x5b   :  { %956 = vmatmul.mubr.bf16.vlgmr.msra.gmra.mxu0 %v8008_v8  ;;  %3990 = vperm.xlu0 %3977, %v3989_v17  }
  0x5c   :  { %977 = vmatpush1.bf16.msra.mxu1 %v5271_v27  ;;  %1219 = vmatpush1.bf16.msra.mxu0 %v4760_v5  ;;  %v1847_v27 = vsub.f32 1.0, %v3867_v14  ;;  %v5309_v5 = vld [vmem:[%s7655_s3 + $0x2b4] ss:$24 sps:$4 sm:$0xff]   ;;  %v5321_v14 = vld [vmem:[%s7655_s3 + $0x2b0] ss:$24 sps:$4 sm:$0xff]  }
  0x5d   :  { %978 = vmatprep.subr.bf16.mxu1 %v5277_v23  ;;  %1220 = vmatprep.subr.bf16.mxu0 %v4770_v7  ;;  %v3881_v7 = vsel %vm2161_vm7, 1.0, %v8009_v25  ;;  %v5341_v25 = vld [vmem:[%s7655_s3 + $0x254] ss:$24 sps:$4 sm:$0xff]  }
  0x5e   :  { %1850 = vperm.xlu1 %3983, %v1847_v27   ;;  %v2196_v27 = vsub.f32 1.0, %v3881_v7 }
  0x5f   :  { %1830 = vperm.xlu0 %3977, %v1827_v19   ;;  %v5335_v19 = vld [vmem:[%s7655_s3 + $0x280] ss:$24 sps:$4 sm:$0xff]  }
  0x60   :  { %979 = vmatpush1.bf16.msra.mxu1 %v5289_v10  ;;  %1221 = vmatpush1.bf16.msra.mxu0 %v4778_v9  ;;  %v3994_v9 = vpack.i.bf16 %v3880_v0, %v3881_v7 }
  0x61   :  { %980 = vmatprep.subr.bf16.mxu1 %v5296_v3  ;;  %1222 = vmatprep.subr.bf16.mxu0 %v4790_v12  ;;  %v2176_v12 = vsub.f32 1.0, %v3880_v0  ;;  %v5490_v0 = vld [vmem:[%s7659_s5] sm:$0x3f] }
  0x62   :  { %3995 = vperm.xlu1 %3983, %v3994_v9  }
  0x63   :  { %2199 = vperm.xlu0 %3977, %v2196_v27  }
  0x64   :  { %981 = vmatpush2.bf16.msra.mxu1 %v5303_v13  ;;  %1223 = vmatpush1.bf16.msra.mxu0 %v4802_v15  ;;  %v5349_v15 = vld [vmem:[%s7655_s3 + $0x250] ss:$24 sps:$4 sm:$0xff]  }
  0x65   :  { %982 = vmatprep.subr.bf16.mxu1 %v5309_v5  ;;  %1224 = vmatprep.subr.bf16.mxu0 %v4811_v18  ;;  %v5355_v18 = vld [vmem:[%s7655_s3 + $0x224] ss:$24 sps:$4 sm:$0xff]  }
  0x66   :  { %2179 = vperm.xlu1 %3983, %v2176_v12  }
  0x68   :  { %983 = vmatpush2.bf16.msra.mxu1 %v5321_v14  ;;  %1225 = vmatpush1.bf16.msra.mxu0 %v4821_v20  ;;  %v5363_v20 = vld [vmem:[%s7655_s3 + $0x220] ss:$24 sps:$4 sm:$0xff]  }
  0x69   :  { %984 = vmatprep.subr.bf16.mxu1 %v5327_v2  ;;  %1226 = vmatprep.subr.bf16.mxu0 %v4830_v22  ;;  %v5369_v22 = vld [vmem:[%s7655_s3 + $0x1f4] ss:$24 sps:$4 sm:$0xff]  }
  0x6c   :  { %985 = vmatpush2.bf16.msra.mxu1 %v5335_v19  ;;  %1227 = vmatpush1.bf16.msra.mxu0 %v4839_v24  ;;  %v5377_v24 = vld [vmem:[%s7655_s3 + $0x1f0] ss:$24 sps:$4 sm:$0xff]  }
  0x6d   :  { %986 = vmatprep.subr.bf16.mxu1 %v5341_v25  ;;  %1228 = vmatprep.subr.bf16.mxu0 %v4848_v26  ;;  %v5383_v26 = vld [vmem:[%s7655_s3 + $0x1c4] ss:$24 sps:$4 sm:$0xff]  }
  0x70   :  { %987 = vmatpush2.bf16.msra.mxu1 %v5349_v15  ;;  %1229 = vmatpush1.bf16.msra.mxu0 %v4858_v28  ;;  %v5391_v28 = vld [vmem:[%s7655_s3 + $0x1c0] ss:$24 sps:$4 sm:$0xff]  }
  0x71   :  { %988 = vmatprep.subr.bf16.mxu1 %v5355_v18  ;;  %1230 = vmatprep.subr.bf16.mxu0 %v4864_v29  ;;  %v5397_v29 = vld [vmem:[%s7655_s3 + $0x194] ss:$24 sps:$4 sm:$0xff]  }
  0x74   :  { %989 = vmatpush2.bf16.msra.mxu1 %v5363_v20  ;;  %1231 = vmatpush1.bf16.msra.mxu0 %v4874_v31  ;;  %v5405_v31 = vld [vmem:[%s7655_s3 + $0x190] ss:$24 sps:$4 sm:$0xff]  }
  0x75   :  { %990 = vmatprep.subr.bf16.mxu1 %v5369_v22  ;;  %1232 = vmatprep.subr.bf16.mxu0 %v4885_v33  ;;  %v8012_v33 = vld [vmem:[#allocation5_spill] sm:$0xff] }
  0x78   :  { %991 = vmatpush2.bf16.msra.mxu1 %v5377_v24  ;;  %1233 = vmatpush1.bf16.msra.mxu0 %v4898_v35  ;;  %v8014_v35 = vld [vmem:[#allocation7_spill] sm:$0xff] }
  0x79   :  { %992 = vmatprep.subr.bf16.mxu1 %v5383_v26  ;;  %1234 = vmatprep.subr.bf16.mxu0 %v4912_v37  ;;  %v8016_v37 = vld [vmem:[#allocation11_spill] sm:$0xff] }
  0x7c   :  { %993 = vmatpush2.bf16.msra.mxu1 %v5391_v28  ;;  %1235 = vmatpush2.bf16.msra.mxu0 %v4923_v39  ;;  %v8018_v39 = vld [vmem:[#allocation15_spill] sm:$0xff] }
  0x7d   :  { %994 = vmatprep.subr.bf16.mxu1 %v5397_v29  ;;  %1236 = vmatprep.subr.bf16.mxu0 %v4935_v41  ;;  %v8020_v41 = vld [vmem:[#allocation25_spill] sm:$0xff] }
  0x80   :  { %995 = vmatpush2.bf16.msra.mxu1 %v5405_v31  ;;  %1237 = vmatpush2.bf16.msra.mxu0 %v4947_v43  ;;  %v8022_v43 = vld [vmem:[#allocation2_spill] sm:$0xff] }
  0x81   :  { %1259 = vmatprep.subr.bf16.mxu1 %v4869_v30  ;;  %1238 = vmatprep.subr.bf16.mxu0 %v4961_v45  ;;  %v8010_v30 = vld [vmem:[#allocation3_spill] sm:$0xff] }
  0x83   :  { %997 = vmatmul.mubr.bf16.vlgmr.msra.gmra.mxu1 %v8008_v8 }
  0x84   :  { %1260 = vmatpush1.bf16.msra.mxu1 %v4880_v32  ;;  %1239 = vmatpush2.bf16.msra.mxu0 %v4971_v47  ;;  %v8011_v32 = vld [vmem:[#allocation4_spill] sm:$0xff]  ;;  %v49_v47 = vlaneseq }
  0x85   :  { %1261 = vmatprep.subr.bf16.mxu1 %v4892_v34  ;;  %1240 = vmatprep.subr.bf16.mxu0 %v4983_v49  ;;  %v8013_v34 = vld [vmem:[#allocation6_spill] sm:$0xff] }
  0x88   :  { %1262 = vmatpush1.bf16.msra.mxu1 %v4905_v36  ;;  %1241 = vmatpush2.bf16.msra.mxu0 %v4995_v51  ;;  %v8015_v36 = vld [vmem:[#allocation9_spill] sm:$0xff] }
  0x89   :  { %1263 = vmatprep.subr.bf16.mxu1 %v4917_v38  ;;  %1242 = vmatprep.subr.bf16.mxu0 %v5009_v53  ;;  %v8017_v38 = vld [vmem:[#allocation13_spill] sm:$0xff] }
  0x8c   :  { %1264 = vmatpush1.bf16.msra.mxu1 %v4930_v40  ;;  %1243 = vmatpush2.bf16.msra.mxu0 %v5019_v55  ;;  %v8019_v40 = vld [vmem:[#allocation17_spill] sm:$0xff] }
  0x8d   :  { %1265 = vmatprep.subr.bf16.mxu1 %v4942_v42  ;;  %1244 = vmatprep.subr.bf16.mxu0 %v5031_v57  ;;  %v8021_v42 = vld [vmem:[#allocation27_spill] sm:$0xff] }
  0x90   :  { %1266 = vmatpush1.bf16.msra.mxu1 %v4954_v44  ;;  %1245 = vmatpush2.bf16.msra.mxu0 %v5043_v59 }
  0x91   :  { %1267 = vmatprep.subr.bf16.mxu1 %v4966_v46  ;;  %1246 = vmatprep.subr.bf16.mxu0 %v5057_v61 }
  0x94   :  { %1268 = vmatpush1.bf16.msra.mxu1 %v4978_v48  ;;  %1247 = vmatpush2.bf16.msra.mxu0 %v5067_v63 }
  0x95   :  { %1269 = vmatprep.subr.bf16.mxu1 %v4990_v50  ;;  %1248 = vmatprep.subr.bf16.mxu0 %v5079_v1  ;;  %v5461_v50 = vshrl.u32 %v49_v47, 7 }
  0x97   :  { %v51_v7 = vsub.s32 0, %v5461_v50  ;;  %v55_v12 = vsub.s32 1, %v5461_v50 }
  0x98   :  { %1270 = vmatpush1.bf16.msra.mxu1 %v5002_v52  ;;  %1249 = vmatpush2.bf16.msra.mxu0 %v5093_v6  ;;  %v7704_v52 = vsub.s32 5, %v5461_v50 }
  0x99   :  { %1271 = vmatprep.subr.bf16.mxu1 %v5014_v54  ;;  %1300 = vmatprep.subr.bf16.mxu0 %v5110_v11  ;;  %v5471_v54 = vld [vmem:[%s7658_s4] sm:$0x3f]  ;;  %v5494_v9 = vrot.slane %v5490_v0, %v51_v7 }
  0x9a   :  { %v52_v27 = vrot.slane %v5471_v54, %v51_v7  ;;  %v56_v7 = vrot.slane %v5471_v54, %v55_v12 }
  0x9b   :  { %8025 = vst [vmem:[#allocation5_spill] sm:$0xff] %v5494_v9 }
  0x9c   :  { %1272 = vmatpush1.bf16.msra.mxu1 %v5026_v56  ;;  %v72_v56 = vrot.slane %v5471_v54, %v7704_v52 }
  0x9d   :  { %1273 = vmatprep.subr.bf16.mxu1 %v5038_v58 }
  0xa0   :  { %1274 = vmatpush1.bf16.msra.mxu1 %v5050_v60 }
  0xa1   :  { %1275 = vmatprep.subr.bf16.mxu1 %v5062_v62 }
  0xa4   :  { %1276 = vmatpush2.bf16.msra.mxu1 %v8010_v30  ;;  %v5498_v30 = vrot.slane %v5490_v0, %v55_v12 }
  0xa5   :  { %1277 = vmatprep.subr.bf16.mxu1 %v8011_v32 }
  0xa6   :  { %8026 = vst [vmem:[#allocation6_spill] sm:$0xff] %v5498_v30 }
  0xa8   :  { %1278 = vmatpush2.bf16.msra.mxu1 %v8012_v33 }
  0xa9   :  { %1279 = vmatprep.subr.bf16.mxu1 %v8013_v34 }
  0xac   :  { %1280 = vmatpush2.bf16.msra.mxu1 %v8014_v35 }
  0xad   :  { %1281 = vmatprep.subr.bf16.mxu1 %v8015_v36 }
  0xb0   :  { %1282 = vmatpush2.bf16.msra.mxu1 %v8016_v37 }
  0xb1   :  { %1283 = vmatprep.subr.bf16.mxu1 %v8017_v38 }
  0xb4   :  { %1284 = vmatpush2.bf16.msra.mxu1 %v8018_v39 }
  0xb5   :  { %1285 = vmatprep.subr.bf16.mxu1 %v8019_v40 }
  0xb8   :  { %1286 = vmatpush2.bf16.msra.mxu1 %v5204_v4 }
  0xb9   :  { %1287 = vmatprep.subr.bf16.mxu1 %v5216_v16 }
  0xbc   :  { %1288 = vmatpush2.bf16.msra.mxu1 %v5228_v21 }
  0xbd   :  { %1289 = vmatprep.subr.bf16.mxu1 %v8020_v41 }
  0xc0   :  { %1290 = vmatpush2.bf16.msra.mxu1 %v8021_v42 }
  0xc1   :  { %1562 = vmatprep.subr.bf16.mxu1 %v8022_v43 }
  0xcb   :  { %v177_v44 = vpop.f32.mrf.mxu0 }
  0xcc   :  { %v5500_v43 = vadd.f32 %v177_v44, %v52_v27 }
  0xcd   :  { %v179_v45 = vpop.f32.mrf.mxu0 }
  0xce   :  { %8027 = vst [vmem:[#allocation7_spill] sm:$0xff] %v5500_v43  ;;  %v5509_v39 = vadd.f32 %v179_v45, %v56_v7 }
  0xcf   :  { %v181_v46 = vpop.f32.mrf.mxu0 }
  0xd0   :  { %8029 = vst [vmem:[#allocation11_spill] sm:$0xff] %v5509_v39 }
  0xd1   :  { %v183_v48 = vpop.f32.mrf.mxu0 }
  0xd3   :  { %v5459_v49 = vpop.f32.mrf.mxu0 }
  0xd5   :  { %v5463_v51 = vpop.f32.mrf.mxu0 }
  0xd7   :  { %v5466_v53 = vpop.f32.mrf.mxu0 }
  0xd9   :  { %v5473_v55 = vpop.f32.mrf.mxu0 }
  0xdb   :  { %v5478_v57 = vpop.f32.mrf.mxu0 }
  0xdd   :  { %v265_v58 = vpop.f32.mrf.mxu0 }
  0xde   :  { %v5480_v60 = vadd.f32 %v265_v58, %v72_v56  ;;  %v5503_v58 = vadd.f32 %v181_v46, %v52_v27 }
  0xdf   :  { %v5482_v62 = vpop.f32.mrf.mxu0 }
  0xe0   :  { %8023 = vst [vmem:[#allocation3_spill] sm:$0xff] %v5480_v60  ;;  %8028 = vst [vmem:[#allocation9_spill] sm:$0xff] %v5503_v58 }
  0xe1   :  { %v269_v8 = vpop.f32.mrf.mxu0 }
  0xe2   :  { %v5484_v17 = vadd.f32 %v269_v8, %v72_v56 }
  0xe4   :  { %8024 = vst [vmem:[#allocation4_spill] sm:$0xff] %v5484_v17 }
 0x103   :  { %v916_v32 = vpop.f32.mrf.mxu1 }
 0x104   :  { %v917_v47 = vadd.f32 %v916_v32, %v5494_v9  ;;  %v5511_v32 = vadd.f32 %v183_v48, %v56_v7 }
 0x105   :  { %v918_v56 = vpop.f32.mrf.mxu1 }
 0x106   :  { %v1006_v8 = vrot.slane %v917_v47, 1  ;;  %v1009_v52 = vadd.f32 %v917_v47, %v5500_v43  ;;  %v919_v42 = vadd.f32 %v918_v56, %v5498_v30  ;;  %8030 = vst [vmem:[#allocation13_spill] sm:$0xff] %v5511_v32 }
 0x107   :  { %v920_v41 = vpop.f32.mrf.mxu1 }
 0x108   :  { %v1010_v21 = vadd.f32 %v1006_v8, %v5503_v58  ;;  %v3830_v16 = vmul.f32 -1.442695, %v1009_v52  ;;  %v1024_v40 = vrot.slane %v919_v42, 1  ;;  %v1027_v46 = vadd.f32 %v919_v42, %v5509_v39 }
 0x109   :  { %v921_v4 = vpop.f32.mrf.mxu1  ;;  %v63_v42 = vsub.s32 3, %v5461_v50 }
 0x10a   :  { %4177 = vpow2.f32 %v3830_v16  ;;  %v3831_v44 = vmul.f32 -1.442695, %v1010_v21  ;;  %v1028_v27 = vadd.f32 %v1024_v40, %v5511_v32  ;;  %v3832_v47 = vmul.f32 -1.442695, %v1027_v46 }
 0x10b   :  { %v59_v16 = vsub.s32 2, %v5461_v50  ;;  %v5521_v8 = vrot.slane %v5490_v0, %v63_v42 }
 0x10c   :  { %4179 = vpow2.f32 %v3831_v44  ;;  %v3833_v56 = vmul.f32 -1.442695, %v1028_v27 }
 0x10d   :  { %4181 = vpow2.f32 %v3832_v47  ;;  %v5517_v48 = vrot.slane %v5490_v0, %v59_v16  ;;  %8032 = vst [vmem:[#allocation31_spill] sm:$0xff] %v5521_v8  ;;  %v60_v47 = vrot.slane %v5471_v54, %v59_v16 }
 0x10e   :  { %4183 = vpow2.f32 %v3833_v56 }
 0x10f   :  { %8031 = vst [vmem:[#allocation2_spill] sm:$0xff] %v5517_v48  ;;  %v5534_v16 = vadd.f32 %v5466_v53, %v60_v47 }
 0x111   :  { %8035 = vst [vmem:[#allocation34_spill] sm:$0xff] %v5534_v16 }
 0x117   :  { %v4178_v41 = vpop.eup %4177 }
 0x118   :  { %v1017_v12 = vadd.f32 1.0, %v4178_v41  ;;  %v64_v41 = vrot.slane %v5471_v54, %v63_v42 }
 0x119   :  { %v4180_v52 = vpop.eup %4179 }
 0x11a   :  { %v1018_v4 = vadd.f32 1.0, %v4180_v52  ;;  %4185 = vrcp.f32 %v1017_v12  ;;  %v4182_v44 = vpop.eup %4181  ;;  %v5531_v30 = vadd.f32 %v5463_v51, %v64_v41 }
 0x11b   :  { %v957_v21 = vpop.f32.mrf.mxu0  ;;  %v4184_v27 = vpop.eup %4183  ;;  %v1035_v12 = vadd.f32 1.0, %v4182_v44  ;;  %v5538_v44 = vadd.f32 %v5473_v55, %v64_v41 }
 0x11c   :  { %4187 = vrcp.f32 %v1018_v4  ;;  %v958_v46 = vadd.f32 %v957_v21, %v5517_v48  ;;  %v1036_v52 = vadd.f32 1.0, %v4184_v27  ;;  %8034 = vst [vmem:[#allocation33_spill] sm:$0xff] %v5531_v30 }
 0x11d   :  { %v959_v45 = vpop.f32.mrf.mxu0  ;;  %4189 = vrcp.f32 %v1035_v12  ;;  %8036 = vst [vmem:[#allocation35_spill] sm:$0xff] %v5538_v44  ;;  %v4694_v12 = vmov 1966171168  }
 0x11e   :  { %v960_v56 = vadd.f32 %v959_v45, %v5521_v8  ;;  %v1042_v4 = vrot.slane %v958_v46, 1  ;;  %4191 = vrcp.f32 %v1036_v52 }
 0x11f   :  { %v961_v40 = vpop.f32.mrf.mxu0 }
 0x120   :  { %v5528_v40 = vadd.f32 %v5459_v49, %v60_v47  ;;  %v1060_v43 = vrot.slane %v960_v56, 1  ;;  %v1061_v21 = vrot.slane %v960_v56, 2 }
 0x121   :  { %v962_v7 = vpop.f32.mrf.mxu0 }
 0x122   :  { %8033 = vst [vmem:[#allocation32_spill] sm:$0xff] %v5528_v40  ;;  %v1065_v51 = vadd.f32 %v1061_v21, %v5538_v44  ;;  %v67_v21 = vsub.s32 4, %v5461_v50 }
 0x124   :  { %v3835_v27 = vmul.f32 -1.442695, %v1065_v51 }
 0x127   :  { %v4186_v39 = vpop.eup %4185 }
 0x128   :  { %v1045_v32 = vmul.f32 %v4186_v39, %v958_v46  ;;  %v1064_v39 = vadd.f32 %v1060_v43, %v5531_v30 }
 0x129   :  { %v4188_v7 = vpop.eup %4187 }
 0x12a   :  { %v1046_v45 = vmul.f32 %v4188_v7, %v1042_v4  ;;  %v1047_v42 = vadd.f32 %v1045_v32, %v5528_v40  ;;  %v3834_v46 = vmul.f32 -1.442695, %v1064_v39  ;;  %v4190_v53 = vpop.eup %4189  ;;  %v1164_v32 = vunpack.c.l.s4 %v4694_v12  ;;  %v5543_v4 = vpop.permute.xlu0 %3979 }
 0x12b   :  { %v4192_v47 = vpop.eup %4191  ;;  %v1051_v52 = vsub.f32 1.0, %v4190_v53  ;;  %8037 = vst [vmem:[#allocation36_spill] sm:$0xff] %v5543_v4  ;;  %v7720_v51 = vunpack.i.h.bf16 %v5543_v4 }
 0x12c   :  { %v1048_v49 = vadd.f32 %v1046_v45, %v5534_v16  ;;  %4193 = vtanh.f32 %v1047_v42  ;;  %v1052_v55 = vsub.f32 1.0, %v4192_v47  ;;  %v1056_v43 = vmul.f32 0.0, %v4192_v47 }
 0x12d   :  { %v1165_v42 = vunpack.c.0.s8 %v1164_v32  ;;  %v68_v47 = vrot.slane %v5471_v54, %v67_v21 }
 0x12e   :  { %4195 = vtanh.f32 %v1048_v49  ;;  %v1055_v49 = vmul.f32 0.0, %v4190_v53 }
 0x12f   :  { %4197 = vpow2.f32 %v3834_v46  ;;  %v5548_v46 = vrot.slane %v5490_v0, %v67_v21  ;;  %v5551_v30 = vsub.s32 %v1165_v42, %v5461_v50  ;;  %v5563_v42 = vadd.f32 %v5478_v57, %v68_v47 }
 0x130   :  { %4199 = vpow2.f32 %v3835_v27  ;;  %v5566_v54 = vadd.f32 %v5482_v62, %v68_v47  ;;  %v8038_v62 = vsub.s32 5, %v5461_v50 }
 0x139   :  { %v4194_v56 = vpop.eup %4193 }
 0x13a   :  { %v1053_v7 = vmul.f32 %v4194_v56, %v1051_v52 }
 0x13b   :  { %v4196_v41 = vpop.eup %4195 }
 0x13c   :  { %v1054_v45 = vmul.f32 %v4196_v41, %v1052_v55  ;;  %v1057_v27 = vadd.f32 %v1055_v49, %v1053_v7  ;;  %v4198_v44 = vpop.eup %4197 }
 0x13d   :  { %v4200_v56 = vpop.eup %4199  ;;  %v1072_v55 = vadd.f32 1.0, %v4198_v44 }
 0x13e   :  { %v1058_v39 = vadd.f32 %v1056_v43, %v1054_v45  ;;  %v1073_v45 = vadd.f32 1.0, %v4200_v56  ;;  %v5579_v56 = vrot.slane %v5490_v0, %v8038_v62 }
 0x13f   :  { %4201 = vrcp.f32 %v1072_v55 }
 0x140   :  { %v1129_v12 = vrot.slane %v1058_v39, 7  ;;  %4203 = vrcp.f32 %v1073_v45 }
 0x142   :  { %v1131_v32 = vsel %vm1130_vm9, %v1129_v12, %v1057_v27 }
 0x143   :  { %v5557_v53 = vmul.f32 %v7720_v51, %v1131_v32  ;;  %v998_v52 = vpop.f32.mrf.mxu1 }
 0x144   :  { %v999_v41 = vadd.f32 %v998_v52, %v5548_v46 }
 0x145   :  { %v1169_v7 = vrot.slane %v5557_v53, %v5551_v30  ;;  %v1000_v43 = vpop.f32.mrf.mxu1 }
 0x146   :  { %v1079_v21 = vrot.slane %v999_v41, 1  ;;  %v1080_v49 = vrot.slane %v999_v41, 2  ;;  %v1001_v52 = vadd.f32 %v1000_v43, %v5579_v56 }
 0x147   :  { %v1170_v39 = vcombine.high %v1169_v7, %v1169_v7  ;;  %3840 = vst.sshfl [vmem:[%s7660_s8] sm:$0x1 pattern:$0x73625140] %v1169_v7  ;;  %v1002_v44 = vpop.f32.mrf.mxu1 }
 0x148   :  { %v1083_v27 = vadd.f32 %v1079_v21, %v5563_v42  ;;  %v1084_v12 = vadd.f32 %v1080_v49, %v5566_v54  ;;  %v1098_v55 = vrot.slane %v1001_v52, 1  ;;  %v1099_v41 = vrot.slane %v1001_v52, 2 }
 0x149   :  { %3841 = vst.sshfl [vmem:[%s7660_s8 + $0x10] sm:$0x1 pattern:$0x73625140] %v1170_v39  ;;  %v1003_v57 = vpop.f32.mrf.mxu1 }
 0x14a   :  { %v3836_v47 = vmul.f32 -1.442695, %v1083_v27  ;;  %v3837_v32 = vmul.f32 -1.442695, %v1084_v12 }
 0x14c   :  { %4205 = vpow2.f32 %v3836_v47  ;;  %v4202_v7 = vpop.eup %4201 }
 0x14d   :  { %4207 = vpow2.f32 %v3837_v32  ;;  %v4204_v45 = vpop.eup %4203  ;;  %v1102_v21 = vmul.f32 %v4202_v7, %v1098_v55 }
 0x14e   :  { %v1103_v49 = vmul.f32 %v4204_v45, %v1099_v41 }
 0x14f   :  { %v1104_v50 = vadd.f32 %v1102_v21, %v5480_v60 }
 0x150   :  { %v1105_v0 = vadd.f32 %v1103_v49, %v5484_v17 }
 0x159   :  { %v4206_v44 = vpop.eup %4205 }
 0x15a   :  { %v4208_v39 = vpop.eup %4207  ;;  %v1091_v57 = vadd.f32 1.0, %v4206_v44 }
 0x15b   :  { %v1092_v51 = vadd.f32 1.0, %v4208_v39  ;;  %v5584_v39 = vpop.permute.xlu1 %1137 }
 0x15c   :  { %4209 = vrcp.f32 %v1091_v57  ;;  %8039 = vst [vmem:[#allocation37_spill] sm:$0xff] %v5584_v39  ;;  %v7721_v57 = vunpack.i.l.bf16 %v5543_v4  ;;  %v5907_v4 = vld [vmem:[%s7655_s3 + $0x2dc] ss:$24 sps:$4 sm:$0xff]  }
 0x15d   :  { %4211 = vrcp.f32 %v1092_v51  ;;  %v1140_v51 = vmul.f32 0.0, %v5584_v39  ;;  %v5895_v39 = vld [vmem:[%s7655_s3 + $0xc] ss:$24 sps:$4 sm:$0xff]   ;;  %8081 = vst [vmem:[#allocation53_spill] sm:$0xff] %v5907_v4 }
 0x15e   :  { %4213 = vtanh.f32 %v1104_v50  ;;  %v5588_v50 = vpop.permute.xlu0 %1157  ;;  %8079 = vst [vmem:[#allocation51_spill] sm:$0xff] %v5895_v39 }
 0x15f   :  { %4215 = vtanh.f32 %v1105_v0  ;;  %8040 = vst [vmem:[#allocation38_spill] sm:$0xff] %v5588_v50 }
 0x169   :  { %v4210_v27 = vpop.eup %4209 }
 0x16a   :  { %v4212_v43 = vpop.eup %4211  ;;  %v1108_v12 = vsub.f32 1.0, %v4210_v27  ;;  %v1112_v55 = vmul.f32 0.0, %v4210_v27  ;;  %v1160_v27 = vmul.f32 0.0, %v5588_v50  ;;  %v5901_v50 = vld [vmem:[%s7655_s3 + $0x8] ss:$24 sps:$4 sm:$0xff]  }
 0x16b   :  { %v4214_v62 = vpop.eup %4213  ;;  %v1109_v47 = vsub.f32 1.0, %v4212_v43  ;;  %v1113_v7 = vmul.f32 0.0, %v4212_v43  ;;  %v5595_v43 = vadd.f32 %v1140_v51, %v5557_v53  ;;  %v5639_v51 = vld [vmem:[%s7655_s3 + $0xf4] ss:$24 sps:$4 sm:$0xff]   ;;  %8080 = vst [vmem:[#allocation52_spill] sm:$0xff] %v5901_v50 }
 0x16c   :  { %v4216_v32 = vpop.eup %4215  ;;  %v1110_v52 = vmul.f32 %v4214_v62, %v1108_v12 }
 0x16d   :  { %v1111_v41 = vmul.f32 %v4216_v32, %v1109_v47  ;;  %v5610_v53 = vpack.c.bf16 %v5595_v43, %v5595_v43 }
 0x16e   :  { %v1114_v45 = vadd.f32 %v1112_v55, %v1110_v52  ;;  %v8041_v55 = vld [vmem:[#allocation8_spill] sm:$0xff] }
 0x16f   :  { %v1115_v44 = vadd.f32 %v1113_v7, %v1111_v41  ;;  %v8042_v41 = vld [vmem:[#allocation10_spill] sm:$0xff]  ;;  %v5619_v7 = vld [vmem:[%s7655_s3 + $0x150] ss:$24 sps:$4 sm:$0xff]  }
 0x170   :  { %v1149_v21 = vrot.slane %v1114_v45, 7  ;;  %v5625_v45 = vld [vmem:[%s7655_s3 + $0x124] ss:$24 sps:$4 sm:$0xff]  }
 0x171   :  { %v1150_v49 = vrot.slane %v1115_v44, 6  ;;  %v8043_v44 = vld [vmem:[#allocation12_spill] sm:$0xff] }
 0x173   :  { %v1151_v0 = vsel %vm1130_vm9, %v1150_v49, %v1149_v21  ;;  %v8044_v21 = vld [vmem:[#allocation14_spill] sm:$0xff] }
 0x174   :  { %v1153_v12 = vmul.f32 %v7721_v57, %v1151_v0  ;;  %v5633_v49 = vld [vmem:[%s7655_s3 + $0x120] ss:$24 sps:$4 sm:$0xff]   ;;  %v8045_v0 = vld [vmem:[#allocation16_spill] sm:$0xff] }
 0x175   :  { %v8053_v57 = vld [vmem:[#allocation30_spill] sm:$0xff] }
 0x176   :  { %v5597_v62 = vadd.f32 %v1160_v27, %v1153_v12  ;;  %v1196_v47 = vrot.slane %v1153_v12, %v5551_v30  ;;  %v8046_v12 = vld [vmem:[#allocation18_spill] sm:$0xff]  ;;  %v5647_v27 = vld [vmem:[%s7655_s3 + $0xf0] ss:$24 sps:$4 sm:$0xff]  }
 0x178   :  { %v1197_v32 = vcombine.high %v1196_v47, %v1196_v47  ;;  %3842 = vst.sshfl [vmem:[%s7660_s8 + $0xf] sm:$0x1 pattern:$0x73625140] %v1196_v47  ;;  %v1217_v52 = vpack.c.bf16 %v5597_v62, %v5597_v62  ;;  %v5653_v47 = vld [vmem:[%s7655_s3 + $0xc4] ss:$24 sps:$4 sm:$0xff]  }
 0x17a   :  { %3843 = vst.sshfl [vmem:[%s7660_s8 + $0x1f] sm:$0x1 pattern:$0x73625140] %v1197_v32  ;;  %1250 = vmatprep.mubr.bf16.mxu0 %v1217_v52  ;;  %1291 = vmatprep.mubr.bf16.mxu1 %v1217_v52  ;;  %v8047_v32 = vld [vmem:[#allocation20_spill] sm:$0xff] }
 0x17b   :  { %1251 = vmatmul.mubr.bf16.vlgmr.msra.gmra.mxu0 %v5610_v53  ;;  %1292 = vmatmul.mubr.bf16.vlgmr.msra.gmra.mxu1 %v5610_v53 }
 0x17c   :  { %1301 = vmatpush1.bf16.msra.mxu0 %v8041_v55  ;;  %1332 = vmatprep.mubr.bf16.mxu0 %v1217_v52  ;;  %v8048_v52 = vld [vmem:[#allocation22_spill] sm:$0xff] }
 0x17d   :  { %1302 = vmatprep.subr.bf16.mxu0 %v8042_v41  ;;  %1563 = vmatpush1.bf16.msra.mxu1 %v5619_v7  ;;  %v5661_v55 = vld [vmem:[%s7655_s3 + $0xc0] ss:$24 sps:$4 sm:$0xff]   ;;  %v5667_v41 = vld [vmem:[%s7655_s3 + $0x94] ss:$24 sps:$4 sm:$0xff]  }
 0x17e   :  { %1564 = vmatprep.subr.bf16.mxu1 %v5625_v45 }
 0x180   :  { %1303 = vmatpush1.bf16.msra.mxu0 %v8043_v44  ;;  %v8049_v44 = vld [vmem:[#allocation24_spill] sm:$0xff] }
 0x181   :  { %1304 = vmatprep.subr.bf16.mxu0 %v8044_v21  ;;  %1565 = vmatpush1.bf16.msra.mxu1 %v5633_v49  ;;  %v8050_v21 = vld [vmem:[#allocation26_spill] sm:$0xff] }
 0x182   :  { %1566 = vmatprep.subr.bf16.mxu1 %v5639_v51 }
 0x184   :  { %1305 = vmatpush1.bf16.msra.mxu0 %v8045_v0  ;;  %v5675_v0 = vld [vmem:[%s7655_s3 + $0x90] ss:$24 sps:$4 sm:$0xff]  }
 0x185   :  { %1306 = vmatprep.subr.bf16.mxu0 %v8046_v12  ;;  %1567 = vmatpush1.bf16.msra.mxu1 %v5647_v27  ;;  %v5681_v12 = vld [vmem:[%s7655_s3 + $0x64] ss:$24 sps:$4 sm:$0xff]  }
 0x186   :  { %1568 = vmatprep.subr.bf16.mxu1 %v5653_v47 }
 0x188   :  { %1307 = vmatpush1.bf16.msra.mxu0 %v8047_v32  ;;  %v8051_v32 = vld [vmem:[#allocation28_spill] sm:$0xff] }
 0x189   :  { %1308 = vmatprep.subr.bf16.mxu0 %v8048_v52  ;;  %1569 = vmatpush1.bf16.msra.mxu1 %v5661_v55  ;;  %v8052_v52 = vld [vmem:[#allocation29_spill] sm:$0xff] }
 0x18a   :  { %1570 = vmatprep.subr.bf16.mxu1 %v5667_v41 }
 0x18c   :  { %1309 = vmatpush1.bf16.msra.mxu0 %v8049_v44  ;;  %v5689_v44 = vld [vmem:[%s7655_s3 + $0x60] ss:$24 sps:$4 sm:$0xff]  }
 0x18d   :  { %1310 = vmatprep.subr.bf16.mxu0 %v8050_v21  ;;  %1571 = vmatpush1.bf16.msra.mxu1 %v5675_v0  ;;  %v5695_v21 = vld [vmem:[%s7655_s3 + $0x34] ss:$24 sps:$4 sm:$0xff]  }
 0x18e   :  { %1572 = vmatprep.subr.bf16.mxu1 %v5681_v12 }
 0x190   :  { %1311 = vmatpush1.bf16.msra.mxu0 %v8051_v32  ;;  %v5703_v32 = vld [vmem:[%s7655_s3 + $0x30] ss:$24 sps:$4 sm:$0xff]  }
 0x191   :  { %1312 = vmatprep.subr.bf16.mxu0 %v8052_v52  ;;  %1573 = vmatpush1.bf16.msra.mxu1 %v5689_v44  ;;  %v5709_v52 = vld [vmem:[%s7655_s3 + $0x4] ss:$24 sps:$4 sm:$0xff]  }
 0x192   :  { %1574 = vmatprep.subr.bf16.mxu1 %v5695_v21 }
 0x194   :  { %1313 = vmatpush1.bf16.msra.mxu0 %v8053_v57  ;;  %v5723_v57 = vld [vmem:[%s7655_s3 + $0x2d4] ss:$24 sps:$4 sm:$0xff]  }
 0x195   :  { %1314 = vmatprep.subr.bf16.mxu0 %v5277_v23  ;;  %1575 = vmatpush1.bf16.msra.mxu1 %v5703_v32  ;;  %v5717_v23 = vld [vmem:[%s7655_s3] ss:$24 sps:$4 sm:$0xff]   ;;  %8054 = vst [vmem:[#allocation8_spill] sm:$0xff] %v5723_v57 }
 0x196   :  { %1576 = vmatprep.subr.bf16.mxu1 %v5709_v52 }
 0x198   :  { %1315 = vmatpush1.bf16.msra.mxu0 %v5289_v10  ;;  %v5737_v10 = vld [vmem:[%s7655_s3 + $0x2a4] ss:$24 sps:$4 sm:$0xff]  }
 0x199   :  { %1316 = vmatprep.subr.bf16.mxu0 %v5296_v3  ;;  %1577 = vmatpush1.bf16.msra.mxu1 %v5717_v23  ;;  %v5731_v3 = vld [vmem:[%s7655_s3 + $0x2d0] ss:$24 sps:$4 sm:$0xff]   ;;  %8056 = vst [vmem:[#allocation12_spill] sm:$0xff] %v5737_v10 }
 0x19a   :  { %1578 = vmatprep.subr.bf16.mxu1 %v5723_v57  ;;  %8055 = vst [vmem:[#allocation10_spill] sm:$0xff] %v5731_v3 }
 0x19c   :  { %1317 = vmatpush2.bf16.msra.mxu0 %v5303_v13  ;;  %v5745_v13 = vld [vmem:[%s7655_s3 + $0x2a0] ss:$24 sps:$4 sm:$0xff]  }
 0x19d   :  { %1318 = vmatprep.subr.bf16.mxu0 %v5309_v5  ;;  %1579 = vmatpush2.bf16.msra.mxu1 %v5731_v3  ;;  %8057 = vst [vmem:[#allocation14_spill] sm:$0xff] %v5745_v13  ;;  %v5751_v5 = vld [vmem:[%s7655_s3 + $0x274] ss:$24 sps:$4 sm:$0xff]  }
 0x19e   :  { %1580 = vmatprep.subr.bf16.mxu1 %v5737_v10  ;;  %8058 = vst [vmem:[#allocation16_spill] sm:$0xff] %v5751_v5 }
 0x1a0   :  { %1319 = vmatpush2.bf16.msra.mxu0 %v5321_v14  ;;  %v5759_v14 = vld [vmem:[%s7655_s3 + $0x270] ss:$24 sps:$4 sm:$0xff]  }
 0x1a1   :  { %1320 = vmatprep.subr.bf16.mxu0 %v5327_v2  ;;  %1581 = vmatpush2.bf16.msra.mxu1 %v5745_v13  ;;  %8059 = vst [vmem:[#allocation18_spill] sm:$0xff] %v5759_v14  ;;  %v5765_v2 = vld [vmem:[%s7655_s3 + $0x244] ss:$24 sps:$4 sm:$0xff]  }
 0x1a2   :  { %1582 = vmatprep.subr.bf16.mxu1 %v5751_v5  ;;  %8060 = vst [vmem:[#allocation20_spill] sm:$0xff] %v5765_v2 }
 0x1a4   :  { %1321 = vmatpush2.bf16.msra.mxu0 %v5335_v19  ;;  %v5773_v19 = vld [vmem:[%s7655_s3 + $0x240] ss:$24 sps:$4 sm:$0xff]  }
 0x1a5   :  { %1322 = vmatprep.subr.bf16.mxu0 %v5341_v25  ;;  %1583 = vmatpush2.bf16.msra.mxu1 %v5759_v14  ;;  %8061 = vst [vmem:[#allocation22_spill] sm:$0xff] %v5773_v19  ;;  %v5779_v25 = vld [vmem:[%s7655_s3 + $0x214] ss:$24 sps:$4 sm:$0xff]  }
 0x1a6   :  { %1584 = vmatprep.subr.bf16.mxu1 %v5765_v2  ;;  %8062 = vst [vmem:[#allocation24_spill] sm:$0xff] %v5779_v25 }
 0x1a8   :  { %1323 = vmatpush2.bf16.msra.mxu0 %v5349_v15  ;;  %v5787_v15 = vld [vmem:[%s7655_s3 + $0x210] ss:$24 sps:$4 sm:$0xff]  }
 0x1a9   :  { %1324 = vmatprep.subr.bf16.mxu0 %v5355_v18  ;;  %1585 = vmatpush2.bf16.msra.mxu1 %v5773_v19  ;;  %8063 = vst [vmem:[#allocation26_spill] sm:$0xff] %v5787_v15  ;;  %v5793_v18 = vld [vmem:[%s7655_s3 + $0x1e4] ss:$24 sps:$4 sm:$0xff]  }
 0x1aa   :  { %1586 = vmatprep.subr.bf16.mxu1 %v5779_v25  ;;  %8064 = vst [vmem:[#allocation28_spill] sm:$0xff] %v5793_v18 }
 0x1ac   :  { %1325 = vmatpush2.bf16.msra.mxu0 %v5363_v20  ;;  %v5808_v20 = vld [vmem:[%s7655_s3 + $0x15c] ss:$24 sps:$4 sm:$0xff]  }
 0x1ad   :  { %1326 = vmatprep.subr.bf16.mxu0 %v5369_v22  ;;  %1587 = vmatpush2.bf16.msra.mxu1 %v5787_v15  ;;  %8065 = vst [vmem:[#allocation29_spill] sm:$0xff] %v5808_v20  ;;  %v5853_v22 = vld [vmem:[%s7655_s3 + $0xc8] ss:$24 sps:$4 sm:$0xff]  }
 0x1ae   :  { %1588 = vmatprep.subr.bf16.mxu1 %v5793_v18  ;;  %8072 = vst [vmem:[#allocation44_spill] sm:$0xff] %v5853_v22 }
 0x1b0   :  { %1327 = vmatpush2.bf16.msra.mxu0 %v5377_v24  ;;  %v5859_v24 = vld [vmem:[%s7655_s3 + $0x9c] ss:$24 sps:$4 sm:$0xff]  }
 0x1b1   :  { %1328 = vmatprep.subr.bf16.mxu0 %v5383_v26  ;;  %1589 = vmatpush2.bf16.msra.mxu1 %v5043_v59  ;;  %v5817_v59 = vld [vmem:[%s7655_s3 + $0x158] ss:$24 sps:$4 sm:$0xff]   ;;  %8073 = vst [vmem:[#allocation45_spill] sm:$0xff] %v5859_v24 }
 0x1b2   :  { %1590 = vmatprep.subr.bf16.mxu1 %v5057_v61  ;;  %8066 = vst [vmem:[#allocation30_spill] sm:$0xff] %v5817_v59  ;;  %v5823_v61 = vld [vmem:[%s7655_s3 + $0x12c] ss:$24 sps:$4 sm:$0xff]   ;;  %v5865_v26 = vld [vmem:[%s7655_s3 + $0x98] ss:$24 sps:$4 sm:$0xff]  }
 0x1b3   :  { %8067 = vst [vmem:[#allocation39_spill] sm:$0xff] %v5823_v61  ;;  %8074 = vst [vmem:[#allocation46_spill] sm:$0xff] %v5865_v26 }
 0x1b4   :  { %1329 = vmatpush2.bf16.msra.mxu0 %v5391_v28  ;;  %v5871_v28 = vld [vmem:[%s7655_s3 + $0x6c] ss:$24 sps:$4 sm:$0xff]  }
 0x1b5   :  { %1330 = vmatprep.subr.bf16.mxu0 %v5397_v29  ;;  %1591 = vmatpush2.bf16.msra.mxu1 %v5067_v63  ;;  %v5829_v63 = vld [vmem:[%s7655_s3 + $0x128] ss:$24 sps:$4 sm:$0xff]   ;;  %8075 = vst [vmem:[#allocation47_spill] sm:$0xff] %v5871_v28 }
 0x1b6   :  { %1592 = vmatprep.subr.bf16.mxu1 %v5079_v1  ;;  %8068 = vst [vmem:[#allocation40_spill] sm:$0xff] %v5829_v63  ;;  %v5835_v1 = vld [vmem:[%s7655_s3 + $0xfc] ss:$24 sps:$4 sm:$0xff]   ;;  %v5877_v29 = vld [vmem:[%s7655_s3 + $0x68] ss:$24 sps:$4 sm:$0xff]  }
 0x1b7   :  { %8069 = vst [vmem:[#allocation41_spill] sm:$0xff] %v5835_v1  ;;  %8076 = vst [vmem:[#allocation48_spill] sm:$0xff] %v5877_v29 }
 0x1b8   :  { %1331 = vmatpush2.bf16.msra.mxu0 %v5405_v31  ;;  %v5883_v31 = vld [vmem:[%s7655_s3 + $0x3c] ss:$24 sps:$4 sm:$0xff]  }
 0x1b9   :  { %1603 = vmatprep.subr.bf16.mxu0 %v5808_v20  ;;  %1593 = vmatpush2.bf16.msra.mxu1 %v5093_v6  ;;  %v5841_v6 = vld [vmem:[%s7655_s3 + $0xf8] ss:$24 sps:$4 sm:$0xff]   ;;  %8077 = vst [vmem:[#allocation49_spill] sm:$0xff] %v5883_v31 }
 0x1ba   :  { %1644 = vmatprep.subr.bf16.mxu1 %v5110_v11  ;;  %8070 = vst [vmem:[#allocation42_spill] sm:$0xff] %v5841_v6  ;;  %v5847_v11 = vld [vmem:[%s7655_s3 + $0xcc] ss:$24 sps:$4 sm:$0xff]  }
 0x1bb   :  { %1333 = vmatmul.mubr.bf16.vlgmr.msra.gmra.mxu0 %v5610_v53  ;;  %8071 = vst [vmem:[#allocation43_spill] sm:$0xff] %v5847_v11  ;;  %v5889_v53 = vld [vmem:[%s7655_s3 + $0x38] ss:$24 sps:$4 sm:$0xff]  }
 0x1bc   :  { %1604 = vmatpush1.bf16.msra.mxu0 %v5817_v59  ;;  %8078 = vst [vmem:[#allocation50_spill] sm:$0xff] %v5889_v53 }
 0x1bd   :  { %1605 = vmatprep.subr.bf16.mxu0 %v5823_v61 }
 0x1c0   :  { %1606 = vmatpush1.bf16.msra.mxu0 %v5829_v63 }
 0x1c1   :  { %1607 = vmatprep.subr.bf16.mxu0 %v5835_v1  ;;  %v8094_v1 = vld [vmem:[#allocation13_spill] sm:$0xff] }
 0x1c4   :  { %1608 = vmatpush1.bf16.msra.mxu0 %v5841_v6 }
 0x1c5   :  { %1609 = vmatprep.subr.bf16.mxu0 %v5847_v11 }
 0x1c8   :  { %1610 = vmatpush1.bf16.msra.mxu0 %v5853_v22 }
 0x1c9   :  { %1611 = vmatprep.subr.bf16.mxu0 %v5859_v24 }
 0x1cc   :  { %1612 = vmatpush1.bf16.msra.mxu0 %v5865_v26 }
 0x1cd   :  { %1613 = vmatprep.subr.bf16.mxu0 %v5871_v28  ;;  %v8093_v28 = vld [vmem:[#allocation7_spill] sm:$0xff] }
 0x1d0   :  { %1614 = vmatpush1.bf16.msra.mxu0 %v5877_v29 }
 0x1d1   :  { %1615 = vmatprep.subr.bf16.mxu0 %v5883_v31  ;;  %v8087_v31 = vld [vmem:[#allocation21_spill] sm:$0xff] }
 0x1d4   :  { %1616 = vmatpush1.bf16.msra.mxu0 %v5889_v53  ;;  %v5913_v53 = vld [vmem:[%s7655_s3 + $0x2d8] ss:$24 sps:$4 sm:$0xff]  }
 0x1d5   :  { %1617 = vmatprep.subr.bf16.mxu0 %v5895_v39  ;;  %8082 = vst [vmem:[#allocation54_spill] sm:$0xff] %v5913_v53  ;;  %v5919_v39 = vld [vmem:[%s7655_s3 + $0x2ac] ss:$24 sps:$4 sm:$0xff]  }
 0x1d6   :  { %8083 = vst [vmem:[#allocation55_spill] sm:$0xff] %v5919_v39 }
 0x1d8   :  { %1618 = vmatpush1.bf16.msra.mxu0 %v5901_v50  ;;  %v8086_v50 = vld [vmem:[#allocation19_spill] sm:$0xff] }
 0x1d9   :  { %1619 = vmatprep.subr.bf16.mxu0 %v5907_v4  ;;  %v8085_v4 = vld [vmem:[#allocation17_spill] sm:$0xff] }
 0x1dc   :  { %1620 = vmatpush2.bf16.msra.mxu0 %v5913_v53  ;;  %v8084_v53 = vld [vmem:[#allocation15_spill] sm:$0xff] }
 0x1dd   :  { %1621 = vmatprep.subr.bf16.mxu0 %v5919_v39  ;;  %v8088_v39 = vld [vmem:[#allocation23_spill] sm:$0xff] }
 0x1e0   :  { %1622 = vmatpush2.bf16.msra.mxu0 %v8012_v33  ;;  %v8089_v33 = vld [vmem:[#allocation25_spill] sm:$0xff] }
 0x1e1   :  { %1623 = vmatprep.subr.bf16.mxu0 %v8013_v34  ;;  %v8090_v34 = vld [vmem:[#allocation27_spill] sm:$0xff] }
 0x1e4   :  { %1624 = vmatpush2.bf16.msra.mxu0 %v8014_v35  ;;  %v5938_v35 = vld [vmem:[%s7655_s3 + $0x154] ss:$24 sps:$4 sm:$0xff]  }
 0x1e5   :  { %1625 = vmatprep.subr.bf16.mxu0 %v8015_v36  ;;  %8091 = vst [vmem:[#allocation15_spill] sm:$0xff] %v5938_v35 }
 0x1e8   :  { %1626 = vmatpush2.bf16.msra.mxu0 %v8016_v37 }
 0x1e9   :  { %1627 = vmatprep.subr.bf16.mxu0 %v8017_v38 }
 0x1ec   :  { %1628 = vmatpush2.bf16.msra.mxu0 %v8084_v53  ;;  %v8092_v53 = vld [vmem:[#allocation6_spill] sm:$0xff] }
 0x1ed   :  { %1629 = vmatprep.subr.bf16.mxu0 %v8085_v4 }
 0x1f0   :  { %1630 = vmatpush2.bf16.msra.mxu0 %v8086_v50 }
 0x1f1   :  { %1631 = vmatprep.subr.bf16.mxu0 %v8087_v31 }
 0x1f4   :  { %1632 = vmatpush2.bf16.msra.mxu0 %v8088_v39 }
 0x1f5   :  { %1633 = vmatprep.subr.bf16.mxu0 %v8089_v33 }
 0x1f8   :  { %1634 = vmatpush2.bf16.msra.mxu0 %v8090_v34 }
 0x1f9   :  { %1911 = vmatprep.subr.bf16.mxu0 %v5938_v35 }
 0x23b   :  { %v1252_v36 = vpop.f32.mrf.mxu0  ;;  %v1293_v37 = vpop.f32.mrf.mxu1 }
 0x23c   :  { %v1253_v38 = vadd.f32 %v1252_v36, %v5494_v9  ;;  %v8095_v9 = vld [vmem:[#allocation11_spill] sm:$0xff] }
 0x23d   :  { %v1254_v4 = vpop.f32.mrf.mxu0  ;;  %v1295_v50 = vpop.f32.mrf.mxu1 }
 0x23e   :  { %v1342_v31 = vrot.slane %v1253_v38, 7  ;;  %v1346_v39 = vadd.f32 %v1253_v38, %v5503_v58  ;;  %v1255_v33 = vadd.f32 %v1254_v4, %v8092_v53 }
 0x23f   :  { %v1256_v29 = vpop.f32.mrf.mxu0  ;;  %v1297_v34 = vpop.f32.mrf.mxu1 }
 0x240   :  { %v1345_v26 = vadd.f32 %v1342_v31, %v8093_v28  ;;  %v3845_v24 = vmul.f32 -1.442695, %v1346_v39  ;;  %v1360_v35 = vrot.slane %v1255_v33, 7  ;;  %v1364_v36 = vadd.f32 %v1255_v33, %v8094_v1 }
 0x241   :  { %v1257_v22 = vpop.f32.mrf.mxu0  ;;  %v1298_v11 = vpop.f32.mrf.mxu1 }
 0x242   :  { %v3844_v6 = vmul.f32 -1.442695, %v1345_v26  ;;  %4217 = vpow2.f32 %v3845_v24  ;;  %v1363_v63 = vadd.f32 %v1360_v35, %v8095_v9  ;;  %v3847_v61 = vmul.f32 -1.442695, %v1364_v36 }
 0x243   :  { %v1294_v24 = vadd.f32 %v1293_v37, %v5517_v48 }
 0x244   :  { %4219 = vpow2.f32 %v3844_v6  ;;  %v3846_v59 = vmul.f32 -1.442695, %v1363_v63  ;;  %v1296_v6 = vadd.f32 %v1295_v50, %v5521_v8 }
 0x245   :  { %4221 = vpow2.f32 %v3847_v61  ;;  %v1378_v35 = vrot.slane %v1294_v24, 7 }
 0x246   :  { %4223 = vpow2.f32 %v3846_v59  ;;  %v1400_v63 = vrot.slane %v1296_v6, 2  ;;  %v1401_v59 = vrot.slane %v1296_v6, 3  ;;  %v1392_v6 = vrot.slane %v5595_v43, 7 }
 0x24f   :  { %v4218_v38 = vpop.eup %4217 }
 0x250   :  { %v1354_v29 = vadd.f32 1.0, %v4218_v38 }
 0x251   :  { %v4220_v4 = vpop.eup %4219 }
 0x252   :  { %v1353_v34 = vadd.f32 1.0, %v4220_v4  ;;  %4225 = vrcp.f32 %v1354_v29  ;;  %v4222_v22 = vpop.eup %4221  ;;  %v8096_v4 = vld [vmem:[#allocation33_spill] sm:$0xff] }
 0x253   :  { %v4224_v11 = vpop.eup %4223  ;;  %v1372_v26 = vadd.f32 1.0, %v4222_v22  ;;  %v1404_v37 = vadd.f32 %v1400_v63, %v8096_v4 }
 0x254   :  { %4227 = vrcp.f32 %v1353_v34  ;;  %v1371_v31 = vadd.f32 1.0, %v4224_v11  ;;  %v8097_v34 = vld [vmem:[#allocation35_spill] sm:$0xff] }
 0x255   :  { %4229 = vrcp.f32 %v1372_v26  ;;  %v1405_v50 = vadd.f32 %v1401_v59, %v8097_v34  ;;  %v3848_v22 = vmul.f32 -1.442695, %v1404_v37  ;;  %v5955_v59 = vpop.permute.xlu1 %3985 }
 0x256   :  { %4231 = vrcp.f32 %v1371_v31  ;;  %8098 = vst [vmem:[#allocation17_spill] sm:$0xff] %v5955_v59 }
 0x257   :  { %v3849_v11 = vmul.f32 -1.442695, %v1405_v50 }
 0x25f   :  { %v4226_v39 = vpop.eup %4225 }
 0x260   :  { %v1382_v33 = vmul.f32 %v4226_v39, %v1294_v24 }
 0x261   :  { %v4228_v61 = vpop.eup %4227 }
 0x262   :  { %v1381_v36 = vmul.f32 %v4228_v61, %v1378_v35  ;;  %v1384_v38 = vadd.f32 %v1382_v33, %v5534_v16  ;;  %v4230_v24 = vpop.eup %4229 }
 0x263   :  { %v4232_v39 = vpop.eup %4231  ;;  %v1388_v33 = vsub.f32 1.0, %v4230_v24  ;;  %v1396_v63 = vmul.f32 %v4230_v24, %v5595_v43 }
 0x264   :  { %v1383_v29 = vadd.f32 %v1381_v36, %v5528_v40  ;;  %4233 = vtanh.f32 %v1384_v38  ;;  %v1387_v35 = vsub.f32 1.0, %v4232_v39  ;;  %v1395_v36 = vmul.f32 %v4232_v39, %v1392_v6 }
 0x266   :  { %4235 = vtanh.f32 %v1383_v29 }
 0x267   :  { %4237 = vpow2.f32 %v3848_v22  ;;  %v7770_v22 = vunpack.i.h.bf16 %v5955_v59 }
 0x268   :  { %4239 = vpow2.f32 %v3849_v11 }
 0x271   :  { %v4234_v26 = vpop.eup %4233 }
 0x272   :  { %v1390_v61 = vmul.f32 %v4234_v26, %v1388_v33 }
 0x273   :  { %v4236_v31 = vpop.eup %4235 }
 0x274   :  { %v1389_v38 = vmul.f32 %v4236_v31, %v1387_v35  ;;  %v1398_v29 = vadd.f32 %v1396_v63, %v1390_v61  ;;  %v4238_v50 = vpop.eup %4237 }
 0x275   :  { %v4240_v11 = vpop.eup %4239  ;;  %v1412_v26 = vadd.f32 1.0, %v4238_v50 }
 0x276   :  { %v1397_v16 = vadd.f32 %v1395_v36, %v1389_v38  ;;  %v1413_v6 = vadd.f32 1.0, %v4240_v11 }
 0x277   :  { %4241 = vrcp.f32 %v1412_v26 }
 0x278   :  { %v1474_v37 = vrot.slane %v1397_v16, 1  ;;  %4243 = vrcp.f32 %v1413_v6 }
 0x27a   :  { %v1475_v34 = vsel %vm1130_vm9, %v1398_v29, %v1474_v37 }
 0x27b   :  { %v1334_v4 = vpop.f32.mrf.mxu0  ;;  %v1477_v40 = vmul.f32 %v7770_v22, %v1475_v34 }
 0x27c   :  { %v1335_v39 = vadd.f32 %v1334_v4, %v5548_v46 }
 0x27d   :  { %v1336_v24 = vpop.f32.mrf.mxu0  ;;  %v1513_v35 = vrot.slane %v1477_v40, %v5551_v30 }
 0x27e   :  { %v1419_v33 = vrot.slane %v1335_v39, 2  ;;  %v1420_v31 = vrot.slane %v1335_v39, 3  ;;  %v1337_v29 = vadd.f32 %v1336_v24, %v5579_v56 }
 0x27f   :  { %v1338_v16 = vpop.f32.mrf.mxu0  ;;  %v1514_v61 = vcombine.high %v1513_v35, %v1513_v35  ;;  %3854 = vst.sshfl [vmem:[%s7660_s8 + $0x1] sm:$0x1 pattern:$0x73625140] %v1513_v35 }
 0x280   :  { %v1423_v36 = vadd.f32 %v1419_v33, %v5563_v42  ;;  %v1424_v34 = vadd.f32 %v1420_v31, %v5566_v54  ;;  %v1438_v37 = vrot.slane %v1337_v29, 2  ;;  %v1439_v50 = vrot.slane %v1337_v29, 3 }
 0x281   :  { %v1339_v38 = vpop.f32.mrf.mxu0  ;;  %3855 = vst.sshfl [vmem:[%s7660_s8 + $0x11] sm:$0x1 pattern:$0x73625140] %v1514_v61  ;;  %v1454_v29 = vrot.slane %v5597_v62, 3 }
 0x282   :  { %v3850_v4 = vmul.f32 -1.442695, %v1423_v36  ;;  %v3851_v63 = vmul.f32 -1.442695, %v1424_v34  ;;  %v1453_v34 = vrot.slane %v5597_v62, 2 }
 0x284   :  { %4245 = vpow2.f32 %v3850_v4  ;;  %v4242_v11 = vpop.eup %4241 }
 0x285   :  { %4247 = vpow2.f32 %v3851_v63  ;;  %v4244_v26 = vpop.eup %4243  ;;  %v1442_v39 = vmul.f32 %v4242_v11, %v1438_v37 }
 0x286   :  { %v1443_v35 = vmul.f32 %v4244_v26, %v1439_v50 }
 0x287   :  { %v1444_v16 = vadd.f32 %v1442_v39, %v5480_v60 }
 0x288   :  { %v1445_v61 = vadd.f32 %v1443_v35, %v5484_v17  ;;  %v5981_v17 = vpop.permute.xlu0 %1501 }
 0x289   :  { %8100 = vst [vmem:[#allocation21_spill] sm:$0xff] %v5981_v17 }
 0x291   :  { %v4246_v33 = vpop.eup %4245 }
 0x292   :  { %v4248_v31 = vpop.eup %4247  ;;  %v1431_v6 = vadd.f32 1.0, %v4246_v33 }
 0x293   :  { %v1432_v38 = vadd.f32 1.0, %v4248_v31 }
 0x294   :  { %4249 = vrcp.f32 %v1431_v6  ;;  %v5976_v6 = vpop.permute.xlu1 %1481 }
 0x295   :  { %4251 = vrcp.f32 %v1432_v38  ;;  %8099 = vst [vmem:[#allocation19_spill] sm:$0xff] %v5976_v6  ;;  %v1484_v22 = vmul.f32 %v5976_v6, %v5595_v43  ;;  %v6142_v6 = vld [vmem:[%s7655_s3 + $0x284] ss:$24 sps:$4 sm:$0xff]  }
 0x296   :  { %4253 = vtanh.f32 %v1444_v16  ;;  %8104 = vst [vmem:[#allocation56_spill] sm:$0xff] %v6142_v6 }
 0x297   :  { %4255 = vtanh.f32 %v1445_v61  ;;  %v7775_v61 = vunpack.i.l.bf16 %v5955_v59  ;;  %v6156_v59 = vld [vmem:[%s7655_s3 + $0x254] ss:$24 sps:$4 sm:$0xff]  }
 0x298   :  { %8106 = vst [vmem:[#allocation58_spill] sm:$0xff] %v6156_v59 }
 0x2a1   :  { %v4250_v36 = vpop.eup %4249 }
 0x2a2   :  { %v4252_v24 = vpop.eup %4251  ;;  %v1448_v4 = vsub.f32 1.0, %v4250_v36  ;;  %v1457_v26 = vmul.f32 %v4250_v36, %v1453_v34  ;;  %v1504_v36 = vmul.f32 %v5981_v17, %v5597_v62  ;;  %v5988_v34 = vadd.f32 %v1484_v22, %v1477_v40  ;;  %v6016_v40 = vld [vmem:[%s7655_s3 + $0x134] ss:$24 sps:$4 sm:$0xff]   ;;  %v6024_v22 = vld [vmem:[%s7655_s3 + $0x130] ss:$24 sps:$4 sm:$0xff]  }
 0x2a3   :  { %v4254_v63 = vpop.eup %4253  ;;  %v1449_v37 = vsub.f32 1.0, %v4252_v24  ;;  %v1458_v33 = vmul.f32 %v4252_v24, %v1454_v29  ;;  %v6150_v17 = vld [vmem:[%s7655_s3 + $0x280] ss:$24 sps:$4 sm:$0xff]  }
 0x2a4   :  { %v4256_v50 = vpop.eup %4255  ;;  %v1450_v11 = vmul.f32 %v4254_v63, %v1448_v4  ;;  %v6000_v62 = vpack.c.bf16 %v5988_v34, %v5988_v34  ;;  %8105 = vst [vmem:[#allocation57_spill] sm:$0xff] %v6150_v17 }
 0x2a5   :  { %v1451_v39 = vmul.f32 %v4256_v50, %v1449_v37  ;;  %v6030_v37 = vld [vmem:[%s7655_s3 + $0x104] ss:$24 sps:$4 sm:$0xff]   ;;  %v6038_v50 = vld [vmem:[%s7655_s3 + $0x100] ss:$24 sps:$4 sm:$0xff]  }
 0x2a6   :  { %v1459_v31 = vadd.f32 %v1457_v26, %v1450_v11  ;;  %v6044_v11 = vld [vmem:[%s7655_s3 + $0xd4] ss:$24 sps:$4 sm:$0xff]   ;;  %v6052_v26 = vld [vmem:[%s7655_s3 + $0xd0] ss:$24 sps:$4 sm:$0xff]  }
 0x2a7   :  { %v1460_v35 = vadd.f32 %v1458_v33, %v1451_v39  ;;  %v6058_v39 = vld [vmem:[%s7655_s3 + $0xa4] ss:$24 sps:$4 sm:$0xff]   ;;  %v6066_v33 = vld [vmem:[%s7655_s3 + $0xa0] ss:$24 sps:$4 sm:$0xff]  }
 0x2a8   :  { %v1493_v16 = vrot.slane %v1459_v31, 6  ;;  %v6072_v31 = vld [vmem:[%s7655_s3 + $0x74] ss:$24 sps:$4 sm:$0xff]  }
 0x2a9   :  { %v1494_v38 = vrot.slane %v1460_v35, 5  ;;  %v6080_v35 = vld [vmem:[%s7655_s3 + $0x70] ss:$24 sps:$4 sm:$0xff]  }
 0x2ab   :  { %v1495_v60 = vsel %vm1130_vm9, %v1494_v38, %v1493_v16  ;;  %v6086_v16 = vld [vmem:[%s7655_s3 + $0x44] ss:$24 sps:$4 sm:$0xff]   ;;  %v6094_v38 = vld [vmem:[%s7655_s3 + $0x40] ss:$24 sps:$4 sm:$0xff]  }
 0x2ac   :  { %v1497_v24 = vmul.f32 %v7775_v61, %v1495_v60  ;;  %v6010_v60 = vld [vmem:[%s7655_s3 + $0x160] ss:$24 sps:$4 sm:$0xff]   ;;  %v6136_v61 = vld [vmem:[%s7655_s3 + $0x2b0] ss:$24 sps:$4 sm:$0xff]  }
 0x2ad   :  { %8103 = vst [vmem:[#allocation27_spill] sm:$0xff] %v6136_v61 }
 0x2ae   :  { %v5990_v4 = vadd.f32 %v1504_v36, %v1497_v24  ;;  %v1540_v63 = vrot.slane %v1497_v24, %v5551_v30  ;;  %v6100_v36 = vld [vmem:[%s7655_s3 + $0x14] ss:$24 sps:$4 sm:$0xff]   ;;  %v6108_v24 = vld [vmem:[%s7655_s3 + $0x10] ss:$24 sps:$4 sm:$0xff]  }
 0x2b0   :  { %v1541_v29 = vcombine.high %v1540_v63, %v1540_v63  ;;  %3856 = vst.sshfl [vmem:[%s7660_s8 + $0xe] sm:$0x1 pattern:$0x73625140] %v1540_v63  ;;  %v1561_v43 = vpack.c.bf16 %v5990_v4, %v5990_v4  ;;  %v6114_v63 = vld [vmem:[%s7655_s3 + $0x2e4] ss:$24 sps:$4 sm:$0xff]  }
 0x2b2   :  { %3857 = vst.sshfl [vmem:[%s7660_s8 + $0x1e] sm:$0x1 pattern:$0x73625140] %v1541_v29  ;;  %1594 = vmatprep.mubr.bf16.mxu1 %v1561_v43  ;;  %1635 = vmatprep.mubr.bf16.mxu0 %v1561_v43  ;;  %v6122_v29 = vld [vmem:[%s7655_s3 + $0x2e0] ss:$24 sps:$4 sm:$0xff]  }
 0x2b3   :  { %1595 = vmatmul.mubr.bf16.vlgmr.msra.gmra.mxu1 %v6000_v62  ;;  %1636 = vmatmul.mubr.bf16.vlgmr.msra.gmra.mxu0 %v6000_v62  ;;  %8101 = vst [vmem:[#allocation23_spill] sm:$0xff] %v6122_v29 }
 0x2b4   :  { %1645 = vmatpush1.bf16.msra.mxu1 %v6010_v60  ;;  %1676 = vmatprep.mubr.bf16.mxu1 %v1561_v43  ;;  %v6128_v43 = vld [vmem:[%s7655_s3 + $0x2b4] ss:$24 sps:$4 sm:$0xff]  }
 0x2b5   :  { %1646 = vmatprep.subr.bf16.mxu1 %v6016_v40  ;;  %1912 = vmatpush1.bf16.msra.mxu0 %v5619_v7  ;;  %8102 = vst [vmem:[#allocation25_spill] sm:$0xff] %v6128_v43 }
 0x2b6   :  { %1913 = vmatprep.subr.bf16.mxu0 %v5625_v45 }
 0x2b8   :  { %1647 = vmatpush1.bf16.msra.mxu1 %v6024_v22 }
 0x2b9   :  { %1648 = vmatprep.subr.bf16.mxu1 %v6030_v37  ;;  %1914 = vmatpush1.bf16.msra.mxu0 %v5633_v49 }
 0x2ba   :  { %1915 = vmatprep.subr.bf16.mxu0 %v5639_v51 }
 0x2bc   :  { %1649 = vmatpush1.bf16.msra.mxu1 %v6038_v50 }
 0x2bd   :  { %1650 = vmatprep.subr.bf16.mxu1 %v6044_v11  ;;  %1916 = vmatpush1.bf16.msra.mxu0 %v5647_v27 }
 0x2be   :  { %1917 = vmatprep.subr.bf16.mxu0 %v5653_v47 }
 0x2c0   :  { %1651 = vmatpush1.bf16.msra.mxu1 %v6052_v26 }
 0x2c1   :  { %1652 = vmatprep.subr.bf16.mxu1 %v6058_v39  ;;  %1918 = vmatpush1.bf16.msra.mxu0 %v5661_v55 }
 0x2c2   :  { %1919 = vmatprep.subr.bf16.mxu0 %v5667_v41 }
 0x2c4   :  { %1653 = vmatpush1.bf16.msra.mxu1 %v6066_v33 }
 0x2c5   :  { %1654 = vmatprep.subr.bf16.mxu1 %v6072_v31  ;;  %1920 = vmatpush1.bf16.msra.mxu0 %v5675_v0 }
 0x2c6   :  { %1921 = vmatprep.subr.bf16.mxu0 %v5681_v12 }
 0x2c8   :  { %1655 = vmatpush1.bf16.msra.mxu1 %v6080_v35 }
 0x2c9   :  { %1656 = vmatprep.subr.bf16.mxu1 %v6086_v16  ;;  %1922 = vmatpush1.bf16.msra.mxu0 %v5689_v44 }
 0x2ca   :  { %1923 = vmatprep.subr.bf16.mxu0 %v5695_v21 }
 0x2cc   :  { %1657 = vmatpush1.bf16.msra.mxu1 %v6094_v38 }
 0x2cd   :  { %1658 = vmatprep.subr.bf16.mxu1 %v6100_v36  ;;  %1924 = vmatpush1.bf16.msra.mxu0 %v5703_v32 }
 0x2ce   :  { %1925 = vmatprep.subr.bf16.mxu0 %v5709_v52 }
 0x2d0   :  { %1659 = vmatpush1.bf16.msra.mxu1 %v6108_v24 }
 0x2d1   :  { %1660 = vmatprep.subr.bf16.mxu1 %v6114_v63  ;;  %1926 = vmatpush1.bf16.msra.mxu0 %v5717_v23 }
 0x2d2   :  { %1927 = vmatprep.subr.bf16.mxu0 %v5723_v57 }
 0x2d4   :  { %1661 = vmatpush2.bf16.msra.mxu1 %v6122_v29 }
 0x2d5   :  { %1662 = vmatprep.subr.bf16.mxu1 %v6128_v43  ;;  %1928 = vmatpush2.bf16.msra.mxu0 %v5731_v3 }
 0x2d6   :  { %1929 = vmatprep.subr.bf16.mxu0 %v5737_v10 }
 0x2d8   :  { %1663 = vmatpush2.bf16.msra.mxu1 %v6136_v61 }
 0x2d9   :  { %1664 = vmatprep.subr.bf16.mxu1 %v6142_v6  ;;  %1930 = vmatpush2.bf16.msra.mxu0 %v5745_v13 }
 0x2da   :  { %1931 = vmatprep.subr.bf16.mxu0 %v5751_v5  ;;  %v6164_v5 = vld [vmem:[%s7655_s3 + $0x250] ss:$24 sps:$4 sm:$0xff]  }
 0x2db   :  { %8107 = vst [vmem:[#allocation59_spill] sm:$0xff] %v6164_v5 }
 0x2dc   :  { %1665 = vmatpush2.bf16.msra.mxu1 %v6150_v17  ;;  %v6170_v17 = vld [vmem:[%s7655_s3 + $0x224] ss:$24 sps:$4 sm:$0xff]  }
 0x2dd   :  { %1666 = vmatprep.subr.bf16.mxu1 %v6156_v59  ;;  %1932 = vmatpush2.bf16.msra.mxu0 %v5759_v14  ;;  %8108 = vst [vmem:[#allocation60_spill] sm:$0xff] %v6170_v17  ;;  %v8129_v14 = vld [vmem:[#allocation45_spill] sm:$0xff]  ;;  %v8130_v59 = vld [vmem:[#allocation46_spill] sm:$0xff] }
 0x2de   :  { %1933 = vmatprep.subr.bf16.mxu0 %v5765_v2  ;;  %v6178_v2 = vld [vmem:[%s7655_s3 + $0x220] ss:$24 sps:$4 sm:$0xff]  }
 0x2df   :  { %8109 = vst [vmem:[#allocation61_spill] sm:$0xff] %v6178_v2 }
 0x2e0   :  { %1667 = vmatpush2.bf16.msra.mxu1 %v6164_v5  ;;  %v6184_v5 = vld [vmem:[%s7655_s3 + $0x1f4] ss:$24 sps:$4 sm:$0xff]  }
 0x2e1   :  { %1668 = vmatprep.subr.bf16.mxu1 %v6170_v17  ;;  %1934 = vmatpush2.bf16.msra.mxu0 %v5773_v19  ;;  %8110 = vst [vmem:[#allocation62_spill] sm:$0xff] %v6184_v5  ;;  %v8126_v19 = vld [vmem:[#allocation42_spill] sm:$0xff]  ;;  %v8128_v17 = vld [vmem:[#allocation44_spill] sm:$0xff] }
 0x2e2   :  { %1935 = vmatprep.subr.bf16.mxu0 %v5779_v25  ;;  %v6192_v25 = vld [vmem:[%s7655_s3 + $0x1f0] ss:$24 sps:$4 sm:$0xff]  }
 0x2e3   :  { %8111 = vst [vmem:[#allocation63_spill] sm:$0xff] %v6192_v25 }
 0x2e4   :  { %1669 = vmatpush2.bf16.msra.mxu1 %v6178_v2  ;;  %v6198_v2 = vld [vmem:[%s7655_s3 + $0x1c4] ss:$24 sps:$4 sm:$0xff]  }
 0x2e5   :  { %1670 = vmatprep.subr.bf16.mxu1 %v6184_v5  ;;  %1936 = vmatpush2.bf16.msra.mxu0 %v5787_v15  ;;  %8112 = vst [vmem:[#allocation64_spill] sm:$0xff] %v6198_v2  ;;  %v6204_v15 = vld [vmem:[%s7655_s3 + $0x1e0] ss:$24 sps:$4 sm:$0xff]  }
 0x2e6   :  { %1937 = vmatprep.subr.bf16.mxu0 %v5793_v18  ;;  %8113 = vst [vmem:[#allocation65_spill] sm:$0xff] %v6204_v15  ;;  %v6210_v18 = vld [vmem:[%s7655_s3 + $0x1b4] ss:$24 sps:$4 sm:$0xff]   ;;  %v8125_v5 = vld [vmem:[#allocation41_spill] sm:$0xff] }
 0x2e7   :  { %8114 = vst [vmem:[#allocation66_spill] sm:$0xff] %v6210_v18 }
 0x2e8   :  { %1671 = vmatpush2.bf16.msra.mxu1 %v6192_v25  ;;  %v6216_v25 = vld [vmem:[%s7655_s3 + $0x1c0] ss:$24 sps:$4 sm:$0xff]  }
 0x2e9   :  { %1672 = vmatprep.subr.bf16.mxu1 %v6198_v2  ;;  %1938 = vmatpush2.bf16.msra.mxu0 %v6204_v15  ;;  %8115 = vst [vmem:[#allocation67_spill] sm:$0xff] %v6216_v25  ;;  %v6222_v2 = vld [vmem:[%s7655_s3 + $0x194] ss:$24 sps:$4 sm:$0xff]   ;;  %v6228_v15 = vld [vmem:[%s7655_s3 + $0x1b0] ss:$24 sps:$4 sm:$0xff]  }
 0x2ea   :  { %1939 = vmatprep.subr.bf16.mxu0 %v6210_v18  ;;  %8116 = vst [vmem:[#allocation68_spill] sm:$0xff] %v6222_v2  ;;  %8117 = vst [vmem:[#allocation69_spill] sm:$0xff] %v6228_v15  ;;  %v6234_v18 = vld [vmem:[%s7655_s3 + $0x184] ss:$24 sps:$4 sm:$0xff]  }
 0x2eb   :  { %8118 = vst [vmem:[#allocation70_spill] sm:$0xff] %v6234_v18 }
 0x2ec   :  { %1673 = vmatpush2.bf16.msra.mxu1 %v6216_v25  ;;  %v6240_v25 = vld [vmem:[%s7655_s3 + $0x190] ss:$24 sps:$4 sm:$0xff]  }
 0x2ed   :  { %1674 = vmatprep.subr.bf16.mxu1 %v6222_v2  ;;  %1940 = vmatpush2.bf16.msra.mxu0 %v6228_v15  ;;  %8119 = vst [vmem:[#allocation71_spill] sm:$0xff] %v6240_v25  ;;  %v6247_v15 = vld [vmem:[%s7655_s3 + $0x180] ss:$24 sps:$4 sm:$0xff]  }
 0x2ee   :  { %1941 = vmatprep.subr.bf16.mxu0 %v6234_v18  ;;  %8120 = vst [vmem:[#allocation72_spill] sm:$0xff] %v6247_v15  ;;  %v6253_v18 = vld [vmem:[%s7655_s3 + $0x164] ss:$24 sps:$4 sm:$0xff]  }
 0x2ef   :  { %8121 = vst [vmem:[#allocation73_spill] sm:$0xff] %v6253_v18  ;;  %v8122_v2 = vld [vmem:[#allocation30_spill] sm:$0xff] }
 0x2f0   :  { %1675 = vmatpush2.bf16.msra.mxu1 %v6240_v25  ;;  %v8123_v25 = vld [vmem:[#allocation39_spill] sm:$0xff] }
 0x2f1   :  { %1952 = vmatprep.subr.bf16.mxu1 %v5808_v20  ;;  %1942 = vmatpush2.bf16.msra.mxu0 %v6247_v15  ;;  %v8124_v20 = vld [vmem:[#allocation40_spill] sm:$0xff]  ;;  %v8127_v15 = vld [vmem:[#allocation43_spill] sm:$0xff] }
 0x2f2   :  { %1993 = vmatprep.subr.bf16.mxu0 %v6253_v18  ;;  %v8131_v18 = vld [vmem:[#allocation47_spill] sm:$0xff] }
 0x2f3   :  { %1677 = vmatmul.mubr.bf16.vlgmr.msra.gmra.mxu1 %v6000_v62  ;;  %v8132_v62 = vld [vmem:[#allocation48_spill] sm:$0xff] }
 0x2f4   :  { %1953 = vmatpush1.bf16.msra.mxu1 %v8122_v2  ;;  %v8133_v2 = vld [vmem:[#allocation49_spill] sm:$0xff] }
 0x2f5   :  { %1954 = vmatprep.subr.bf16.mxu1 %v8123_v25  ;;  %v8134_v25 = vld [vmem:[#allocation50_spill] sm:$0xff] }
 0x2f8   :  { %1955 = vmatpush1.bf16.msra.mxu1 %v8124_v20  ;;  %v8135_v20 = vld [vmem:[#allocation51_spill] sm:$0xff] }
 0x2f9   :  { %1956 = vmatprep.subr.bf16.mxu1 %v8125_v5  ;;  %v8136_v5 = vld [vmem:[#allocation52_spill] sm:$0xff] }
 0x2fc   :  { %1957 = vmatpush1.bf16.msra.mxu1 %v8126_v19  ;;  %v8137_v19 = vld [vmem:[#allocation53_spill] sm:$0xff] }
 0x2fd   :  { %1958 = vmatprep.subr.bf16.mxu1 %v8127_v15  ;;  %v8138_v15 = vld [vmem:[#allocation54_spill] sm:$0xff] }
 0x300   :  { %1959 = vmatpush1.bf16.msra.mxu1 %v8128_v17  ;;  %v8139_v17 = vld [vmem:[#allocation55_spill] sm:$0xff] }
 0x301   :  { %1960 = vmatprep.subr.bf16.mxu1 %v8129_v14 }
 0x304   :  { %1961 = vmatpush1.bf16.msra.mxu1 %v8130_v59 }
 0x305   :  { %1962 = vmatprep.subr.bf16.mxu1 %v8131_v18  ;;  %v6278_v18 = vld [vmem:[%s7655_s3 + $0x2a8] ss:$24 sps:$4 sm:$0xff]  }
 0x306   :  { %8140 = vst [vmem:[#allocation74_spill] sm:$0xff] %v6278_v18 }
 0x308   :  { %1963 = vmatpush1.bf16.msra.mxu1 %v8132_v62 }
 0x309   :  { %1964 = vmatprep.subr.bf16.mxu1 %v8133_v2 }
 0x30c   :  { %1965 = vmatpush1.bf16.msra.mxu1 %v8134_v25  ;;  %v6284_v25 = vld [vmem:[%s7655_s3 + $0x27c] ss:$24 sps:$4 sm:$0xff]  }
 0x30d   :  { %1966 = vmatprep.subr.bf16.mxu1 %v8135_v20  ;;  %8141 = vst [vmem:[#allocation75_spill] sm:$0xff] %v6284_v25  ;;  %v8154_v20 = vld [vmem:[#allocation5_spill] sm:$0xff] }
 0x310   :  { %1967 = vmatpush1.bf16.msra.mxu1 %v8136_v5 }
 0x311   :  { %1968 = vmatprep.subr.bf16.mxu1 %v8137_v19 }
 0x314   :  { %1969 = vmatpush2.bf16.msra.mxu1 %v8138_v15  ;;  %v6290_v15 = vld [vmem:[%s7655_s3 + $0x278] ss:$24 sps:$4 sm:$0xff]  }
 0x315   :  { %1970 = vmatprep.subr.bf16.mxu1 %v8139_v17  ;;  %8142 = vst [vmem:[#allocation76_spill] sm:$0xff] %v6290_v15  ;;  %v6296_v17 = vld [vmem:[%s7655_s3 + $0x24c] ss:$24 sps:$4 sm:$0xff]  }
 0x316   :  { %8143 = vst [vmem:[#allocation77_spill] sm:$0xff] %v6296_v17 }
 0x318   :  { %1971 = vmatpush2.bf16.msra.mxu1 %v6278_v18  ;;  %v6302_v18 = vld [vmem:[%s7655_s3 + $0x248] ss:$24 sps:$4 sm:$0xff]  }
 0x319   :  { %1972 = vmatprep.subr.bf16.mxu1 %v6284_v25  ;;  %8144 = vst [vmem:[#allocation78_spill] sm:$0xff] %v6302_v18  ;;  %v6308_v25 = vld [vmem:[%s7655_s3 + $0x21c] ss:$24 sps:$4 sm:$0xff]  }
 0x31a   :  { %8145 = vst [vmem:[#allocation79_spill] sm:$0xff] %v6308_v25 }
 0x31c   :  { %1973 = vmatpush2.bf16.msra.mxu1 %v6290_v15  ;;  %v6314_v15 = vld [vmem:[%s7655_s3 + $0x218] ss:$24 sps:$4 sm:$0xff]  }
 0x31d   :  { %1974 = vmatprep.subr.bf16.mxu1 %v6296_v17  ;;  %8146 = vst [vmem:[#allocation80_spill] sm:$0xff] %v6314_v15  ;;  %v6320_v17 = vld [vmem:[%s7655_s3 + $0x1ec] ss:$24 sps:$4 sm:$0xff]  }
 0x31e   :  { %8147 = vst [vmem:[#allocation81_spill] sm:$0xff] %v6320_v17 }
 0x320   :  { %1975 = vmatpush2.bf16.msra.mxu1 %v6302_v18  ;;  %v6326_v18 = vld [vmem:[%s7655_s3 + $0x1e8] ss:$24 sps:$4 sm:$0xff]  }
 0x321   :  { %1976 = vmatprep.subr.bf16.mxu1 %v6308_v25  ;;  %8148 = vst [vmem:[#allocation82_spill] sm:$0xff] %v6326_v18  ;;  %v6332_v25 = vld [vmem:[%s7655_s3 + $0x1bc] ss:$24 sps:$4 sm:$0xff]  }
 0x322   :  { %8149 = vst [vmem:[#allocation83_spill] sm:$0xff] %v6332_v25 }
 0x324   :  { %1977 = vmatpush2.bf16.msra.mxu1 %v6314_v15  ;;  %v6338_v15 = vld [vmem:[%s7655_s3 + $0x1b8] ss:$24 sps:$4 sm:$0xff]  }
 0x325   :  { %1978 = vmatprep.subr.bf16.mxu1 %v6320_v17  ;;  %8150 = vst [vmem:[#allocation84_spill] sm:$0xff] %v6338_v15  ;;  %v6344_v17 = vld [vmem:[%s7655_s3 + $0x18c] ss:$24 sps:$4 sm:$0xff]  }
 0x326   :  { %8151 = vst [vmem:[#allocation85_spill] sm:$0xff] %v6344_v17 }
 0x328   :  { %1979 = vmatpush2.bf16.msra.mxu1 %v6326_v18  ;;  %v6350_v18 = vld [vmem:[%s7655_s3 + $0x188] ss:$24 sps:$4 sm:$0xff]  }
 0x329   :  { %1980 = vmatprep.subr.bf16.mxu1 %v6332_v25  ;;  %8152 = vst [vmem:[#allocation86_spill] sm:$0xff] %v6350_v18  ;;  %v8153_v25 = vld [vmem:[#allocation15_spill] sm:$0xff] }
 0x32c   :  { %1981 = vmatpush2.bf16.msra.mxu1 %v6338_v15 }
 0x32d   :  { %1982 = vmatprep.subr.bf16.mxu1 %v6344_v17 }
 0x330   :  { %1983 = vmatpush2.bf16.msra.mxu1 %v6350_v18 }
 0x331   :  { %2260 = vmatprep.subr.bf16.mxu1 %v8153_v25 }
 0x373   :  { %v1596_v19 = vpop.f32.mrf.mxu1  ;;  %v1637_v5 = vpop.f32.mrf.mxu0 }
 0x374   :  { %v1597_v15 = vadd.f32 %v1596_v19, %v8154_v20 }
 0x375   :  { %v1598_v2 = vpop.f32.mrf.mxu1  ;;  %v1639_v62 = vpop.f32.mrf.mxu0 }
 0x376   :  { %v1686_v59 = vrot.slane %v1597_v15, 6  ;;  %v1687_v14 = vrot.slane %v1597_v15, 7  ;;  %v1599_v13 = vadd.f32 %v1598_v2, %v8092_v53 }
 0x377   :  { %v1600_v17 = vpop.f32.mrf.mxu1  ;;  %v1641_v6 = vpop.f32.mrf.mxu0 }
 0x378   :  { %v1690_v61 = vadd.f32 %v1686_v59, %v8093_v28  ;;  %v1691_v10 = vadd.f32 %v1687_v14, %v5503_v58  ;;  %v1705_v29 = vrot.slane %v1599_v13, 6  ;;  %v1706_v57 = vrot.slane %v1599_v13, 7 }
 0x379   :  { %v1601_v3 = vpop.f32.mrf.mxu1  ;;  %v1642_v18 = vpop.f32.mrf.mxu0  ;;  %v1638_v13 = vadd.f32 %v1637_v5, %v5517_v48  ;;  %v8158_v48 = vld [vmem:[#allocation35_spill] sm:$0xff] }
 0x37a   :  { %v3858_v43 = vmul.f32 -1.442695, %v1690_v61  ;;  %v3859_v25 = vmul.f32 -1.442695, %v1691_v10  ;;  %v1709_v19 = vadd.f32 %v1705_v29, %v8095_v9  ;;  %v1710_v15 = vadd.f32 %v1706_v57, %v8094_v1  ;;  %v8157_v9 = vld [vmem:[#allocation34_spill] sm:$0xff] }
 0x37b   :  { %v1724_v29 = vrot.slane %v1638_v13, 6 }
 0x37c   :  { %4257 = vpow2.f32 %v3858_v43  ;;  %v3860_v20 = vmul.f32 -1.442695, %v1709_v19  ;;  %v3861_v2 = vmul.f32 -1.442695, %v1710_v15  ;;  %v1725_v19 = vrot.slane %v1638_v13, 7 }
 0x37d   :  { %4259 = vpow2.f32 %v3859_v25  ;;  %v1640_v25 = vadd.f32 %v1639_v62, %v5521_v8 }
 0x37e   :  { %4261 = vpow2.f32 %v3860_v20 }
 0x37f   :  { %4263 = vpow2.f32 %v3861_v2  ;;  %v1748_v57 = vrot.slane %v1640_v25, 3  ;;  %v1749_v20 = vrot.slane %v1640_v25, 4 }
 0x381   :  { %v1753_v62 = vadd.f32 %v1749_v20, %v8158_v48 }
 0x389   :  { %v4258_v17 = vpop.eup %4257 }
 0x38a   :  { %v4260_v59 = vpop.eup %4259  ;;  %v1698_v6 = vadd.f32 1.0, %v4258_v17 }
 0x38b   :  { %v1699_v14 = vadd.f32 1.0, %v4260_v59  ;;  %v4262_v3 = vpop.eup %4261  ;;  %v8155_v59 = vld [vmem:[#allocation32_spill] sm:$0xff] }
 0x38c   :  { %4265 = vrcp.f32 %v1698_v6  ;;  %v4264_v10 = vpop.eup %4263  ;;  %v1717_v18 = vadd.f32 1.0, %v4262_v3 }
 0x38d   :  { %4267 = vrcp.f32 %v1699_v14  ;;  %v1718_v61 = vadd.f32 1.0, %v4264_v10  ;;  %v8156_v14 = vld [vmem:[#allocation33_spill] sm:$0xff]  ;;  %v3863_v10 = vmul.f32 -1.442695, %v1753_v62 }
 0x38e   :  { %4269 = vrcp.f32 %v1717_v18  ;;  %v1752_v1 = vadd.f32 %v1748_v57, %v8156_v14  ;;  %v1739_v18 = vrot.slane %v5988_v34, 6 }
 0x38f   :  { %4271 = vrcp.f32 %v1718_v61 }
 0x390   :  { %v3862_v3 = vmul.f32 -1.442695, %v1752_v1 }
 0x399   :  { %v4266_v43 = vpop.eup %4265 }
 0x39a   :  { %v4268_v15 = vpop.eup %4267  ;;  %v1728_v2 = vmul.f32 %v4266_v43, %v1724_v29  ;;  %v1740_v43 = vrot.slane %v5988_v34, 7 }
 0x39b   :  { %v1729_v17 = vmul.f32 %v4268_v15, %v1725_v19  ;;  %v4270_v13 = vpop.eup %4269 }
 0x39c   :  { %v1730_v6 = vadd.f32 %v1728_v2, %v8155_v59  ;;  %v4272_v25 = vpop.eup %4271  ;;  %v1734_v29 = vsub.f32 1.0, %v4270_v13  ;;  %v1743_v15 = vmul.f32 %v4270_v13, %v1739_v18 }
 0x39d   :  { %v1731_v5 = vadd.f32 %v1729_v17, %v8157_v9  ;;  %v1735_v19 = vsub.f32 1.0, %v4272_v25  ;;  %v1744_v17 = vmul.f32 %v4272_v25, %v1740_v43 }
 0x39e   :  { %4273 = vtanh.f32 %v1730_v6 }
 0x39f   :  { %4275 = vtanh.f32 %v1731_v5 }
 0x3a0   :  { %4277 = vpow2.f32 %v3862_v3  ;;  %v6368_v3 = vpop.permute.xlu0 %3990 }
 0x3a1   :  { %4279 = vpow2.f32 %v3863_v10  ;;  %8159 = vst [vmem:[#allocation87_spill] sm:$0xff] %v6368_v3  ;;  %v7868_v9 = vunpack.i.h.bf16 %v6368_v3 }
 0x3ab   :  { %v4274_v61 = vpop.eup %4273 }
 0x3ac   :  { %v4276_v57 = vpop.eup %4275  ;;  %v1736_v2 = vmul.f32 %v4274_v61, %v1734_v29 }
 0x3ad   :  { %v1737_v20 = vmul.f32 %v4276_v57, %v1735_v19  ;;  %v4278_v62 = vpop.eup %4277 }
 0x3ae   :  { %v1745_v6 = vadd.f32 %v1743_v15, %v1736_v2  ;;  %v4280_v48 = vpop.eup %4279  ;;  %v1760_v8 = vadd.f32 1.0, %v4278_v62 }
 0x3af   :  { %v1746_v5 = vadd.f32 %v1744_v17, %v1737_v20  ;;  %v1761_v25 = vadd.f32 1.0, %v4280_v48 }
 0x3b0   :  { %v1822_v1 = vrot.slane %v1745_v6, 2  ;;  %4281 = vrcp.f32 %v1760_v8 }
 0x3b1   :  { %v1823_v10 = vrot.slane %v1746_v5, 1  ;;  %4283 = vrcp.f32 %v1761_v25 }
 0x3b3   :  { %v1678_v14 = vpop.f32.mrf.mxu1  ;;  %v1824_v59 = vsel %vm1130_vm9, %v1823_v10, %v1822_v1 }
 0x3b4   :  { %v1679_v58 = vadd.f32 %v1678_v14, %v5548_v46  ;;  %v1826_v13 = vmul.f32 %v7868_v9, %v1824_v59 }
 0x3b5   :  { %v1680_v18 = vpop.f32.mrf.mxu1 }
 0x3b6   :  { %v1767_v29 = vrot.slane %v1679_v58, 3  ;;  %v1768_v61 = vrot.slane %v1679_v58, 4  ;;  %v1862_v19 = vrot.slane %v1826_v13, %v5551_v30  ;;  %v1681_v58 = vadd.f32 %v1680_v18, %v5579_v56 }
 0x3b7   :  { %v1682_v43 = vpop.f32.mrf.mxu1 }
 0x3b8   :  { %v1771_v57 = vadd.f32 %v1767_v29, %v5563_v42  ;;  %v1772_v15 = vadd.f32 %v1768_v61, %v5566_v54  ;;  %v1863_v17 = vcombine.high %v1862_v19, %v1862_v19  ;;  %3868 = vst.sshfl [vmem:[%s7660_s8 + $0x2] sm:$0x1 pattern:$0x73625140] %v1862_v19  ;;  %v1786_v8 = vrot.slane %v1681_v58, 3  ;;  %v8160_v29 = vld [vmem:[#allocation3_spill] sm:$0xff] }
 0x3b9   :  { %v1683_v2 = vpop.f32.mrf.mxu1  ;;  %v1787_v14 = vrot.slane %v1681_v58, 4  ;;  %v8161_v19 = vld [vmem:[#allocation4_spill] sm:$0xff] }
 0x3ba   :  { %v3864_v59 = vmul.f32 -1.442695, %v1771_v57  ;;  %v3865_v48 = vmul.f32 -1.442695, %v1772_v15  ;;  %v1801_v2 = vrot.slane %v5990_v4, 3 }
 0x3bb   :  { %3869 = vst.sshfl [vmem:[%s7660_s8 + $0x12] sm:$0x1 pattern:$0x73625140] %v1863_v17 }
 0x3bc   :  { %4285 = vpow2.f32 %v3864_v59 }
 0x3bd   :  { %4287 = vpow2.f32 %v3865_v48  ;;  %v4282_v20 = vpop.eup %4281  ;;  %v1802_v48 = vrot.slane %v5990_v4, 4 }
 0x3be   :  { %v4284_v6 = vpop.eup %4283  ;;  %v1790_v5 = vmul.f32 %v4282_v20, %v1786_v8 }
 0x3bf   :  { %v1791_v1 = vmul.f32 %v4284_v6, %v1787_v14 }
 0x3c0   :  { %v1792_v61 = vadd.f32 %v1790_v5, %v8160_v29 }
 0x3c1   :  { %v1793_v57 = vadd.f32 %v1791_v1, %v8161_v19 }
 0x3c9   :  { %v4286_v62 = vpop.eup %4285 }
 0x3ca   :  { %v4288_v10 = vpop.eup %4287  ;;  %v1779_v25 = vadd.f32 1.0, %v4286_v62 }
 0x3cb   :  { %v1780_v43 = vadd.f32 1.0, %v4288_v10 }
 0x3cc   :  { %4289 = vrcp.f32 %v1779_v25 }
 0x3cd   :  { %4291 = vrcp.f32 %v1780_v43  ;;  %v6390_v43 = vpop.permute.xlu0 %1830 }
 0x3ce   :  { %4293 = vtanh.f32 %v1792_v61  ;;  %v7869_v61 = vunpack.i.l.bf16 %v6368_v3  ;;  %8162 = vst [vmem:[#allocation3_spill] sm:$0xff] %v6390_v43  ;;  %v1833_v19 = vmul.f32 %v6390_v43, %v5988_v34  ;;  %v8229_v3 = vld [vmem:[#allocation5_spill] sm:$0xff] }
 0x3cf   :  { %4295 = vtanh.f32 %v1793_v57  ;;  %v6392_v57 = vpop.permute.xlu1 %1850 }
 0x3d0   :  { %8163 = vst [vmem:[#allocation88_spill] sm:$0xff] %v6392_v57 }
 0x3d9   :  { %v4290_v15 = vpop.eup %4289 }
 0x3da   :  { %v4292_v18 = vpop.eup %4291  ;;  %v1796_v17 = vsub.f32 1.0, %v4290_v15  ;;  %v1805_v20 = vmul.f32 %v4290_v15, %v1801_v2  ;;  %v6401_v2 = vadd.f32 %v1833_v19, %v1826_v13  ;;  %v8180_v13 = vld [vmem:[#allocation24_spill] sm:$0xff]  ;;  %v8181_v19 = vld [vmem:[#allocation61_spill] sm:$0xff] }
 0x3db   :  { %v4294_v59 = vpop.eup %4293  ;;  %v1797_v58 = vsub.f32 1.0, %v4292_v18  ;;  %v1806_v5 = vmul.f32 %v4292_v18, %v1802_v48  ;;  %v1853_v18 = vmul.f32 %v6392_v57, %v5990_v4  ;;  %v8179_v4 = vld [vmem:[#allocation22_spill] sm:$0xff] }
 0x3dc   :  { %v4296_v8 = vpop.eup %4295  ;;  %v1798_v14 = vmul.f32 %v4294_v59, %v1796_v17 }
 0x3dd   :  { %v1799_v6 = vmul.f32 %v4296_v8, %v1797_v58  ;;  %v8182_v58 = vld [vmem:[#allocation62_spill] sm:$0xff] }
 0x3de   :  { %v1807_v62 = vadd.f32 %v1805_v20, %v1798_v14  ;;  %v8183_v8 = vld [vmem:[#allocation26_spill] sm:$0xff]  ;;  %v8184_v14 = vld [vmem:[#allocation28_spill] sm:$0xff]  ;;  %v8185_v20 = vld [vmem:[#allocation63_spill] sm:$0xff] }
 0x3df   :  { %v1808_v1 = vadd.f32 %v1806_v5, %v1799_v6  ;;  %v8186_v6 = vld [vmem:[#allocation64_spill] sm:$0xff]  ;;  %v8187_v5 = vld [vmem:[#allocation65_spill] sm:$0xff] }
 0x3e0   :  { %v1842_v10 = vrot.slane %v1807_v62, 5  ;;  %v8188_v62 = vld [vmem:[#allocation66_spill] sm:$0xff] }
 0x3e1   :  { %v1843_v25 = vrot.slane %v1808_v1, 4  ;;  %v8189_v1 = vld [vmem:[#allocation67_spill] sm:$0xff] }
 0x3e3   :  { %v1844_v9 = vsel %vm1130_vm9, %v1843_v25, %v1842_v10  ;;  %v8190_v10 = vld [vmem:[#allocation68_spill] sm:$0xff]  ;;  %v8191_v25 = vld [vmem:[#allocation69_spill] sm:$0xff] }
 0x3e4   :  { %v1846_v15 = vmul.f32 %v7869_v61, %v1844_v9  ;;  %v6413_v9 = vpack.c.bf16 %v6401_v2, %v6401_v2  ;;  %v8228_v61 = vld [vmem:[#allocation15_spill] sm:$0xff] }
 0x3e6   :  { %v6403_v17 = vadd.f32 %v1853_v18, %v1846_v15  ;;  %v1889_v59 = vrot.slane %v1846_v15, %v5551_v30  ;;  %v8192_v15 = vld [vmem:[#allocation70_spill] sm:$0xff]  ;;  %v8193_v18 = vld [vmem:[#allocation71_spill] sm:$0xff] }
 0x3e8   :  { %v1890_v48 = vcombine.high %v1889_v59, %v1889_v59  ;;  %3870 = vst.sshfl [vmem:[%s7660_s8 + $0xd] sm:$0x1 pattern:$0x73625140] %v1889_v59  ;;  %v1910_v34 = vpack.c.bf16 %v6403_v17, %v6403_v17  ;;  %v8194_v59 = vld [vmem:[#allocation29_spill] sm:$0xff] }
 0x3ea   :  { %3871 = vst.sshfl [vmem:[%s7660_s8 + $0x1d] sm:$0x1 pattern:$0x73625140] %v1890_v48  ;;  %1943 = vmatprep.mubr.bf16.mxu0 %v1910_v34  ;;  %1984 = vmatprep.mubr.bf16.mxu1 %v1910_v34  ;;  %v8195_v48 = vld [vmem:[#allocation72_spill] sm:$0xff] }
 0x3eb   :  { %1944 = vmatmul.mubr.bf16.vlgmr.msra.gmra.mxu0 %v6413_v9  ;;  %1985 = vmatmul.mubr.bf16.vlgmr.msra.gmra.mxu1 %v6413_v9 }
 0x3ec   :  { %1994 = vmatpush1.bf16.msra.mxu0 %v6010_v60  ;;  %2025 = vmatprep.mubr.bf16.mxu0 %v1910_v34  ;;  %v8196_v34 = vld [vmem:[#allocation73_spill] sm:$0xff] }
 0x3ed   :  { %1995 = vmatprep.subr.bf16.mxu0 %v6016_v40  ;;  %2261 = vmatpush1.bf16.msra.mxu1 %v5619_v7  ;;  %v8164_v7 = vld [vmem:[#allocation8_spill] sm:$0xff] }
 0x3ee   :  { %2262 = vmatprep.subr.bf16.mxu1 %v5625_v45  ;;  %v8165_v45 = vld [vmem:[#allocation23_spill] sm:$0xff] }
 0x3f0   :  { %1996 = vmatpush1.bf16.msra.mxu0 %v6024_v22 }
 0x3f1   :  { %1997 = vmatprep.subr.bf16.mxu0 %v6030_v37  ;;  %2263 = vmatpush1.bf16.msra.mxu1 %v5633_v49  ;;  %v8166_v49 = vld [vmem:[#allocation25_spill] sm:$0xff] }
 0x3f2   :  { %2264 = vmatprep.subr.bf16.mxu1 %v5639_v51  ;;  %v8167_v51 = vld [vmem:[#allocation10_spill] sm:$0xff] }
 0x3f4   :  { %1998 = vmatpush1.bf16.msra.mxu0 %v6038_v50 }
 0x3f5   :  { %1999 = vmatprep.subr.bf16.mxu0 %v6044_v11  ;;  %2265 = vmatpush1.bf16.msra.mxu1 %v5647_v27  ;;  %v8168_v27 = vld [vmem:[#allocation12_spill] sm:$0xff] }
 0x3f6   :  { %2266 = vmatprep.subr.bf16.mxu1 %v5653_v47  ;;  %v8169_v47 = vld [vmem:[#allocation27_spill] sm:$0xff] }
 0x3f8   :  { %2000 = vmatpush1.bf16.msra.mxu0 %v6052_v26 }
 0x3f9   :  { %2001 = vmatprep.subr.bf16.mxu0 %v6058_v39  ;;  %2267 = vmatpush1.bf16.msra.mxu1 %v5661_v55  ;;  %v8170_v55 = vld [vmem:[#allocation56_spill] sm:$0xff] }
 0x3fa   :  { %2268 = vmatprep.subr.bf16.mxu1 %v5667_v41  ;;  %v8171_v41 = vld [vmem:[#allocation14_spill] sm:$0xff] }
 0x3fc   :  { %2002 = vmatpush1.bf16.msra.mxu0 %v6066_v33 }
 0x3fd   :  { %2003 = vmatprep.subr.bf16.mxu0 %v6072_v31  ;;  %2269 = vmatpush1.bf16.msra.mxu1 %v5675_v0  ;;  %v8172_v0 = vld [vmem:[#allocation16_spill] sm:$0xff] }
 0x3fe   :  { %2270 = vmatprep.subr.bf16.mxu1 %v5681_v12  ;;  %v8173_v12 = vld [vmem:[#allocation57_spill] sm:$0xff] }
 0x400   :  { %2004 = vmatpush1.bf16.msra.mxu0 %v6080_v35 }
 0x401   :  { %2005 = vmatprep.subr.bf16.mxu0 %v6086_v16  ;;  %2271 = vmatpush1.bf16.msra.mxu1 %v5689_v44  ;;  %v8174_v44 = vld [vmem:[#allocation58_spill] sm:$0xff] }
 0x402   :  { %2272 = vmatprep.subr.bf16.mxu1 %v5695_v21  ;;  %v8175_v21 = vld [vmem:[#allocation18_spill] sm:$0xff] }
 0x404   :  { %2006 = vmatpush1.bf16.msra.mxu0 %v6094_v38 }
 0x405   :  { %2007 = vmatprep.subr.bf16.mxu0 %v6100_v36  ;;  %2273 = vmatpush1.bf16.msra.mxu1 %v5703_v32  ;;  %v8176_v32 = vld [vmem:[#allocation20_spill] sm:$0xff] }
 0x406   :  { %2274 = vmatprep.subr.bf16.mxu1 %v5709_v52  ;;  %v8177_v52 = vld [vmem:[#allocation59_spill] sm:$0xff] }
 0x408   :  { %2008 = vmatpush1.bf16.msra.mxu0 %v6108_v24 }
 0x409   :  { %2009 = vmatprep.subr.bf16.mxu0 %v6114_v63  ;;  %2275 = vmatpush1.bf16.msra.mxu1 %v5717_v23  ;;  %v8178_v23 = vld [vmem:[#allocation60_spill] sm:$0xff] }
 0x40a   :  { %2276 = vmatprep.subr.bf16.mxu1 %v8164_v7  ;;  %v8197_v7 = vld [vmem:[#allocation30_spill] sm:$0xff] }
 0x40c   :  { %2010 = vmatpush2.bf16.msra.mxu0 %v8165_v45 }
 0x40d   :  { %2011 = vmatprep.subr.bf16.mxu0 %v8166_v49  ;;  %2277 = vmatpush2.bf16.msra.mxu1 %v8167_v51  ;;  %v8198_v51 = vld [vmem:[#allocation39_spill] sm:$0xff] }
 0x40e   :  { %2278 = vmatprep.subr.bf16.mxu1 %v8168_v27  ;;  %v8199_v27 = vld [vmem:[#allocation40_spill] sm:$0xff] }
 0x410   :  { %2012 = vmatpush2.bf16.msra.mxu0 %v8169_v47 }
 0x411   :  { %2013 = vmatprep.subr.bf16.mxu0 %v8170_v55  ;;  %2279 = vmatpush2.bf16.msra.mxu1 %v8171_v41  ;;  %v8200_v41 = vld [vmem:[#allocation41_spill] sm:$0xff] }
 0x412   :  { %2280 = vmatprep.subr.bf16.mxu1 %v8172_v0  ;;  %v8201_v0 = vld [vmem:[#allocation42_spill] sm:$0xff] }
 0x414   :  { %2014 = vmatpush2.bf16.msra.mxu0 %v8173_v12 }
 0x415   :  { %2015 = vmatprep.subr.bf16.mxu0 %v8174_v44  ;;  %2281 = vmatpush2.bf16.msra.mxu1 %v8175_v21  ;;  %v8202_v21 = vld [vmem:[#allocation43_spill] sm:$0xff] }
 0x416   :  { %2282 = vmatprep.subr.bf16.mxu1 %v8176_v32  ;;  %v8203_v32 = vld [vmem:[#allocation44_spill] sm:$0xff] }
 0x418   :  { %2016 = vmatpush2.bf16.msra.mxu0 %v8177_v52 }
 0x419   :  { %2017 = vmatprep.subr.bf16.mxu0 %v8178_v23  ;;  %2283 = vmatpush2.bf16.msra.mxu1 %v8179_v4  ;;  %v8204_v4 = vld [vmem:[#allocation45_spill] sm:$0xff] }
 0x41a   :  { %2284 = vmatprep.subr.bf16.mxu1 %v8180_v13  ;;  %v8205_v13 = vld [vmem:[#allocation46_spill] sm:$0xff] }
 0x41c   :  { %2018 = vmatpush2.bf16.msra.mxu0 %v8181_v19 }
 0x41d   :  { %2019 = vmatprep.subr.bf16.mxu0 %v8182_v58  ;;  %2285 = vmatpush2.bf16.msra.mxu1 %v8183_v8  ;;  %v8206_v8 = vld [vmem:[#allocation47_spill] sm:$0xff] }
 0x41e   :  { %2286 = vmatprep.subr.bf16.mxu1 %v8184_v14  ;;  %v8208_v14 = vld [vmem:[#allocation49_spill] sm:$0xff] }
 0x420   :  { %2020 = vmatpush2.bf16.msra.mxu0 %v8185_v20 }
 0x421   :  { %2021 = vmatprep.subr.bf16.mxu0 %v8186_v6  ;;  %2287 = vmatpush2.bf16.msra.mxu1 %v8187_v5 }
 0x422   :  { %2288 = vmatprep.subr.bf16.mxu1 %v8188_v62 }
 0x424   :  { %2022 = vmatpush2.bf16.msra.mxu0 %v8189_v1 }
 0x425   :  { %2023 = vmatprep.subr.bf16.mxu0 %v8190_v10  ;;  %2289 = vmatpush2.bf16.msra.mxu1 %v8191_v25 }
 0x426   :  { %2290 = vmatprep.subr.bf16.mxu1 %v8192_v15  ;;  %v8232_v15 = vld [vmem:[#allocation13_spill] sm:$0xff] }
 0x428   :  { %2024 = vmatpush2.bf16.msra.mxu0 %v8193_v18 }
 0x429   :  { %2301 = vmatprep.subr.bf16.mxu0 %v8194_v59  ;;  %2291 = vmatpush2.bf16.msra.mxu1 %v8195_v48  ;;  %v8209_v59 = vld [vmem:[#allocation50_spill] sm:$0xff] }
 0x42a   :  { %2342 = vmatprep.subr.bf16.mxu1 %v8196_v34 }
 0x42b   :  { %2026 = vmatmul.mubr.bf16.vlgmr.msra.gmra.mxu0 %v6413_v9  ;;  %v8207_v9 = vld [vmem:[#allocation48_spill] sm:$0xff] }
 0x42c   :  { %2302 = vmatpush1.bf16.msra.mxu0 %v8197_v7  ;;  %v8210_v7 = vld [vmem:[#allocation51_spill] sm:$0xff] }
 0x42d   :  { %2303 = vmatprep.subr.bf16.mxu0 %v8198_v51  ;;  %v8211_v51 = vld [vmem:[#allocation52_spill] sm:$0xff] }
 0x430   :  { %2304 = vmatpush1.bf16.msra.mxu0 %v8199_v27  ;;  %v8212_v27 = vld [vmem:[#allocation53_spill] sm:$0xff] }
 0x431   :  { %2305 = vmatprep.subr.bf16.mxu0 %v8200_v41  ;;  %v8213_v41 = vld [vmem:[#allocation54_spill] sm:$0xff] }
 0x434   :  { %2306 = vmatpush1.bf16.msra.mxu0 %v8201_v0  ;;  %v8214_v0 = vld [vmem:[#allocation55_spill] sm:$0xff] }
 0x435   :  { %2307 = vmatprep.subr.bf16.mxu0 %v8202_v21  ;;  %v8215_v21 = vld [vmem:[#allocation74_spill] sm:$0xff] }
 0x438   :  { %2308 = vmatpush1.bf16.msra.mxu0 %v8203_v32  ;;  %v8216_v32 = vld [vmem:[#allocation75_spill] sm:$0xff] }
 0x439   :  { %2309 = vmatprep.subr.bf16.mxu0 %v8204_v4  ;;  %v8217_v4 = vld [vmem:[#allocation76_spill] sm:$0xff] }
 0x43c   :  { %2310 = vmatpush1.bf16.msra.mxu0 %v8205_v13  ;;  %v8218_v13 = vld [vmem:[#allocation77_spill] sm:$0xff] }
 0x43d   :  { %2311 = vmatprep.subr.bf16.mxu0 %v8206_v8  ;;  %v8219_v8 = vld [vmem:[#allocation78_spill] sm:$0xff] }
 0x440   :  { %2312 = vmatpush1.bf16.msra.mxu0 %v8207_v9  ;;  %v8220_v9 = vld [vmem:[#allocation79_spill] sm:$0xff] }
 0x441   :  { %2313 = vmatprep.subr.bf16.mxu0 %v8208_v14  ;;  %v8221_v14 = vld [vmem:[#allocation80_spill] sm:$0xff] }
 0x444   :  { %2314 = vmatpush1.bf16.msra.mxu0 %v8209_v59  ;;  %v8222_v59 = vld [vmem:[#allocation81_spill] sm:$0xff] }
 0x445   :  { %2315 = vmatprep.subr.bf16.mxu0 %v8210_v7  ;;  %v8223_v7 = vld [vmem:[#allocation82_spill] sm:$0xff] }
 0x448   :  { %2316 = vmatpush1.bf16.msra.mxu0 %v8211_v51  ;;  %v8224_v51 = vld [vmem:[#allocation83_spill] sm:$0xff] }
 0x449   :  { %2317 = vmatprep.subr.bf16.mxu0 %v8212_v27  ;;  %v8225_v27 = vld [vmem:[#allocation84_spill] sm:$0xff] }
 0x44c   :  { %2318 = vmatpush2.bf16.msra.mxu0 %v8213_v41  ;;  %v8226_v41 = vld [vmem:[#allocation85_spill] sm:$0xff] }
 0x44d   :  { %2319 = vmatprep.subr.bf16.mxu0 %v8214_v0  ;;  %v8227_v0 = vld [vmem:[#allocation86_spill] sm:$0xff] }
 0x450   :  { %2320 = vmatpush2.bf16.msra.mxu0 %v8215_v21 }
 0x451   :  { %2321 = vmatprep.subr.bf16.mxu0 %v8216_v32  ;;  %v8230_v32 = vld [vmem:[#allocation9_spill] sm:$0xff] }
 0x454   :  { %2322 = vmatpush2.bf16.msra.mxu0 %v8217_v4 }
 0x455   :  { %2323 = vmatprep.subr.bf16.mxu0 %v8218_v13 }
 0x458   :  { %2324 = vmatpush2.bf16.msra.mxu0 %v8219_v8 }
 0x459   :  { %2325 = vmatprep.subr.bf16.mxu0 %v8220_v9 }
 0x45c   :  { %2326 = vmatpush2.bf16.msra.mxu0 %v8221_v14 }
 0x45d   :  { %2327 = vmatprep.subr.bf16.mxu0 %v8222_v59 }
 0x460   :  { %2328 = vmatpush2.bf16.msra.mxu0 %v8223_v7 }
 0x461   :  { %2329 = vmatprep.subr.bf16.mxu0 %v8224_v51 }
 0x464   :  { %2330 = vmatpush2.bf16.msra.mxu0 %v8225_v27 }
 0x465   :  { %2331 = vmatprep.subr.bf16.mxu0 %v8226_v41 }
 0x468   :  { %2332 = vmatpush2.bf16.msra.mxu0 %v8227_v0 }
 0x469   :  { %2581 = vmatprep.subr.bf16.mxu0 %v8228_v61 }
 0x4ab   :  { %v1945_v43 = vpop.f32.mrf.mxu0  ;;  %v1986_v57 = vpop.f32.mrf.mxu1 }
 0x4ac   :  { %v1946_v9 = vadd.f32 %v1945_v43, %v8229_v3  ;;  %v8231_v43 = vld [vmem:[#allocation11_spill] sm:$0xff] }
 0x4ad   :  { %v1947_v8 = vpop.f32.mrf.mxu0  ;;  %v1988_v14 = vpop.f32.mrf.mxu1 }
 0x4ae   :  { %v2035_v13 = vrot.slane %v1946_v9, 5  ;;  %v2036_v59 = vrot.slane %v1946_v9, 6  ;;  %v1948_v7 = vadd.f32 %v1947_v8, %v8092_v53 }
 0x4af   :  { %v1949_v4 = vpop.f32.mrf.mxu0  ;;  %v1990_v51 = vpop.f32.mrf.mxu1 }
 0x4b0   :  { %v2039_v27 = vadd.f32 %v2035_v13, %v8093_v28  ;;  %v2040_v41 = vadd.f32 %v2036_v59, %v8230_v32  ;;  %v2054_v48 = vrot.slane %v1948_v7, 5  ;;  %v2055_v18 = vrot.slane %v1948_v7, 6  ;;  %v8237_v28 = vld [vmem:[#allocation34_spill] sm:$0xff] }
 0x4b1   :  { %v1950_v21 = vpop.f32.mrf.mxu0  ;;  %v1991_v0 = vpop.f32.mrf.mxu1 }
 0x4b2   :  { %v3872_v34 = vmul.f32 -1.442695, %v2039_v27  ;;  %v3873_v61 = vmul.f32 -1.442695, %v2040_v41  ;;  %v2058_v3 = vadd.f32 %v2054_v48, %v8231_v43  ;;  %v2059_v9 = vadd.f32 %v2055_v18, %v8232_v15  ;;  %v8233_v41 = vld [vmem:[#allocation2_spill] sm:$0xff] }
 0x4b3   :  { %v1987_v7 = vadd.f32 %v1986_v57, %v8233_v41  ;;  %v8238_v41 = vld [vmem:[#allocation35_spill] sm:$0xff] }
 0x4b4   :  { %4297 = vpow2.f32 %v3872_v34  ;;  %v3874_v25 = vmul.f32 -1.442695, %v2058_v3  ;;  %v3875_v8 = vmul.f32 -1.442695, %v2059_v9  ;;  %v8234_v34 = vld [vmem:[#allocation31_spill] sm:$0xff] }
 0x4b5   :  { %4299 = vpow2.f32 %v3873_v61  ;;  %v1989_v0 = vadd.f32 %v1988_v14, %v8234_v34  ;;  %v2073_v43 = vrot.slane %v1987_v7, 5  ;;  %v2074_v9 = vrot.slane %v1987_v7, 6 }
 0x4b6   :  { %4301 = vpow2.f32 %v3874_v25 }
 0x4b7   :  { %4303 = vpow2.f32 %v3875_v8  ;;  %v2097_v18 = vrot.slane %v1989_v0, 4  ;;  %v2098_v25 = vrot.slane %v1989_v0, 5 }
 0x4b9   :  { %v2102_v14 = vadd.f32 %v2098_v25, %v8238_v41 }
 0x4c1   :  { %v4298_v4 = vpop.eup %4297 }
 0x4c2   :  { %v4300_v13 = vpop.eup %4299  ;;  %v2047_v51 = vadd.f32 1.0, %v4298_v4 }
 0x4c3   :  { %v2048_v59 = vadd.f32 1.0, %v4300_v13  ;;  %v4302_v21 = vpop.eup %4301  ;;  %v8235_v13 = vld [vmem:[#allocation32_spill] sm:$0xff] }
 0x4c4   :  { %4305 = vrcp.f32 %v2047_v51  ;;  %v4304_v27 = vpop.eup %4303  ;;  %v2066_v61 = vadd.f32 1.0, %v4302_v21 }
 0x4c5   :  { %4307 = vrcp.f32 %v2048_v59  ;;  %v2067_v48 = vadd.f32 1.0, %v4304_v27  ;;  %v8236_v59 = vld [vmem:[#allocation33_spill] sm:$0xff]  ;;  %v3877_v27 = vmul.f32 -1.442695, %v2102_v14 }
 0x4c6   :  { %4309 = vrcp.f32 %v2066_v61  ;;  %v2101_v32 = vadd.f32 %v2097_v18, %v8236_v59 }
 0x4c7   :  { %4311 = vrcp.f32 %v2067_v48 }
 0x4c8   :  { %v3876_v21 = vmul.f32 -1.442695, %v2101_v32 }
 0x4d1   :  { %v4306_v3 = vpop.eup %4305 }
 0x4d2   :  { %v4308_v8 = vpop.eup %4307  ;;  %v2077_v15 = vmul.f32 %v4306_v3, %v2073_v43  ;;  %v2088_v43 = vrot.slane %v6401_v2, 5 }
 0x4d3   :  { %v2078_v4 = vmul.f32 %v4308_v8, %v2074_v9  ;;  %v4310_v7 = vpop.eup %4309 }
 0x4d4   :  { %v2079_v51 = vadd.f32 %v2077_v15, %v8235_v13  ;;  %v4312_v0 = vpop.eup %4311  ;;  %v2083_v61 = vsub.f32 1.0, %v4310_v7  ;;  %v2089_v15 = vrot.slane %v6401_v2, 6  ;;  %v2092_v9 = vmul.f32 %v4310_v7, %v2088_v43 }
 0x4d5   :  { %v2080_v57 = vadd.f32 %v2078_v4, %v8237_v28  ;;  %v2084_v3 = vsub.f32 1.0, %v4312_v0 }
 0x4d6   :  { %4313 = vtanh.f32 %v2079_v51  ;;  %v2093_v4 = vmul.f32 %v4312_v0, %v2089_v15 }
 0x4d7   :  { %4315 = vtanh.f32 %v2080_v57 }
 0x4d8   :  { %4317 = vpow2.f32 %v3876_v21  ;;  %v6531_v21 = vpop.permute.xlu1 %3995 }
 0x4d9   :  { %4319 = vpow2.f32 %v3877_v27  ;;  %v7876_v28 = vunpack.i.h.bf16 %v6531_v21 }
 0x4e3   :  { %v4314_v48 = vpop.eup %4313 }
 0x4e4   :  { %v4316_v18 = vpop.eup %4315  ;;  %v2085_v8 = vmul.f32 %v4314_v48, %v2083_v61 }
 0x4e5   :  { %v2086_v25 = vmul.f32 %v4316_v18, %v2084_v3  ;;  %v4318_v14 = vpop.eup %4317 }
 0x4e6   :  { %v2094_v51 = vadd.f32 %v2092_v9, %v2085_v8  ;;  %v4320_v41 = vpop.eup %4319  ;;  %v2109_v34 = vadd.f32 1.0, %v4318_v14 }
 0x4e7   :  { %v2095_v57 = vadd.f32 %v2093_v4, %v2086_v25  ;;  %v2110_v0 = vadd.f32 1.0, %v4320_v41 }
 0x4e8   :  { %v2171_v32 = vrot.slane %v2094_v51, 3  ;;  %4321 = vrcp.f32 %v2109_v34 }
 0x4e9   :  { %v2172_v27 = vrot.slane %v2095_v57, 2  ;;  %4323 = vrcp.f32 %v2110_v0 }
 0x4eb   :  { %v2027_v59 = vpop.f32.mrf.mxu0  ;;  %v2173_v13 = vsel %vm1130_vm9, %v2172_v27, %v2171_v32 }
 0x4ec   :  { %v2028_v53 = vadd.f32 %v2027_v59, %v5548_v46  ;;  %v2175_v7 = vmul.f32 %v7876_v28, %v2173_v13 }
 0x4ed   :  { %v2029_v43 = vpop.f32.mrf.mxu0 }
 0x4ee   :  { %v2116_v61 = vrot.slane %v2028_v53, 4  ;;  %v2117_v48 = vrot.slane %v2028_v53, 5  ;;  %v2211_v3 = vrot.slane %v2175_v7, %v5551_v30  ;;  %v2030_v53 = vadd.f32 %v2029_v43, %v5579_v56 }
 0x4ef   :  { %v2031_v15 = vpop.f32.mrf.mxu0 }
 0x4f0   :  { %v2120_v18 = vadd.f32 %v2116_v61, %v5563_v42  ;;  %v2121_v9 = vadd.f32 %v2117_v48, %v5566_v54  ;;  %v2212_v4 = vcombine.high %v2211_v3, %v2211_v3  ;;  %3882 = vst.sshfl [vmem:[%s7660_s8 + $0x3] sm:$0x1 pattern:$0x73625140] %v2211_v3  ;;  %v2135_v34 = vrot.slane %v2030_v53, 4  ;;  %v8239_v15 = vld [vmem:[#allocation4_spill] sm:$0xff] }
 0x4f1   :  { %v2032_v8 = vpop.f32.mrf.mxu0  ;;  %v2136_v59 = vrot.slane %v2030_v53, 5 }
 0x4f2   :  { %v3878_v13 = vmul.f32 -1.442695, %v2120_v18  ;;  %v3879_v41 = vmul.f32 -1.442695, %v2121_v9  ;;  %v2150_v9 = vrot.slane %v6403_v17, 4 }
 0x4f3   :  { %3883 = vst.sshfl [vmem:[%s7660_s8 + $0x13] sm:$0x1 pattern:$0x73625140] %v2212_v4 }
 0x4f4   :  { %4325 = vpow2.f32 %v3878_v13  ;;  %v2151_v13 = vrot.slane %v6403_v17, 5 }
 0x4f5   :  { %4327 = vpow2.f32 %v3879_v41  ;;  %v4322_v25 = vpop.eup %4321 }
 0x4f6   :  { %v4324_v51 = vpop.eup %4323  ;;  %v2139_v57 = vmul.f32 %v4322_v25, %v2135_v34 }
 0x4f7   :  { %v2140_v32 = vmul.f32 %v4324_v51, %v2136_v59 }
 0x4f8   :  { %v2141_v61 = vadd.f32 %v2139_v57, %v8160_v29 }
 0x4f9   :  { %v2142_v3 = vadd.f32 %v2140_v32, %v8239_v15 }
 0x501   :  { %v4326_v14 = vpop.eup %4325 }
 0x502   :  { %v4328_v27 = vpop.eup %4327  ;;  %v2128_v0 = vadd.f32 1.0, %v4326_v14 }
 0x503   :  { %v2129_v48 = vadd.f32 1.0, %v4328_v27 }
 0x504   :  { %4329 = vrcp.f32 %v2128_v0  ;;  %v7877_v0 = vunpack.i.l.bf16 %v6531_v21 }
 0x505   :  { %4331 = vrcp.f32 %v2129_v48  ;;  %v6555_v48 = vpop.permute.xlu0 %2199 }
 0x506   :  { %4333 = vtanh.f32 %v2141_v61  ;;  %v6553_v61 = vpop.permute.xlu1 %2179 }
 0x507   :  { %4335 = vtanh.f32 %v2142_v3  ;;  %v2182_v28 = vmul.f32 %v6553_v61, %v6401_v2 }
 0x511   :  { %v4330_v18 = vpop.eup %4329 }
 0x512   :  { %v4332_v43 = vpop.eup %4331  ;;  %v2145_v8 = vsub.f32 1.0, %v4330_v18  ;;  %v2154_v59 = vmul.f32 %v4330_v18, %v2150_v9  ;;  %v6564_v9 = vadd.f32 %v2182_v28, %v2175_v7  ;;  %v6588_v28 = vld [vmem:[%s7655_s3 + $0x150] ss:$24 sps:$4 sm:$0xff]  }
 0x513   :  { %v4334_v4 = vpop.eup %4333  ;;  %v2146_v41 = vsub.f32 1.0, %v4332_v43  ;;  %v2155_v51 = vmul.f32 %v4332_v43, %v2151_v13  ;;  %v2202_v43 = vmul.f32 %v6555_v48, %v6403_v17  ;;  %v6594_v17 = vld [vmem:[%s7655_s3 + $0x124] ss:$24 sps:$4 sm:$0xff]   ;;  %v8254_v7 = vld [vmem:[#allocation71_spill] sm:$0xff] }
 0x514   :  { %v4336_v53 = vpop.eup %4335  ;;  %v2147_v34 = vmul.f32 %v4334_v4, %v2145_v8 }
 0x515   :  { %v2148_v25 = vmul.f32 %v4336_v53, %v2146_v41  ;;  %v6576_v41 = vpack.c.bf16 %v6564_v9, %v6564_v9  ;;  %v6804_v53 = vld [vmem:[%s7655_s3 + $0xfc] ss:$24 sps:$4 sm:$0xff]  }
 0x516   :  { %v2156_v57 = vadd.f32 %v2154_v59, %v2147_v34  ;;  %8261 = vst [vmem:[#allocation24_spill] sm:$0xff] %v6804_v53  ;;  %v6810_v34 = vld [vmem:[%s7655_s3 + $0xf8] ss:$24 sps:$4 sm:$0xff]   ;;  %v6816_v59 = vld [vmem:[%s7655_s3 + $0xcc] ss:$24 sps:$4 sm:$0xff]  }
 0x517   :  { %v2157_v32 = vadd.f32 %v2155_v51, %v2148_v25  ;;  %8262 = vst [vmem:[#allocation61_spill] sm:$0xff] %v6810_v34  ;;  %8263 = vst [vmem:[#allocation62_spill] sm:$0xff] %v6816_v59  ;;  %v6822_v25 = vld [vmem:[%s7655_s3 + $0xc8] ss:$24 sps:$4 sm:$0xff]   ;;  %v6828_v51 = vld [vmem:[%s7655_s3 + $0x9c] ss:$24 sps:$4 sm:$0xff]  }
 0x518   :  { %v2191_v14 = vrot.slane %v2156_v57, 4  ;;  %8264 = vst [vmem:[#allocation26_spill] sm:$0xff] %v6822_v25  ;;  %8265 = vst [vmem:[#allocation28_spill] sm:$0xff] %v6828_v51  ;;  %v6834_v57 = vld [vmem:[%s7655_s3 + $0x98] ss:$24 sps:$4 sm:$0xff]  }
 0x519   :  { %v2192_v27 = vrot.slane %v2157_v32, 3  ;;  %8266 = vst [vmem:[#allocation63_spill] sm:$0xff] %v6834_v57  ;;  %v6840_v32 = vld [vmem:[%s7655_s3 + $0x6c] ss:$24 sps:$4 sm:$0xff]  }
 0x51a   :  { %8267 = vst [vmem:[#allocation64_spill] sm:$0xff] %v6840_v32 }
 0x51b   :  { %v2193_v3 = vsel %vm1130_vm9, %v2192_v27, %v2191_v14  ;;  %v6846_v14 = vld [vmem:[%s7655_s3 + $0x68] ss:$24 sps:$4 sm:$0xff]   ;;  %v6852_v27 = vld [vmem:[%s7655_s3 + $0x3c] ss:$24 sps:$4 sm:$0xff]  }
 0x51c   :  { %v2195_v18 = vmul.f32 %v7877_v0, %v2193_v3  ;;  %8268 = vst [vmem:[#allocation65_spill] sm:$0xff] %v6846_v14  ;;  %8269 = vst [vmem:[#allocation66_spill] sm:$0xff] %v6852_v27  ;;  %v6858_v3 = vld [vmem:[%s7655_s3 + $0x38] ss:$24 sps:$4 sm:$0xff]  }
 0x51d   :  { %8270 = vst [vmem:[#allocation67_spill] sm:$0xff] %v6858_v3  ;;  %v8282_v0 = vld [vmem:[#allocation80_spill] sm:$0xff] }
 0x51e   :  { %v6566_v8 = vadd.f32 %v2202_v43, %v2195_v18  ;;  %v2238_v4 = vrot.slane %v2195_v18, %v5551_v30  ;;  %v6864_v18 = vld [vmem:[%s7655_s3 + $0xc] ss:$24 sps:$4 sm:$0xff]   ;;  %v6870_v43 = vld [vmem:[%s7655_s3 + $0x8] ss:$24 sps:$4 sm:$0xff]  }
 0x51f   :  { %8271 = vst [vmem:[#allocation68_spill] sm:$0xff] %v6864_v18  ;;  %8272 = vst [vmem:[#allocation29_spill] sm:$0xff] %v6870_v43 }
 0x520   :  { %v2239_v13 = vcombine.high %v2238_v4, %v2238_v4  ;;  %3884 = vst.sshfl [vmem:[%s7660_s8 + $0xc] sm:$0x1 pattern:$0x73625140] %v2238_v4  ;;  %v2259_v2 = vpack.c.bf16 %v6566_v8, %v6566_v8  ;;  %v6876_v4 = vld [vmem:[%s7655_s3 + $0x2dc] ss:$24 sps:$4 sm:$0xff]  }
 0x521   :  { %8273 = vst [vmem:[#allocation30_spill] sm:$0xff] %v6876_v4 }
 0x522   :  { %3885 = vst.sshfl [vmem:[%s7660_s8 + $0x1c] sm:$0x1 pattern:$0x73625140] %v2239_v13  ;;  %2292 = vmatprep.mubr.bf16.mxu1 %v2259_v2  ;;  %2333 = vmatprep.mubr.bf16.mxu0 %v2259_v2  ;;  %v6882_v13 = vld [vmem:[%s7655_s3 + $0x2d8] ss:$24 sps:$4 sm:$0xff]  }
 0x523   :  { %2293 = vmatmul.mubr.bf16.vlgmr.msra.gmra.mxu1 %v6576_v41  ;;  %2334 = vmatmul.mubr.bf16.vlgmr.msra.gmra.mxu0 %v6576_v41  ;;  %8274 = vst [vmem:[#allocation39_spill] sm:$0xff] %v6882_v13 }
 0x524   :  { %2343 = vmatpush1.bf16.msra.mxu1 %v6010_v60  ;;  %2374 = vmatprep.mubr.bf16.mxu1 %v2259_v2  ;;  %v6602_v60 = vld [vmem:[%s7655_s3 + $0x120] ss:$24 sps:$4 sm:$0xff]   ;;  %v6888_v2 = vld [vmem:[%s7655_s3 + $0x2ac] ss:$24 sps:$4 sm:$0xff]  }
 0x525   :  { %2344 = vmatprep.subr.bf16.mxu1 %v6016_v40  ;;  %2582 = vmatpush1.bf16.msra.mxu0 %v6588_v28  ;;  %v6608_v40 = vld [vmem:[%s7655_s3 + $0xf4] ss:$24 sps:$4 sm:$0xff]   ;;  %8275 = vst [vmem:[#allocation40_spill] sm:$0xff] %v6888_v2 }
 0x526   :  { %2583 = vmatprep.subr.bf16.mxu0 %v6594_v17 }
 0x528   :  { %2345 = vmatpush1.bf16.msra.mxu1 %v6024_v22  ;;  %v6616_v22 = vld [vmem:[%s7655_s3 + $0xf0] ss:$24 sps:$4 sm:$0xff]  }
 0x529   :  { %2346 = vmatprep.subr.bf16.mxu1 %v6030_v37  ;;  %2584 = vmatpush1.bf16.msra.mxu0 %v6602_v60  ;;  %v6622_v37 = vld [vmem:[%s7655_s3 + $0xc4] ss:$24 sps:$4 sm:$0xff]  }
 0x52a   :  { %2585 = vmatprep.subr.bf16.mxu0 %v6608_v40 }
 0x52c   :  { %2347 = vmatpush1.bf16.msra.mxu1 %v6038_v50  ;;  %v6630_v50 = vld [vmem:[%s7655_s3 + $0xc0] ss:$24 sps:$4 sm:$0xff]  }
 0x52d   :  { %2348 = vmatprep.subr.bf16.mxu1 %v6044_v11  ;;  %2586 = vmatpush1.bf16.msra.mxu0 %v6616_v22  ;;  %v6636_v11 = vld [vmem:[%s7655_s3 + $0x94] ss:$24 sps:$4 sm:$0xff]  }
 0x52e   :  { %2587 = vmatprep.subr.bf16.mxu0 %v6622_v37 }
 0x530   :  { %2349 = vmatpush1.bf16.msra.mxu1 %v6052_v26  ;;  %v6644_v26 = vld [vmem:[%s7655_s3 + $0x90] ss:$24 sps:$4 sm:$0xff]  }
 0x531   :  { %2350 = vmatprep.subr.bf16.mxu1 %v6058_v39  ;;  %2588 = vmatpush1.bf16.msra.mxu0 %v6630_v50  ;;  %v6650_v39 = vld [vmem:[%s7655_s3 + $0x64] ss:$24 sps:$4 sm:$0xff]  }
 0x532   :  { %2589 = vmatprep.subr.bf16.mxu0 %v6636_v11 }
 0x534   :  { %2351 = vmatpush1.bf16.msra.mxu1 %v6066_v33  ;;  %v6658_v33 = vld [vmem:[%s7655_s3 + $0x60] ss:$24 sps:$4 sm:$0xff]  }
 0x535   :  { %2352 = vmatprep.subr.bf16.mxu1 %v6072_v31  ;;  %2590 = vmatpush1.bf16.msra.mxu0 %v6644_v26  ;;  %v6664_v31 = vld [vmem:[%s7655_s3 + $0x34] ss:$24 sps:$4 sm:$0xff]  }
 0x536   :  { %2591 = vmatprep.subr.bf16.mxu0 %v6650_v39 }
 0x538   :  { %2353 = vmatpush1.bf16.msra.mxu1 %v6080_v35  ;;  %v6672_v35 = vld [vmem:[%s7655_s3 + $0x30] ss:$24 sps:$4 sm:$0xff]  }
 0x539   :  { %2354 = vmatprep.subr.bf16.mxu1 %v6086_v16  ;;  %2592 = vmatpush1.bf16.msra.mxu0 %v6658_v33  ;;  %v6678_v16 = vld [vmem:[%s7655_s3 + $0x4] ss:$24 sps:$4 sm:$0xff]  }
 0x53a   :  { %2593 = vmatprep.subr.bf16.mxu0 %v6664_v31 }
 0x53c   :  { %2355 = vmatpush1.bf16.msra.mxu1 %v6094_v38  ;;  %v6686_v38 = vld [vmem:[%s7655_s3] ss:$24 sps:$4 sm:$0xff]  }
 0x53d   :  { %2356 = vmatprep.subr.bf16.mxu1 %v6100_v36  ;;  %2594 = vmatpush1.bf16.msra.mxu0 %v6672_v35  ;;  %8240 = vst [vmem:[#allocation8_spill] sm:$0xff] %v6686_v38  ;;  %v6692_v36 = vld [vmem:[%s7655_s3 + $0x2d4] ss:$24 sps:$4 sm:$0xff]  }
 0x53e   :  { %2595 = vmatprep.subr.bf16.mxu0 %v6678_v16  ;;  %8241 = vst [vmem:[#allocation23_spill] sm:$0xff] %v6692_v36 }
 0x540   :  { %2357 = vmatpush1.bf16.msra.mxu1 %v6108_v24  ;;  %v6700_v24 = vld [vmem:[%s7655_s3 + $0x2d0] ss:$24 sps:$4 sm:$0xff]  }
 0x541   :  { %2358 = vmatprep.subr.bf16.mxu1 %v6114_v63  ;;  %2596 = vmatpush1.bf16.msra.mxu0 %v6686_v38  ;;  %8242 = vst [vmem:[#allocation25_spill] sm:$0xff] %v6700_v24  ;;  %v6706_v63 = vld [vmem:[%s7655_s3 + $0x2a4] ss:$24 sps:$4 sm:$0xff]  }
 0x542   :  { %2597 = vmatprep.subr.bf16.mxu0 %v6692_v36  ;;  %8243 = vst [vmem:[#allocation10_spill] sm:$0xff] %v6706_v63 }
 0x544   :  { %2359 = vmatpush2.bf16.msra.mxu1 %v8165_v45  ;;  %v6714_v45 = vld [vmem:[%s7655_s3 + $0x2a0] ss:$24 sps:$4 sm:$0xff]  }
 0x545   :  { %2360 = vmatprep.subr.bf16.mxu1 %v8166_v49  ;;  %2598 = vmatpush2.bf16.msra.mxu0 %v6700_v24  ;;  %8244 = vst [vmem:[#allocation12_spill] sm:$0xff] %v6714_v45  ;;  %v6720_v49 = vld [vmem:[%s7655_s3 + $0x274] ss:$24 sps:$4 sm:$0xff]  }
 0x546   :  { %2599 = vmatprep.subr.bf16.mxu0 %v6706_v63  ;;  %8245 = vst [vmem:[#allocation27_spill] sm:$0xff] %v6720_v49 }
 0x548   :  { %2361 = vmatpush2.bf16.msra.mxu1 %v8169_v47  ;;  %v6728_v47 = vld [vmem:[%s7655_s3 + $0x270] ss:$24 sps:$4 sm:$0xff]  }
 0x549   :  { %2362 = vmatprep.subr.bf16.mxu1 %v8170_v55  ;;  %2600 = vmatpush2.bf16.msra.mxu0 %v6714_v45  ;;  %8246 = vst [vmem:[#allocation56_spill] sm:$0xff] %v6728_v47  ;;  %v6734_v55 = vld [vmem:[%s7655_s3 + $0x244] ss:$24 sps:$4 sm:$0xff]  }
 0x54a   :  { %2601 = vmatprep.subr.bf16.mxu0 %v6720_v49  ;;  %8247 = vst [vmem:[#allocation14_spill] sm:$0xff] %v6734_v55 }
 0x54c   :  { %2363 = vmatpush2.bf16.msra.mxu1 %v8173_v12  ;;  %v6742_v12 = vld [vmem:[%s7655_s3 + $0x240] ss:$24 sps:$4 sm:$0xff]  }
 0x54d   :  { %2364 = vmatprep.subr.bf16.mxu1 %v8174_v44  ;;  %2602 = vmatpush2.bf16.msra.mxu0 %v6728_v47  ;;  %8248 = vst [vmem:[#allocation16_spill] sm:$0xff] %v6742_v12  ;;  %v6748_v44 = vld [vmem:[%s7655_s3 + $0x214] ss:$24 sps:$4 sm:$0xff]  }
 0x54e   :  { %2603 = vmatprep.subr.bf16.mxu0 %v6734_v55  ;;  %8249 = vst [vmem:[#allocation57_spill] sm:$0xff] %v6748_v44 }
 0x550   :  { %2365 = vmatpush2.bf16.msra.mxu1 %v8177_v52  ;;  %v6756_v52 = vld [vmem:[%s7655_s3 + $0x210] ss:$24 sps:$4 sm:$0xff]  }
 0x551   :  { %2366 = vmatprep.subr.bf16.mxu1 %v8178_v23  ;;  %2604 = vmatpush2.bf16.msra.mxu0 %v6742_v12  ;;  %8250 = vst [vmem:[#allocation58_spill] sm:$0xff] %v6756_v52  ;;  %v6762_v23 = vld [vmem:[%s7655_s3 + $0x1e4] ss:$24 sps:$4 sm:$0xff]  }
 0x552   :  { %2605 = vmatprep.subr.bf16.mxu0 %v6748_v44  ;;  %8251 = vst [vmem:[#allocation18_spill] sm:$0xff] %v6762_v23 }
 0x554   :  { %2367 = vmatpush2.bf16.msra.mxu1 %v8181_v19  ;;  %v8252_v19 = vld [vmem:[#allocation69_spill] sm:$0xff] }
 0x555   :  { %2368 = vmatprep.subr.bf16.mxu1 %v8182_v58  ;;  %2606 = vmatpush2.bf16.msra.mxu0 %v6756_v52  ;;  %v8253_v58 = vld [vmem:[#allocation70_spill] sm:$0xff] }
 0x556   :  { %2607 = vmatprep.subr.bf16.mxu0 %v6762_v23 }
 0x558   :  { %2369 = vmatpush2.bf16.msra.mxu1 %v8185_v20  ;;  %v6777_v20 = vld [vmem:[%s7655_s3 + $0x15c] ss:$24 sps:$4 sm:$0xff]  }
 0x559   :  { %2370 = vmatprep.subr.bf16.mxu1 %v8186_v6  ;;  %2608 = vmatpush2.bf16.msra.mxu0 %v8187_v5  ;;  %8255 = vst [vmem:[#allocation20_spill] sm:$0xff] %v6777_v20  ;;  %v8256_v6 = vld [vmem:[#allocation72_spill] sm:$0xff]  ;;  %v8257_v5 = vld [vmem:[#allocation73_spill] sm:$0xff] }
 0x55a   :  { %2609 = vmatprep.subr.bf16.mxu0 %v8188_v62  ;;  %v6786_v62 = vld [vmem:[%s7655_s3 + $0x158] ss:$24 sps:$4 sm:$0xff]  }
 0x55b   :  { %8258 = vst [vmem:[#allocation59_spill] sm:$0xff] %v6786_v62 }
 0x55c   :  { %2371 = vmatpush2.bf16.msra.mxu1 %v8189_v1  ;;  %v6792_v1 = vld [vmem:[%s7655_s3 + $0x12c] ss:$24 sps:$4 sm:$0xff]  }
 0x55d   :  { %2372 = vmatprep.subr.bf16.mxu1 %v8190_v10  ;;  %2610 = vmatpush2.bf16.msra.mxu0 %v8252_v19  ;;  %8259 = vst [vmem:[#allocation60_spill] sm:$0xff] %v6792_v1  ;;  %v6798_v10 = vld [vmem:[%s7655_s3 + $0x128] ss:$24 sps:$4 sm:$0xff]  }
 0x55e   :  { %2611 = vmatprep.subr.bf16.mxu0 %v8253_v58  ;;  %8260 = vst [vmem:[#allocation22_spill] sm:$0xff] %v6798_v10  ;;  %v8277_v19 = vld [vmem:[#allocation75_spill] sm:$0xff]  ;;  %v8278_v58 = vld [vmem:[#allocation76_spill] sm:$0xff] }
 0x560   :  { %2373 = vmatpush2.bf16.msra.mxu1 %v8254_v7  ;;  %v8279_v7 = vld [vmem:[#allocation77_spill] sm:$0xff] }
 0x561   :  { %2622 = vmatprep.subr.bf16.mxu1 %v6777_v20  ;;  %2612 = vmatpush2.bf16.msra.mxu0 %v8256_v6  ;;  %v8280_v6 = vld [vmem:[#allocation78_spill] sm:$0xff] }
 0x562   :  { %2663 = vmatprep.subr.bf16.mxu0 %v8257_v5  ;;  %v8281_v5 = vld [vmem:[#allocation79_spill] sm:$0xff] }
 0x563   :  { %2375 = vmatmul.mubr.bf16.vlgmr.msra.gmra.mxu1 %v6576_v41  ;;  %v8276_v41 = vld [vmem:[#allocation74_spill] sm:$0xff] }
 0x564   :  { %2623 = vmatpush1.bf16.msra.mxu1 %v6786_v62 }
 0x565   :  { %2624 = vmatprep.subr.bf16.mxu1 %v6792_v1 }
 0x568   :  { %2625 = vmatpush1.bf16.msra.mxu1 %v6798_v10  ;;  %v8295_v10 = vld [vmem:[#allocation13_spill] sm:$0xff] }
 0x569   :  { %2626 = vmatprep.subr.bf16.mxu1 %v6804_v53 }
 0x56c   :  { %2627 = vmatpush1.bf16.msra.mxu1 %v6810_v34 }
 0x56d   :  { %2628 = vmatprep.subr.bf16.mxu1 %v6816_v59 }
 0x570   :  { %2629 = vmatpush1.bf16.msra.mxu1 %v6822_v25 }
 0x571   :  { %2630 = vmatprep.subr.bf16.mxu1 %v6828_v51 }
 0x574   :  { %2631 = vmatpush1.bf16.msra.mxu1 %v6834_v57 }
 0x575   :  { %2632 = vmatprep.subr.bf16.mxu1 %v6840_v32  ;;  %v8293_v32 = vld [vmem:[#allocation9_spill] sm:$0xff] }
 0x578   :  { %2633 = vmatpush1.bf16.msra.mxu1 %v6846_v14 }
 0x579   :  { %2634 = vmatprep.subr.bf16.mxu1 %v6852_v27 }
 0x57c   :  { %2635 = vmatpush1.bf16.msra.mxu1 %v6858_v3 }
 0x57d   :  { %2636 = vmatprep.subr.bf16.mxu1 %v6864_v18 }
 0x580   :  { %2637 = vmatpush1.bf16.msra.mxu1 %v6870_v43  ;;  %v8285_v43 = vld [vmem:[#allocation83_spill] sm:$0xff] }
 0x581   :  { %2638 = vmatprep.subr.bf16.mxu1 %v6876_v4  ;;  %v8284_v4 = vld [vmem:[#allocation82_spill] sm:$0xff] }
 0x584   :  { %2639 = vmatpush2.bf16.msra.mxu1 %v6882_v13  ;;  %v8283_v13 = vld [vmem:[#allocation81_spill] sm:$0xff] }
 0x585   :  { %2640 = vmatprep.subr.bf16.mxu1 %v6888_v2  ;;  %v8286_v2 = vld [vmem:[#allocation84_spill] sm:$0xff] }
 0x588   :  { %2641 = vmatpush2.bf16.msra.mxu1 %v8276_v41  ;;  %v8287_v41 = vld [vmem:[#allocation85_spill] sm:$0xff] }
 0x589   :  { %2642 = vmatprep.subr.bf16.mxu1 %v8277_v19  ;;  %v8288_v19 = vld [vmem:[#allocation86_spill] sm:$0xff] }
 0x58c   :  { %2643 = vmatpush2.bf16.msra.mxu1 %v8278_v58  ;;  %v6907_v58 = vld [vmem:[%s7655_s3 + $0x154] ss:$24 sps:$4 sm:$0xff]  }
 0x58d   :  { %2644 = vmatprep.subr.bf16.mxu1 %v8279_v7  ;;  %8289 = vst [vmem:[#allocation41_spill] sm:$0xff] %v6907_v58 }
 0x590   :  { %2645 = vmatpush2.bf16.msra.mxu1 %v8280_v6 }
 0x591   :  { %2646 = vmatprep.subr.bf16.mxu1 %v8281_v5 }
 0x594   :  { %2647 = vmatpush2.bf16.msra.mxu1 %v8282_v0 }
 0x595   :  { %2648 = vmatprep.subr.bf16.mxu1 %v8283_v13  ;;  %v8290_v13 = vld [vmem:[#allocation5_spill] sm:$0xff] }
 0x598   :  { %2649 = vmatpush2.bf16.msra.mxu1 %v8284_v4 }
 0x599   :  { %2650 = vmatprep.subr.bf16.mxu1 %v8285_v43 }
 0x59c   :  { %2651 = vmatpush2.bf16.msra.mxu1 %v8286_v2  ;;  %v8291_v2 = vld [vmem:[#allocation6_spill] sm:$0xff] }
 0x59d   :  { %2652 = vmatprep.subr.bf16.mxu1 %v8287_v41 }
 0x5a0   :  { %2653 = vmatpush2.bf16.msra.mxu1 %v8288_v19  ;;  %v8292_v19 = vld [vmem:[#allocation7_spill] sm:$0xff] }
 0x5a1   :  { %2902 = vmatprep.subr.bf16.mxu1 %v6907_v58 }
 0x5e3   :  { %v2294_v0 = vpop.f32.mrf.mxu1  ;;  %v2335_v7 = vpop.f32.mrf.mxu0 }
 0x5e4   :  { %v2295_v6 = vadd.f32 %v2294_v0, %v8290_v13  ;;  %v8294_v0 = vld [vmem:[#allocation11_spill] sm:$0xff] }
 0x5e5   :  { %v2296_v4 = vpop.f32.mrf.mxu1  ;;  %v2337_v5 = vpop.f32.mrf.mxu0 }
 0x5e6   :  { %v2384_v43 = vrot.slane %v2295_v6, 4  ;;  %v2385_v18 = vrot.slane %v2295_v6, 5  ;;  %v2297_v3 = vadd.f32 %v2296_v4, %v8291_v2 }
 0x5e7   :  { %v2298_v41 = vpop.f32.mrf.mxu1  ;;  %v2339_v27 = vpop.f32.mrf.mxu0 }
 0x5e8   :  { %v2388_v14 = vadd.f32 %v2384_v43, %v8292_v19  ;;  %v2389_v57 = vadd.f32 %v2385_v18, %v8293_v32  ;;  %v2403_v34 = vrot.slane %v2297_v3, 4  ;;  %v2404_v53 = vrot.slane %v2297_v3, 5  ;;  %v8300_v19 = vld [vmem:[#allocation34_spill] sm:$0xff] }
 0x5e9   :  { %v2299_v51 = vpop.f32.mrf.mxu1  ;;  %v2340_v25 = vpop.f32.mrf.mxu0 }
 0x5ea   :  { %v3886_v59 = vmul.f32 -1.442695, %v2388_v14  ;;  %v3887_v58 = vmul.f32 -1.442695, %v2389_v57  ;;  %v2407_v13 = vadd.f32 %v2403_v34, %v8294_v0  ;;  %v2408_v6 = vadd.f32 %v2404_v53, %v8295_v10  ;;  %v8296_v57 = vld [vmem:[#allocation2_spill] sm:$0xff] }
 0x5eb   :  { %v2336_v14 = vadd.f32 %v2335_v7, %v8296_v57  ;;  %v8301_v57 = vld [vmem:[#allocation35_spill] sm:$0xff] }
 0x5ec   :  { %4337 = vpow2.f32 %v3886_v59  ;;  %v3888_v1 = vmul.f32 -1.442695, %v2407_v13  ;;  %v3889_v4 = vmul.f32 -1.442695, %v2408_v6  ;;  %v8297_v59 = vld [vmem:[#allocation31_spill] sm:$0xff] }
 0x5ed   :  { %4339 = vpow2.f32 %v3887_v58  ;;  %v2338_v3 = vadd.f32 %v2337_v5, %v8297_v59  ;;  %v2422_v0 = vrot.slane %v2336_v14, 4  ;;  %v2423_v6 = vrot.slane %v2336_v14, 5 }
 0x5ee   :  { %4341 = vpow2.f32 %v3888_v1  ;;  %v8302_v59 = vunpack.i.l.bf16 %v6531_v21 }
 0x5ef   :  { %4343 = vpow2.f32 %v3889_v4  ;;  %v2446_v53 = vrot.slane %v2338_v3, 5  ;;  %v2447_v1 = vrot.slane %v2338_v3, 6 }
 0x5f1   :  { %v2451_v5 = vadd.f32 %v2447_v1, %v8301_v57 }
 0x5f9   :  { %v4338_v27 = vpop.eup %4337 }
 0x5fa   :  { %v4340_v43 = vpop.eup %4339  ;;  %v2396_v41 = vadd.f32 1.0, %v4338_v27 }
 0x5fb   :  { %v2397_v18 = vadd.f32 1.0, %v4340_v43  ;;  %v4342_v25 = vpop.eup %4341  ;;  %v8298_v43 = vld [vmem:[#allocation32_spill] sm:$0xff] }
 0x5fc   :  { %4345 = vrcp.f32 %v2396_v41  ;;  %v4344_v51 = vpop.eup %4343  ;;  %v2415_v58 = vadd.f32 1.0, %v4342_v25 }
 0x5fd   :  { %4347 = vrcp.f32 %v2397_v18  ;;  %v2416_v34 = vadd.f32 1.0, %v4344_v51  ;;  %v8299_v18 = vld [vmem:[#allocation33_spill] sm:$0xff]  ;;  %v3891_v51 = vmul.f32 -1.442695, %v2451_v5 }
 0x5fe   :  { %4349 = vrcp.f32 %v2415_v58  ;;  %v2450_v32 = vadd.f32 %v2446_v53, %v8299_v18 }
 0x5ff   :  { %4351 = vrcp.f32 %v2416_v34 }
 0x600   :  { %v3890_v25 = vmul.f32 -1.442695, %v2450_v32 }
 0x609   :  { %v4346_v13 = vpop.eup %4345 }
 0x60a   :  { %v4348_v4 = vpop.eup %4347  ;;  %v2426_v10 = vmul.f32 %v4346_v13, %v2422_v0  ;;  %v2437_v0 = vrot.slane %v6564_v9, 4 }
 0x60b   :  { %v2427_v27 = vmul.f32 %v4348_v4, %v2423_v6  ;;  %v4350_v14 = vpop.eup %4349 }
 0x60c   :  { %v2428_v41 = vadd.f32 %v2426_v10, %v8298_v43  ;;  %v4352_v3 = vpop.eup %4351  ;;  %v2432_v58 = vsub.f32 1.0, %v4350_v14  ;;  %v2438_v10 = vrot.slane %v6564_v9, 5  ;;  %v2441_v6 = vmul.f32 %v4350_v14, %v2437_v0 }
 0x60d   :  { %v2429_v7 = vadd.f32 %v2427_v27, %v8300_v19  ;;  %v2433_v13 = vsub.f32 1.0, %v4352_v3 }
 0x60e   :  { %4353 = vtanh.f32 %v2428_v41  ;;  %v2442_v27 = vmul.f32 %v4352_v3, %v2438_v10 }
 0x60f   :  { %4355 = vtanh.f32 %v2429_v7 }
 0x610   :  { %4357 = vpow2.f32 %v3890_v25 }
 0x611   :  { %4359 = vpow2.f32 %v3891_v51 }
 0x61b   :  { %v4354_v34 = vpop.eup %4353 }
 0x61c   :  { %v4356_v53 = vpop.eup %4355  ;;  %v2434_v4 = vmul.f32 %v4354_v34, %v2432_v58 }
 0x61d   :  { %v2435_v1 = vmul.f32 %v4356_v53, %v2433_v13  ;;  %v4358_v5 = vpop.eup %4357 }
 0x61e   :  { %v2443_v41 = vadd.f32 %v2441_v6, %v2434_v4  ;;  %v4360_v51 = vpop.eup %4359  ;;  %v2458_v18 = vadd.f32 1.0, %v4358_v5 }
 0x61f   :  { %v2444_v7 = vadd.f32 %v2442_v27, %v2435_v1  ;;  %v2459_v62 = vadd.f32 1.0, %v4360_v51 }
 0x620   :  { %v2509_v32 = vrot.slane %v2443_v41, 4  ;;  %4361 = vrcp.f32 %v2458_v18 }
 0x621   :  { %v2510_v25 = vrot.slane %v2444_v7, 3  ;;  %4363 = vrcp.f32 %v2459_v62 }
 0x623   :  { %v2376_v57 = vpop.f32.mrf.mxu1  ;;  %v2511_v19 = vsel %vm1130_vm9, %v2510_v25, %v2509_v32 }
 0x624   :  { %v2377_v43 = vadd.f32 %v2376_v57, %v5548_v46  ;;  %v2513_v2 = vmul.f32 %v8302_v59, %v2511_v19 }
 0x625   :  { %v2378_v14 = vpop.f32.mrf.mxu1 }
 0x626   :  { %v2465_v0 = vrot.slane %v2377_v43, 5  ;;  %v2466_v3 = vrot.slane %v2377_v43, 6  ;;  %v2532_v34 = vrot.slane %v2513_v2, %v5551_v30  ;;  %v2379_v59 = vadd.f32 %v2378_v14, %v5579_v56 }
 0x627   :  { %v2380_v58 = vpop.f32.mrf.mxu1 }
 0x628   :  { %v2469_v10 = vadd.f32 %v2465_v0, %v5563_v42  ;;  %v2470_v13 = vadd.f32 %v2466_v3, %v5566_v54  ;;  %v2533_v6 = vcombine.high %v2532_v34, %v2532_v34  ;;  %3894 = vst.sshfl [vmem:[%s7660_s8 + $0x4] sm:$0x1 pattern:$0x73625140] %v2532_v34  ;;  %v2484_v43 = vrot.slane %v2379_v59, 5 }
 0x629   :  { %v2381_v53 = vpop.f32.mrf.mxu1  ;;  %v2485_v18 = vrot.slane %v2379_v59, 6  ;;  %v2499_v3 = vrot.slane %v6566_v8, 5 }
 0x62a   :  { %v3892_v19 = vmul.f32 -1.442695, %v2469_v10  ;;  %v3893_v57 = vmul.f32 -1.442695, %v2470_v13  ;;  %v2500_v10 = vrot.slane %v6566_v8, 6 }
 0x62b   :  { %3895 = vst.sshfl [vmem:[%s7660_s8 + $0x14] sm:$0x1 pattern:$0x73625140] %v2533_v6 }
 0x62c   :  { %4365 = vpow2.f32 %v3892_v19 }
 0x62d   :  { %4367 = vpow2.f32 %v3893_v57  ;;  %v4362_v4 = vpop.eup %4361 }
 0x62e   :  { %v4364_v62 = vpop.eup %4363  ;;  %v2488_v27 = vmul.f32 %v4362_v4, %v2484_v43 }
 0x62f   :  { %v2489_v1 = vmul.f32 %v4364_v62, %v2485_v18 }
 0x630   :  { %v2490_v5 = vadd.f32 %v2488_v27, %v8160_v29 }
 0x631   :  { %v2491_v51 = vadd.f32 %v2489_v1, %v8239_v15  ;;  %v2514_v1 = vmul.f32 %v6555_v48, %v6564_v9  ;;  %v6977_v9 = vld [vmem:[%s7655_s3 + $0x134] ss:$24 sps:$4 sm:$0xff]  }
 0x639   :  { %v4366_v41 = vpop.eup %4365 }
 0x63a   :  { %v4368_v7 = vpop.eup %4367  ;;  %v2477_v32 = vadd.f32 1.0, %v4366_v41  ;;  %v8303_v41 = vunpack.i.h.bf16 %v6531_v21 }
 0x63b   :  { %v2478_v25 = vadd.f32 1.0, %v4368_v7 }
 0x63c   :  { %4369 = vrcp.f32 %v2477_v32  ;;  %v2523_v32 = vmul.f32 %v6566_v8, %v6553_v61  ;;  %v6971_v61 = vld [vmem:[%s7655_s3 + $0x160] ss:$24 sps:$4 sm:$0xff]   ;;  %v6985_v8 = vld [vmem:[%s7655_s3 + $0x130] ss:$24 sps:$4 sm:$0xff]  }
 0x63d   :  { %4371 = vrcp.f32 %v2478_v25 }
 0x63e   :  { %4373 = vtanh.f32 %v2490_v5  ;;  %v6949_v5 = vadd.f32 %v2514_v1, %v2513_v2  ;;  %v6991_v2 = vld [vmem:[%s7655_s3 + $0x104] ss:$24 sps:$4 sm:$0xff]   ;;  %v7111_v1 = vld [vmem:[%s7655_s3 + $0x280] ss:$24 sps:$4 sm:$0xff]  }
 0x63f   :  { %4375 = vtanh.f32 %v2491_v51  ;;  %8309 = vst [vmem:[#allocation47_spill] sm:$0xff] %v7111_v1 }
 0x640   :  { %v6961_v21 = vpack.c.bf16 %v6949_v5, %v6949_v5 }
 0x649   :  { %v4370_v0 = vpop.eup %4369 }
 0x64a   :  { %v4372_v14 = vpop.eup %4371  ;;  %v2494_v58 = vsub.f32 1.0, %v4370_v0  ;;  %v2503_v19 = vmul.f32 %v4370_v0, %v2499_v3  ;;  %v7005_v3 = vld [vmem:[%s7655_s3 + $0xd4] ss:$24 sps:$4 sm:$0xff]  }
 0x64b   :  { %v4374_v34 = vpop.eup %4373  ;;  %v2495_v13 = vsub.f32 1.0, %v4372_v14  ;;  %v2504_v59 = vmul.f32 %v4372_v14, %v2500_v10  ;;  %v6999_v14 = vld [vmem:[%s7655_s3 + $0x100] ss:$24 sps:$4 sm:$0xff]  }
 0x64c   :  { %v4376_v53 = vpop.eup %4375  ;;  %v2496_v6 = vmul.f32 %v4374_v34, %v2494_v58  ;;  %v7013_v58 = vld [vmem:[%s7655_s3 + $0xd0] ss:$24 sps:$4 sm:$0xff]   ;;  %v7019_v34 = vld [vmem:[%s7655_s3 + $0xa4] ss:$24 sps:$4 sm:$0xff]   ;;  %v7027_v10 = vld [vmem:[%s7655_s3 + $0xa0] ss:$24 sps:$4 sm:$0xff]  }
 0x64d   :  { %v2497_v57 = vmul.f32 %v4376_v53, %v2495_v13  ;;  %v7033_v13 = vld [vmem:[%s7655_s3 + $0x74] ss:$24 sps:$4 sm:$0xff]   ;;  %v7041_v53 = vld [vmem:[%s7655_s3 + $0x70] ss:$24 sps:$4 sm:$0xff]  }
 0x64e   :  { %v2505_v43 = vadd.f32 %v2503_v19, %v2496_v6  ;;  %v7047_v6 = vld [vmem:[%s7655_s3 + $0x44] ss:$24 sps:$4 sm:$0xff]   ;;  %v7055_v19 = vld [vmem:[%s7655_s3 + $0x40] ss:$24 sps:$4 sm:$0xff]  }
 0x64f   :  { %v2506_v18 = vadd.f32 %v2504_v59, %v2497_v57  ;;  %v7061_v57 = vld [vmem:[%s7655_s3 + $0x14] ss:$24 sps:$4 sm:$0xff]   ;;  %v7069_v59 = vld [vmem:[%s7655_s3 + $0x10] ss:$24 sps:$4 sm:$0xff]  }
 0x650   :  { %v2518_v4 = vrot.slane %v2505_v43, 3  ;;  %v7075_v43 = vld [vmem:[%s7655_s3 + $0x2e4] ss:$24 sps:$4 sm:$0xff]  }
 0x651   :  { %v2519_v62 = vrot.slane %v2506_v18, 2  ;;  %8304 = vst [vmem:[#allocation42_spill] sm:$0xff] %v7075_v43  ;;  %v7083_v18 = vld [vmem:[%s7655_s3 + $0x2e0] ss:$24 sps:$4 sm:$0xff]  }
 0x652   :  { %8305 = vst [vmem:[#allocation43_spill] sm:$0xff] %v7083_v18 }
 0x653   :  { %v2520_v27 = vsel %vm1130_vm9, %v2519_v62, %v2518_v4  ;;  %v7089_v4 = vld [vmem:[%s7655_s3 + $0x2b4] ss:$24 sps:$4 sm:$0xff]   ;;  %v7097_v62 = vld [vmem:[%s7655_s3 + $0x2b0] ss:$24 sps:$4 sm:$0xff]  }
 0x654   :  { %v2522_v7 = vmul.f32 %v8303_v41, %v2520_v27  ;;  %8306 = vst [vmem:[#allocation44_spill] sm:$0xff] %v7089_v4  ;;  %8307 = vst [vmem:[#allocation45_spill] sm:$0xff] %v7097_v62  ;;  %v7103_v27 = vld [vmem:[%s7655_s3 + $0x284] ss:$24 sps:$4 sm:$0xff]   ;;  %v7117_v41 = vld [vmem:[%s7655_s3 + $0x254] ss:$24 sps:$4 sm:$0xff]  }
 0x655   :  { %8308 = vst [vmem:[#allocation46_spill] sm:$0xff] %v7103_v27  ;;  %8310 = vst [vmem:[#allocation48_spill] sm:$0xff] %v7117_v41 }
 0x656   :  { %v6951_v25 = vadd.f32 %v2523_v32, %v2522_v7  ;;  %v2559_v51 = vrot.slane %v2522_v7, %v5551_v30  ;;  %v7125_v7 = vld [vmem:[%s7655_s3 + $0x250] ss:$24 sps:$4 sm:$0xff]   ;;  %v7131_v32 = vld [vmem:[%s7655_s3 + $0x224] ss:$24 sps:$4 sm:$0xff]  }
 0x657   :  { %8311 = vst [vmem:[#allocation49_spill] sm:$0xff] %v7125_v7  ;;  %8312 = vst [vmem:[#allocation50_spill] sm:$0xff] %v7131_v32 }
 0x658   :  { %v2560_v0 = vcombine.high %v2559_v51, %v2559_v51  ;;  %3896 = vst.sshfl [vmem:[%s7660_s8 + $0xb] sm:$0x1 pattern:$0x73625140] %v2559_v51  ;;  %v2580_v48 = vpack.c.bf16 %v6951_v25, %v6951_v25  ;;  %v7139_v51 = vld [vmem:[%s7655_s3 + $0x220] ss:$24 sps:$4 sm:$0xff]  }
 0x659   :  { %8313 = vst [vmem:[#allocation51_spill] sm:$0xff] %v7139_v51 }
 0x65a   :  { %3897 = vst.sshfl [vmem:[%s7660_s8 + $0x1b] sm:$0x1 pattern:$0x73625140] %v2560_v0  ;;  %2613 = vmatprep.mubr.bf16.mxu0 %v2580_v48  ;;  %2654 = vmatprep.mubr.bf16.mxu1 %v2580_v48  ;;  %v7145_v0 = vld [vmem:[%s7655_s3 + $0x1f4] ss:$24 sps:$4 sm:$0xff]  }
 0x65b   :  { %2614 = vmatmul.mubr.bf16.vlgmr.msra.gmra.mxu0 %v6961_v21  ;;  %2655 = vmatmul.mubr.bf16.vlgmr.msra.gmra.mxu1 %v6961_v21  ;;  %8314 = vst [vmem:[#allocation52_spill] sm:$0xff] %v7145_v0 }
 0x65c   :  { %2664 = vmatpush1.bf16.msra.mxu0 %v6971_v61  ;;  %2695 = vmatprep.mubr.bf16.mxu0 %v2580_v48  ;;  %v7153_v48 = vld [vmem:[%s7655_s3 + $0x1f0] ss:$24 sps:$4 sm:$0xff]  }
 0x65d   :  { %2665 = vmatprep.subr.bf16.mxu0 %v6977_v9  ;;  %2903 = vmatpush1.bf16.msra.mxu1 %v6588_v28  ;;  %8315 = vst [vmem:[#allocation53_spill] sm:$0xff] %v7153_v48 }
 0x65e   :  { %2904 = vmatprep.subr.bf16.mxu1 %v6594_v17 }
 0x660   :  { %2666 = vmatpush1.bf16.msra.mxu0 %v6985_v8 }
 0x661   :  { %2667 = vmatprep.subr.bf16.mxu0 %v6991_v2  ;;  %2905 = vmatpush1.bf16.msra.mxu1 %v6602_v60 }
 0x662   :  { %2906 = vmatprep.subr.bf16.mxu1 %v6608_v40 }
 0x664   :  { %2668 = vmatpush1.bf16.msra.mxu0 %v6999_v14 }
 0x665   :  { %2669 = vmatprep.subr.bf16.mxu0 %v7005_v3  ;;  %2907 = vmatpush1.bf16.msra.mxu1 %v6616_v22 }
 0x666   :  { %2908 = vmatprep.subr.bf16.mxu1 %v6622_v37 }
 0x668   :  { %2670 = vmatpush1.bf16.msra.mxu0 %v7013_v58 }
 0x669   :  { %2671 = vmatprep.subr.bf16.mxu0 %v7019_v34  ;;  %2909 = vmatpush1.bf16.msra.mxu1 %v6630_v50 }
 0x66a   :  { %2910 = vmatprep.subr.bf16.mxu1 %v6636_v11 }
 0x66c   :  { %2672 = vmatpush1.bf16.msra.mxu0 %v7027_v10 }
 0x66d   :  { %2673 = vmatprep.subr.bf16.mxu0 %v7033_v13  ;;  %2911 = vmatpush1.bf16.msra.mxu1 %v6644_v26 }
 0x66e   :  { %2912 = vmatprep.subr.bf16.mxu1 %v6650_v39 }
 0x670   :  { %2674 = vmatpush1.bf16.msra.mxu0 %v7041_v53 }
 0x671   :  { %2675 = vmatprep.subr.bf16.mxu0 %v7047_v6  ;;  %2913 = vmatpush1.bf16.msra.mxu1 %v6658_v33 }
 0x672   :  { %2914 = vmatprep.subr.bf16.mxu1 %v6664_v31 }
 0x674   :  { %2676 = vmatpush1.bf16.msra.mxu0 %v7055_v19 }
 0x675   :  { %2677 = vmatprep.subr.bf16.mxu0 %v7061_v57  ;;  %2915 = vmatpush1.bf16.msra.mxu1 %v6672_v35 }
 0x676   :  { %2916 = vmatprep.subr.bf16.mxu1 %v6678_v16 }
 0x678   :  { %2678 = vmatpush1.bf16.msra.mxu0 %v7069_v59 }
 0x679   :  { %2679 = vmatprep.subr.bf16.mxu0 %v7075_v43  ;;  %2917 = vmatpush1.bf16.msra.mxu1 %v6686_v38 }
 0x67a   :  { %2918 = vmatprep.subr.bf16.mxu1 %v6692_v36 }
 0x67c   :  { %2680 = vmatpush2.bf16.msra.mxu0 %v7083_v18  ;;  %v8363_v18 = vld [vmem:[#allocation13_spill] sm:$0xff] }
 0x67d   :  { %2681 = vmatprep.subr.bf16.mxu0 %v7089_v4  ;;  %2919 = vmatpush2.bf16.msra.mxu1 %v6700_v24 }
 0x67e   :  { %2920 = vmatprep.subr.bf16.mxu1 %v6706_v63 }
 0x680   :  { %2682 = vmatpush2.bf16.msra.mxu0 %v7097_v62 }
 0x681   :  { %2683 = vmatprep.subr.bf16.mxu0 %v7103_v27  ;;  %2921 = vmatpush2.bf16.msra.mxu1 %v6714_v45  ;;  %v8361_v45 = vld [vmem:[#allocation9_spill] sm:$0xff] }
 0x682   :  { %2922 = vmatprep.subr.bf16.mxu1 %v6720_v49 }
 0x684   :  { %2684 = vmatpush2.bf16.msra.mxu0 %v7111_v1  ;;  %v8360_v1 = vld [vmem:[#allocation7_spill] sm:$0xff] }
 0x685   :  { %2685 = vmatprep.subr.bf16.mxu0 %v7117_v41  ;;  %2923 = vmatpush2.bf16.msra.mxu1 %v6728_v47 }
 0x686   :  { %2924 = vmatprep.subr.bf16.mxu1 %v6734_v55  ;;  %v8359_v55 = vld [vmem:[#allocation6_spill] sm:$0xff] }
 0x688   :  { %2686 = vmatpush2.bf16.msra.mxu0 %v7125_v7  ;;  %v8334_v7 = vld [vmem:[#allocation63_spill] sm:$0xff] }
 0x689   :  { %2687 = vmatprep.subr.bf16.mxu0 %v7131_v32  ;;  %2925 = vmatpush2.bf16.msra.mxu1 %v6742_v12  ;;  %v8332_v12 = vld [vmem:[#allocation26_spill] sm:$0xff]  ;;  %v8333_v32 = vld [vmem:[#allocation28_spill] sm:$0xff] }
 0x68a   :  { %2926 = vmatprep.subr.bf16.mxu1 %v6748_v44  ;;  %v8330_v44 = vld [vmem:[#allocation61_spill] sm:$0xff] }
 0x68c   :  { %2688 = vmatpush2.bf16.msra.mxu0 %v7139_v51  ;;  %v7159_v51 = vld [vmem:[%s7655_s3 + $0x1c4] ss:$24 sps:$4 sm:$0xff]  }
 0x68d   :  { %2689 = vmatprep.subr.bf16.mxu0 %v7145_v0  ;;  %2927 = vmatpush2.bf16.msra.mxu1 %v6756_v52  ;;  %8316 = vst [vmem:[#allocation54_spill] sm:$0xff] %v7159_v51  ;;  %v7165_v52 = vld [vmem:[%s7655_s3 + $0x1e0] ss:$24 sps:$4 sm:$0xff]   ;;  %v8329_v0 = vld [vmem:[#allocation24_spill] sm:$0xff] }
 0x68e   :  { %2928 = vmatprep.subr.bf16.mxu1 %v6762_v23  ;;  %8317 = vst [vmem:[#allocation55_spill] sm:$0xff] %v7165_v52  ;;  %v7171_v23 = vld [vmem:[%s7655_s3 + $0x1b4] ss:$24 sps:$4 sm:$0xff]  }
 0x68f   :  { %8318 = vst [vmem:[#allocation15_spill] sm:$0xff] %v7171_v23 }
 0x690   :  { %2690 = vmatpush2.bf16.msra.mxu0 %v7153_v48  ;;  %v7177_v48 = vld [vmem:[%s7655_s3 + $0x1c0] ss:$24 sps:$4 sm:$0xff]  }
 0x691   :  { %2691 = vmatprep.subr.bf16.mxu0 %v7159_v51  ;;  %2929 = vmatpush2.bf16.msra.mxu1 %v7165_v52  ;;  %8319 = vst [vmem:[#allocation4_spill] sm:$0xff] %v7177_v48  ;;  %v7183_v51 = vld [vmem:[%s7655_s3 + $0x194] ss:$24 sps:$4 sm:$0xff]   ;;  %v7189_v52 = vld [vmem:[%s7655_s3 + $0x1b0] ss:$24 sps:$4 sm:$0xff]  }
 0x692   :  { %2930 = vmatprep.subr.bf16.mxu1 %v7171_v23  ;;  %8320 = vst [vmem:[#allocation69_spill] sm:$0xff] %v7183_v51  ;;  %8321 = vst [vmem:[#allocation70_spill] sm:$0xff] %v7189_v52  ;;  %v7195_v23 = vld [vmem:[%s7655_s3 + $0x184] ss:$24 sps:$4 sm:$0xff]  }
 0x693   :  { %8322 = vst [vmem:[#allocation71_spill] sm:$0xff] %v7195_v23 }
 0x694   :  { %2692 = vmatpush2.bf16.msra.mxu0 %v7177_v48  ;;  %v7201_v48 = vld [vmem:[%s7655_s3 + $0x190] ss:$24 sps:$4 sm:$0xff]  }
 0x695   :  { %2693 = vmatprep.subr.bf16.mxu0 %v7183_v51  ;;  %2931 = vmatpush2.bf16.msra.mxu1 %v7189_v52  ;;  %8323 = vst [vmem:[#allocation72_spill] sm:$0xff] %v7201_v48  ;;  %v7208_v52 = vld [vmem:[%s7655_s3 + $0x180] ss:$24 sps:$4 sm:$0xff]   ;;  %v8326_v51 = vld [vmem:[#allocation59_spill] sm:$0xff] }
 0x696   :  { %2932 = vmatprep.subr.bf16.mxu1 %v7195_v23  ;;  %8324 = vst [vmem:[#allocation73_spill] sm:$0xff] %v7208_v52  ;;  %v7214_v23 = vld [vmem:[%s7655_s3 + $0x164] ss:$24 sps:$4 sm:$0xff]  }
 0x697   :  { %8325 = vst [vmem:[#allocation74_spill] sm:$0xff] %v7214_v23 }
 0x698   :  { %2694 = vmatpush2.bf16.msra.mxu0 %v7201_v48  ;;  %v8327_v48 = vld [vmem:[#allocation60_spill] sm:$0xff] }
 0x699   :  { %2943 = vmatprep.subr.bf16.mxu0 %v6777_v20  ;;  %2933 = vmatpush2.bf16.msra.mxu1 %v7208_v52  ;;  %v8328_v20 = vld [vmem:[#allocation22_spill] sm:$0xff] }
 0x69a   :  { %2984 = vmatprep.subr.bf16.mxu1 %v7214_v23  ;;  %v8331_v52 = vld [vmem:[#allocation62_spill] sm:$0xff]  ;;  %v8335_v23 = vld [vmem:[#allocation64_spill] sm:$0xff] }
 0x69b   :  { %2696 = vmatmul.mubr.bf16.vlgmr.msra.gmra.mxu0 %v6961_v21  ;;  %v8336_v21 = vld [vmem:[#allocation65_spill] sm:$0xff] }
 0x69c   :  { %2944 = vmatpush1.bf16.msra.mxu0 %v8326_v51  ;;  %v8337_v51 = vld [vmem:[#allocation66_spill] sm:$0xff] }
 0x69d   :  { %2945 = vmatprep.subr.bf16.mxu0 %v8327_v48  ;;  %v8338_v48 = vld [vmem:[#allocation67_spill] sm:$0xff] }
 0x6a0   :  { %2946 = vmatpush1.bf16.msra.mxu0 %v8328_v20  ;;  %v8339_v20 = vld [vmem:[#allocation68_spill] sm:$0xff] }
 0x6a1   :  { %2947 = vmatprep.subr.bf16.mxu0 %v8329_v0  ;;  %v8340_v0 = vld [vmem:[#allocation29_spill] sm:$0xff] }
 0x6a4   :  { %2948 = vmatpush1.bf16.msra.mxu0 %v8330_v44  ;;  %v8341_v44 = vld [vmem:[#allocation30_spill] sm:$0xff] }
 0x6a5   :  { %2949 = vmatprep.subr.bf16.mxu0 %v8331_v52  ;;  %v8342_v52 = vld [vmem:[#allocation39_spill] sm:$0xff] }
 0x6a8   :  { %2950 = vmatpush1.bf16.msra.mxu0 %v8332_v12  ;;  %v8343_v12 = vld [vmem:[#allocation40_spill] sm:$0xff] }
 0x6a9   :  { %2951 = vmatprep.subr.bf16.mxu0 %v8333_v32 }
 0x6ac   :  { %2952 = vmatpush1.bf16.msra.mxu0 %v8334_v7 }
 0x6ad   :  { %2953 = vmatprep.subr.bf16.mxu0 %v8335_v23  ;;  %v7239_v23 = vld [vmem:[%s7655_s3 + $0x2a8] ss:$24 sps:$4 sm:$0xff]  }
 0x6ae   :  { %8344 = vst [vmem:[#allocation75_spill] sm:$0xff] %v7239_v23 }
 0x6b0   :  { %2954 = vmatpush1.bf16.msra.mxu0 %v8336_v21 }
 0x6b1   :  { %2955 = vmatprep.subr.bf16.mxu0 %v8337_v51 }
 0x6b4   :  { %2956 = vmatpush1.bf16.msra.mxu0 %v8338_v48  ;;  %v7245_v48 = vld [vmem:[%s7655_s3 + $0x27c] ss:$24 sps:$4 sm:$0xff]  }
 0x6b5   :  { %2957 = vmatprep.subr.bf16.mxu0 %v8339_v20  ;;  %8345 = vst [vmem:[#allocation76_spill] sm:$0xff] %v7245_v48  ;;  %v8358_v20 = vld [vmem:[#allocation5_spill] sm:$0xff] }
 0x6b8   :  { %2958 = vmatpush1.bf16.msra.mxu0 %v8340_v0 }
 0x6b9   :  { %2959 = vmatprep.subr.bf16.mxu0 %v8341_v44 }
 0x6bc   :  { %2960 = vmatpush2.bf16.msra.mxu0 %v8342_v52  ;;  %v7251_v52 = vld [vmem:[%s7655_s3 + $0x278] ss:$24 sps:$4 sm:$0xff]  }
 0x6bd   :  { %2961 = vmatprep.subr.bf16.mxu0 %v8343_v12  ;;  %8346 = vst [vmem:[#allocation77_spill] sm:$0xff] %v7251_v52  ;;  %v7257_v12 = vld [vmem:[%s7655_s3 + $0x24c] ss:$24 sps:$4 sm:$0xff]  }
 0x6be   :  { %8347 = vst [vmem:[#allocation78_spill] sm:$0xff] %v7257_v12 }
 0x6c0   :  { %2962 = vmatpush2.bf16.msra.mxu0 %v7239_v23  ;;  %v7263_v23 = vld [vmem:[%s7655_s3 + $0x248] ss:$24 sps:$4 sm:$0xff]  }
 0x6c1   :  { %2963 = vmatprep.subr.bf16.mxu0 %v7245_v48  ;;  %8348 = vst [vmem:[#allocation79_spill] sm:$0xff] %v7263_v23  ;;  %v7269_v48 = vld [vmem:[%s7655_s3 + $0x21c] ss:$24 sps:$4 sm:$0xff]  }
 0x6c2   :  { %8349 = vst [vmem:[#allocation80_spill] sm:$0xff] %v7269_v48 }
 0x6c4   :  { %2964 = vmatpush2.bf16.msra.mxu0 %v7251_v52  ;;  %v7275_v52 = vld [vmem:[%s7655_s3 + $0x218] ss:$24 sps:$4 sm:$0xff]  }
 0x6c5   :  { %2965 = vmatprep.subr.bf16.mxu0 %v7257_v12  ;;  %8350 = vst [vmem:[#allocation81_spill] sm:$0xff] %v7275_v52  ;;  %v7281_v12 = vld [vmem:[%s7655_s3 + $0x1ec] ss:$24 sps:$4 sm:$0xff]  }
 0x6c6   :  { %8351 = vst [vmem:[#allocation82_spill] sm:$0xff] %v7281_v12 }
 0x6c8   :  { %2966 = vmatpush2.bf16.msra.mxu0 %v7263_v23  ;;  %v7287_v23 = vld [vmem:[%s7655_s3 + $0x1e8] ss:$24 sps:$4 sm:$0xff]  }
 0x6c9   :  { %2967 = vmatprep.subr.bf16.mxu0 %v7269_v48  ;;  %8352 = vst [vmem:[#allocation83_spill] sm:$0xff] %v7287_v23  ;;  %v7293_v48 = vld [vmem:[%s7655_s3 + $0x1bc] ss:$24 sps:$4 sm:$0xff]  }
 0x6ca   :  { %8353 = vst [vmem:[#allocation84_spill] sm:$0xff] %v7293_v48 }
 0x6cc   :  { %2968 = vmatpush2.bf16.msra.mxu0 %v7275_v52  ;;  %v7299_v52 = vld [vmem:[%s7655_s3 + $0x1b8] ss:$24 sps:$4 sm:$0xff]  }
 0x6cd   :  { %2969 = vmatprep.subr.bf16.mxu0 %v7281_v12  ;;  %8354 = vst [vmem:[#allocation85_spill] sm:$0xff] %v7299_v52  ;;  %v7305_v12 = vld [vmem:[%s7655_s3 + $0x18c] ss:$24 sps:$4 sm:$0xff]  }
 0x6ce   :  { %8355 = vst [vmem:[#allocation86_spill] sm:$0xff] %v7305_v12 }
 0x6d0   :  { %2970 = vmatpush2.bf16.msra.mxu0 %v7287_v23  ;;  %v7311_v23 = vld [vmem:[%s7655_s3 + $0x188] ss:$24 sps:$4 sm:$0xff]  }
 0x6d1   :  { %2971 = vmatprep.subr.bf16.mxu0 %v7293_v48  ;;  %8356 = vst [vmem:[#allocation89_spill] sm:$0xff] %v7311_v23  ;;  %v8357_v48 = vld [vmem:[#allocation41_spill] sm:$0xff] }
 0x6d4   :  { %2972 = vmatpush2.bf16.msra.mxu0 %v7299_v52 }
 0x6d5   :  { %2973 = vmatprep.subr.bf16.mxu0 %v7305_v12 }
 0x6d8   :  { %2974 = vmatpush2.bf16.msra.mxu0 %v7311_v23 }
 0x6d9   :  { %3218 = vmatprep.subr.bf16.mxu0 %v8357_v48 }
 0x71b   :  { %v2615_v44 = vpop.f32.mrf.mxu0  ;;  %v2656_v0 = vpop.f32.mrf.mxu1 }
 0x71c   :  { %v2616_v52 = vadd.f32 %v2615_v44, %v8358_v20  ;;  %v8362_v44 = vld [vmem:[#allocation11_spill] sm:$0xff] }
 0x71d   :  { %v2617_v51 = vpop.f32.mrf.mxu0  ;;  %v2658_v21 = vpop.f32.mrf.mxu1 }
 0x71e   :  { %v2705_v7 = vrot.slane %v2616_v52, 3  ;;  %v2706_v32 = vrot.slane %v2616_v52, 4  ;;  %v2618_v47 = vadd.f32 %v2617_v51, %v8359_v55 }
 0x71f   :  { %v2619_v12 = vpop.f32.mrf.mxu0  ;;  %v2660_v41 = vpop.f32.mrf.mxu1 }
 0x720   :  { %v2709_v49 = vadd.f32 %v2705_v7, %v8360_v1  ;;  %v2710_v27 = vadd.f32 %v2706_v32, %v8361_v45  ;;  %v2724_v24 = vrot.slane %v2618_v47, 3  ;;  %v2725_v4 = vrot.slane %v2618_v47, 4  ;;  %v8368_v1 = vld [vmem:[#allocation34_spill] sm:$0xff] }
 0x721   :  { %v2620_v62 = vpop.f32.mrf.mxu0  ;;  %v2661_v23 = vpop.f32.mrf.mxu1 }
 0x722   :  { %v3898_v63 = vmul.f32 -1.442695, %v2709_v49  ;;  %v3899_v48 = vmul.f32 -1.442695, %v2710_v27  ;;  %v2728_v20 = vadd.f32 %v2724_v24, %v8362_v44  ;;  %v2729_v52 = vadd.f32 %v2725_v4, %v8363_v18  ;;  %v8364_v62 = vld [vmem:[#allocation2_spill] sm:$0xff] }
 0x723   :  { %v2657_v47 = vadd.f32 %v2656_v0, %v8364_v62  ;;  %v8369_v62 = vld [vmem:[#allocation35_spill] sm:$0xff] }
 0x724   :  { %4377 = vpow2.f32 %v3898_v63  ;;  %v3900_v36 = vmul.f32 -1.442695, %v2728_v20  ;;  %v3901_v51 = vmul.f32 -1.442695, %v2729_v52  ;;  %v8365_v63 = vld [vmem:[#allocation31_spill] sm:$0xff] }
 0x725   :  { %4379 = vpow2.f32 %v3899_v48  ;;  %v2659_v27 = vadd.f32 %v2658_v21, %v8365_v63  ;;  %v2743_v44 = vrot.slane %v2657_v47, 3  ;;  %v2744_v52 = vrot.slane %v2657_v47, 4  ;;  %v8370_v63 = vld [vmem:[#allocation87_spill] sm:$0xff] }
 0x726   :  { %4381 = vpow2.f32 %v3900_v36  ;;  %v8371_v55 = vunpack.i.l.bf16 %v8370_v63 }
 0x727   :  { %4383 = vpow2.f32 %v3901_v51  ;;  %v2767_v4 = vrot.slane %v2659_v27, 6  ;;  %v2768_v36 = vrot.slane %v2659_v27, 7 }
 0x729   :  { %v2772_v21 = vadd.f32 %v2768_v36, %v8369_v62 }
 0x731   :  { %v4378_v12 = vpop.eup %4377 }
 0x732   :  { %v4380_v41 = vpop.eup %4379  ;;  %v2717_v7 = vadd.f32 1.0, %v4378_v12 }
 0x733   :  { %v2718_v32 = vadd.f32 1.0, %v4380_v41  ;;  %v4382_v49 = vpop.eup %4381  ;;  %v8366_v41 = vld [vmem:[#allocation32_spill] sm:$0xff] }
 0x734   :  { %4385 = vrcp.f32 %v2717_v7  ;;  %v4384_v23 = vpop.eup %4383  ;;  %v2736_v48 = vadd.f32 1.0, %v4382_v49 }
 0x735   :  { %4387 = vrcp.f32 %v2718_v32  ;;  %v2737_v24 = vadd.f32 1.0, %v4384_v23  ;;  %v8367_v32 = vld [vmem:[#allocation33_spill] sm:$0xff]  ;;  %v3903_v23 = vmul.f32 -1.442695, %v2772_v21 }
 0x736   :  { %4389 = vrcp.f32 %v2736_v48  ;;  %v2771_v45 = vadd.f32 %v2767_v4, %v8367_v32 }
 0x737   :  { %4391 = vrcp.f32 %v2737_v24 }
 0x738   :  { %v3902_v49 = vmul.f32 -1.442695, %v2771_v45 }
 0x741   :  { %v4386_v20 = vpop.eup %4385 }
 0x742   :  { %v4388_v51 = vpop.eup %4387  ;;  %v2747_v18 = vmul.f32 %v4386_v20, %v2743_v44  ;;  %v2758_v44 = vrot.slane %v6949_v5, 3 }
 0x743   :  { %v2748_v12 = vmul.f32 %v4388_v51, %v2744_v52  ;;  %v4390_v47 = vpop.eup %4389 }
 0x744   :  { %v2749_v7 = vadd.f32 %v2747_v18, %v8366_v41  ;;  %v4392_v27 = vpop.eup %4391  ;;  %v2753_v48 = vsub.f32 1.0, %v4390_v47  ;;  %v2759_v18 = vrot.slane %v6949_v5, 4  ;;  %v2762_v52 = vmul.f32 %v4390_v47, %v2758_v44 }
 0x745   :  { %v2750_v0 = vadd.f32 %v2748_v12, %v8368_v1  ;;  %v2754_v20 = vsub.f32 1.0, %v4392_v27 }
 0x746   :  { %4393 = vtanh.f32 %v2749_v7  ;;  %v2763_v12 = vmul.f32 %v4392_v27, %v2759_v18 }
 0x747   :  { %4395 = vtanh.f32 %v2750_v0 }
 0x748   :  { %4397 = vpow2.f32 %v3902_v49 }
 0x749   :  { %4399 = vpow2.f32 %v3903_v23 }
 0x753   :  { %v4394_v24 = vpop.eup %4393 }
 0x754   :  { %v4396_v4 = vpop.eup %4395  ;;  %v2755_v51 = vmul.f32 %v4394_v24, %v2753_v48 }
 0x755   :  { %v2756_v36 = vmul.f32 %v4396_v4, %v2754_v20  ;;  %v4398_v21 = vpop.eup %4397 }
 0x756   :  { %v2764_v7 = vadd.f32 %v2762_v52, %v2755_v51  ;;  %v4400_v23 = vpop.eup %4399  ;;  %v2779_v41 = vadd.f32 1.0, %v4398_v21 }
 0x757   :  { %v2765_v0 = vadd.f32 %v2763_v12, %v2756_v36  ;;  %v2780_v43 = vadd.f32 1.0, %v4400_v23 }
 0x758   :  { %v2830_v45 = vrot.slane %v2764_v7, 5  ;;  %4401 = vrcp.f32 %v2779_v41 }
 0x759   :  { %v2831_v49 = vrot.slane %v2765_v0, 4  ;;  %4403 = vrcp.f32 %v2780_v43 }
 0x75b   :  { %v2697_v1 = vpop.f32.mrf.mxu0  ;;  %v2832_v32 = vsel %vm1130_vm9, %v2831_v49, %v2830_v45 }
 0x75c   :  { %v2698_v62 = vadd.f32 %v2697_v1, %v5548_v46  ;;  %v2834_v38 = vmul.f32 %v8371_v55, %v2832_v32 }
 0x75d   :  { %v2699_v47 = vpop.f32.mrf.mxu0 }
 0x75e   :  { %v2786_v44 = vrot.slane %v2698_v62, 6  ;;  %v2787_v27 = vrot.slane %v2698_v62, 7  ;;  %v2853_v24 = vrot.slane %v2834_v38, %v5551_v30  ;;  %v2700_v62 = vadd.f32 %v2699_v47, %v5579_v56 }
 0x75f   :  { %v2701_v48 = vpop.f32.mrf.mxu0 }
 0x760   :  { %v2790_v18 = vadd.f32 %v2786_v44, %v5563_v42  ;;  %v2791_v20 = vadd.f32 %v2787_v27, %v5566_v54  ;;  %v2854_v52 = vcombine.high %v2853_v24, %v2853_v24  ;;  %3906 = vst.sshfl [vmem:[%s7660_s8 + $0x5] sm:$0x1 pattern:$0x73625140] %v2853_v24  ;;  %v2805_v41 = vrot.slane %v2700_v62, 6 }
 0x761   :  { %v2702_v4 = vpop.f32.mrf.mxu0  ;;  %v2806_v32 = vrot.slane %v2700_v62, 7  ;;  %v2820_v27 = vrot.slane %v6951_v25, 6 }
 0x762   :  { %v3904_v55 = vmul.f32 -1.442695, %v2790_v18  ;;  %v3905_v1 = vmul.f32 -1.442695, %v2791_v20  ;;  %v2821_v18 = vrot.slane %v6951_v25, 7 }
 0x763   :  { %3907 = vst.sshfl [vmem:[%s7660_s8 + $0x15] sm:$0x1 pattern:$0x73625140] %v2854_v52 }
 0x764   :  { %4405 = vpow2.f32 %v3904_v55 }
 0x765   :  { %4407 = vpow2.f32 %v3905_v1  ;;  %v4402_v51 = vpop.eup %4401 }
 0x766   :  { %v4404_v43 = vpop.eup %4403  ;;  %v2809_v12 = vmul.f32 %v4402_v51, %v2805_v41 }
 0x767   :  { %v2810_v36 = vmul.f32 %v4404_v43, %v2806_v32 }
 0x768   :  { %v2811_v21 = vadd.f32 %v2809_v12, %v8160_v29 }
 0x769   :  { %v2812_v23 = vadd.f32 %v2810_v36, %v8239_v15  ;;  %v8372_v36 = vld [vmem:[#allocation88_spill] sm:$0xff] }
 0x771   :  { %v4406_v7 = vpop.eup %4405 }
 0x772   :  { %v4408_v0 = vpop.eup %4407  ;;  %v2798_v45 = vadd.f32 1.0, %v4406_v7  ;;  %v2835_v7 = vmul.f32 %v6949_v5, %v8372_v36  ;;  %v8405_v36 = vld [vmem:[#allocation71_spill] sm:$0xff] }
 0x773   :  { %v2799_v49 = vadd.f32 1.0, %v4408_v0  ;;  %v8373_v0 = vunpack.i.h.bf16 %v8370_v63 }
 0x774   :  { %4409 = vrcp.f32 %v2798_v45 }
 0x775   :  { %4411 = vrcp.f32 %v2799_v49 }
 0x776   :  { %4413 = vtanh.f32 %v2811_v21  ;;  %v8374_v21 = vld [vmem:[#allocation3_spill] sm:$0xff] }
 0x777   :  { %4415 = vtanh.f32 %v2812_v23  ;;  %v2844_v49 = vmul.f32 %v6951_v25, %v8374_v21  ;;  %v7354_v23 = vadd.f32 %v2835_v7, %v2834_v38  ;;  %v8389_v38 = vld [vmem:[#allocation14_spill] sm:$0xff]  ;;  %v8390_v25 = vld [vmem:[#allocation49_spill] sm:$0xff]  ;;  %v8406_v7 = vld [vmem:[#allocation72_spill] sm:$0xff] }
 0x778   :  { %v8409_v21 = vld [vmem:[#allocation74_spill] sm:$0xff] }
 0x779   :  { %v7366_v63 = vpack.c.bf16 %v7354_v23, %v7354_v23 }
 0x781   :  { %v4410_v44 = vpop.eup %4409 }
 0x782   :  { %v4412_v47 = vpop.eup %4411  ;;  %v2815_v48 = vsub.f32 1.0, %v4410_v44  ;;  %v2824_v55 = vmul.f32 %v4410_v44, %v2820_v27 }
 0x783   :  { %v4414_v24 = vpop.eup %4413  ;;  %v2816_v20 = vsub.f32 1.0, %v4412_v47  ;;  %v2825_v62 = vmul.f32 %v4412_v47, %v2821_v18  ;;  %v8393_v18 = vld [vmem:[#allocation57_spill] sm:$0xff] }
 0x784   :  { %v4416_v4 = vpop.eup %4415  ;;  %v2817_v52 = vmul.f32 %v4414_v24, %v2815_v48  ;;  %v8391_v48 = vld [vmem:[#allocation50_spill] sm:$0xff]  ;;  %v8392_v24 = vld [vmem:[#allocation16_spill] sm:$0xff] }
 0x785   :  { %v2818_v1 = vmul.f32 %v4416_v4, %v2816_v20  ;;  %v8394_v20 = vld [vmem:[#allocation51_spill] sm:$0xff]  ;;  %v8395_v4 = vld [vmem:[#allocation52_spill] sm:$0xff] }
 0x786   :  { %v2826_v41 = vadd.f32 %v2824_v55, %v2817_v52  ;;  %v8396_v52 = vld [vmem:[#allocation58_spill] sm:$0xff] }
 0x787   :  { %v2827_v32 = vadd.f32 %v2825_v62, %v2818_v1  ;;  %v8397_v55 = vld [vmem:[#allocation18_spill] sm:$0xff]  ;;  %v8398_v1 = vld [vmem:[#allocation53_spill] sm:$0xff] }
 0x788   :  { %v2839_v51 = vrot.slane %v2826_v41, 2  ;;  %v8399_v62 = vld [vmem:[#allocation54_spill] sm:$0xff]  ;;  %v8400_v41 = vld [vmem:[#allocation55_spill] sm:$0xff] }
 0x789   :  { %v2840_v43 = vrot.slane %v2827_v32, 1  ;;  %v8401_v32 = vld [vmem:[#allocation15_spill] sm:$0xff] }
 0x78b   :  { %v2841_v12 = vsel %vm1130_vm9, %v2840_v43, %v2839_v51  ;;  %v8402_v51 = vld [vmem:[#allocation4_spill] sm:$0xff]  ;;  %v8403_v43 = vld [vmem:[#allocation69_spill] sm:$0xff] }
 0x78c   :  { %v2843_v45 = vmul.f32 %v8373_v0, %v2841_v12  ;;  %v8404_v12 = vld [vmem:[#allocation70_spill] sm:$0xff]  ;;  %v8407_v0 = vld [vmem:[#allocation20_spill] sm:$0xff] }
 0x78e   :  { %v7356_v44 = vadd.f32 %v2844_v49, %v2843_v45  ;;  %v2880_v47 = vrot.slane %v2843_v45, %v5551_v30  ;;  %v8408_v45 = vld [vmem:[#allocation73_spill] sm:$0xff]  ;;  %v8410_v49 = vld [vmem:[#allocation59_spill] sm:$0xff] }
 0x790   :  { %v2881_v27 = vcombine.high %v2880_v47, %v2880_v47  ;;  %3908 = vst.sshfl [vmem:[%s7660_s8 + $0xa] sm:$0x1 pattern:$0x73625140] %v2880_v47  ;;  %v2901_v5 = vpack.c.bf16 %v7356_v44, %v7356_v44  ;;  %v8411_v47 = vld [vmem:[#allocation60_spill] sm:$0xff] }
 0x792   :  { %3909 = vst.sshfl [vmem:[%s7660_s8 + $0x1a] sm:$0x1 pattern:$0x73625140] %v2881_v27  ;;  %2934 = vmatprep.mubr.bf16.mxu1 %v2901_v5  ;;  %2975 = vmatprep.mubr.bf16.mxu0 %v2901_v5  ;;  %v8412_v27 = vld [vmem:[#allocation22_spill] sm:$0xff] }
 0x793   :  { %2935 = vmatmul.mubr.bf16.vlgmr.msra.gmra.mxu1 %v7366_v63  ;;  %2976 = vmatmul.mubr.bf16.vlgmr.msra.gmra.mxu0 %v7366_v63 }
 0x794   :  { %2985 = vmatpush1.bf16.msra.mxu1 %v6971_v61  ;;  %3016 = vmatprep.mubr.bf16.mxu1 %v2901_v5  ;;  %v8413_v5 = vld [vmem:[#allocation24_spill] sm:$0xff] }
 0x795   :  { %2986 = vmatprep.subr.bf16.mxu1 %v6977_v9  ;;  %3219 = vmatpush1.bf16.msra.mxu0 %v6588_v28  ;;  %v8375_v28 = vld [vmem:[#allocation42_spill] sm:$0xff] }
 0x796   :  { %3220 = vmatprep.subr.bf16.mxu0 %v6594_v17  ;;  %v8376_v17 = vld [vmem:[#allocation8_spill] sm:$0xff] }
 0x798   :  { %2987 = vmatpush1.bf16.msra.mxu1 %v6985_v8 }
 0x799   :  { %2988 = vmatprep.subr.bf16.mxu1 %v6991_v2  ;;  %3221 = vmatpush1.bf16.msra.mxu0 %v6602_v60  ;;  %v8377_v60 = vld [vmem:[#allocation23_spill] sm:$0xff] }
 0x79a   :  { %3222 = vmatprep.subr.bf16.mxu0 %v6608_v40  ;;  %v8378_v40 = vld [vmem:[#allocation43_spill] sm:$0xff] }
 0x79c   :  { %2989 = vmatpush1.bf16.msra.mxu1 %v6999_v14 }
 0x79d   :  { %2990 = vmatprep.subr.bf16.mxu1 %v7005_v3  ;;  %3223 = vmatpush1.bf16.msra.mxu0 %v6616_v22  ;;  %v8379_v22 = vld [vmem:[#allocation44_spill] sm:$0xff] }
 0x79e   :  { %3224 = vmatprep.subr.bf16.mxu0 %v6622_v37  ;;  %v8380_v37 = vld [vmem:[#allocation25_spill] sm:$0xff] }
 0x7a0   :  { %2991 = vmatpush1.bf16.msra.mxu1 %v7013_v58 }
 0x7a1   :  { %2992 = vmatprep.subr.bf16.mxu1 %v7019_v34  ;;  %3225 = vmatpush1.bf16.msra.mxu0 %v6630_v50  ;;  %v8381_v50 = vld [vmem:[#allocation10_spill] sm:$0xff] }
 0x7a2   :  { %3226 = vmatprep.subr.bf16.mxu0 %v6636_v11  ;;  %v8382_v11 = vld [vmem:[#allocation45_spill] sm:$0xff] }
 0x7a4   :  { %2993 = vmatpush1.bf16.msra.mxu1 %v7027_v10 }
 0x7a5   :  { %2994 = vmatprep.subr.bf16.mxu1 %v7033_v13  ;;  %3227 = vmatpush1.bf16.msra.mxu0 %v6644_v26  ;;  %v8383_v26 = vld [vmem:[#allocation46_spill] sm:$0xff] }
 0x7a6   :  { %3228 = vmatprep.subr.bf16.mxu0 %v6650_v39  ;;  %v8384_v39 = vld [vmem:[#allocation12_spill] sm:$0xff] }
 0x7a8   :  { %2995 = vmatpush1.bf16.msra.mxu1 %v7041_v53 }
 0x7a9   :  { %2996 = vmatprep.subr.bf16.mxu1 %v7047_v6  ;;  %3229 = vmatpush1.bf16.msra.mxu0 %v6658_v33  ;;  %v8385_v33 = vld [vmem:[#allocation27_spill] sm:$0xff] }
 0x7aa   :  { %3230 = vmatprep.subr.bf16.mxu0 %v6664_v31  ;;  %v8386_v31 = vld [vmem:[#allocation47_spill] sm:$0xff] }
 0x7ac   :  { %2997 = vmatpush1.bf16.msra.mxu1 %v7055_v19 }
 0x7ad   :  { %2998 = vmatprep.subr.bf16.mxu1 %v7061_v57  ;;  %3231 = vmatpush1.bf16.msra.mxu0 %v6672_v35  ;;  %v8387_v35 = vld [vmem:[#allocation48_spill] sm:$0xff] }
 0x7ae   :  { %3232 = vmatprep.subr.bf16.mxu0 %v6678_v16  ;;  %v8388_v16 = vld [vmem:[#allocation56_spill] sm:$0xff] }
 0x7b0   :  { %2999 = vmatpush1.bf16.msra.mxu1 %v7069_v59 }
 0x7b1   :  { %3000 = vmatprep.subr.bf16.mxu1 %v8375_v28  ;;  %3233 = vmatpush1.bf16.msra.mxu0 %v8376_v17  ;;  %v8414_v17 = vld [vmem:[#allocation61_spill] sm:$0xff] }
 0x7b2   :  { %3234 = vmatprep.subr.bf16.mxu0 %v8377_v60  ;;  %v8415_v60 = vld [vmem:[#allocation62_spill] sm:$0xff] }
 0x7b4   :  { %3001 = vmatpush2.bf16.msra.mxu1 %v8378_v40 }
 0x7b5   :  { %3002 = vmatprep.subr.bf16.mxu1 %v8379_v22  ;;  %3235 = vmatpush2.bf16.msra.mxu0 %v8380_v37  ;;  %v8416_v37 = vld [vmem:[#allocation26_spill] sm:$0xff] }
 0x7b6   :  { %3236 = vmatprep.subr.bf16.mxu0 %v8381_v50  ;;  %v8417_v50 = vld [vmem:[#allocation28_spill] sm:$0xff] }
 0x7b8   :  { %3003 = vmatpush2.bf16.msra.mxu1 %v8382_v11 }
 0x7b9   :  { %3004 = vmatprep.subr.bf16.mxu1 %v8383_v26  ;;  %3237 = vmatpush2.bf16.msra.mxu0 %v8384_v39  ;;  %v8418_v39 = vld [vmem:[#allocation63_spill] sm:$0xff] }
 0x7ba   :  { %3238 = vmatprep.subr.bf16.mxu0 %v8385_v33  ;;  %v8419_v33 = vld [vmem:[#allocation64_spill] sm:$0xff] }
 0x7bc   :  { %3005 = vmatpush2.bf16.msra.mxu1 %v8386_v31 }
 0x7bd   :  { %3006 = vmatprep.subr.bf16.mxu1 %v8387_v35  ;;  %3239 = vmatpush2.bf16.msra.mxu0 %v8388_v16  ;;  %v8421_v16 = vld [vmem:[#allocation66_spill] sm:$0xff] }
 0x7be   :  { %3240 = vmatprep.subr.bf16.mxu0 %v8389_v38  ;;  %v8422_v38 = vld [vmem:[#allocation67_spill] sm:$0xff] }
 0x7c0   :  { %3007 = vmatpush2.bf16.msra.mxu1 %v8390_v25 }
 0x7c1   :  { %3008 = vmatprep.subr.bf16.mxu1 %v8391_v48  ;;  %3241 = vmatpush2.bf16.msra.mxu0 %v8392_v24  ;;  %v8423_v24 = vld [vmem:[#allocation68_spill] sm:$0xff] }
 0x7c2   :  { %3242 = vmatprep.subr.bf16.mxu0 %v8393_v18  ;;  %v8424_v18 = vld [vmem:[#allocation29_spill] sm:$0xff] }
 0x7c4   :  { %3009 = vmatpush2.bf16.msra.mxu1 %v8394_v20 }
 0x7c5   :  { %3010 = vmatprep.subr.bf16.mxu1 %v8395_v4  ;;  %3243 = vmatpush2.bf16.msra.mxu0 %v8396_v52  ;;  %v8425_v52 = vld [vmem:[#allocation30_spill] sm:$0xff] }
 0x7c6   :  { %3244 = vmatprep.subr.bf16.mxu0 %v8397_v55  ;;  %v8426_v55 = vld [vmem:[#allocation39_spill] sm:$0xff] }
 0x7c8   :  { %3011 = vmatpush2.bf16.msra.mxu1 %v8398_v1 }
 0x7c9   :  { %3012 = vmatprep.subr.bf16.mxu1 %v8399_v62  ;;  %3245 = vmatpush2.bf16.msra.mxu0 %v8400_v41  ;;  %v8427_v41 = vld [vmem:[#allocation40_spill] sm:$0xff] }
 0x7ca   :  { %3246 = vmatprep.subr.bf16.mxu0 %v8401_v32  ;;  %v8428_v32 = vld [vmem:[#allocation75_spill] sm:$0xff] }
 0x7cc   :  { %3013 = vmatpush2.bf16.msra.mxu1 %v8402_v51 }
 0x7cd   :  { %3014 = vmatprep.subr.bf16.mxu1 %v8403_v43  ;;  %3247 = vmatpush2.bf16.msra.mxu0 %v8404_v12  ;;  %v8429_v12 = vld [vmem:[#allocation76_spill] sm:$0xff] }
 0x7ce   :  { %3248 = vmatprep.subr.bf16.mxu0 %v8405_v36  ;;  %v8430_v36 = vld [vmem:[#allocation77_spill] sm:$0xff] }
 0x7d0   :  { %3015 = vmatpush2.bf16.msra.mxu1 %v8406_v7 }
 0x7d1   :  { %3259 = vmatprep.subr.bf16.mxu1 %v8407_v0  ;;  %3249 = vmatpush2.bf16.msra.mxu0 %v8408_v45  ;;  %v8431_v0 = vld [vmem:[#allocation78_spill] sm:$0xff]  ;;  %v8432_v45 = vld [vmem:[#allocation79_spill] sm:$0xff] }
 0x7d2   :  { %3300 = vmatprep.subr.bf16.mxu0 %v8409_v21  ;;  %v8433_v21 = vld [vmem:[#allocation80_spill] sm:$0xff] }
 0x7d3   :  { %3017 = vmatmul.mubr.bf16.vlgmr.msra.gmra.mxu1 %v7366_v63  ;;  %v8420_v63 = vld [vmem:[#allocation65_spill] sm:$0xff] }
 0x7d4   :  { %3260 = vmatpush1.bf16.msra.mxu1 %v8410_v49  ;;  %v8434_v49 = vld [vmem:[#allocation81_spill] sm:$0xff] }
 0x7d5   :  { %3261 = vmatprep.subr.bf16.mxu1 %v8411_v47  ;;  %v8435_v47 = vld [vmem:[#allocation82_spill] sm:$0xff] }
 0x7d8   :  { %3262 = vmatpush1.bf16.msra.mxu1 %v8412_v27  ;;  %v8436_v27 = vld [vmem:[#allocation83_spill] sm:$0xff] }
 0x7d9   :  { %3263 = vmatprep.subr.bf16.mxu1 %v8413_v5  ;;  %v8437_v5 = vld [vmem:[#allocation84_spill] sm:$0xff] }
 0x7dc   :  { %3264 = vmatpush1.bf16.msra.mxu1 %v8414_v17  ;;  %v8438_v17 = vld [vmem:[#allocation85_spill] sm:$0xff] }
 0x7dd   :  { %3265 = vmatprep.subr.bf16.mxu1 %v8415_v60  ;;  %v8439_v60 = vld [vmem:[#allocation86_spill] sm:$0xff] }
 0x7e0   :  { %3266 = vmatpush1.bf16.msra.mxu1 %v8416_v37  ;;  %v8440_v37 = vld [vmem:[#allocation89_spill] sm:$0xff] }
 0x7e1   :  { %3267 = vmatprep.subr.bf16.mxu1 %v8417_v50 }
 0x7e4   :  { %3268 = vmatpush1.bf16.msra.mxu1 %v8418_v39 }
 0x7e5   :  { %3269 = vmatprep.subr.bf16.mxu1 %v8419_v33  ;;  %v8441_v33 = vld [vmem:[#allocation5_spill] sm:$0xff] }
 0x7e8   :  { %3270 = vmatpush1.bf16.msra.mxu1 %v8420_v63 }
 0x7e9   :  { %3271 = vmatprep.subr.bf16.mxu1 %v8421_v16 }
 0x7ec   :  { %3272 = vmatpush1.bf16.msra.mxu1 %v8422_v38 }
 0x7ed   :  { %3273 = vmatprep.subr.bf16.mxu1 %v8423_v24 }
 0x7f0   :  { %3274 = vmatpush1.bf16.msra.mxu1 %v8424_v18 }
 0x7f1   :  { %3275 = vmatprep.subr.bf16.mxu1 %v8425_v52  ;;  %v8442_v52 = vld [vmem:[#allocation6_spill] sm:$0xff] }
 0x7f4   :  { %3276 = vmatpush2.bf16.msra.mxu1 %v8426_v55 }
 0x7f5   :  { %3277 = vmatprep.subr.bf16.mxu1 %v8427_v41 }
 0x7f8   :  { %3278 = vmatpush2.bf16.msra.mxu1 %v8428_v32 }
 0x7f9   :  { %3279 = vmatprep.subr.bf16.mxu1 %v8429_v12  ;;  %v8443_v12 = vld [vmem:[#allocation7_spill] sm:$0xff] }
 0x7fc   :  { %3280 = vmatpush2.bf16.msra.mxu1 %v8430_v36 }
 0x7fd   :  { %3281 = vmatprep.subr.bf16.mxu1 %v8431_v0  ;;  %v8444_v0 = vld [vmem:[#allocation9_spill] sm:$0xff] }
 0x800   :  { %3282 = vmatpush2.bf16.msra.mxu1 %v8432_v45 }
 0x801   :  { %3283 = vmatprep.subr.bf16.mxu1 %v8433_v21 }
 0x804   :  { %3284 = vmatpush2.bf16.msra.mxu1 %v8434_v49 }
 0x805   :  { %3285 = vmatprep.subr.bf16.mxu1 %v8435_v47 }
 0x808   :  { %3286 = vmatpush2.bf16.msra.mxu1 %v8436_v27 }
 0x809   :  { %3287 = vmatprep.subr.bf16.mxu1 %v8437_v5 }
 0x80c   :  { %3288 = vmatpush2.bf16.msra.mxu1 %v8438_v17 }
 0x80d   :  { %3289 = vmatprep.subr.bf16.mxu1 %v8439_v60  ;;  %v8445_v60 = vld [vmem:[#allocation11_spill] sm:$0xff] }
 0x810   :  { %3290 = vmatpush2.bf16.msra.mxu1 %v8440_v37 }
 0x853   :  { %v2936_v50 = vpop.f32.mrf.mxu1  ;;  %v2977_v39 = vpop.f32.mrf.mxu0 }
 0x854   :  { %v2937_v63 = vadd.f32 %v2936_v50, %v8441_v33  ;;  %v8446_v50 = vld [vmem:[#allocation13_spill] sm:$0xff] }
 0x855   :  { %v2938_v16 = vpop.f32.mrf.mxu1  ;;  %v2979_v38 = vpop.f32.mrf.mxu0 }
 0x856   :  { %v3026_v24 = vrot.slane %v2937_v63, 2  ;;  %v3027_v18 = vrot.slane %v2937_v63, 3  ;;  %v2939_v55 = vadd.f32 %v2938_v16, %v8442_v52  ;;  %v8453_v52 = vld [vmem:[#allocation17_spill] sm:$0xff] }
 0x857   :  { %v2940_v41 = vpop.f32.mrf.mxu1  ;;  %v2981_v32 = vpop.f32.mrf.mxu0  ;;  %v8454_v7 = vunpack.i.l.bf16 %v8453_v52 }
 0x858   :  { %v3030_v36 = vadd.f32 %v3026_v24, %v8443_v12  ;;  %v3031_v45 = vadd.f32 %v3027_v18, %v8444_v0  ;;  %v3045_v5 = vrot.slane %v2939_v55, 2  ;;  %v3046_v17 = vrot.slane %v2939_v55, 3  ;;  %v8451_v0 = vld [vmem:[#allocation33_spill] sm:$0xff] }
 0x859   :  { %v2941_v21 = vpop.f32.mrf.mxu1  ;;  %v2982_v49 = vpop.f32.mrf.mxu0 }
 0x85a   :  { %v3910_v47 = vmul.f32 -1.442695, %v3030_v36  ;;  %v3911_v27 = vmul.f32 -1.442695, %v3031_v45  ;;  %v3049_v37 = vadd.f32 %v3045_v5, %v8445_v60  ;;  %v3050_v63 = vadd.f32 %v3046_v17, %v8446_v50  ;;  %v8447_v21 = vld [vmem:[#allocation2_spill] sm:$0xff]  ;;  %v8448_v49 = vld [vmem:[#allocation31_spill] sm:$0xff] }
 0x85b   :  { %v2978_v55 = vadd.f32 %v2977_v39, %v8447_v21  ;;  %v8452_v39 = vld [vmem:[#allocation34_spill] sm:$0xff] }
 0x85c   :  { %4417 = vpow2.f32 %v3910_v47  ;;  %v3912_v33 = vmul.f32 -1.442695, %v3049_v37  ;;  %v3913_v16 = vmul.f32 -1.442695, %v3050_v63  ;;  %v2980_v47 = vadd.f32 %v2979_v38, %v8448_v49 }
 0x85d   :  { %4419 = vpow2.f32 %v3911_v27  ;;  %v3064_v60 = vrot.slane %v2978_v55, 2  ;;  %v3065_v63 = vrot.slane %v2978_v55, 3 }
 0x85e   :  { %4421 = vpow2.f32 %v3912_v33  ;;  %v3088_v17 = vrot.slane %v2980_v47, 7 }
 0x85f   :  { %4423 = vpow2.f32 %v3913_v16 }
 0x860   :  { %v3091_v12 = vadd.f32 %v3088_v17, %v8451_v0 }
 0x869   :  { %v4418_v41 = vpop.eup %4417 }
 0x86a   :  { %v4420_v24 = vpop.eup %4419  ;;  %v3038_v32 = vadd.f32 1.0, %v4418_v41  ;;  %v8449_v41 = vld [vmem:[#allocation35_spill] sm:$0xff] }
 0x86b   :  { %v3039_v18 = vadd.f32 1.0, %v4420_v24  ;;  %v4422_v36 = vpop.eup %4421  ;;  %v3092_v24 = vadd.f32 %v2980_v47, %v8449_v41  ;;  %v3080_v47 = vrot.slane %v7354_v23, 3 }
 0x86c   :  { %4425 = vrcp.f32 %v3038_v32  ;;  %v4424_v45 = vpop.eup %4423  ;;  %v3057_v27 = vadd.f32 1.0, %v4422_v36  ;;  %v8450_v32 = vld [vmem:[#allocation32_spill] sm:$0xff]  ;;  %v3914_v36 = vmul.f32 -1.442695, %v3091_v12 }
 0x86d   :  { %4427 = vrcp.f32 %v3039_v18  ;;  %v3058_v5 = vadd.f32 1.0, %v4424_v45  ;;  %v3915_v38 = vmul.f32 -1.442695, %v3092_v24 }
 0x86e   :  { %4429 = vrcp.f32 %v3057_v27 }
 0x86f   :  { %4431 = vrcp.f32 %v3058_v5 }
 0x879   :  { %v4426_v37 = vpop.eup %4425 }
 0x87a   :  { %v4428_v33 = vpop.eup %4427  ;;  %v3068_v16 = vmul.f32 %v4426_v37, %v3064_v60  ;;  %v3079_v60 = vrot.slane %v7354_v23, 2 }
 0x87b   :  { %v3069_v50 = vmul.f32 %v4428_v33, %v3065_v63  ;;  %v4430_v45 = vpop.eup %4429 }
 0x87c   :  { %v3070_v18 = vadd.f32 %v3068_v16, %v8450_v32  ;;  %v4432_v55 = vpop.eup %4431  ;;  %v3074_v27 = vsub.f32 1.0, %v4430_v45  ;;  %v3083_v33 = vmul.f32 %v4430_v45, %v3079_v60 }
 0x87d   :  { %v3071_v21 = vadd.f32 %v3069_v50, %v8452_v39  ;;  %v3075_v37 = vsub.f32 1.0, %v4432_v55  ;;  %v3084_v16 = vmul.f32 %v4432_v55, %v3080_v47 }
 0x87e   :  { %4433 = vtanh.f32 %v3070_v18 }
 0x87f   :  { %4435 = vtanh.f32 %v3071_v21 }
 0x880   :  { %4437 = vpow2.f32 %v3915_v38 }
 0x881   :  { %4439 = vpow2.f32 %v3914_v36 }
 0x88b   :  { %v4434_v5 = vpop.eup %4433 }
 0x88c   :  { %v4436_v63 = vpop.eup %4435  ;;  %v3076_v17 = vmul.f32 %v4434_v5, %v3074_v27 }
 0x88d   :  { %v3077_v50 = vmul.f32 %v4436_v63, %v3075_v37  ;;  %v4438_v24 = vpop.eup %4437 }
 0x88e   :  { %v3085_v18 = vadd.f32 %v3083_v33, %v3076_v17  ;;  %v4440_v38 = vpop.eup %4439  ;;  %v3100_v39 = vadd.f32 1.0, %v4438_v24 }
 0x88f   :  { %v3086_v21 = vadd.f32 %v3084_v16, %v3077_v50  ;;  %v3099_v0 = vadd.f32 1.0, %v4440_v38 }
 0x890   :  { %v3147_v12 = vrot.slane %v3085_v18, 6  ;;  %4441 = vrcp.f32 %v3100_v39 }
 0x891   :  { %v3148_v36 = vrot.slane %v3086_v21, 5  ;;  %4443 = vrcp.f32 %v3099_v0 }
 0x893   :  { %v3018_v41 = vpop.f32.mrf.mxu1  ;;  %v3149_v32 = vsel %vm1130_vm9, %v3148_v36, %v3147_v12 }
 0x894   :  { %v3019_v49 = vadd.f32 %v3018_v41, %v5548_v46  ;;  %v3151_v43 = vmul.f32 %v8454_v7, %v3149_v32 }
 0x895   :  { %v3020_v45 = vpop.f32.mrf.mxu1 }
 0x896   :  { %v3106_v60 = vrot.slane %v3019_v49, 7  ;;  %v3110_v55 = vadd.f32 %v3019_v49, %v5566_v54  ;;  %v3169_v5 = vrot.slane %v3151_v43, %v5551_v30  ;;  %v3021_v7 = vadd.f32 %v3020_v45, %v5579_v56 }
 0x897   :  { %v3022_v27 = vpop.f32.mrf.mxu1 }
 0x898   :  { %v3109_v47 = vadd.f32 %v3106_v60, %v5563_v42  ;;  %v3917_v37 = vmul.f32 -1.442695, %v3110_v55  ;;  %v3170_v33 = vcombine.high %v3169_v5, %v3169_v5  ;;  %3918 = vst.sshfl [vmem:[%s7660_s8 + $0x6] sm:$0x1 pattern:$0x73625140] %v3169_v5 }
 0x899   :  { %v3023_v63 = vpop.f32.mrf.mxu1  ;;  %v3124_v49 = vrot.slane %v3021_v7, 7  ;;  %v3138_v55 = vrot.slane %v7356_v44, 7 }
 0x89a   :  { %v3916_v41 = vmul.f32 -1.442695, %v3109_v47  ;;  %4445 = vpow2.f32 %v3917_v37  ;;  %3919 = vst.sshfl [vmem:[%s7660_s8 + $0x16] sm:$0x1 pattern:$0x73625140] %v3170_v33 }
 0x89c   :  { %4447 = vpow2.f32 %v3916_v41 }
 0x89d   :  { %v4442_v0 = vpop.eup %4441 }
 0x89e   :  { %v4444_v32 = vpop.eup %4443  ;;  %v3128_v39 = vmul.f32 %v4442_v0, %v3021_v7 }
 0x89f   :  { %v3127_v17 = vmul.f32 %v4444_v32, %v3124_v49  ;;  %v8455_v32 = vld [vmem:[#allocation21_spill] sm:$0xff] }
 0x8a0   :  { %v3130_v21 = vadd.f32 %v3128_v39, %v8239_v15  ;;  %v3152_v39 = vmul.f32 %v7354_v23, %v8455_v32 }
 0x8a1   :  { %v3129_v12 = vadd.f32 %v3127_v17, %v8160_v29  ;;  %v8456_v17 = vunpack.i.h.bf16 %v8453_v52 }
 0x8a7   :  { %v4446_v16 = vpop.eup %4445 }
 0x8a8   :  { %v3118_v50 = vadd.f32 1.0, %v4446_v16 }
 0x8a9   :  { %v4448_v18 = vpop.eup %4447 }
 0x8aa   :  { %v3117_v24 = vadd.f32 1.0, %v4448_v18  ;;  %4449 = vrcp.f32 %v3118_v50  ;;  %v8457_v50 = vld [vmem:[#allocation19_spill] sm:$0xff] }
 0x8ab   :  { %v3160_v18 = vmul.f32 %v7356_v44, %v8457_v50 }
 0x8ac   :  { %4451 = vrcp.f32 %v3117_v24 }
 0x8ad   :  { %4453 = vtanh.f32 %v3130_v21  ;;  %v7508_v21 = vadd.f32 %v3152_v39, %v3151_v43  ;;  %v8462_v43 = vld [vmem:[#allocation7_spill] sm:$0xff] }
 0x8ae   :  { %4455 = vtanh.f32 %v3129_v12 }
 0x8af   :  { %v3216_v52 = vpack.c.bf16 %v7508_v21, %v7508_v21 }
 0x8b7   :  { %v4450_v38 = vpop.eup %4449 }
 0x8b8   :  { %v3134_v36 = vsub.f32 1.0, %v4450_v38  ;;  %v3142_v33 = vmul.f32 %v4450_v38, %v7356_v44  ;;  %v4174_v44 = vld [vmem:[%s7661_s6 + $0x8] sm:$0xff]  }
 0x8b9   :  { %v4452_v45 = vpop.eup %4451 }
 0x8ba   :  { %v4454_v60 = vpop.eup %4453  ;;  %v3133_v27 = vsub.f32 1.0, %v4452_v45  ;;  %v3141_v63 = vmul.f32 %v4452_v45, %v3138_v55  ;;  %v8463_v45 = vld [vmem:[#allocation9_spill] sm:$0xff] }
 0x8bb   :  { %v4456_v5 = vpop.eup %4455  ;;  %v3136_v37 = vmul.f32 %v4454_v60, %v3134_v36 }
 0x8bc   :  { %v3135_v47 = vmul.f32 %v4456_v5, %v3133_v27 }
 0x8bd   :  { %v3144_v7 = vadd.f32 %v3142_v33, %v3136_v37  ;;  %v8464_v33 = vld [vmem:[#allocation11_spill] sm:$0xff] }
 0x8be   :  { %v3143_v41 = vadd.f32 %v3141_v63, %v3135_v47 }
 0x8c0   :  { %v3156_v49 = vrot.slane %v3143_v41, 1 }
 0x8c2   :  { %v3157_v0 = vsel %vm1130_vm9, %v3144_v7, %v3156_v49  ;;  %v8465_v7 = vld [vmem:[#allocation13_spill] sm:$0xff] }
 0x8c3   :  { %v3159_v16 = vmul.f32 %v8456_v17, %v3157_v0 }
 0x8c5   :  { %v7510_v24 = vadd.f32 %v3160_v18, %v3159_v16  ;;  %v3196_v12 = vrot.slane %v3159_v16, %v5551_v30 }
 0x8c7   :  { %v3197_v38 = vcombine.high %v3196_v12, %v3196_v12  ;;  %3920 = vst.sshfl [vmem:[%s7660_s8 + $0x9] sm:$0x1 pattern:$0x73625140] %v3196_v12  ;;  %v3217_v23 = vpack.c.bf16 %v7510_v24, %v7510_v24 }
 0x8c9   :  { %3921 = vst.sshfl [vmem:[%s7660_s8 + $0x19] sm:$0x1 pattern:$0x73625140] %v3197_v38  ;;  %3250 = vmatprep.mubr.bf16.mxu0 %v3217_v23  ;;  %3291 = vmatprep.mubr.bf16.mxu1 %v3217_v23  ;;  %v8466_v38 = vld [vmem:[#allocation2_spill] sm:$0xff] }
 0x8ca   :  { %3251 = vmatmul.mubr.bf16.vlgmr.msra.gmra.mxu0 %v3216_v52  ;;  %3292 = vmatmul.mubr.bf16.vlgmr.msra.gmra.mxu1 %v3216_v52 }
 0x8cb   :  { %3301 = vmatpush1.bf16.msra.mxu0 %v6971_v61  ;;  %3332 = vmatprep.mubr.bf16.mxu0 %v3217_v23  ;;  %v8458_v61 = vld [vmem:[#allocation69_spill] sm:$0xff] }
 0x8cc   :  { %3302 = vmatprep.subr.bf16.mxu0 %v6977_v9  ;;  %v8459_v9 = vld [vmem:[#allocation72_spill] sm:$0xff] }
 0x8cf   :  { %3303 = vmatpush1.bf16.msra.mxu0 %v6985_v8  ;;  %v4161_v8 = vld [vmem:[%s7661_s6 + $0x78] sm:$0xff]  }
 0x8d0   :  { %3304 = vmatprep.subr.bf16.mxu0 %v6991_v2  ;;  %v4162_v2 = vld [vmem:[%s7661_s6 + $0x38] sm:$0xff]   ;;  %3951 = vmatprep.subr.bf16.mxu1 %v4161_v8 }
 0x8d1   :  { %3952 = vmatpush3.bf16.msra.mxu1 %v4162_v2 }
 0x8d3   :  { %3305 = vmatpush1.bf16.msra.mxu0 %v6999_v14  ;;  %v4163_v14 = vld [vmem:[%s7661_s6 + $0x70] sm:$0xff]  }
 0x8d4   :  { %3306 = vmatprep.subr.bf16.mxu0 %v7005_v3  ;;  %v4164_v3 = vld [vmem:[%s7661_s6 + $0x30] sm:$0xff]   ;;  %3953 = vmatprep.subr.bf16.mxu1 %v4163_v14 }
 0x8d5   :  { %3954 = vmatpush3.bf16.msra.mxu1 %v4164_v3 }
 0x8d7   :  { %3307 = vmatpush1.bf16.msra.mxu0 %v7013_v58  ;;  %v4165_v58 = vld [vmem:[%s7661_s6 + $0x68] sm:$0xff]  }
 0x8d8   :  { %3308 = vmatprep.subr.bf16.mxu0 %v7019_v34  ;;  %v4166_v34 = vld [vmem:[%s7661_s6 + $0x28] sm:$0xff]   ;;  %3955 = vmatprep.subr.bf16.mxu1 %v4165_v58 }
 0x8d9   :  { %3956 = vmatpush3.bf16.msra.mxu1 %v4166_v34 }
 0x8db   :  { %3309 = vmatpush1.bf16.msra.mxu0 %v7027_v10  ;;  %v4167_v10 = vld [vmem:[%s7661_s6 + $0x60] sm:$0xff]  }
 0x8dc   :  { %3310 = vmatprep.subr.bf16.mxu0 %v7033_v13  ;;  %v4168_v13 = vld [vmem:[%s7661_s6 + $0x20] sm:$0xff]   ;;  %3957 = vmatprep.subr.bf16.mxu1 %v4167_v10 }
 0x8dd   :  { %3958 = vmatpush3.bf16.msra.mxu1 %v4168_v13 }
 0x8df   :  { %3311 = vmatpush1.bf16.msra.mxu0 %v7041_v53  ;;  %v4169_v53 = vld [vmem:[%s7661_s6 + $0x58] sm:$0xff]  }
 0x8e0   :  { %3312 = vmatprep.subr.bf16.mxu0 %v7047_v6  ;;  %v4170_v6 = vld [vmem:[%s7661_s6 + $0x18] sm:$0xff]   ;;  %3959 = vmatprep.subr.bf16.mxu1 %v4169_v53 }
 0x8e1   :  { %3960 = vmatpush3.bf16.msra.mxu1 %v4170_v6  ;;  %v8468_v53 = vld [vmem:[#allocation33_spill] sm:$0xff] }
 0x8e3   :  { %3313 = vmatpush1.bf16.msra.mxu0 %v7055_v19  ;;  %v4171_v19 = vld [vmem:[%s7661_s6 + $0x50] sm:$0xff]  }
 0x8e4   :  { %3314 = vmatprep.subr.bf16.mxu0 %v7061_v57  ;;  %v4172_v57 = vld [vmem:[%s7661_s6 + $0x10] sm:$0xff]   ;;  %3961 = vmatprep.subr.bf16.mxu1 %v4171_v19 }
 0x8e5   :  { %3962 = vmatpush3.bf16.msra.mxu1 %v4172_v57  ;;  %v8469_v19 = vld [vmem:[#allocation32_spill] sm:$0xff] }
 0x8e7   :  { %3315 = vmatpush1.bf16.msra.mxu0 %v7069_v59  ;;  %v4173_v59 = vld [vmem:[%s7661_s6 + $0x48] sm:$0xff]  }
 0x8e8   :  { %3316 = vmatprep.subr.bf16.mxu0 %v8375_v28  ;;  %3963 = vmatprep.subr.bf16.mxu1 %v4173_v59  ;;  %v4175_v28 = vld [vmem:[%s7661_s6 + $0x40] sm:$0xff]   ;;  %v8470_v59 = vld [vmem:[#allocation35_spill] sm:$0xff] }
 0x8e9   :  { %3964 = vmatpush3.bf16.msra.mxu1 %v4174_v44 }
 0x8ea   :  { %3965 = vmatprep.subr.bf16.mxu1 %v4175_v28  ;;  %v8471_v28 = vld [vmem:[#allocation34_spill] sm:$0xff] }
 0x8eb   :  { %3317 = vmatpush2.bf16.msra.mxu0 %v8378_v40  ;;  %v4176_v40 = vld [vmem:[%s7661_s6] sm:$0xff]  }
 0x8ec   :  { %3318 = vmatprep.subr.bf16.mxu0 %v8379_v22 }
 0x8ed   :  { %3966 = vmatpush3.bf16.msra.mxu1 %v4176_v40 }
 0x8ef   :  { %3319 = vmatpush2.bf16.msra.mxu0 %v8382_v11 }
 0x8f0   :  { %3320 = vmatprep.subr.bf16.mxu0 %v8383_v26  ;;  %v8460_v26 = vld [vmem:[#allocation5_spill] sm:$0xff] }
 0x8f3   :  { %3321 = vmatpush2.bf16.msra.mxu0 %v8386_v31 }
 0x8f4   :  { %3322 = vmatprep.subr.bf16.mxu0 %v8387_v35 }
 0x8f7   :  { %3323 = vmatpush2.bf16.msra.mxu0 %v8390_v25 }
 0x8f8   :  { %3324 = vmatprep.subr.bf16.mxu0 %v8391_v48 }
 0x8fb   :  { %3325 = vmatpush2.bf16.msra.mxu0 %v8394_v20 }
 0x8fc   :  { %3326 = vmatprep.subr.bf16.mxu0 %v8395_v4  ;;  %v8461_v4 = vld [vmem:[#allocation6_spill] sm:$0xff] }
 0x8ff   :  { %3327 = vmatpush2.bf16.msra.mxu0 %v8398_v1 }
 0x900   :  { %3328 = vmatprep.subr.bf16.mxu0 %v8399_v62 }
 0x903   :  { %3329 = vmatpush2.bf16.msra.mxu0 %v8402_v51 }
 0x904   :  { %3330 = vmatprep.subr.bf16.mxu0 %v8458_v61 }
 0x907   :  { %3331 = vmatpush2.bf16.msra.mxu0 %v8459_v9 }
 0x90a   :  { %3333 = vmatmul.mubr.bf16.vlgmr.msra.gmra.mxu0 %v3216_v52  ;;  %v8467_v52 = vld [vmem:[#allocation31_spill] sm:$0xff] }
 0x98a   :  { %v3252_v22 = vpop.f32.mrf.mxu0  ;;  %v3293_v11 = vpop.f32.mrf.mxu1 }
 0x98b   :  { %v3253_v31 = vadd.f32 %v3252_v22, %v8460_v26  ;;  %v3294_v23 = vadd.f32 %v3293_v11, %v8466_v38 }
 0x98c   :  { %v3254_v35 = vpop.f32.mrf.mxu0  ;;  %v3295_v25 = vpop.f32.mrf.mxu1 }
 0x98d   :  { %v3342_v48 = vrot.slane %v3253_v31, 1  ;;  %v3343_v20 = vrot.slane %v3253_v31, 2  ;;  %v3255_v1 = vadd.f32 %v3254_v35, %v8461_v4  ;;  %v3296_v61 = vadd.f32 %v3295_v25, %v8467_v52 }
 0x98e   :  { %v3256_v62 = vpop.f32.mrf.mxu0  ;;  %v3297_v51 = vpop.f32.mrf.mxu1  ;;  %v3380_v2 = vrot.slane %v3294_v23, 1  ;;  %v3381_v58 = vrot.slane %v3294_v23, 2  ;;  %v3395_v25 = vrot.slane %v7508_v21, 1  ;;  %v3396_v4 = vrot.slane %v7508_v21, 2 }
 0x98f   :  { %v3346_v36 = vadd.f32 %v3342_v48, %v8462_v43  ;;  %v3347_v60 = vadd.f32 %v3343_v20, %v8463_v45  ;;  %v3361_v37 = vrot.slane %v3255_v1, 1  ;;  %v3362_v63 = vrot.slane %v3255_v1, 2 }
 0x990   :  { %v3257_v55 = vpop.f32.mrf.mxu0  ;;  %v3298_v27 = vpop.f32.mrf.mxu1  ;;  %v3404_v14 = vrot.slane %v3296_v61, 1  ;;  %v3407_v6 = vadd.f32 %v3296_v61, %v8468_v53 }
 0x991   :  { %v3922_v5 = vmul.f32 -1.442695, %v3346_v36  ;;  %v3923_v47 = vmul.f32 -1.442695, %v3347_v60  ;;  %v3365_v41 = vadd.f32 %v3361_v37, %v8464_v33  ;;  %v3366_v49 = vadd.f32 %v3362_v63, %v8465_v7 }
 0x992   :  { %v3408_v44 = vadd.f32 %v3404_v14, %v8470_v59  ;;  %v3926_v22 = vmul.f32 -1.442695, %v3407_v6  ;;  %v3454_v59 = vrot.slane %v7510_v24, 1 }
 0x993   :  { %4457 = vpow2.f32 %v3922_v5  ;;  %v3924_v0 = vmul.f32 -1.442695, %v3365_v41  ;;  %v3925_v32 = vmul.f32 -1.442695, %v3366_v49  ;;  %v8472_v49 = vld [vmem:[#allocation36_spill] sm:$0xff] }
 0x994   :  { %4459 = vpow2.f32 %v3923_v47  ;;  %v3927_v11 = vmul.f32 -1.442695, %v3408_v44 }
 0x995   :  { %4461 = vpow2.f32 %v3924_v0  ;;  %v8473_v0 = vunpack.i.l.bf16 %v8472_v49 }
 0x996   :  { %4463 = vpow2.f32 %v3925_v32 }
 0x9a0   :  { %v4458_v39 = vpop.eup %4457 }
 0x9a1   :  { %v4460_v17 = vpop.eup %4459  ;;  %v3354_v16 = vadd.f32 1.0, %v4458_v39 }
 0x9a2   :  { %v3355_v50 = vadd.f32 1.0, %v4460_v17  ;;  %v4462_v18 = vpop.eup %4461 }
 0x9a3   :  { %4465 = vrcp.f32 %v3354_v16  ;;  %v4464_v12 = vpop.eup %4463  ;;  %v3373_v9 = vadd.f32 1.0, %v4462_v18 }
 0x9a4   :  { %4467 = vrcp.f32 %v3355_v50  ;;  %v3374_v8 = vadd.f32 1.0, %v4464_v12 }
 0x9a5   :  { %4469 = vrcp.f32 %v3373_v9 }
 0x9a6   :  { %4471 = vrcp.f32 %v3374_v8 }
 0x9b0   :  { %v4466_v3 = vpop.eup %4465 }
 0x9b1   :  { %v4468_v34 = vpop.eup %4467  ;;  %v3384_v10 = vmul.f32 %v4466_v3, %v3380_v2 }
 0x9b2   :  { %v3385_v13 = vmul.f32 %v4468_v34, %v3381_v58  ;;  %v4470_v26 = vpop.eup %4469 }
 0x9b3   :  { %v3386_v57 = vadd.f32 %v3384_v10, %v8469_v19  ;;  %v4472_v31 = vpop.eup %4471  ;;  %v3390_v35 = vsub.f32 1.0, %v4470_v26  ;;  %v3399_v51 = vmul.f32 %v4470_v26, %v3395_v25 }
 0x9b4   :  { %v3387_v40 = vadd.f32 %v3385_v13, %v8471_v28  ;;  %v3391_v20 = vsub.f32 1.0, %v4472_v31  ;;  %v3400_v36 = vmul.f32 %v4472_v31, %v3396_v4  ;;  %v8476_v4 = vld [vmem:[#allocation37_spill] sm:$0xff] }
 0x9b5   :  { %4473 = vtanh.f32 %v3386_v57 }
 0x9b6   :  { %4475 = vtanh.f32 %v3387_v40 }
 0x9b7   :  { %4477 = vpow2.f32 %v3926_v22 }
 0x9b8   :  { %4479 = vpow2.f32 %v3927_v11 }
 0x9c2   :  { %v4474_v48 = vpop.eup %4473 }
 0x9c3   :  { %v4476_v1 = vpop.eup %4475  ;;  %v3392_v62 = vmul.f32 %v4474_v48, %v3390_v35  ;;  %v8474_v35 = vld [vmem:[#allocation38_spill] sm:$0xff]  ;;  %v8475_v48 = vunpack.i.h.bf16 %v8472_v49 }
 0x9c4   :  { %v3393_v43 = vmul.f32 %v4476_v1, %v3391_v20  ;;  %v4478_v55 = vpop.eup %4477  ;;  %v3468_v25 = vmul.f32 %v7508_v21, %v8474_v35  ;;  %v3476_v1 = vmul.f32 %v7510_v24, %v8476_v4 }
 0x9c5   :  { %v3401_v45 = vadd.f32 %v3399_v51, %v3392_v62  ;;  %v4480_v5 = vpop.eup %4479  ;;  %v3415_v37 = vadd.f32 1.0, %v4478_v55 }
 0x9c6   :  { %v3402_v60 = vadd.f32 %v3400_v36, %v3393_v43  ;;  %v3416_v41 = vadd.f32 1.0, %v4480_v5 }
 0x9c7   :  { %v3463_v27 = vrot.slane %v3401_v45, 7  ;;  %4481 = vrcp.f32 %v3415_v37 }
 0x9c8   :  { %v3464_v47 = vrot.slane %v3402_v60, 6  ;;  %4483 = vrcp.f32 %v3416_v41 }
 0x9ca   :  { %v3334_v63 = vpop.f32.mrf.mxu0  ;;  %v3465_v33 = vsel %vm1130_vm9, %v3464_v47, %v3463_v27 }
 0x9cb   :  { %v3335_v7 = vadd.f32 %v3334_v63, %v5548_v46  ;;  %v3467_v32 = vmul.f32 %v8473_v0, %v3465_v33 }
 0x9cc   :  { %v3336_v39 = vpop.f32.mrf.mxu0 }
 0x9cd   :  { %v3422_v17 = vrot.slane %v3335_v7, 1  ;;  %v3425_v16 = vadd.f32 %v3335_v7, %v5563_v42  ;;  %v3485_v18 = vrot.slane %v3467_v32, %v5551_v30  ;;  %v3337_v42 = vadd.f32 %v3336_v39, %v5579_v56 }
 0x9ce   :  { %v3338_v50 = vpop.f32.mrf.mxu0  ;;  %v3469_v62 = vadd.f32 %v3468_v25, %v3467_v32 }
 0x9cf   :  { %v3426_v12 = vadd.f32 %v3422_v17, %v5566_v54  ;;  %v3928_v38 = vmul.f32 -1.442695, %v3425_v16  ;;  %v3486_v52 = vcombine.high %v3485_v18, %v3485_v18  ;;  %3930 = vst.sshfl [vmem:[%s7660_s8 + $0x7] sm:$0x1 pattern:$0x73625140] %v3485_v18 }
 0x9d0   :  { %v3339_v23 = vpop.f32.mrf.mxu0  ;;  %v3440_v61 = vrot.slane %v3337_v42, 1  ;;  %v3532_v60 = vpack.c.bf16 %v3469_v62, %v3469_v62 }
 0x9d1   :  { %4485 = vpow2.f32 %v3928_v38  ;;  %v3929_v46 = vmul.f32 -1.442695, %v3426_v12  ;;  %3931 = vst.sshfl [vmem:[%s7660_s8 + $0x17] sm:$0x1 pattern:$0x73625140] %v3486_v52 }
 0x9d3   :  { %4487 = vpow2.f32 %v3929_v46 }
 0x9d4   :  { %v4482_v9 = vpop.eup %4481 }
 0x9d5   :  { %v4484_v8 = vpop.eup %4483  ;;  %v3443_v54 = vmul.f32 %v4482_v9, %v3337_v42 }
 0x9d6   :  { %v3444_v2 = vmul.f32 %v4484_v8, %v3440_v61 }
 0x9d7   :  { %v3445_v34 = vadd.f32 %v3443_v54, %v8160_v29 }
 0x9d8   :  { %v3446_v13 = vadd.f32 %v3444_v2, %v8239_v15 }
 0x9de   :  { %v4486_v14 = vpop.eup %4485 }
 0x9df   :  { %v3433_v3 = vadd.f32 1.0, %v4486_v14 }
 0x9e0   :  { %v4488_v58 = vpop.eup %4487 }
 0x9e1   :  { %v3434_v10 = vadd.f32 1.0, %v4488_v58  ;;  %4489 = vrcp.f32 %v3433_v3 }
 0x9e3   :  { %4491 = vrcp.f32 %v3434_v10 }
 0x9e4   :  { %4493 = vtanh.f32 %v3445_v34 }
 0x9e5   :  { %4495 = vtanh.f32 %v3446_v13 }
 0x9ee   :  { %v4490_v53 = vpop.eup %4489 }
 0x9ef   :  { %v3449_v6 = vsub.f32 1.0, %v4490_v53  ;;  %v3457_v29 = vmul.f32 %v4490_v53, %v7510_v24  ;;  %v3934_v24 = vld [vmem:[%s7662_s7] ss:$0 sm:$0xff] }
 0x9f0   :  { %v4492_v56 = vpop.eup %4491 }
 0x9f1   :  { %v4494_v19 = vpop.eup %4493  ;;  %v3450_v57 = vsub.f32 1.0, %v4492_v56  ;;  %v3458_v22 = vmul.f32 %v4492_v56, %v3454_v59 }
 0x9f2   :  { %v4496_v44 = vpop.eup %4495  ;;  %v3451_v28 = vmul.f32 %v4494_v19, %v3449_v6 }
 0x9f3   :  { %v3452_v40 = vmul.f32 %v4496_v44, %v3450_v57 }
 0x9f4   :  { %v3459_v26 = vadd.f32 %v3457_v29, %v3451_v28 }
 0x9f5   :  { %v3460_v11 = vadd.f32 %v3458_v22, %v3452_v40 }
 0x9f7   :  { %v3472_v31 = vrot.slane %v3460_v11, 7 }
 0x9f9   :  { %v3473_v15 = vsel %vm1130_vm9, %v3472_v31, %v3459_v26 }
 0x9fa   :  { %v3475_v20 = vmul.f32 %v8475_v48, %v3473_v15 }
 0x9fc   :  { %v3477_v51 = vadd.f32 %v3476_v1, %v3475_v20  ;;  %v3512_v43 = vrot.slane %v3475_v20, %v5551_v30 }
 0x9fe   :  { %v3513_v36 = vcombine.high %v3512_v43, %v3512_v43  ;;  %3932 = vst.sshfl [vmem:[%s7660_s8 + $0x8] sm:$0x1 pattern:$0x73625140] %v3512_v43  ;;  %v3533_v45 = vpack.c.bf16 %v3477_v51, %v3477_v51 }
 0xa00   :  { %3933 = vst.sshfl [vmem:[%s7660_s8 + $0x18] sm:$0x1 pattern:$0x73625140] %v3513_v36  ;;  %3701 = vmatprep.mubr.bf16.mxu1 %v3533_v45 }
 0xa01   :  { %3702 = vmatmul.mubr.bf16.vlgmr.msra.gmra.mxu1 %v3532_v60 }
 0xac1   :  { %v3967_v21 = vpop.f32.mrf.mxu1 }
 0xac3   :  { %v3968_v55 = vpop.f32.mrf.mxu1 }
 0xac4   :  { %v3969_v30 = vadd.f32 %v3968_v55, %v3967_v21 }
 0xac5   :  { %v3970_v27 = vpop.f32.mrf.mxu1 }
 0xac6   :  { %v3704_v5 = vadd.f32 %v3969_v30, %v3934_v24 }
 0xac7   :  { %v3971_v47 = vpop.f32.mrf.mxu1 }
 0xac8   :  { %4497 = vtanh.f32 %v3704_v5 }
 0xad5   :  { %v4498_v37 = vpop.eup %4497 }
 0xad6   :  { %3710 = vst [vmem:[%s7663_s9] sm:$0x3] %v4498_v37 }

</bundles_post_ra>
